<compile_context>
chip_gen: v7x
topology: tpu7x:2x2x1
jax: 0.10.0
libtpu: 0.0.40
codegen_flags: <defaults>
</compile_context>

<pallas_src>
import functools

import jax
import jax.numpy as jnp
from jax.experimental import pallas as pl
from jax.experimental.pallas import tpu as pltpu


# ----------------------------------------------------------------------------
# Fused kernel: one (batch element, query tile) per grid step.
# ----------------------------------------------------------------------------
def _fused_ref_unet_kernel(coef_ref, sample_ref, cond_ref, noise_ref,
                           wi_ref, bi_ref, wq_ref, wk_ref, wv_ref,
                           wo_ref, bo_ref, wout_ref, bout_ref,
                           o_ref, *, heads, tq):
    f32 = jnp.float32
    bf16 = jnp.bfloat16
    bidx = pl.program_id(0)
    qidx = pl.program_id(1)

    # DDPM add_noise coefficients for this batch element (f32 scalars in SMEM).
    a = coef_ref[bidx, 0]      # sqrt(alphas_cumprod[t])
    b = coef_ref[bidx, 1]      # sqrt(1 - alphas_cumprod[t])

    # Shared weights (bf16 MXU operands, f32 accumulation). Casts hoisted once.
    w_in = wi_ref[...].astype(bf16)          # (C, D)
    b_in = bi_ref[...]                       # (1, D) f32
    wq = wq_ref[...].astype(bf16)            # (D, D), 1/sqrt(hd) pre-folded
    wk = wk_ref[...].astype(bf16)            # (D, D)
    wv = wv_ref[...].astype(bf16)            # (D, D)

    def conv_in(x_cs_bf16):
        # x: (C, n) bf16 -> (n, D) f32, contraction over C (trans-lhs dot_general).
        return jax.lax.dot_general(
            x_cs_bf16, w_in, (((0,), (0,)), ((), ())),
            preferred_element_type=f32) + b_in

    S = sample_ref.shape[-1]

    # ---------- add_noise + fused conv_in (write branch || read branch) -----
    noisy_cs = cond_ref[0] * a + noise_ref[0] * b            # (C, S) f32
    x_cat = jnp.concatenate([noisy_cs, sample_ref[0]], axis=1)   # (C, 2S)
    hs_cat = conv_in(x_cat.astype(bf16))                     # (2S, D) f32
    hs_w_b = hs_cat[:S].astype(bf16)   # write pass hidden states (noisy cond)
    hs_b = hs_cat[S:].astype(bf16)     # read pass hidden states (sample)

    # Write pass caches *projected* reference K/V (exactly equivalent to caching
    # hidden states and concatenating, since to_k/to_v are bias-free & linear).
    k_refp = jnp.dot(hs_w_b, wk, preferred_element_type=f32)   # (S, D)
    v_refp = jnp.dot(hs_w_b, wv, preferred_element_type=f32)
    # Read pass current K/V over the full sequence.
    k_cur = jnp.dot(hs_b, wk, preferred_element_type=f32)      # (S, D)
    v_cur = jnp.dot(hs_b, wv, preferred_element_type=f32)

    # cat([hidden_states, reference], dim=1) for the 'r' mode, cast to bf16 ONCE.
    k_all = jnp.concatenate([k_cur, k_refp], axis=0).astype(bf16)   # (2S, D)
    v_all = jnp.concatenate([v_cur, v_refp], axis=0).astype(bf16)   # (2S, D)

    # ---------- query tile for this grid step --------------------------------
    q_start = pl.multiple_of(qidx * tq, tq)
    x_tile = sample_ref[0, :, pl.ds(q_start, tq)]             # (C, tq) f32
    hs_tile = conv_in(x_tile.astype(bf16))                    # (tq, D) f32 residual
    q = jnp.dot(hs_tile.astype(bf16), wq,
                preferred_element_type=f32).astype(bf16)      # (tq, D) bf16

    d_model = q.shape[-1]
    hd = d_model // heads

    # ---------- multi-head SDPA over [current | reference] keys --------------
    head_outs = []
    for h in range(heads):                   # heads is a static python int
        sl = slice(h * hd, (h + 1) * hd)
        s = jax.lax.dot_general(q[:, sl], k_all[:, sl],
                                (((1,), (1,)), ((), ())),
                                preferred_element_type=f32)   # (tq, 2S)
        m = jnp.max(s, axis=-1, keepdims=True)
        e = jnp.exp(s - m)                                    # f32 softmax
        denom = jnp.sum(e, axis=-1, keepdims=True)
        pv = jnp.dot(e.astype(bf16), v_all[:, sl],
                     preferred_element_type=f32)              # (tq, hd)
        head_outs.append(pv * pl.reciprocal(denom, approx=True))

    out_all = jnp.concatenate(head_outs, axis=-1)             # (tq, D)
    # to_out projection (single matmul), bias, residual connection.
    hidden = jnp.dot(out_all.astype(bf16), wo_ref[...].astype(bf16),
                     preferred_element_type=f32) + bo_ref[...] + hs_tile

    # conv_out directly in (C, tq) layout -> 128-lane-dense output store.
    y_cs = jax.lax.dot_general(
        wout_ref[...].astype(bf16), hidden.astype(bf16),
        (((0,), (1,)), ((), ())), preferred_element_type=f32) + bout_ref[...]
    o_ref[0] = y_cs.astype(o_ref.dtype)                       # (C, tq)


# ----------------------------------------------------------------------------
# Wrapper: one pallas_call for the whole forward pass.
# ----------------------------------------------------------------------------
def fused_ref_unet(sample, cond_lat, noise, coefs, params, *, heads, tq=128):
    B, C, H, W = sample.shape
    S = H * W
    assert S % tq == 0, (S, tq)
    D = params["wq"].shape[0]

    # NCHW -> (B, C, H*W): free reshape, H*W becomes the lane-dense axis.
    sample_f = sample.reshape(B, C, S)
    cond_f = cond_lat.reshape(B, C, S)
    noise_f = noise.reshape(B, C, S)

    kern = functools.partial(_fused_ref_unet_kernel, heads=heads, tq=tq)

    def rep(shape):  # whole-array operand, same block every grid step
        n = len(shape)
        return pl.BlockSpec(shape, lambda b, q, _n=n: (0,) * _n)

    out = pl.pallas_call(
        kern,
        out_shape=jax.ShapeDtypeStruct((B, C, S), sample.dtype),
        grid=(B, S // tq),
        in_specs=[
            pl.BlockSpec(memory_space=pltpu.MemorySpace.SMEM),   # coefs (B, 2)
            pl.BlockSpec((1, C, S), lambda b, q: (b, 0, 0)),     # sample
            pl.BlockSpec((1, C, S), lambda b, q: (b, 0, 0)),     # cond_lat
            pl.BlockSpec((1, C, S), lambda b, q: (b, 0, 0)),     # noise
            rep((C, D)), rep((1, D)),                            # conv_in w, b
            rep((D, D)), rep((D, D)), rep((D, D)),               # wq, wk, wv
            rep((D, D)), rep((1, D)),                            # wo, bo
            rep((D, C)), rep((C, 1)),                            # conv_out w, b
        ],
        out_specs=pl.BlockSpec((1, C, tq), lambda b, q: (b, 0, q)),
        compiler_params=pltpu.CompilerParams(
            dimension_semantics=("parallel", "parallel")),   # batch x query tiles
    )(coefs, sample_f, cond_f, noise_f,
      params["conv_in_w"], params["conv_in_b"].reshape(1, D),
      params["wq"], params["wk"], params["wv"],
      params["wo"], params["bo"],
      params["conv_out_w"], params["conv_out_b"].reshape(C, 1))
    return out.reshape(B, C, H, W)


def ref_only_noised_unet_forward(params, sample, timestep, encoder_hidden_states,
                                 cond_lat, noise, alphas_cumprod, *, heads):
    del encoder_hidden_states  # TODO(synk): cross-attention (attn2) of the real UNet not reproduced.
    # Scheduler math in f32 regardless of input dtype.
    acp = alphas_cumprod[timestep].astype(jnp.float32)                 # (B,)
    coefs = jnp.stack([jnp.sqrt(acp), jnp.sqrt(1.0 - acp)], axis=-1)   # (B, 2)
    return fused_ref_unet(sample, cond_lat, noise, coefs, params, heads=heads)


# ----------------------------------------------------------------------------
# Deterministic parameter construction and driver
# ----------------------------------------------------------------------------
def make_params(key, c_in=4, d_model=32, heads=4):
    ks = jax.random.split(key, 6)
    s = 0.05
    hd = d_model // heads
    # One-time weight transform: 1/sqrt(head_dim) attention scale folded into to_q.
    q_scale = 1.0 / float(hd) ** 0.5
    return {
        "conv_in_w": (s * jax.random.normal(ks[0], (c_in, d_model))).astype(jnp.float32),
        "conv_in_b": jnp.zeros((d_model,), jnp.float32),
        "wq": (s * q_scale * jax.random.normal(ks[1], (d_model, d_model))).astype(jnp.float32),
        "wk": (s * jax.random.normal(ks[2], (d_model, d_model))).astype(jnp.float32),
        "wv": (s * jax.random.normal(ks[3], (d_model, d_model))).astype(jnp.float32),
        "wo": (s * jax.random.normal(ks[4], (d_model, d_model))).astype(jnp.float32),
        "bo": jnp.zeros((1, d_model), jnp.float32),
        "conv_out_w": (s * jax.random.normal(ks[5], (d_model, c_in))).astype(jnp.float32),
        "conv_out_b": jnp.zeros((c_in,), jnp.float32),
    }


if __name__ == "__main__":
    B, C, H, W = 2, 4, 16, 16
    SEQ, ENC = 8, 32
    D_MODEL, HEADS = 32, 4

    key = jax.random.PRNGKey(0)
    k_sample, k_cond, k_noise, k_enc, k_params = jax.random.split(key, 5)

    sample = jax.random.normal(k_sample, (B, C, H, W), jnp.float32)
    cond_lat = jax.random.normal(k_cond, (B, C, H, W), jnp.float32)
    noise = jax.random.normal(k_noise, (B, C, H, W), jnp.float32)  # torch.randn_like(cond_lat)
    encoder_hidden_states = jax.random.normal(k_enc, (B, SEQ, ENC), jnp.float32)
    timestep = jnp.array([10, 500], jnp.int32)

    # DDPM scheduler tables (standard linear beta schedule).
    betas = jnp.linspace(1e-4, 0.02, 1000, dtype=jnp.float32)
    alphas_cumprod = jnp.cumprod(1.0 - betas)

    params = make_params(k_params, c_in=C, d_model=D_MODEL, heads=HEADS)

    fwd = jax.jit(functools.partial(ref_only_noised_unet_forward, heads=HEADS))
    out = fwd(params, sample, timestep, encoder_hidden_states,
              cond_lat, noise, alphas_cumprod)
    jax.block_until_ready(out)

    assert out.shape == (B, C, H, W), out.shape
    assert bool(jnp.all(jnp.isfinite(out)))
    print("KERNEL_OK")
</pallas_src>

<mosaic_0001>
module attributes {stable_mosaic.version = 11 : i64} {
  func.func @_fused_ref_unet_kernel(%arg0: i32, %arg1: i32, %arg2: memref<2x2xf32, #tpu.memory_space<smem>>, %arg3: memref<1x4x256xf32, #tpu.memory_space<vmem>>, %arg4: memref<1x4x256xf32, #tpu.memory_space<vmem>>, %arg5: memref<1x4x256xf32, #tpu.memory_space<vmem>>, %arg6: memref<4x32xf32, #tpu.memory_space<vmem>>, %arg7: memref<1x32xf32, #tpu.memory_space<vmem>>, %arg8: memref<32x32xf32, #tpu.memory_space<vmem>>, %arg9: memref<32x32xf32, #tpu.memory_space<vmem>>, %arg10: memref<32x32xf32, #tpu.memory_space<vmem>>, %arg11: memref<32x32xf32, #tpu.memory_space<vmem>>, %arg12: memref<1x32xf32, #tpu.memory_space<vmem>>, %arg13: memref<32x4xf32, #tpu.memory_space<vmem>>, %arg14: memref<4x1xf32, #tpu.memory_space<vmem>>, %arg15: memref<1x4x128xf32, #tpu.memory_space<vmem>>) attributes {dimension_semantics = [#tpu.dimension_semantics<parallel>, #tpu.dimension_semantics<parallel>], iteration_bounds = array<i64: 2, 2>, scalar_prefetch = 0 : i64, scratch_operands = 0 : i64, tpu.core_type = #tpu.core_type<tc>, window_params = [{transform_indices = @transform_0, window_bounds = array<i64: 2, 2>}, {transform_indices = @transform_1, window_bounds = array<i64: 1, 4, 256>}, {transform_indices = @transform_2, window_bounds = array<i64: 1, 4, 256>}, {transform_indices = @transform_3, window_bounds = array<i64: 1, 4, 256>}, {pipeline_mode = #tpu.pipeline_mode<synchronous>, transform_indices = @transform_4, window_bounds = array<i64: 4, 32>}, {pipeline_mode = #tpu.pipeline_mode<synchronous>, transform_indices = @transform_5, window_bounds = array<i64: 1, 32>}, {pipeline_mode = #tpu.pipeline_mode<synchronous>, transform_indices = @transform_6, window_bounds = array<i64: 32, 32>}, {pipeline_mode = #tpu.pipeline_mode<synchronous>, transform_indices = @transform_7, window_bounds = array<i64: 32, 32>}, {pipeline_mode = #tpu.pipeline_mode<synchronous>, transform_indices = @transform_8, window_bounds = array<i64: 32, 32>}, {pipeline_mode = #tpu.pipeline_mode<synchronous>, transform_indices = @transform_9, window_bounds = array<i64: 32, 32>}, {pipeline_mode = #tpu.pipeline_mode<synchronous>, transform_indices = @transform_10, window_bounds = array<i64: 1, 32>}, {pipeline_mode = #tpu.pipeline_mode<synchronous>, transform_indices = @transform_11, window_bounds = array<i64: 32, 4>}, {pipeline_mode = #tpu.pipeline_mode<synchronous>, transform_indices = @transform_12, window_bounds = array<i64: 4, 1>}, {transform_indices = @transform_13, window_bounds = array<i64: 1, 4, 128>}]} {
    %0 = arith.index_cast %arg0 : i32 to index
    %c0 = arith.constant 0 : index
    %1 = memref.load %arg2[%0, %c0] : memref<2x2xf32, #tpu.memory_space<smem>>
    %2 = arith.index_cast %arg0 : i32 to index
    %c1 = arith.constant 1 : index
    %3 = memref.load %arg2[%2, %c1] : memref<2x2xf32, #tpu.memory_space<smem>>
    %c0_0 = arith.constant 0 : index
    %c0_1 = arith.constant 0 : index
    %4 = vector.load %arg6[%c0_0, %c0_1] : memref<4x32xf32, #tpu.memory_space<vmem>>, vector<4x32xf32>
    %5 = arith.truncf %4 : vector<4x32xf32> to vector<4x32xbf16>
    %c0_2 = arith.constant 0 : index
    %c0_3 = arith.constant 0 : index
    %6 = vector.load %arg7[%c0_2, %c0_3] : memref<1x32xf32, #tpu.memory_space<vmem>>, vector<1x32xf32>
    %c0_4 = arith.constant 0 : index
    %c0_5 = arith.constant 0 : index
    %7 = vector.load %arg8[%c0_4, %c0_5] : memref<32x32xf32, #tpu.memory_space<vmem>>, vector<32x32xf32>
    %8 = arith.truncf %7 : vector<32x32xf32> to vector<32x32xbf16>
    %c0_6 = arith.constant 0 : index
    %c0_7 = arith.constant 0 : index
    %9 = vector.load %arg9[%c0_6, %c0_7] : memref<32x32xf32, #tpu.memory_space<vmem>>, vector<32x32xf32>
    %10 = arith.truncf %9 : vector<32x32xf32> to vector<32x32xbf16>
    %c0_8 = arith.constant 0 : index
    %c0_9 = arith.constant 0 : index
    %11 = vector.load %arg10[%c0_8, %c0_9] : memref<32x32xf32, #tpu.memory_space<vmem>>, vector<32x32xf32>
    %12 = arith.truncf %11 : vector<32x32xf32> to vector<32x32xbf16>
    %c0_10 = arith.constant 0 : index
    %c0_11 = arith.constant 0 : index
    %c0_12 = arith.constant 0 : index
    %13 = vector.load %arg4[%c0_10, %c0_11, %c0_12] : memref<1x4x256xf32, #tpu.memory_space<vmem>>, vector<1x4x256xf32>
    %14 = vector.shape_cast %13 : vector<1x4x256xf32> to vector<4x256xf32>
    %15 = vector.broadcast %1 : f32 to vector<4x256xf32>
    %16 = arith.mulf %14, %15 : vector<4x256xf32>
    %c0_13 = arith.constant 0 : index
    %c0_14 = arith.constant 0 : index
    %c0_15 = arith.constant 0 : index
    %17 = vector.load %arg5[%c0_13, %c0_14, %c0_15] : memref<1x4x256xf32, #tpu.memory_space<vmem>>, vector<1x4x256xf32>
    %18 = vector.shape_cast %17 : vector<1x4x256xf32> to vector<4x256xf32>
    %19 = vector.broadcast %3 : f32 to vector<4x256xf32>
    %20 = arith.mulf %18, %19 : vector<4x256xf32>
    %21 = arith.addf %16, %20 : vector<4x256xf32>
    %c0_16 = arith.constant 0 : index
    %c0_17 = arith.constant 0 : index
    %c0_18 = arith.constant 0 : index
    %22 = vector.load %arg3[%c0_16, %c0_17, %c0_18] : memref<1x4x256xf32, #tpu.memory_space<vmem>>, vector<1x4x256xf32>
    %23 = vector.shape_cast %22 : vector<1x4x256xf32> to vector<4x256xf32>
    %24 = tpu.concatenate %21, %23 in 1 : vector<4x256xf32>, vector<4x256xf32> -> vector<4x512xf32>
    %25 = arith.truncf %24 : vector<4x512xf32> to vector<4x512xbf16>
    %cst = arith.constant dense<0.000000e+00> : vector<512x32xf32>
    %26 = tpu.matmul %25, %5, %cst {dimension_numbers = #tpu.dot_dimension_numbers<[0], [0], [1], [1], [0, 1, 1, 1], [], []>} : vector<4x512xbf16>, vector<4x32xbf16>, vector<512x32xf32> -> vector<512x32xf32>
    %27 = vector.broadcast %6 : vector<1x32xf32> to vector<512x32xf32>
    %28 = arith.addf %26, %27 : vector<512x32xf32>
    %29 = vector.extract_strided_slice %28 {offsets = [0, 0], sizes = [256, 32], strides = [1, 1]} : vector<512x32xf32> to vector<256x32xf32>
    %30 = arith.truncf %29 : vector<256x32xf32> to vector<256x32xbf16>
    %31 = vector.extract_strided_slice %28 {offsets = [256, 0], sizes = [256, 32], strides = [1, 1]} : vector<512x32xf32> to vector<256x32xf32>
    %32 = arith.truncf %31 : vector<256x32xf32> to vector<256x32xbf16>
    %cst_19 = arith.constant dense<0.000000e+00> : vector<256x32xf32>
    %33 = tpu.matmul %30, %10, %cst_19 {dimension_numbers = #tpu.dot_dimension_numbers<[1], [0], [0], [1], [0, 0, 1, 1], [], []>} : vector<256x32xbf16>, vector<32x32xbf16>, vector<256x32xf32> -> vector<256x32xf32>
    %cst_20 = arith.constant dense<0.000000e+00> : vector<256x32xf32>
    %34 = tpu.matmul %30, %12, %cst_20 {dimension_numbers = #tpu.dot_dimension_numbers<[1], [0], [0], [1], [0, 0, 1, 1], [], []>} : vector<256x32xbf16>, vector<32x32xbf16>, vector<256x32xf32> -> vector<256x32xf32>
    %cst_21 = arith.constant dense<0.000000e+00> : vector<256x32xf32>
    %35 = tpu.matmul %32, %10, %cst_21 {dimension_numbers = #tpu.dot_dimension_numbers<[1], [0], [0], [1], [0, 0, 1, 1], [], []>} : vector<256x32xbf16>, vector<32x32xbf16>, vector<256x32xf32> -> vector<256x32xf32>
    %cst_22 = arith.constant dense<0.000000e+00> : vector<256x32xf32>
    %36 = tpu.matmul %32, %12, %cst_22 {dimension_numbers = #tpu.dot_dimension_numbers<[1], [0], [0], [1], [0, 0, 1, 1], [], []>} : vector<256x32xbf16>, vector<32x32xbf16>, vector<256x32xf32> -> vector<256x32xf32>
    %37 = tpu.concatenate %35, %33 in 0 : vector<256x32xf32>, vector<256x32xf32> -> vector<512x32xf32>
    %38 = arith.truncf %37 : vector<512x32xf32> to vector<512x32xbf16>
    %39 = tpu.concatenate %36, %34 in 0 : vector<256x32xf32>, vector<256x32xf32> -> vector<512x32xf32>
    %40 = arith.truncf %39 : vector<512x32xf32> to vector<512x32xbf16>
    %c128_i32 = arith.constant 128 : i32
    %41 = arith.muli %arg1, %c128_i32 : i32
    %42 = tpu.assume_multiple %41, 128 : i32
    %c0_23 = arith.constant 0 : index
    %c0_24 = arith.constant 0 : index
    %43 = arith.index_cast %42 : i32 to index
    %44 = vector.load %arg3[%c0_23, %c0_24, %43] : memref<1x4x256xf32, #tpu.memory_space<vmem>>, vector<1x4x128xf32>
    %45 = vector.shape_cast %44 : vector<1x4x128xf32> to vector<4x128xf32>
    %46 = arith.truncf %45 : vector<4x128xf32> to vector<4x128xbf16>
    %cst_25 = arith.constant dense<0.000000e+00> : vector<128x32xf32>
    %47 = tpu.matmul %46, %5, %cst_25 {dimension_numbers = #tpu.dot_dimension_numbers<[0], [0], [1], [1], [0, 1, 1, 1], [], []>} : vector<4x128xbf16>, vector<4x32xbf16>, vector<128x32xf32> -> vector<128x32xf32>
    %48 = vector.broadcast %6 : vector<1x32xf32> to vector<128x32xf32>
    %49 = arith.addf %47, %48 : vector<128x32xf32>
    %50 = arith.truncf %49 : vector<128x32xf32> to vector<128x32xbf16>
    %cst_26 = arith.constant dense<0.000000e+00> : vector<128x32xf32>
    %51 = tpu.matmul %50, %8, %cst_26 {dimension_numbers = #tpu.dot_dimension_numbers<[1], [0], [0], [1], [0, 0, 1, 1], [], []>} : vector<128x32xbf16>, vector<32x32xbf16>, vector<128x32xf32> -> vector<128x32xf32>
    %52 = arith.truncf %51 : vector<128x32xf32> to vector<128x32xbf16>
    %53 = vector.extract_strided_slice %52 {offsets = [0, 0], sizes = [128, 8], strides = [1, 1]} : vector<128x32xbf16> to vector<128x8xbf16>
    %54 = vector.extract_strided_slice %38 {offsets = [0, 0], sizes = [512, 8], strides = [1, 1]} : vector<512x32xbf16> to vector<512x8xbf16>
    %cst_27 = arith.constant dense<0.000000e+00> : vector<128x512xf32>
    %55 = tpu.matmul %53, %54, %cst_27 {dimension_numbers = #tpu.dot_dimension_numbers<[1], [1], [0], [0], [0, 0, 1, 0], [], []>} : vector<128x8xbf16>, vector<512x8xbf16>, vector<128x512xf32> -> vector<128x512xf32>
    %cst_28 = arith.constant dense<0xFF800000> : vector<128xf32>
    %56 = vector.multi_reduction <maximumf>, %55, %cst_28 [1] : vector<128x512xf32> to vector<128xf32>
    %57 = vector.shape_cast %56 : vector<128xf32> to vector<128x1xf32>
    %58 = vector.broadcast %57 : vector<128x1xf32> to vector<128x512xf32>
    %59 = arith.subf %55, %58 : vector<128x512xf32>
    %60 = math.exp %59 : vector<128x512xf32>
    %cst_29 = arith.constant dense<0.000000e+00> : vector<128xf32>
    %61 = vector.multi_reduction <add>, %60, %cst_29 [1] : vector<128x512xf32> to vector<128xf32>
    %62 = vector.shape_cast %61 : vector<128xf32> to vector<128x1xf32>
    %63 = arith.truncf %60 : vector<128x512xf32> to vector<128x512xbf16>
    %64 = vector.extract_strided_slice %40 {offsets = [0, 0], sizes = [512, 8], strides = [1, 1]} : vector<512x32xbf16> to vector<512x8xbf16>
    %cst_30 = arith.constant dense<0.000000e+00> : vector<128x8xf32>
    %65 = tpu.matmul %63, %64, %cst_30 {dimension_numbers = #tpu.dot_dimension_numbers<[1], [0], [0], [1], [0, 0, 1, 1], [], []>} : vector<128x512xbf16>, vector<512x8xbf16>, vector<128x8xf32> -> vector<128x8xf32>
    %66 = tpu.reciprocal %62 {approx = true} : vector<128x1xf32> -> vector<128x1xf32>
    %67 = vector.broadcast %66 : vector<128x1xf32> to vector<128x8xf32>
    %68 = arith.mulf %65, %67 : vector<128x8xf32>
    %69 = vector.extract_strided_slice %52 {offsets = [0, 8], sizes = [128, 8], strides = [1, 1]} : vector<128x32xbf16> to vector<128x8xbf16>
    %70 = vector.extract_strided_slice %38 {offsets = [0, 8], sizes = [512, 8], strides = [1, 1]} : vector<512x32xbf16> to vector<512x8xbf16>
    %cst_31 = arith.constant dense<0.000000e+00> : vector<128x512xf32>
    %71 = tpu.matmul %69, %70, %cst_31 {dimension_numbers = #tpu.dot_dimension_numbers<[1], [1], [0], [0], [0, 0, 1, 0], [], []>} : vector<128x8xbf16>, vector<512x8xbf16>, vector<128x512xf32> -> vector<128x512xf32>
    %cst_32 = arith.constant dense<0xFF800000> : vector<128xf32>
    %72 = vector.multi_reduction <maximumf>, %71, %cst_32 [1] : vector<128x512xf32> to vector<128xf32>
    %73 = vector.shape_cast %72 : vector<128xf32> to vector<128x1xf32>
    %74 = vector.broadcast %73 : vector<128x1xf32> to vector<128x512xf32>
    %75 = arith.subf %71, %74 : vector<128x512xf32>
    %76 = math.exp %75 : vector<128x512xf32>
    %cst_33 = arith.constant dense<0.000000e+00> : vector<128xf32>
    %77 = vector.multi_reduction <add>, %76, %cst_33 [1] : vector<128x512xf32> to vector<128xf32>
    %78 = vector.shape_cast %77 : vector<128xf32> to vector<128x1xf32>
    %79 = arith.truncf %76 : vector<128x512xf32> to vector<128x512xbf16>
    %80 = vector.extract_strided_slice %40 {offsets = [0, 8], sizes = [512, 8], strides = [1, 1]} : vector<512x32xbf16> to vector<512x8xbf16>
    %cst_34 = arith.constant dense<0.000000e+00> : vector<128x8xf32>
    %81 = tpu.matmul %79, %80, %cst_34 {dimension_numbers = #tpu.dot_dimension_numbers<[1], [0], [0], [1], [0, 0, 1, 1], [], []>} : vector<128x512xbf16>, vector<512x8xbf16>, vector<128x8xf32> -> vector<128x8xf32>
    %82 = tpu.reciprocal %78 {approx = true} : vector<128x1xf32> -> vector<128x1xf32>
    %83 = vector.broadcast %82 : vector<128x1xf32> to vector<128x8xf32>
    %84 = arith.mulf %81, %83 : vector<128x8xf32>
    %85 = vector.extract_strided_slice %52 {offsets = [0, 16], sizes = [128, 8], strides = [1, 1]} : vector<128x32xbf16> to vector<128x8xbf16>
    %86 = vector.extract_strided_slice %38 {offsets = [0, 16], sizes = [512, 8], strides = [1, 1]} : vector<512x32xbf16> to vector<512x8xbf16>
    %cst_35 = arith.constant dense<0.000000e+00> : vector<128x512xf32>
    %87 = tpu.matmul %85, %86, %cst_35 {dimension_numbers = #tpu.dot_dimension_numbers<[1], [1], [0], [0], [0, 0, 1, 0], [], []>} : vector<128x8xbf16>, vector<512x8xbf16>, vector<128x512xf32> -> vector<128x512xf32>
    %cst_36 = arith.constant dense<0xFF800000> : vector<128xf32>
    %88 = vector.multi_reduction <maximumf>, %87, %cst_36 [1] : vector<128x512xf32> to vector<128xf32>
    %89 = vector.shape_cast %88 : vector<128xf32> to vector<128x1xf32>
    %90 = vector.broadcast %89 : vector<128x1xf32> to vector<128x512xf32>
    %91 = arith.subf %87, %90 : vector<128x512xf32>
    %92 = math.exp %91 : vector<128x512xf32>
    %cst_37 = arith.constant dense<0.000000e+00> : vector<128xf32>
    %93 = vector.multi_reduction <add>, %92, %cst_37 [1] : vector<128x512xf32> to vector<128xf32>
    %94 = vector.shape_cast %93 : vector<128xf32> to vector<128x1xf32>
    %95 = arith.truncf %92 : vector<128x512xf32> to vector<128x512xbf16>
    %96 = vector.extract_strided_slice %40 {offsets = [0, 16], sizes = [512, 8], strides = [1, 1]} : vector<512x32xbf16> to vector<512x8xbf16>
    %cst_38 = arith.constant dense<0.000000e+00> : vector<128x8xf32>
    %97 = tpu.matmul %95, %96, %cst_38 {dimension_numbers = #tpu.dot_dimension_numbers<[1], [0], [0], [1], [0, 0, 1, 1], [], []>} : vector<128x512xbf16>, vector<512x8xbf16>, vector<128x8xf32> -> vector<128x8xf32>
    %98 = tpu.reciprocal %94 {approx = true} : vector<128x1xf32> -> vector<128x1xf32>
    %99 = vector.broadcast %98 : vector<128x1xf32> to vector<128x8xf32>
    %100 = arith.mulf %97, %99 : vector<128x8xf32>
    %101 = vector.extract_strided_slice %52 {offsets = [0, 24], sizes = [128, 8], strides = [1, 1]} : vector<128x32xbf16> to vector<128x8xbf16>
    %102 = vector.extract_strided_slice %38 {offsets = [0, 24], sizes = [512, 8], strides = [1, 1]} : vector<512x32xbf16> to vector<512x8xbf16>
    %cst_39 = arith.constant dense<0.000000e+00> : vector<128x512xf32>
    %103 = tpu.matmul %101, %102, %cst_39 {dimension_numbers = #tpu.dot_dimension_numbers<[1], [1], [0], [0], [0, 0, 1, 0], [], []>} : vector<128x8xbf16>, vector<512x8xbf16>, vector<128x512xf32> -> vector<128x512xf32>
    %cst_40 = arith.constant dense<0xFF800000> : vector<128xf32>
    %104 = vector.multi_reduction <maximumf>, %103, %cst_40 [1] : vector<128x512xf32> to vector<128xf32>
    %105 = vector.shape_cast %104 : vector<128xf32> to vector<128x1xf32>
    %106 = vector.broadcast %105 : vector<128x1xf32> to vector<128x512xf32>
    %107 = arith.subf %103, %106 : vector<128x512xf32>
    %108 = math.exp %107 : vector<128x512xf32>
    %cst_41 = arith.constant dense<0.000000e+00> : vector<128xf32>
    %109 = vector.multi_reduction <add>, %108, %cst_41 [1] : vector<128x512xf32> to vector<128xf32>
    %110 = vector.shape_cast %109 : vector<128xf32> to vector<128x1xf32>
    %111 = arith.truncf %108 : vector<128x512xf32> to vector<128x512xbf16>
    %112 = vector.extract_strided_slice %40 {offsets = [0, 24], sizes = [512, 8], strides = [1, 1]} : vector<512x32xbf16> to vector<512x8xbf16>
    %cst_42 = arith.constant dense<0.000000e+00> : vector<128x8xf32>
    %113 = tpu.matmul %111, %112, %cst_42 {dimension_numbers = #tpu.dot_dimension_numbers<[1], [0], [0], [1], [0, 0, 1, 1], [], []>} : vector<128x512xbf16>, vector<512x8xbf16>, vector<128x8xf32> -> vector<128x8xf32>
    %114 = tpu.reciprocal %110 {approx = true} : vector<128x1xf32> -> vector<128x1xf32>
    %115 = vector.broadcast %114 : vector<128x1xf32> to vector<128x8xf32>
    %116 = arith.mulf %113, %115 : vector<128x8xf32>
    %117 = tpu.concatenate %68, %84, %100, %116 in 1 : vector<128x8xf32>, vector<128x8xf32>, vector<128x8xf32>, vector<128x8xf32> -> vector<128x32xf32>
    %118 = arith.truncf %117 : vector<128x32xf32> to vector<128x32xbf16>
    %c0_43 = arith.constant 0 : index
    %c0_44 = arith.constant 0 : index
    %119 = vector.load %arg11[%c0_43, %c0_44] : memref<32x32xf32, #tpu.memory_space<vmem>>, vector<32x32xf32>
    %120 = arith.truncf %119 : vector<32x32xf32> to vector<32x32xbf16>
    %cst_45 = arith.constant dense<0.000000e+00> : vector<128x32xf32>
    %121 = tpu.matmul %118, %120, %cst_45 {dimension_numbers = #tpu.dot_dimension_numbers<[1], [0], [0], [1], [0, 0, 1, 1], [], []>} : vector<128x32xbf16>, vector<32x32xbf16>, vector<128x32xf32> -> vector<128x32xf32>
    %c0_46 = arith.constant 0 : index
    %c0_47 = arith.constant 0 : index
    %122 = vector.load %arg12[%c0_46, %c0_47] : memref<1x32xf32, #tpu.memory_space<vmem>>, vector<1x32xf32>
    %123 = vector.broadcast %122 : vector<1x32xf32> to vector<128x32xf32>
    %124 = arith.addf %121, %123 : vector<128x32xf32>
    %125 = arith.addf %124, %49 : vector<128x32xf32>
    %c0_48 = arith.constant 0 : index
    %c0_49 = arith.constant 0 : index
    %126 = vector.load %arg13[%c0_48, %c0_49] : memref<32x4xf32, #tpu.memory_space<vmem>>, vector<32x4xf32>
    %127 = arith.truncf %126 : vector<32x4xf32> to vector<32x4xbf16>
    %128 = arith.truncf %125 : vector<128x32xf32> to vector<128x32xbf16>
    %cst_50 = arith.constant dense<0.000000e+00> : vector<4x128xf32>
    %129 = tpu.matmul %127, %128, %cst_50 {dimension_numbers = #tpu.dot_dimension_numbers<[0], [1], [1], [0], [0, 1, 1, 0], [], []>} : vector<32x4xbf16>, vector<128x32xbf16>, vector<4x128xf32> -> vector<4x128xf32>
    %c0_51 = arith.constant 0 : index
    %c0_52 = arith.constant 0 : index
    %130 = vector.load %arg14[%c0_51, %c0_52] : memref<4x1xf32, #tpu.memory_space<vmem>>, vector<4x1xf32>
    %131 = vector.broadcast %130 : vector<4x1xf32> to vector<4x128xf32>
    %132 = arith.addf %129, %131 : vector<4x128xf32>
    %c0_53 = arith.constant 0 : index
    %c0_54 = arith.constant 0 : index
    %c0_55 = arith.constant 0 : index
    %133 = vector.load %arg15[%c0_53, %c0_54, %c0_55] : memref<1x4x128xf32, #tpu.memory_space<vmem>>, vector<1x4x128xf32>
    %134 = vector.shape_cast %133 : vector<1x4x128xf32> to vector<4x128xf32>
    %135 = vector.shape_cast %132 : vector<4x128xf32> to vector<1x4x128xf32>
    tpu.vector_store %arg15[%c0_53, %c0_54, %c0_55], %135 {strides = array<i32>} : memref<1x4x128xf32, #tpu.memory_space<vmem>>, vector<1x4x128xf32>,
    return
  }
  func.func @transform_0(%arg0: i32, %arg1: i32) -> (i32, i32) {
    %c0_i32 = arith.constant 0 : i32
    %c0_i32_0 = arith.constant 0 : i32
    %c0_i32_1 = arith.constant 0 : i32
    return %c0_i32, %c0_i32_0 : i32, i32
  }
  func.func @transform_1(%arg0: i32, %arg1: i32) -> (i32, i32, i32) {
    %c0_i32 = arith.constant 0 : i32
    %c0_i32_0 = arith.constant 0 : i32
    %c0_i32_1 = arith.constant 0 : i32
    return %arg0, %c0_i32, %c0_i32_0 : i32, i32, i32
  }
  func.func @transform_2(%arg0: i32, %arg1: i32) -> (i32, i32, i32) {
    %c0_i32 = arith.constant 0 : i32
    %c0_i32_0 = arith.constant 0 : i32
    %c0_i32_1 = arith.constant 0 : i32
    return %arg0, %c0_i32, %c0_i32_0 : i32, i32, i32
  }
  func.func @transform_3(%arg0: i32, %arg1: i32) -> (i32, i32, i32) {
    %c0_i32 = arith.constant 0 : i32
    %c0_i32_0 = arith.constant 0 : i32
    %c0_i32_1 = arith.constant 0 : i32
    return %arg0, %c0_i32, %c0_i32_0 : i32, i32, i32
  }
  func.func @transform_4(%arg0: i32, %arg1: i32) -> (i32, i32) {
    %c0_i32 = arith.constant 0 : i32
    %c0_i32_0 = arith.constant 0 : i32
    %c0_i32_1 = arith.constant 0 : i32
    return %c0_i32, %c0_i32_0 : i32, i32
  }
  func.func @transform_5(%arg0: i32, %arg1: i32) -> (i32, i32) {
    %c0_i32 = arith.constant 0 : i32
    %c0_i32_0 = arith.constant 0 : i32
    %c0_i32_1 = arith.constant 0 : i32
    return %c0_i32, %c0_i32_0 : i32, i32
  }
  func.func @transform_6(%arg0: i32, %arg1: i32) -> (i32, i32) {
    %c0_i32 = arith.constant 0 : i32
    %c0_i32_0 = arith.constant 0 : i32
    %c0_i32_1 = arith.constant 0 : i32
    return %c0_i32, %c0_i32_0 : i32, i32
  }
  func.func @transform_7(%arg0: i32, %arg1: i32) -> (i32, i32) {
    %c0_i32 = arith.constant 0 : i32
    %c0_i32_0 = arith.constant 0 : i32
    %c0_i32_1 = arith.constant 0 : i32
    return %c0_i32, %c0_i32_0 : i32, i32
  }
  func.func @transform_8(%arg0: i32, %arg1: i32) -> (i32, i32) {
    %c0_i32 = arith.constant 0 : i32
    %c0_i32_0 = arith.constant 0 : i32
    %c0_i32_1 = arith.constant 0 : i32
    return %c0_i32, %c0_i32_0 : i32, i32
  }
  func.func @transform_9(%arg0: i32, %arg1: i32) -> (i32, i32) {
    %c0_i32 = arith.constant 0 : i32
    %c0_i32_0 = arith.constant 0 : i32
    %c0_i32_1 = arith.constant 0 : i32
    return %c0_i32, %c0_i32_0 : i32, i32
  }
  func.func @transform_10(%arg0: i32, %arg1: i32) -> (i32, i32) {
    %c0_i32 = arith.constant 0 : i32
    %c0_i32_0 = arith.constant 0 : i32
    %c0_i32_1 = arith.constant 0 : i32
    return %c0_i32, %c0_i32_0 : i32, i32
  }
  func.func @transform_11(%arg0: i32, %arg1: i32) -> (i32, i32) {
    %c0_i32 = arith.constant 0 : i32
    %c0_i32_0 = arith.constant 0 : i32
    %c0_i32_1 = arith.constant 0 : i32
    return %c0_i32, %c0_i32_0 : i32, i32
  }
  func.func @transform_12(%arg0: i32, %arg1: i32) -> (i32, i32) {
    %c0_i32 = arith.constant 0 : i32
    %c0_i32_0 = arith.constant 0 : i32
    %c0_i32_1 = arith.constant 0 : i32
    return %c0_i32, %c0_i32_0 : i32, i32
  }
  func.func @transform_13(%arg0: i32, %arg1: i32) -> (i32, i32, i32) {
    %c0_i32 = arith.constant 0 : i32
    %c0_i32_0 = arith.constant 0 : i32
    return %arg0, %c0_i32, %arg1 : i32, i32, i32
  }
}

</mosaic_0001>

<bundles_post_ra>
// kernel: ref_only_noised_unet_forward.1
= control target key start
LH: loop header
LB: loop body
LE: loop exit
PB: predicated region body
PF: predicated region fallthrough
CT: control target
= control target key end

     0   :  { %s13679_s0 = inlined_call_operand.vmem [shape: f32[2,2], index: 0, kind: input, shape index: {}]   ;;  %s13680_s1 = inlined_call_operand.vmem [shape: f32[2,4,256], index: 1, kind: input, shape index: {}]   ;;  %s13681_s2 = inlined_call_operand.vmem [shape: f32[2,4,256], index: 2, kind: input, shape index: {}]   ;;  %s13682_s3 = inlined_call_operand.vmem [shape: f32[2,4,256], index: 3, kind: input, shape index: {}]   ;;  %s13683_s4 = inlined_call_operand.vmem [shape: f32[4,32], index: 4, kind: input, shape index: {}]   ;;  %s13684_s5 = inlined_call_operand.vmem [shape: f32[1,32], index: 5, kind: input, shape index: {}]   ;;  %s13685_s6 = inlined_call_operand.vmem [shape: f32[32,32], index: 6, kind: input, shape index: {}]   ;;  %s13686_s7 = inlined_call_operand.vmem [shape: f32[32,32], index: 7, kind: input, shape index: {}]   ;;  %s13687_s8 = inlined_call_operand.vmem [shape: f32[32,32], index: 8, kind: input, shape index: {}]   ;;  %s13688_s9 = inlined_call_operand.vmem [shape: f32[32,32], index: 9, kind: input, shape index: {}]   ;;  %s13689_s10 = inlined_call_operand.vmem [shape: f32[1,32], index: 10, kind: input, shape index: {}]   ;;  %s13690_s11 = inlined_call_operand.vmem [shape: f32[32,4], index: 11, kind: input, shape index: {}]   ;;  %s13691_s12 = inlined_call_operand.vmem [shape: f32[4,1], index: 12, kind: input, shape index: {}]   ;;  %s13692_s13 = inlined_call_operand.vmem [shape: f32[2,4,256], index: 13, kind: output, shape index: {}]  }
   0x1   :  { %13963 = sst [smem:[#allocation164_spill]] %s13679_s0 }
   0x2   :  { %13964 = sst [smem:[#allocation165_spill]] %s13683_s4 }
   0x3   :  { %18 = vsyncpa [#allocation3], 0  ;;  %s9625_s25 = smov 0   ;;  %s9627_s26 = smov 0  }
   0x4   :  { %s9629_s27 = smov 0   ;;  %s9631_s28 = smov 0  }
   0x5   :  { %s9633_s29 = smov 0  }
   0x6 LB: > { %s7185_s30 = sadd.s32 4294967295, %s9543_s29   ;;  %s33_s14 = sadd.s32 1, %s9535_s27  ;;  %s9543_s29 = sphi %s9633_s29, %s24_s29   ;;  %s9539_s28 = sphi %s9631_s28, %s14707_s28   ;;  %s9535_s27 = sphi %s9629_s27, %s14706_s27   ;;  %s9531_s26 = sphi %s9627_s26, %s14705_s26   ;;  %s9527_s25 = sphi %s9625_s25, %s14704_s25  }
   0x7   : > { %p34_p0 = scmp.ge.s32.totalorder %s33_s14, 2  ;;  %s36_s15 = sadd.s32 1, %s9539_s28 }
   0x8   : > { %p7187_p1 = scmp.ge.s32.totalorder %s9543_s29, 1  ;;  %p357_p2 = scmp.lt.s32.totalorder %s9543_s29, 5 }
   0x9   : > { %s14709_s14 = smov (%p34_p0, %s33_s14), 0  ;;  %s14711_s15 = smov (!%p34_p0, %s36_s15), %s9539_s28 }
   0xa   : > { %p9658_p3 = pnand %p7187_p1, %p357_p2  ;;  %p38_p4 = scmp.ge.s32.totalorder %s14711_s15, 2 }
   0xb   : > { %p9662_p5 = scmp.eq.s32.totalorder %s7185_s30, 0  ;;  %s13967_s0 = sld [smem:[#allocation164_spill]] }
   0xc   : > { %p8667_p6 = pneg %p9658_p3  ;;  %s14713_s15 = smov (%p38_p4, %s14711_s15), 0 }
   0xe   : > { %p8668_p7 = pnand %p9662_p5, %p8667_p6 }
  0x10   : > { %p9488_p9 = pneg %p8668_p7 }
  0x11   : > { %s370_s20 = sshll.u32 %s13967_s0, 4  ;;  %s371_s20 = int_to_ptr.vmem [resolvable:$true] %s370_s20 }
  0x12   : > { %s9486_s21 = scalar_lea.vmem %s371_s20, 32  ;;  %p9494_p12 = scmp.lt.s32.totalorder %s371_s20, %s371_s20 }
  0x13   : > { %p9487_p8 = scmp.ne.s32.totalorder %s371_s20, %s9486_s21  ;;  %p9495_p13 = scmp.lt.s32.totalorder %s9486_s21, %s9486_s21 }
  0x15   : > { %p9489_p10 = pnand %p9488_p9, %p9487_p8  ;;  %p9496_p0 = por %p9495_p13, %p9494_p12 }
  0x17   : > { %p9490_p11 = pneg %p9489_p10 }
  0x19   : > { %p9497_p1 = pnand %p9496_p0, %p9490_p11 }
  0x1b   : > { %9500 = shalt.err (!%p9497_p1)
}
  0x1c   : > { %s9545_s22 = smov [#allocation2]   ;;  %434 = sbr.rel (%p9658_p3) target bundleno = 3771 (0xebb), region = 72 }
  0x1d   : > { %8670 = dma.vmem_to_smem (!%p8668_p7), %s371_s20, 32, %s9545_s22, [#allocation3]  }
  0x23   : > { %9522 = dma.done.wait (%p9662_p5), [#allocation3], 32  }
  0x24   : > { %9524 = vsyncadd (%p9662_p5), [#allocation3], 4294967264 }
  0x25   : > { %440 = sfence }
  0x26   : > { %p492_p2 = scmp.lt.s32.totalorder %s9531_s26, 1  ;;  %s7200_s23 = sshll.u32 %s9531_s26, 7  ;;  %vm726_vm0 = vcmask 1041408   ;;  %v529_v17 = vld [vmem:[%s13686_s7] sm:$0xff]  ;;  %v530_v18 = vld [vmem:[%s13686_s7 + $0x8] sm:$0xff]  ;;  %vm629_vm1 = vcmask 31744  }
  0x27   : > { %s13968_s4 = sld [smem:[#allocation165_spill]]  ;;  %s518_s16 = sadd.s32 1, %s7200_s23  ;;  %v533_v19 = vpack.c.bf16 %v530_v18, %v529_v17  ;;  %v531_v52 = vld [vmem:[%s13686_s7 + $0x10] sm:$0xff]  ;;  %v532_v53 = vld [vmem:[%s13686_s7 + $0x18] sm:$0xff]  ;;  %v535_v57 = vld [vmem:[%s13687_s8] sm:$0xff]  ;;  %vm1051_vm2 = vcmask 261120  }
  0x28   : > { %s517_s18 = sld [smem:[#allocation2 + %s7200_s23]]  ;;  %s14715_s26 = smov (!%p492_p2, %s9531_s26), 1  ;;  %v534_v54 = vpack.c.bf16 %v532_v53, %v531_v52  ;;  %v536_v58 = vld [vmem:[%s13687_s8 + $0x8] sm:$0xff]  ;;  %v9774_v61 = vld [vmem:[%s13684_s5] ss:$0 sm:$0xff]  ;;  %vm2137_vm3 = vcmask 64512  }
  0x29   : > { %s519_s17 = sld [smem:[#allocation2 + %s518_s16]]  ;;  %s7392_s19 = sshll.u32 %s14715_s26, 3  ;;  %v9768_v59 = vpack.c.bf16 %v536_v58, %v535_v57  ;;  %vm6770_vm4 = vcmask 130048   ;;  %vm6787_vm5 = vcmask 195584   ;;  %vm9553_vm6 = vmmov 0  }
  0x2a   : > { %s501_s22 = scalar_lea.vmem %s13681_s2, %s7392_s19  ;;  %s506_s30 = scalar_lea.vmem %s13682_s3, %s7392_s19 }
  0x2b   : > { %v541_v3 = vld [vmem:[%s501_s22] sm:$0xff]  ;;  %s7298_s24 = sshll.u32 %s9527_s25, 7  ;;  %s9546_s22 = smov 120  }
  0x2c   : > { %v544_v5 = vld [vmem:[%s506_s30] sm:$0xff]  ;;  %s1857_s30 = sshra.s32 %s7298_s24, 7  ;;  %p509_p3 = scmp.lt.s32.totalorder %s9527_s25, 1 }
  0x2d   : > { %v520_v0 = vld [vmem:[%s13968_s4] sm:$0xf]  ;;  %s9711_s4 = scalar_lea.vmem %s13680_s1, %s7392_s19  ;;  %s7299_s16 = sshll.u32 %s1857_s30, 2 }
  0x2e   : > { %v9686_v1 = vpack.c.bf16 %v520_v0, %v520_v0  ;;  %v542_v4 = vstv %s517_s18  ;;  %v548_v6 = vld [vmem:[%s9711_s4] sm:$0xff]  ;;  %s1860_s0 = scalar_lea.vmem %s9711_s4, %s7299_s16  ;;  %s9547_s30 = smov 112  }
  0x2f   : > { %v543_v7 = vmul.f32 %v542_v4, %v541_v3  ;;  %v557_v8 = vpack.c.bf16 %v548_v6, %v548_v6  ;;  %v545_v9 = vstv %s519_s17  ;;  %v553_v13 = vcombine.high %v548_v6, %v548_v6  ;;  %v1861_v55 = vld [vmem:[%s1860_s0] sm:$0xf]  ;;  %v537_v6 = vld [vmem:[%s13687_s8 + $0x10] sm:$0xff]  ;;  %s9548_s16 = smov 104   ;;  %s9549_s0 = smov 8  }
  0x30   : > { %8596 = vmatprep.subr.msk.bf16.mxu0 %vm726_vm0, %v9686_v1  ;;  %v9695_v2 = vsel %vm726_vm0, %v9686_v1, 0  ;;  %8597 = vmatprep.subr.msk.bf16.mxu1 %vm726_vm0, %v9686_v1  ;;  %v546_v10 = vmul.f32 %v545_v9, %v544_v5  ;;  %v1862_v56 = vpack.c.bf16 %v1861_v55, %v1861_v55  ;;  %s9550_s19 = smov 16   ;;  %s14717_s25 = smov (!%p509_p3, %s9527_s25), 1 }
  0x31   : > { %8307 = vmatpush3.bf16.msra.mxu0 %v9695_v2  ;;  %8595 = vmatpush3.bf16.msra.mxu1 %v9695_v2  ;;  %v558_v14 = vpack.c.bf16 %v553_v13, %v553_v13 }
  0x32   : > { %597 = vxpose.xlu1.c.b16.start.end [1/1] (short) %v557_v8, 128  ;;  %v547_v11 = vadd.f32 %v546_v10, %v543_v7  ;;  %8444 = vmatprep.subr.bf16.mxu0 %v533_v19  ;;  %v538_v7 = vld [vmem:[%s13687_s8 + $0x18] sm:$0xff] }
  0x33   : > { %8372 = vmatprep.subr.bf16.mxu1 %v533_v19  ;;  %v9790_v10 = vpack.c.bf16 %v538_v7, %v537_v6 }
  0x34   : > { %v555_v12 = vpack.c.bf16 %v547_v11, %v547_v11  ;;  %v550_v15 = vcombine.high %v547_v11, %v547_v11 }
  0x36   : > { %565 = vxpose.xlu0.c.b16.start.end [1/1] (short) %v555_v12, 128  ;;  %v556_v16 = vpack.c.bf16 %v550_v15, %v550_v15 }
  0x4f   : > { %613 = vxpose.xlu1.c.b16.start.end [1/1] (short) %v558_v14, 128 }
  0x53   : > { %581 = vxpose.xlu0.c.b16.start.end [1/1] (short) %v556_v16, 128 }
  0x70   : > { %1863 = vxpose.xlu0.c.b16.start.end [1/1] (short) %v1862_v56, 128 }
  0x98   : > { %v605_v20 = vpop.trf.xlu1 }
  0x9c   : > { %v606_v21 = vpop.trf.xlu1  ;;  %v573_v22 = vpop.trf.xlu0 }
  0x9d   : > { %8308 = vmatprep.mubr.msk.bf16.mxu0 %vm629_vm1, %v573_v22 }
  0xa0   : > { %v607_v23 = vpop.trf.xlu1  ;;  %v574_v24 = vpop.trf.xlu0 }
  0xa1   : > { %8309 = vmatmul.mubr.msk.bf16.vlgmr.msra.gmra.mrb[0].mxu0 %vm629_vm1, %v574_v24 }
  0xa2   : > { %8445 = vmatpush3.bf16.msra.mxu0 %v533_v19 }
  0xa3   : > { %8446 = vmatprep.subr.bf16.mxu0 %v534_v54 }
  0xa4   : > { %v608_v25 = vpop.trf.xlu1  ;;  %v575_v26 = vpop.trf.xlu0 }
  0xa5   : > { %8312 = vmatprep.mubr.msk.bf16.mxu0 %vm629_vm1, %v575_v26 }
  0xa6   : > { %8447 = vmatpush3.bf16.msra.mxu0 %v534_v54 }
  0xa7   : > { %8598 = vmatprep.subr.msk.bf16.mxu0 %vm726_vm0, %v9686_v1 }
  0xa8   : > { %v609_v27 = vpop.trf.xlu1  ;;  %v576_v28 = vpop.trf.xlu0 }
  0xa9   : > { %8313 = vmatmul.mubr.msk.bf16.gmra.mrb[4].mxu0 %vm629_vm1, %v576_v28 }
  0xac   : > { %v610_v29 = vpop.trf.xlu1  ;;  %v577_v30 = vpop.trf.xlu0 }
  0xad   : > { %8316 = vmatprep.mubr.msk.bf16.mxu0 %vm629_vm1, %v577_v30 }
  0xb0   : > { %v611_v31 = vpop.trf.xlu1  ;;  %v578_v32 = vpop.trf.xlu0 }
  0xb1   : > { %8317 = vmatmul.mubr.msk.bf16.gmra.mrb[8].mxu0 %vm629_vm1, %v578_v32 }
  0xb4   : > { %v612_v33 = vpop.trf.xlu1  ;;  %v579_v34 = vpop.trf.xlu0 }
  0xb5   : > { %8320 = vmatprep.mubr.msk.bf16.mxu0 %vm629_vm1, %v579_v34 }
  0xb8   : > { %v621_v35 = vpop.trf.xlu1  ;;  %v580_v36 = vpop.trf.xlu0 }
  0xb9   : > { %8321 = vmatmul.mubr.msk.bf16.gmra.mrb[12].mxu0 %vm629_vm1, %v580_v36 }
  0xbc   : > { %v622_v37 = vpop.trf.xlu1  ;;  %v589_v38 = vpop.trf.xlu0 }
  0xbd   : > { %8324 = vmatprep.mubr.msk.bf16.mxu0 %vm629_vm1, %v589_v38 }
  0xc0   : > { %v623_v39 = vpop.trf.xlu1  ;;  %v590_v40 = vpop.trf.xlu0 }
  0xc1   : > { %8325 = vmatmul.mubr.msk.bf16.gmra.mrb[16].mxu0 %vm629_vm1, %v590_v40 }
  0xc4   : > { %v624_v41 = vpop.trf.xlu1  ;;  %v591_v42 = vpop.trf.xlu0 }
  0xc5   : > { %8328 = vmatprep.mubr.msk.bf16.mxu0 %vm629_vm1, %v591_v42 }
  0xc8   : > { %v625_v43 = vpop.trf.xlu1  ;;  %v592_v44 = vpop.trf.xlu0 }
  0xc9   : > { %8329 = vmatmul.mubr.msk.bf16.gmra.mrb[20].mxu0 %vm629_vm1, %v592_v44 }
  0xcc   : > { %v626_v45 = vpop.trf.xlu1  ;;  %v593_v46 = vpop.trf.xlu0 }
  0xcd   : > { %8332 = vmatprep.mubr.msk.bf16.mxu0 %vm629_vm1, %v593_v46 }
  0xd0   : > { %v627_v47 = vpop.trf.xlu1  ;;  %v594_v48 = vpop.trf.xlu0 }
  0xd1   : > { %8368 = vmatprep.mubr.msk.bf16.mxu1 %vm629_vm1, %v627_v47  ;;  %8333 = vmatmul.mubr.msk.bf16.gmra.mrb[24].mxu0 %vm629_vm1, %v594_v48 }
  0xd4   : > { %v628_v49 = vpop.trf.xlu1  ;;  %v595_v50 = vpop.trf.xlu0 }
  0xd5   : > { %8369 = vmatmul.mubr.msk.bf16.vlgmr.msra.gmra.mrb[0].mxu1 %vm629_vm1, %v628_v49  ;;  %8336 = vmatprep.mubr.msk.bf16.mxu0 %vm629_vm1, %v595_v50 }
  0xd6   : > { %8373 = vmatpush3.bf16.msra.mxu1 %v533_v19 }
  0xd7   : > { %8374 = vmatprep.subr.bf16.mxu1 %v534_v54 }
  0xd8   : > { %v596_v51 = vpop.trf.xlu0 }
  0xd9   : > { %8337 = vmatmul.mubr.msk.bf16.gmra.mrb[28].mxu0 %vm629_vm1, %v596_v51 }
  0xda   : > { %8340 = vmatprep.mubr.msk.bf16.mxu0 %vm629_vm1, %v605_v20  ;;  %8375 = vmatpush3.bf16.msra.mxu1 %v534_v54 }
  0xdb   : > { %8408 = vmatprep.subr.bf16.mxu1 %v9768_v59 }
  0xe1   : > { %8341 = vmatmul.mubr.msk.bf16.gmra.mrb[32].mxu0 %vm629_vm1, %v606_v21 }
  0xe2   : > { %8344 = vmatprep.mubr.msk.bf16.mxu0 %vm629_vm1, %v607_v23 }
  0xe9   : > { %8345 = vmatmul.mubr.msk.bf16.gmra.mrb[36].mxu0 %vm629_vm1, %v608_v25 }
  0xea   : > { %8348 = vmatprep.mubr.msk.bf16.mxu0 %vm629_vm1, %v609_v27 }
  0xf1   : > { %8349 = vmatmul.mubr.msk.bf16.gmra.mrb[40].mxu0 %vm629_vm1, %v610_v29 }
  0xf2   : > { %8352 = vmatprep.mubr.msk.bf16.mxu0 %vm629_vm1, %v611_v31 }
  0xf9   : > { %8353 = vmatmul.mubr.msk.bf16.gmra.mrb[44].mxu0 %vm629_vm1, %v612_v33 }
  0xfa   : > { %8356 = vmatprep.mubr.msk.bf16.mxu0 %vm629_vm1, %v621_v35 }
 0x101   : > { %8357 = vmatmul.mubr.msk.bf16.gmra.mrb[48].mxu0 %vm629_vm1, %v622_v37 }
 0x102   : > { %8360 = vmatprep.mubr.msk.bf16.mxu0 %vm629_vm1, %v623_v39 }
 0x109   : > { %8361 = vmatmul.mubr.msk.bf16.gmra.mrb[52].mxu0 %vm629_vm1, %v624_v41 }
 0x10a   : > { %8364 = vmatprep.mubr.msk.bf16.mxu0 %vm629_vm1, %v625_v43 }
 0x111   : > { %8365 = vmatmul.mubr.msk.bf16.gmra.mrb[56].mxu0 %vm629_vm1, %v626_v45 }
 0x174   : > { %v8310_v60 = vpop.f32.mrb[0].mxu0 }
 0x175   : > { %v764_v62 = vpop.f32.mrb[1].mxu0  ;;  %v773_v0 = vadd.f32 %v8310_v60, %v9774_v61 }
 0x176   : > { %v8311_v63 = vpop.f32.mrb[2].mxu0  ;;  %v765_v4 = vadd.f32 %v9774_v61, %v764_v62 }
 0x177   : > { %v776_v1 = vadd.f32 %v8311_v63, %v9774_v61  ;;  %v767_v3 = vpop.f32.mrb[3].mxu0 }
 0x178   : > { %v768_v5 = vadd.f32 %v9774_v61, %v767_v3 }
 0x179   : > { %v9786_v8 = vpack.c.bf16 %v776_v1, %v773_v0 }
 0x17a   : > { %v9788_v9 = vpack.c.bf16 %v768_v5, %v765_v4 }
 0x17c   : > { %v8314_v11 = vpop.f32.mrb[4].mxu0  ;;  %8376 = vmatprep.mubr.msk.bf16.mxu1 %vm1051_vm2, %v9788_v9 }
 0x17d   : > { %v780_v12 = vpop.f32.mrb[5].mxu0  ;;  %8377 = vmatmul.mubr.msk.bf16.vlgmr.msra.gmra.mrb[4].mxu1 %vm1051_vm2, %v9786_v8  ;;  %v789_v14 = vadd.f32 %v8314_v11, %v9774_v61 }
 0x17e   : > { %v8315_v13 = vpop.f32.mrb[6].mxu0  ;;  %8409 = vmatpush3.bf16.msra.mxu1 %v9768_v59  ;;  %v781_v17 = vadd.f32 %v9774_v61, %v780_v12 }
 0x17f   : > { %v792_v15 = vadd.f32 %v8315_v13, %v9774_v61  ;;  %v783_v16 = vpop.f32.mrb[7].mxu0  ;;  %8410 = vmatprep.subr.bf16.mxu1 %v9790_v10 }
 0x180   : > { %v784_v18 = vadd.f32 %v9774_v61, %v783_v16 }
 0x181   : > { %v9802_v19 = vpack.c.bf16 %v792_v15, %v789_v14 }
 0x182   : > { %v9804_v20 = vpack.c.bf16 %v784_v18, %v781_v17  ;;  %8411 = vmatpush3.bf16.msra.mxu1 %v9790_v10 }
 0x183   : > { %8480 = vmatprep.subr.bf16.mxu1 %v9768_v59 }
 0x184   : > { %v8318_v21 = vpop.f32.mrb[8].mxu0  ;;  %8380 = vmatprep.mubr.msk.bf16.mxu1 %vm1051_vm2, %v9804_v20 }
 0x185   : > { %v796_v22 = vpop.f32.mrb[9].mxu0  ;;  %8381 = vmatmul.mubr.msk.bf16.gmra.mrb[8].mxu1 %vm1051_vm2, %v9802_v19  ;;  %v805_v24 = vadd.f32 %v8318_v21, %v9774_v61 }
 0x186   : > { %v8319_v23 = vpop.f32.mrb[10].mxu0  ;;  %v797_v27 = vadd.f32 %v9774_v61, %v796_v22 }
 0x187   : > { %v808_v25 = vadd.f32 %v8319_v23, %v9774_v61  ;;  %v799_v26 = vpop.f32.mrb[11].mxu0 }
 0x188   : > { %v800_v28 = vadd.f32 %v9774_v61, %v799_v26 }
 0x189   : > { %v9816_v29 = vpack.c.bf16 %v808_v25, %v805_v24 }
 0x18a   : > { %v9818_v30 = vpack.c.bf16 %v800_v28, %v797_v27 }
 0x18c   : > { %v8322_v31 = vpop.f32.mrb[12].mxu0  ;;  %8384 = vmatprep.mubr.msk.bf16.mxu1 %vm1051_vm2, %v9818_v30 }
 0x18d   : > { %v812_v32 = vpop.f32.mrb[13].mxu0  ;;  %8385 = vmatmul.mubr.msk.bf16.gmra.mrb[12].mxu1 %vm1051_vm2, %v9816_v29  ;;  %v821_v34 = vadd.f32 %v8322_v31, %v9774_v61 }
 0x18e   : > { %v8323_v33 = vpop.f32.mrb[14].mxu0  ;;  %v813_v37 = vadd.f32 %v9774_v61, %v812_v32 }
 0x18f   : > { %v824_v35 = vadd.f32 %v8323_v33, %v9774_v61  ;;  %v815_v36 = vpop.f32.mrb[15].mxu0 }
 0x190   : > { %v816_v38 = vadd.f32 %v9774_v61, %v815_v36 }
 0x191   : > { %v9828_v39 = vpack.c.bf16 %v824_v35, %v821_v34 }
 0x192   : > { %v9830_v40 = vpack.c.bf16 %v816_v38, %v813_v37 }
 0x194   : > { %v8326_v41 = vpop.f32.mrb[16].mxu0  ;;  %8388 = vmatprep.mubr.msk.bf16.mxu1 %vm1051_vm2, %v9830_v40 }
 0x195   : > { %v828_v42 = vpop.f32.mrb[17].mxu0  ;;  %8389 = vmatmul.mubr.msk.bf16.gmra.mrb[16].mxu1 %vm1051_vm2, %v9828_v39  ;;  %v837_v44 = vadd.f32 %v8326_v41, %v9774_v61 }
 0x196   : > { %v8327_v43 = vpop.f32.mrb[18].mxu0  ;;  %v829_v47 = vadd.f32 %v9774_v61, %v828_v42 }
 0x197   : > { %v840_v45 = vadd.f32 %v8327_v43, %v9774_v61  ;;  %v831_v46 = vpop.f32.mrb[19].mxu0 }
 0x198   : > { %v832_v48 = vadd.f32 %v9774_v61, %v831_v46 }
 0x199   : > { %v9840_v49 = vpack.c.bf16 %v840_v45, %v837_v44 }
 0x19a   : > { %v9842_v50 = vpack.c.bf16 %v832_v48, %v829_v47 }
 0x19c   : > { %v8330_v51 = vpop.f32.mrb[20].mxu0  ;;  %8392 = vmatprep.mubr.msk.bf16.mxu1 %vm1051_vm2, %v9842_v50 }
 0x19d   : > { %v844_v52 = vpop.f32.mrb[21].mxu0  ;;  %8393 = vmatmul.mubr.msk.bf16.gmra.mrb[20].mxu1 %vm1051_vm2, %v9840_v49  ;;  %v853_v54 = vadd.f32 %v8330_v51, %v9774_v61 }
 0x19e   : > { %v8331_v53 = vpop.f32.mrb[22].mxu0  ;;  %v845_v57 = vadd.f32 %v9774_v61, %v844_v52 }
 0x19f   : > { %v856_v55 = vadd.f32 %v8331_v53, %v9774_v61  ;;  %v847_v56 = vpop.f32.mrb[23].mxu0 }
 0x1a0   : > { %v848_v58 = vadd.f32 %v9774_v61, %v847_v56 }
 0x1a1   : > { %v9852_v60 = vpack.c.bf16 %v856_v55, %v853_v54 }
 0x1a2   : > { %v9854_v62 = vpack.c.bf16 %v848_v58, %v845_v57 }
 0x1a4   : > { %v8334_v63 = vpop.f32.mrb[24].mxu0  ;;  %8396 = vmatprep.mubr.msk.bf16.mxu1 %vm1051_vm2, %v9854_v62 }
 0x1a5   : > { %v860_v0 = vpop.f32.mrb[25].mxu0  ;;  %8397 = vmatmul.mubr.msk.bf16.gmra.mrb[24].mxu1 %vm1051_vm2, %v9852_v60  ;;  %v869_v4 = vadd.f32 %v8334_v63, %v9774_v61 }
 0x1a6   : > { %v8335_v1 = vpop.f32.mrb[26].mxu0  ;;  %v861_v12 = vadd.f32 %v9774_v61, %v860_v0 }
 0x1a7   : > { %v872_v5 = vadd.f32 %v8335_v1, %v9774_v61  ;;  %v863_v6 = vpop.f32.mrb[27].mxu0 }
 0x1a8   : > { %v8370_v3 = vpop.f32.mrb[0].mxu1  ;;  %v864_v13 = vadd.f32 %v9774_v61, %v863_v6 }
 0x1a9   : > { %v1013_v7 = vadd.f32 %v8370_v3, %v9774_v61  ;;  %v1004_v11 = vpop.f32.mrb[1].mxu1  ;;  %v9866_v16 = vpack.c.bf16 %v872_v5, %v869_v4 }
 0x1aa   : > { %v1005_v14 = vadd.f32 %v9774_v61, %v1004_v11  ;;  %v8371_v15 = vpop.f32.mrb[2].mxu1  ;;  %v9869_v21 = vpack.c.bf16 %v864_v13, %v861_v12 }
 0x1ab   : > { %v1016_v17 = vadd.f32 %v8371_v15, %v9774_v61  ;;  %v1007_v18 = vpop.f32.mrb[3].mxu1 }
 0x1ac   : > { %v1008_v22 = vadd.f32 %v9774_v61, %v1007_v18  ;;  %v8338_v24 = vpop.f32.mrb[28].mxu0  ;;  %8400 = vmatprep.mubr.msk.bf16.mxu1 %vm1051_vm2, %v9869_v21 }
 0x1ad   : > { %v9872_v23 = vpack.c.bf16 %v1016_v17, %v1013_v7  ;;  %v876_v26 = vpop.f32.mrb[29].mxu0  ;;  %8401 = vmatmul.mubr.msk.bf16.gmra.mrb[28].mxu1 %vm1051_vm2, %v9866_v16  ;;  %v885_v28 = vadd.f32 %v8338_v24, %v9774_v61 }
 0x1ae   : > { %v9876_v25 = vpack.c.bf16 %v1008_v22, %v1005_v14  ;;  %v8339_v27 = vpop.f32.mrb[30].mxu0  ;;  %v877_v33 = vadd.f32 %v9774_v61, %v876_v26 }
 0x1af   : > { %v888_v31 = vadd.f32 %v8339_v27, %v9774_v61  ;;  %v879_v32 = vpop.f32.mrb[31].mxu0 }
 0x1b0   : > { %v880_v34 = vadd.f32 %v9774_v61, %v879_v32 }
 0x1b1   : > { %v9884_v35 = vpack.c.bf16 %v888_v31, %v885_v28 }
 0x1b2   : > { %v9886_v36 = vpack.c.bf16 %v880_v34, %v877_v33 }
 0x1b4   : > { %v8342_v37 = vpop.f32.mrb[32].mxu0  ;;  %8404 = vmatprep.mubr.msk.bf16.mxu1 %vm1051_vm2, %v9886_v36 }
 0x1b5   : > { %v892_v38 = vpop.f32.mrb[33].mxu0  ;;  %8405 = vmatmul.mubr.msk.bf16.gmra.mrb[32].mxu1 %vm1051_vm2, %v9884_v35  ;;  %v901_v42 = vadd.f32 %v8342_v37, %v9774_v61 }
 0x1b6   : > { %v8343_v41 = vpop.f32.mrb[34].mxu0  ;;  %8412 = vmatprep.mubr.msk.bf16.mxu1 %vm1051_vm2, %v9788_v9  ;;  %v893_v45 = vadd.f32 %v9774_v61, %v892_v38 }
 0x1b7   : > { %v904_v43 = vadd.f32 %v8343_v41, %v9774_v61  ;;  %v895_v44 = vpop.f32.mrb[35].mxu0 }
 0x1b8   : > { %v896_v46 = vadd.f32 %v9774_v61, %v895_v44 }
 0x1b9   : > { %v9898_v47 = vpack.c.bf16 %v904_v43, %v901_v42 }
 0x1ba   : > { %v9900_v48 = vpack.c.bf16 %v896_v46, %v893_v45 }
 0x1bc   : > { %v8346_v51 = vpop.f32.mrb[36].mxu0  ;;  %8448 = vmatprep.mubr.msk.bf16.mxu0 %vm1051_vm2, %v9900_v48 }
 0x1bd   : > { %v908_v52 = vpop.f32.mrb[37].mxu0  ;;  %8413 = vmatmul.mubr.msk.bf16.vlgmr.msra.gmra.mrb[36].mxu1 %vm1051_vm2, %v9786_v8  ;;  %8449 = vmatmul.mubr.msk.bf16.vlgmr.msra.gmra.mrb[60].mxu0 %vm1051_vm2, %v9898_v47  ;;  %v917_v53 = vadd.f32 %v8346_v51, %v9774_v61 }
 0x1be   : > { %v8347_v9 = vpop.f32.mrb[38].mxu0  ;;  %8416 = vmatprep.mubr.msk.bf16.mxu1 %vm1051_vm2, %v9804_v20  ;;  %8517 = vmatpush3.bf16.msra.mxu0 %v9695_v2  ;;  %v909_v56 = vadd.f32 %v9774_v61, %v908_v52 }
 0x1bf   : > { %v920_v54 = vadd.f32 %v8347_v9, %v9774_v61  ;;  %v911_v55 = vpop.f32.mrb[39].mxu0  ;;  %8481 = vmatpush3.bf16.msra.mxu1 %v9768_v59 }
 0x1c0   : > { %v912_v8 = vadd.f32 %v9774_v61, %v911_v55  ;;  %8482 = vmatprep.subr.bf16.mxu1 %v9790_v10 }
 0x1c1   : > { %v9917_v57 = vpack.c.bf16 %v920_v54, %v917_v53 }
 0x1c2   : > { %v9919_v58 = vpack.c.bf16 %v912_v8, %v909_v56  ;;  %v524_v56 = vld [vmem:[%s13685_s6 + $0x8] sm:$0xff] }
 0x1c3   : > { %8483 = vmatpush3.bf16.msra.mxu1 %v9790_v10 }
 0x1c4   : > { %v8350_v2 = vpop.f32.mrb[40].mxu0  ;;  %8452 = vmatprep.mubr.msk.bf16.mxu0 %vm1051_vm2, %v9919_v58 }
 0x1c5   : > { %v924_v20 = vpop.f32.mrb[41].mxu0  ;;  %8417 = vmatmul.mubr.msk.bf16.gmra.mrb[40].mxu1 %vm1051_vm2, %v9802_v19  ;;  %8453 = vmatmul.mubr.msk.bf16.gmra.mrb[64].mxu0 %vm1051_vm2, %v9917_v57  ;;  %v933_v63 = vadd.f32 %v8350_v2, %v9774_v61 }
 0x1c6   : > { %v8351_v59 = vpop.f32.mrb[42].mxu0  ;;  %8420 = vmatprep.mubr.msk.bf16.mxu1 %vm1051_vm2, %v9818_v30  ;;  %v925_v1 = vadd.f32 %v9774_v61, %v924_v20  ;;  %v526_v20 = vld [vmem:[%s13685_s6 + $0x18] sm:$0xff] }
 0x1c7   : > { %v936_v0 = vadd.f32 %v8351_v59, %v9774_v61  ;;  %v927_v10 = vpop.f32.mrb[43].mxu0 }
 0x1c8   : > { %v928_v3 = vadd.f32 %v9774_v61, %v927_v10 }
 0x1c9   : > { %v9934_v4 = vpack.c.bf16 %v936_v0, %v933_v63 }
 0x1ca   : > { %v9936_v5 = vpack.c.bf16 %v928_v3, %v925_v1 }
 0x1cc   : > { %v8354_v19 = vpop.f32.mrb[44].mxu0  ;;  %8456 = vmatprep.mubr.msk.bf16.mxu0 %vm1051_vm2, %v9936_v5 }
 0x1cd   : > { %v940_v6 = vpop.f32.mrb[45].mxu0  ;;  %8421 = vmatmul.mubr.msk.bf16.gmra.mrb[44].mxu1 %vm1051_vm2, %v9816_v29  ;;  %8457 = vmatmul.mubr.msk.bf16.gmra.mrb[68].mxu0 %vm1051_vm2, %v9934_v4  ;;  %v949_v7 = vadd.f32 %v8354_v19, %v9774_v61 }
 0x1ce   : > { %v8355_v30 = vpop.f32.mrb[46].mxu0  ;;  %8424 = vmatprep.mubr.msk.bf16.mxu1 %vm1051_vm2, %v9830_v40  ;;  %v941_v13 = vadd.f32 %v9774_v61, %v940_v6 }
 0x1cf   : > { %v952_v11 = vadd.f32 %v8355_v30, %v9774_v61  ;;  %v943_v12 = vpop.f32.mrb[47].mxu0 }
 0x1d0   : > { %v944_v14 = vadd.f32 %v9774_v61, %v943_v12 }
 0x1d1   : > { %v9950_v15 = vpack.c.bf16 %v952_v11, %v949_v7 }
 0x1d2   : > { %v9952_v17 = vpack.c.bf16 %v944_v14, %v941_v13 }
 0x1d4   : > { %v8358_v29 = vpop.f32.mrb[48].mxu0  ;;  %8460 = vmatprep.mubr.msk.bf16.mxu0 %vm1051_vm2, %v9952_v17 }
 0x1d5   : > { %v956_v18 = vpop.f32.mrb[49].mxu0  ;;  %8425 = vmatmul.mubr.msk.bf16.gmra.mrb[48].mxu1 %vm1051_vm2, %v9828_v39  ;;  %8461 = vmatmul.mubr.msk.bf16.gmra.mrb[72].mxu0 %vm1051_vm2, %v9950_v15  ;;  %v965_v22 = vadd.f32 %v8358_v29, %v9774_v61 }
 0x1d6   : > { %v8359_v40 = vpop.f32.mrb[50].mxu0  ;;  %8428 = vmatprep.mubr.msk.bf16.mxu1 %vm1051_vm2, %v9842_v50  ;;  %v957_v27 = vadd.f32 %v9774_v61, %v956_v18 }
 0x1d7   : > { %v968_v24 = vadd.f32 %v8359_v40, %v9774_v61  ;;  %v959_v26 = vpop.f32.mrb[51].mxu0 }
 0x1d8   : > { %v960_v28 = vadd.f32 %v9774_v61, %v959_v26 }
 0x1d9   : > { %v9966_v31 = vpack.c.bf16 %v968_v24, %v965_v22 }
 0x1da   : > { %v9968_v32 = vpack.c.bf16 %v960_v28, %v957_v27 }
 0x1dc   : > { %v8362_v39 = vpop.f32.mrb[52].mxu0  ;;  %8464 = vmatprep.mubr.msk.bf16.mxu0 %vm1051_vm2, %v9968_v32 }
 0x1dd   : > { %v972_v33 = vpop.f32.mrb[53].mxu0  ;;  %8429 = vmatmul.mubr.msk.bf16.gmra.mrb[52].mxu1 %vm1051_vm2, %v9840_v49  ;;  %8465 = vmatmul.mubr.msk.bf16.gmra.mrb[76].mxu0 %vm1051_vm2, %v9966_v31  ;;  %v981_v34 = vadd.f32 %v8362_v39, %v9774_v61 }
 0x1de   : > { %v8363_v50 = vpop.f32.mrb[54].mxu0  ;;  %8432 = vmatprep.mubr.msk.bf16.mxu1 %vm1051_vm2, %v9854_v62  ;;  %v973_v41 = vadd.f32 %v9774_v61, %v972_v33 }
 0x1df   : > { %v984_v37 = vadd.f32 %v8363_v50, %v9774_v61  ;;  %v975_v38 = vpop.f32.mrb[55].mxu0 }
 0x1e0   : > { %v976_v42 = vadd.f32 %v9774_v61, %v975_v38 }
 0x1e1   : > { %v1046_v43 = vpack.c.bf16 %v984_v37, %v981_v34 }
 0x1e2   : > { %v1045_v44 = vpack.c.bf16 %v976_v42, %v973_v41 }
 0x1e4   : > { %v8366_v45 = vpop.f32.mrb[56].mxu0  ;;  %8468 = vmatprep.mubr.msk.bf16.mxu0 %vm1051_vm2, %v1045_v44 }
 0x1e5   : > { %v988_v49 = vpop.f32.mrb[57].mxu0  ;;  %8433 = vmatmul.mubr.msk.bf16.gmra.mrb[56].mxu1 %vm1051_vm2, %v9852_v60  ;;  %8469 = vmatmul.mubr.msk.bf16.gmra.mrb[80].mxu0 %vm1051_vm2, %v1046_v43  ;;  %v997_v46 = vadd.f32 %v8366_v45, %v9774_v61  ;;  %v1871_v60 = vpop.trf.xlu0 }
 0x1e6   : > { %v8367_v62 = vpop.f32.mrb[58].mxu0  ;;  %8436 = vmatprep.mubr.msk.bf16.mxu1 %vm1051_vm2, %v9869_v21  ;;  %v989_v9 = vadd.f32 %v9774_v61, %v988_v49  ;;  %v523_v21 = vld [vmem:[%s13685_s6] sm:$0xff] }
 0x1e7   : > { %v1000_v51 = vadd.f32 %v8367_v62, %v9774_v61  ;;  %v991_v52 = vpop.f32.mrb[59].mxu0  ;;  %v527_v8 = vpack.c.bf16 %v524_v56, %v523_v21 }
 0x1e8   : > { %v992_v53 = vadd.f32 %v9774_v61, %v991_v52 }
 0x1e9   : > { %v1048_v54 = vpack.c.bf16 %v1000_v51, %v997_v46  ;;  %8534 = vmatprep.subr.bf16.mxu1 %v527_v8  ;;  %v1872_v2 = vpop.trf.xlu0 }
 0x1ea   : > { %v1047_v55 = vpack.c.bf16 %v992_v53, %v989_v9 }
 0x1ec   : > { %8472 = vmatprep.mubr.msk.bf16.mxu0 %vm1051_vm2, %v1047_v55 }
 0x1ed   : > { %8437 = vmatmul.mubr.msk.bf16.gmra.mrb[60].mxu1 %vm1051_vm2, %v9866_v16  ;;  %8473 = vmatmul.mubr.msk.bf16.gmra.mrb[84].mxu0 %vm1051_vm2, %v1048_v54  ;;  %v1873_v16 = vpop.trf.xlu0 }
 0x1ee   : > { %8440 = vmatprep.mubr.msk.bf16.mxu1 %vm1051_vm2, %v9886_v36  ;;  %8476 = vmatprep.mubr.msk.bf16.mxu0 %vm1051_vm2, %v9876_v25  ;;  %v525_v36 = vld [vmem:[%s13685_s6 + $0x10] sm:$0xff] }
 0x1ef   : > { %v528_v59 = vpack.c.bf16 %v526_v20, %v525_v36 }
 0x1f5   : > { %8441 = vmatmul.mubr.msk.bf16.gmra.mrb[64].mxu1 %vm1051_vm2, %v9884_v35  ;;  %8477 = vmatmul.mubr.msk.bf16.gmra.mrb[88].mxu0 %vm1051_vm2, %v9872_v23  ;;  %v1874_v35 = vpop.trf.xlu0 }
 0x1f6   : > { %8484 = vmatprep.mubr.msk.bf16.mxu1 %vm1051_vm2, %v9900_v48  ;;  %8518 = vmatprep.mubr.msk.bf16.mxu0 %vm629_vm1, %v1871_v60 }
 0x1f9   : > { %v1875_v48 = vpop.trf.xlu0 }
 0x1fd   : > { %8485 = vmatmul.mubr.msk.bf16.vlgmr.msra.gmra.mrb[68].mxu1 %vm1051_vm2, %v9898_v47  ;;  %8519 = vmatmul.mubr.msk.bf16.vlgmr.msra.gmra.mrb[92].mxu0 %vm629_vm1, %v1872_v2  ;;  %v1876_v47 = vpop.trf.xlu0 }
 0x1fe   : > { %8488 = vmatprep.mubr.msk.bf16.mxu1 %vm1051_vm2, %v9919_v58  ;;  %8522 = vmatprep.mubr.msk.bf16.mxu0 %vm629_vm1, %v1873_v16 }
 0x1ff   : > { %8535 = vmatpush3.bf16.msra.mxu1 %v527_v8 }
 0x200   : > { %8536 = vmatprep.subr.bf16.mxu1 %v528_v59 }
 0x201   : > { %v1877_v63 = vpop.trf.xlu0 }
 0x203   : > { %8537 = vmatpush3.bf16.msra.mxu1 %v528_v59 }
 0x205   : > { %8489 = vmatmul.mubr.msk.bf16.gmra.mrb[72].mxu1 %vm1051_vm2, %v9917_v57  ;;  %8523 = vmatmul.mubr.msk.bf16.gmra.mrb[96].mxu0 %vm629_vm1, %v1874_v35  ;;  %v1878_v57 = vpop.trf.xlu0 }
 0x206   : > { %8492 = vmatprep.mubr.msk.bf16.mxu1 %vm1051_vm2, %v9936_v5  ;;  %8526 = vmatprep.mubr.msk.bf16.mxu0 %vm629_vm1, %v1875_v48 }
 0x20d   : > { %8493 = vmatmul.mubr.msk.bf16.gmra.mrb[76].mxu1 %vm1051_vm2, %v9934_v4  ;;  %8527 = vmatmul.mubr.msk.bf16.gmra.mrb[100].mxu0 %vm629_vm1, %v1876_v47 }
 0x20e   : > { %8496 = vmatprep.mubr.msk.bf16.mxu1 %vm1051_vm2, %v9952_v17  ;;  %8530 = vmatprep.mubr.msk.bf16.mxu0 %vm629_vm1, %v1877_v63 }
 0x215   : > { %8497 = vmatmul.mubr.msk.bf16.gmra.mrb[80].mxu1 %vm1051_vm2, %v9950_v15  ;;  %8531 = vmatmul.mubr.msk.bf16.gmra.mrb[104].mxu0 %vm629_vm1, %v1878_v57 }
 0x216   : > { %8500 = vmatprep.mubr.msk.bf16.mxu1 %vm1051_vm2, %v9968_v32 }
 0x21d   : > { %8501 = vmatmul.mubr.msk.bf16.gmra.mrb[84].mxu1 %vm1051_vm2, %v9966_v31 }
 0x21e   : > { %8504 = vmatprep.mubr.msk.bf16.mxu1 %vm1051_vm2, %v1045_v44 }
 0x225   : > { %8505 = vmatmul.mubr.msk.bf16.gmra.mrb[88].mxu1 %vm1051_vm2, %v1046_v43 }
 0x226   : > { %8508 = vmatprep.mubr.msk.bf16.mxu1 %vm1051_vm2, %v1047_v55 }
 0x22d   : > { %8509 = vmatmul.mubr.msk.bf16.gmra.mrb[92].mxu1 %vm1051_vm2, %v1048_v54 }
 0x22e   : > { %8512 = vmatprep.mubr.msk.bf16.mxu1 %vm1051_vm2, %v9876_v25 }
 0x235   : > { %8513 = vmatmul.mubr.msk.bf16.gmra.mrb[96].mxu1 %vm1051_vm2, %v9872_v23 }
 0x250   : > { %v8378_v58 = vpop.f32.mrb[4].mxu1 }
 0x251   : > { %v1134_v0 = vpop.f32.mrb[5].mxu1 }
 0x252   : > { %v8379_v10 = vpop.f32.mrb[6].mxu1 }
 0x253   : > { %v10052_v1 = vpack.c.bf16 %v8379_v10, %v8378_v58  ;;  %v1137_v3 = vpop.f32.mrb[7].mxu1 }
 0x254   : > { %v10054_v4 = vpack.c.bf16 %v1137_v3, %v1134_v0 }
 0x255   : > { %13969 = vst [vmem:[#allocation5_spill] sm:$0xff] %v10052_v1  ;;  %3184 = vrot.lane.b32.xlu1 %v10052_v1, %s9546_s22 }
 0x256   : > { %13970 = vst [vmem:[#allocation6_spill] sm:$0xff] %v10054_v4 }
 0x258   : > { %v8382_v5 = vpop.f32.mrb[8].mxu1 }
 0x259   : > { %3182 = vrot.lane.b32.xlu1 %v10054_v4, %s9546_s22  ;;  %v1150_v25 = vpop.f32.mrb[9].mxu1 }
 0x25a   : > { %v8383_v19 = vpop.f32.mrb[10].mxu1 }
 0x25b   : > { %v10060_v6 = vpack.c.bf16 %v8383_v19, %v8382_v5  ;;  %v1153_v23 = vpop.f32.mrb[11].mxu1 }
 0x25c   : > { %v10062_v30 = vpack.c.bf16 %v1153_v23, %v1150_v25 }
 0x25d   : > { %13971 = vst [vmem:[#allocation7_spill] sm:$0xff] %v10060_v6  ;;  %3188 = vrot.lane.b32.xlu1 %v10060_v6, %s9546_s22 }
 0x25e   : > { %13972 = vst [vmem:[#allocation8_spill] sm:$0xff] %v10062_v30 }
 0x260   : > { %v8386_v7 = vpop.f32.mrb[12].mxu1 }
 0x261   : > { %3186 = vrot.lane.b32.xlu1 %v10062_v30, %s9546_s22  ;;  %v1166_v11 = vpop.f32.mrb[13].mxu1 }
 0x262   : > { %v8387_v12 = vpop.f32.mrb[14].mxu1 }
 0x263   : > { %v10068_v13 = vpack.c.bf16 %v8387_v12, %v8386_v7  ;;  %v1169_v14 = vpop.f32.mrb[15].mxu1 }
 0x264   : > { %v10070_v15 = vpack.c.bf16 %v1169_v14, %v1166_v11 }
 0x265   : > { %13973 = vst [vmem:[#allocation9_spill] sm:$0xff] %v10068_v13  ;;  %3192 = vrot.lane.b32.xlu1 %v10068_v13, %s9546_s22 }
 0x266   : > { %13974 = vst [vmem:[#allocation10_spill] sm:$0xff] %v10070_v15 }
 0x268   : > { %v8390_v17 = vpop.f32.mrb[16].mxu1 }
 0x269   : > { %3190 = vrot.lane.b32.xlu1 %v10070_v15, %s9546_s22  ;;  %v1182_v29 = vpop.f32.mrb[17].mxu1 }
 0x26a   : > { %v8391_v18 = vpop.f32.mrb[18].mxu1 }
 0x26b   : > { %v10076_v40 = vpack.c.bf16 %v8391_v18, %v8390_v17  ;;  %v1185_v22 = vpop.f32.mrb[19].mxu1 }
 0x26c   : > { %v10078_v24 = vpack.c.bf16 %v1185_v22, %v1182_v29 }
 0x26d   : > { %13975 = vst [vmem:[#allocation11_spill] sm:$0xff] %v10076_v40 }
 0x26e   : > { %13976 = vst [vmem:[#allocation12_spill] sm:$0xff] %v10078_v24  ;;  %3194 = vrot.lane.b32.xlu1 %v10078_v24, %s9546_s22 }
 0x270   : > { %v8394_v26 = vpop.f32.mrb[20].mxu1 }
 0x271   : > { %v1198_v27 = vpop.f32.mrb[21].mxu1 }
 0x272   : > { %v8395_v28 = vpop.f32.mrb[22].mxu1 }
 0x273   : > { %v10082_v31 = vpack.c.bf16 %v8395_v28, %v8394_v26  ;;  %v1201_v32 = vpop.f32.mrb[23].mxu1 }
 0x274   : > { %v10084_v39 = vpack.c.bf16 %v1201_v32, %v1198_v27 }
 0x275   : > { %13977 = vst [vmem:[#allocation13_spill] sm:$0xff] %v10082_v31  ;;  %3200 = vrot.lane.b32.xlu0 %v10082_v31, %s9546_s22 }
 0x276   : > { %13978 = vst [vmem:[#allocation14_spill] sm:$0xff] %v10084_v39  ;;  %8607 = vmatprep.subr.msk.bf16.mxu1 %vm2137_vm3, %v10084_v39 }
 0x278   : > { %v8398_v33 = vpop.f32.mrb[24].mxu1 }
 0x279   : > { %3198 = vrot.lane.b32.xlu0 %v10084_v39, %s9546_s22  ;;  %v1214_v50 = vpop.f32.mrb[25].mxu1 }
 0x27a   : > { %v8399_v34 = vpop.f32.mrb[26].mxu1 }
 0x27b   : > { %v10092_v37 = vpack.c.bf16 %v8399_v34, %v8398_v33  ;;  %v1217_v38 = vpop.f32.mrb[27].mxu1 }
 0x27c   : > { %v10094_v41 = vpack.c.bf16 %v1217_v38, %v1214_v50 }
 0x27d   : > { %13979 = vst [vmem:[#allocation15_spill] sm:$0xff] %v10092_v37  ;;  %3204 = vrot.lane.b32.xlu0 %v10092_v37, %s9546_s22 }
 0x27e   : > { %13980 = vst [vmem:[#allocation16_spill] sm:$0xff] %v10094_v41 }
 0x280   : > { %v8402_v42 = vpop.f32.mrb[28].mxu1 }
 0x281   : > { %3202 = vrot.lane.b32.xlu0 %v10094_v41, %s9546_s22  ;;  %v1230_v43 = vpop.f32.mrb[29].mxu1 }
 0x282   : > { %v8403_v44 = vpop.f32.mrb[30].mxu1 }
 0x283   : > { %v10100_v45 = vpack.c.bf16 %v8403_v44, %v8402_v42  ;;  %v1233_v49 = vpop.f32.mrb[31].mxu1 }
 0x284   : > { %v10102_v62 = vpack.c.bf16 %v1233_v49, %v1230_v43 }
 0x285   : > { %13981 = vst [vmem:[#allocation17_spill] sm:$0xff] %v10100_v45  ;;  %3208 = vrot.lane.b32.xlu0 %v10100_v45, %s9546_s22 }
 0x286   : > { %13982 = vst [vmem:[#allocation18_spill] sm:$0xff] %v10102_v62 }
 0x288   : > { %v8406_v46 = vpop.f32.mrb[32].mxu1 }
 0x289   : > { %3206 = vrot.lane.b32.xlu0 %v10102_v62, %s9546_s22  ;;  %v1246_v51 = vpop.f32.mrb[33].mxu1 }
 0x28a   : > { %v8407_v52 = vpop.f32.mrb[34].mxu1 }
 0x28b   : > { %v10108_v9 = vpack.c.bf16 %v8407_v52, %v8406_v46  ;;  %v1249_v53 = vpop.f32.mrb[35].mxu1 }
 0x28c   : > { %v10110_v54 = vpack.c.bf16 %v1249_v53, %v1246_v51 }
 0x28d   : > { %13983 = vst [vmem:[#allocation19_spill] sm:$0xff] %v10108_v9 }
 0x28e   : > { %13984 = vst [vmem:[#allocation20_spill] sm:$0xff] %v10110_v54 }
 0x290   : > { %v8414_v55 = vpop.f32.mrb[36].mxu1  ;;  %v8450_v60 = vpop.f32.mrb[60].mxu0 }
 0x291   : > { %v1295_v21 = vpop.f32.mrb[37].mxu1  ;;  %v1504_v56 = vpop.f32.mrb[61].mxu0 }
 0x292   : > { %v8415_v8 = vpop.f32.mrb[38].mxu1  ;;  %v8451_v2 = vpop.f32.mrb[62].mxu0 }
 0x293   : > { %v10112_v16 = vpack.c.bf16 %v8415_v8, %v8414_v55  ;;  %v10114_v36 = vpack.c.bf16 %v8451_v2, %v8450_v60  ;;  %v1298_v20 = vpop.f32.mrb[39].mxu1  ;;  %v1507_v59 = vpop.f32.mrb[63].mxu0 }
 0x294   : > { %v10116_v35 = vpack.c.bf16 %v1298_v20, %v1295_v21  ;;  %v10118_v48 = vpack.c.bf16 %v1507_v59, %v1504_v56 }
 0x295   : > { %13985 = vst [vmem:[#allocation21_spill] sm:$0xff] %v10114_v36  ;;  %3152 = vrot.lane.b32.xlu0 %v10114_v36, %s9546_s22 }
 0x296   : > { %13986 = vst [vmem:[#allocation22_spill] sm:$0xff] %v10118_v48 }
 0x298   : > { %v8418_v47 = vpop.f32.mrb[40].mxu1  ;;  %v8454_v63 = vpop.f32.mrb[64].mxu0 }
 0x299   : > { %v1520_v57 = vpop.f32.mrb[65].mxu0  ;;  %3150 = vrot.lane.b32.xlu0 %v10118_v48, %s9546_s22  ;;  %v1311_v58 = vpop.f32.mrb[41].mxu1 }
 0x29a   : > { %v8419_v0 = vpop.f32.mrb[42].mxu1  ;;  %v8455_v10 = vpop.f32.mrb[66].mxu0 }
 0x29b   : > { %v10124_v3 = vpack.c.bf16 %v8419_v0, %v8418_v47  ;;  %v10126_v5 = vpack.c.bf16 %v8455_v10, %v8454_v63  ;;  %v1314_v25 = vpop.f32.mrb[43].mxu1  ;;  %v1523_v19 = vpop.f32.mrb[67].mxu0  ;;  %v2163_v10 = vsel %vm2137_vm3, %v10118_v48, 0 }
 0x29c   : > { %v10128_v23 = vpack.c.bf16 %v1314_v25, %v1311_v58  ;;  %v10130_v7 = vpack.c.bf16 %v1523_v19, %v1520_v57 }
 0x29d   : > { %13987 = vst [vmem:[#allocation23_spill] sm:$0xff] %v10124_v3  ;;  %13988 = vst [vmem:[#allocation24_spill] sm:$0xff] %v10126_v5  ;;  %3156 = vrot.lane.b32.xlu0 %v10126_v5, %s9546_s22 }
 0x29e   : > { %13989 = vst [vmem:[#allocation25_spill] sm:$0xff] %v10128_v23  ;;  %13990 = vst [vmem:[#allocation26_spill] sm:$0xff] %v10130_v7 }
 0x2a0   : > { %v8422_v11 = vpop.f32.mrb[44].mxu1  ;;  %v8458_v12 = vpop.f32.mrb[68].mxu0 }
 0x2a1   : > { %v1536_v14 = vpop.f32.mrb[69].mxu0  ;;  %3154 = vrot.lane.b32.xlu0 %v10130_v7, %s9546_s22  ;;  %v1327_v17 = vpop.f32.mrb[45].mxu1 }
 0x2a2   : > { %v8423_v29 = vpop.f32.mrb[46].mxu1  ;;  %v8459_v18 = vpop.f32.mrb[70].mxu0 }
 0x2a3   : > { %v10136_v22 = vpack.c.bf16 %v8423_v29, %v8422_v11  ;;  %v10138_v26 = vpack.c.bf16 %v8459_v18, %v8458_v12  ;;  %v1330_v27 = vpop.f32.mrb[47].mxu1  ;;  %v1539_v28 = vpop.f32.mrb[71].mxu0 }
 0x2a4   : > { %v10140_v32 = vpack.c.bf16 %v1330_v27, %v1327_v17  ;;  %v10142_v33 = vpack.c.bf16 %v1539_v28, %v1536_v14 }
 0x2a5   : > { %13991 = vst [vmem:[#allocation27_spill] sm:$0xff] %v10136_v22  ;;  %13992 = vst [vmem:[#allocation28_spill] sm:$0xff] %v10138_v26  ;;  %3160 = vrot.lane.b32.xlu1 %v10138_v26, %s9546_s22 }
 0x2a6   : > { %13993 = vst [vmem:[#allocation29_spill] sm:$0xff] %v10140_v32  ;;  %13994 = vst [vmem:[#allocation30_spill] sm:$0xff] %v10142_v33 }
 0x2a8   : > { %v8426_v50 = vpop.f32.mrb[48].mxu1  ;;  %v8462_v34 = vpop.f32.mrb[72].mxu0 }
 0x2a9   : > { %v1552_v38 = vpop.f32.mrb[73].mxu0  ;;  %3158 = vrot.lane.b32.xlu1 %v10142_v33, %s9546_s22  ;;  %v1343_v42 = vpop.f32.mrb[49].mxu1 }
 0x2aa   : > { %v8427_v43 = vpop.f32.mrb[50].mxu1  ;;  %v8463_v44 = vpop.f32.mrb[74].mxu0 }
 0x2ab   : > { %v10148_v49 = vpack.c.bf16 %v8427_v43, %v8426_v50  ;;  %v10150_v46 = vpack.c.bf16 %v8463_v44, %v8462_v34  ;;  %v1346_v51 = vpop.f32.mrb[51].mxu1  ;;  %v1555_v52 = vpop.f32.mrb[75].mxu0 }
 0x2ac   : > { %v10152_v53 = vpack.c.bf16 %v1346_v51, %v1343_v42  ;;  %v10154_v55 = vpack.c.bf16 %v1555_v52, %v1552_v38  ;;  %v2166_v38 = vsel %vm2137_vm3, %v10114_v36, 0 }
 0x2ad   : > { %13995 = vst [vmem:[#allocation31_spill] sm:$0xff] %v10148_v49  ;;  %13996 = vst [vmem:[#allocation32_spill] sm:$0xff] %v10150_v46 }
 0x2ae   : > { %13997 = vst [vmem:[#allocation33_spill] sm:$0xff] %v10152_v53  ;;  %13998 = vst [vmem:[#allocation34_spill] sm:$0xff] %v10154_v55  ;;  %3162 = vrot.lane.b32.xlu1 %v10154_v55, %s9546_s22 }
 0x2b0   : > { %v8430_v60 = vpop.f32.mrb[52].mxu1  ;;  %v8466_v21 = vpop.f32.mrb[76].mxu0 }
 0x2b1   : > { %v1359_v56 = vpop.f32.mrb[53].mxu1  ;;  %v1568_v8 = vpop.f32.mrb[77].mxu0 }
 0x2b2   : > { %v8431_v2 = vpop.f32.mrb[54].mxu1  ;;  %v8467_v20 = vpop.f32.mrb[78].mxu0 }
 0x2b3   : > { %v10158_v59 = vpack.c.bf16 %v8431_v2, %v8430_v60  ;;  %v10160_v47 = vpack.c.bf16 %v8467_v20, %v8466_v21  ;;  %v1362_v63 = vpop.f32.mrb[55].mxu1  ;;  %v1571_v57 = vpop.f32.mrb[79].mxu0 }
 0x2b4   : > { %v10162_v58 = vpack.c.bf16 %v1362_v63, %v1359_v56  ;;  %v10164_v0 = vpack.c.bf16 %v1571_v57, %v1568_v8  ;;  %v2169_v57 = vsel %vm2137_vm3, %v10130_v7, 0 }
 0x2b5   : > { %13999 = vst [vmem:[#allocation35_spill] sm:$0xff] %v10160_v47  ;;  %3168 = vrot.lane.b32.xlu1 %v10160_v47, %s9546_s22 }
 0x2b6   : > { %14000 = vst [vmem:[#allocation36_spill] sm:$0xff] %v10164_v0  ;;  %8599 = vmatprep.subr.msk.bf16.mxu0 %vm2137_vm3, %v10164_v0 }
 0x2b7   : > { %7520 = vmatpush3.bf16.xpose.msra.mxu0 %v2163_v10 }
 0x2b8   : > { %v8434_v25 = vpop.f32.mrb[56].mxu1  ;;  %v8470_v19 = vpop.f32.mrb[80].mxu0  ;;  %8600 = vmatprep.subr.msk.bf16.mxu0 %vm2137_vm3, %v10160_v47 }
 0x2b9   : > { %v1584_v11 = vpop.f32.mrb[81].mxu0  ;;  %3166 = vrot.lane.b32.xlu1 %v10164_v0, %s9546_s22  ;;  %v1375_v12 = vpop.f32.mrb[57].mxu1 }
 0x2ba   : > { %v8435_v14 = vpop.f32.mrb[58].mxu1  ;;  %v8471_v17 = vpop.f32.mrb[82].mxu0 }
 0x2bb   : > { %v10176_v29 = vpack.c.bf16 %v8435_v14, %v8434_v25  ;;  %v10178_v18 = vpack.c.bf16 %v8471_v17, %v8470_v19  ;;  %v1378_v27 = vpop.f32.mrb[59].mxu1  ;;  %v1587_v28 = vpop.f32.mrb[83].mxu0 }
 0x2bc   : > { %v10180_v50 = vpack.c.bf16 %v1378_v27, %v1375_v12  ;;  %v10182_v34 = vpack.c.bf16 %v1587_v28, %v1584_v11 }
 0x2bd   : > { %14001 = vst [vmem:[#allocation37_spill] sm:$0xff] %v10176_v29  ;;  %14002 = vst [vmem:[#allocation38_spill] sm:$0xff] %v10178_v18  ;;  %3172 = vrot.lane.b32.xlu1 %v10178_v18, %s9546_s22 }
 0x2be   : > { %14003 = vst [vmem:[#allocation39_spill] sm:$0xff] %v10182_v34 }
 0x2bf   : > { %7522 = vmatpush3.bf16.xpose.msra.mxu0 %v2166_v38 }
 0x2c0   : > { %v8438_v42 = vpop.f32.mrb[60].mxu1  ;;  %v8474_v43 = vpop.f32.mrb[84].mxu0  ;;  %8601 = vmatprep.subr.msk.bf16.mxu0 %vm2137_vm3, %v10182_v34 }
 0x2c1   : > { %v1600_v44 = vpop.f32.mrb[85].mxu0  ;;  %3170 = vrot.lane.b32.xlu1 %v10182_v34, %s9546_s22  ;;  %v1391_v51 = vpop.f32.mrb[61].mxu1 }
 0x2c2   : > { %v8439_v52 = vpop.f32.mrb[62].mxu1  ;;  %v8475_v60 = vpop.f32.mrb[86].mxu0 }
 0x2c3   : > { %v10192_v21 = vpack.c.bf16 %v8439_v52, %v8438_v42  ;;  %v10194_v56 = vpack.c.bf16 %v8475_v60, %v8474_v43  ;;  %v1394_v8 = vpop.f32.mrb[63].mxu1  ;;  %v1603_v2 = vpop.f32.mrb[87].mxu0 }
 0x2c4   : > { %v10196_v20 = vpack.c.bf16 %v1394_v8, %v1391_v51  ;;  %v10198_v63 = vpack.c.bf16 %v1603_v2, %v1600_v44  ;;  %v2172_v44 = vsel %vm2137_vm3, %v10126_v5, 0 }
 0x2c5   : > { %14004 = vst [vmem:[#allocation40_spill] sm:$0xff] %v10192_v21  ;;  %14005 = vst [vmem:[#allocation41_spill] sm:$0xff] %v10194_v56  ;;  %3176 = vrot.lane.b32.xlu0 %v10194_v56, %s9546_s22 }
 0x2c6   : > { %14006 = vst [vmem:[#allocation42_spill] sm:$0xff] %v10196_v20  ;;  %14007 = vst [vmem:[#allocation43_spill] sm:$0xff] %v10198_v63 }
 0x2c7   : > { %7524 = vmatpush3.bf16.xpose.msra.mxu0 %v2169_v57 }
 0x2c8   : > { %v8442_v10 = vpop.f32.mrb[64].mxu1  ;;  %v8478_v25 = vpop.f32.mrb[88].mxu0  ;;  %8602 = vmatprep.subr.msk.bf16.mxu0 %vm2137_vm3, %v10178_v18 }
 0x2c9   : > { %3174 = vrot.lane.b32.xlu0 %v10198_v63, %s9546_s22  ;;  %v1407_v19 = vpop.f32.mrb[65].mxu1  ;;  %v1616_v11 = vpop.f32.mrb[89].mxu0 }
 0x2ca   : > { %v8443_v12 = vpop.f32.mrb[66].mxu1  ;;  %v8479_v14 = vpop.f32.mrb[90].mxu0 }
 0x2cb   : > { %v10208_v17 = vpack.c.bf16 %v8443_v12, %v8442_v10  ;;  %v10210_v27 = vpack.c.bf16 %v8479_v14, %v8478_v25  ;;  %v1410_v28 = vpop.f32.mrb[67].mxu1  ;;  %v1619_v42 = vpop.f32.mrb[91].mxu0 }
 0x2cc   : > { %v10212_v38 = vpack.c.bf16 %v1410_v28, %v1407_v19  ;;  %v10214_v43 = vpack.c.bf16 %v1619_v42, %v1616_v11 }
 0x2cd   : > { %14008 = vst [vmem:[#allocation44_spill] sm:$0xff] %v10208_v17  ;;  %14009 = vst [vmem:[#allocation45_spill] sm:$0xff] %v10210_v27 }
 0x2ce   : > { %14010 = vst [vmem:[#allocation46_spill] sm:$0xff] %v10212_v38  ;;  %14011 = vst [vmem:[#allocation47_spill] sm:$0xff] %v10214_v43  ;;  %3178 = vrot.lane.b32.xlu0 %v10214_v43, %s9546_s22 }
 0x2cf   : > { %7526 = vmatpush3.bf16.xpose.msra.mxu0 %v2172_v44  ;;  %v2175_v44 = vsel %vm2137_vm3, %v10142_v33, 0 }
 0x2d0   : > { %v8486_v51 = vpop.f32.mrb[68].mxu1  ;;  %v8520_v52 = vpop.f32.mrb[92].mxu0  ;;  %8603 = vmatprep.subr.msk.bf16.mxu0 %vm2137_vm3, %v10198_v63 }
 0x2d1   : > { %v1665_v60 = vpop.f32.mrb[69].mxu1  ;;  %v1937_v8 = vpop.f32.mrb[93].mxu0  ;;  %v10236_v42 = vadd.f32 %v8520_v52, %v9774_v61 }
 0x2d2   : > { %v8487_v2 = vpop.f32.mrb[70].mxu1  ;;  %v8521_v57 = vpop.f32.mrb[94].mxu0  ;;  %v10230_v14 = vadd.f32 %v9774_v61, %v1937_v8 }
 0x2d3   : > { %v10222_v10 = vpack.c.bf16 %v8487_v2, %v8486_v51  ;;  %v1668_v25 = vpop.f32.mrb[71].mxu1  ;;  %v10225_v19 = vadd.f32 %v8521_v57, %v9774_v61  ;;  %v1940_v12 = vpop.f32.mrb[95].mxu0  ;;  %14015 = vst [vmem:[#allocation51_spill] sm:$0xff] %v10236_v42 }
 0x2d4   : > { %v10227_v11 = vpack.c.bf16 %v1668_v25, %v1665_v60  ;;  %14013 = vst [vmem:[#allocation49_spill] sm:$0xff] %v10230_v14  ;;  %v10233_v28 = vadd.f32 %v9774_v61, %v1940_v12  ;;  %v2211_v12 = vsel %vm2137_vm3, %v10054_v4, 0 }
 0x2d5   : > { %14012 = vst [vmem:[#allocation48_spill] sm:$0xff] %v10225_v19  ;;  %v2001_v60 = vpack.c.bf16 %v10225_v19, %v10236_v42 }
 0x2d6   : > { %14014 = vst [vmem:[#allocation50_spill] sm:$0xff] %v10233_v28  ;;  %v2000_v51 = vpack.c.bf16 %v10233_v28, %v10230_v14 }
 0x2d7   : > { %7528 = vmatpush3.bf16.xpose.msra.mxu0 %v2175_v44 }
 0x2d8   : > { %v8490_v2 = vpop.f32.mrb[72].mxu1  ;;  %8604 = vmatprep.subr.msk.bf16.mxu0 %vm2137_vm3, %v10194_v56  ;;  %v8524_v8 = vpop.f32.mrb[96].mxu0  ;;  %8538 = vmatprep.mubr.msk.bf16.mxu1 %vm1051_vm2, %v2000_v51 }
 0x2d9   : > { %v1681_v57 = vpop.f32.mrb[73].mxu1  ;;  %v1953_v52 = vpop.f32.mrb[97].mxu0  ;;  %v10248_v25 = vadd.f32 %v8524_v8, %v9774_v61  ;;  %8539 = vmatmul.mubr.msk.bf16.vlgmr.msra.gmra.mrb[100].mxu1 %vm1051_vm2, %v2001_v60 }
 0x2da   : > { %v8491_v44 = vpop.f32.mrb[74].mxu1  ;;  %v8525_v28 = vpop.f32.mrb[98].mxu0  ;;  %7552 = vmatpush3.bf16.xpose.msra.mxu1 %v2211_v12  ;;  %v10256_v19 = vadd.f32 %v9774_v61, %v1953_v52  ;;  %v2178_v52 = vsel %vm2137_vm3, %v10138_v26, 0 }
 0x2db   : > { %14016 = vst [vmem:[#allocation52_spill] sm:$0xff] %v10248_v25  ;;  %v10253_v14 = vpack.c.bf16 %v8491_v44, %v8490_v2  ;;  %v1684_v42 = vpop.f32.mrb[75].mxu1  ;;  %v10259_v51 = vadd.f32 %v8525_v28, %v9774_v61  ;;  %8608 = vmatprep.subr.msk.bf16.mxu1 %vm2137_vm3, %v10082_v31  ;;  %v1956_v60 = vpop.f32.mrb[99].mxu0  ;;  %v2214_v44 = vsel %vm2137_vm3, %v10052_v1, 0 }
 0x2dc   : > { %14018 = vst [vmem:[#allocation54_spill] sm:$0xff] %v10256_v19  ;;  %v10263_v8 = vpack.c.bf16 %v1684_v42, %v1681_v57  ;;  %v10266_v56 = vadd.f32 %v9774_v61, %v1956_v60 }
 0x2dd   : > { %14017 = vst [vmem:[#allocation53_spill] sm:$0xff] %v10253_v14  ;;  %14019 = vst [vmem:[#allocation55_spill] sm:$0xff] %v10259_v51  ;;  %v2003_v2 = vpack.c.bf16 %v10259_v51, %v10248_v25 }
 0x2de   : > { %14020 = vst [vmem:[#allocation56_spill] sm:$0xff] %v10263_v8  ;;  %14021 = vst [vmem:[#allocation57_spill] sm:$0xff] %v10266_v56  ;;  %v2002_v12 = vpack.c.bf16 %v10266_v56, %v10256_v19 }
 0x2df   : > { %7530 = vmatpush3.bf16.xpose.msra.mxu0 %v2178_v52 }
 0x2e0   : > { %v8494_v28 = vpop.f32.mrb[76].mxu1  ;;  %8605 = vmatprep.subr.msk.bf16.mxu0 %vm2137_vm3, %v10214_v43  ;;  %8542 = vmatprep.mubr.msk.bf16.mxu1 %vm1051_vm2, %v2002_v12  ;;  %v8528_v57 = vpop.f32.mrb[100].mxu0 }
 0x2e1   : > { %v1697_v42 = vpop.f32.mrb[77].mxu1  ;;  %8543 = vmatmul.mubr.msk.bf16.gmra.mrb[104].mxu1 %vm1051_vm2, %v2003_v2  ;;  %v10281_v51 = vadd.f32 %v8528_v57, %v9774_v61  ;;  %v1969_v25 = vpop.f32.mrb[101].mxu0 }
 0x2e2   : > { %v8495_v60 = vpop.f32.mrb[78].mxu1  ;;  %7554 = vmatpush3.bf16.xpose.msra.mxu1 %v2214_v44  ;;  %v10286_v19 = vadd.f32 %v9774_v61, %v1969_v25  ;;  %v8529_v43 = vpop.f32.mrb[102].mxu0 }
 0x2e3   : > { %14022 = vst [vmem:[#allocation58_spill] sm:$0xff] %v10281_v51  ;;  %v10283_v52 = vpack.c.bf16 %v8495_v60, %v8494_v28  ;;  %v1700_v56 = vpop.f32.mrb[79].mxu1  ;;  %8609 = vmatprep.subr.msk.bf16.mxu1 %vm2137_vm3, %v10094_v41  ;;  %v10293_v63 = vadd.f32 %v8529_v43, %v9774_v61  ;;  %v1972_v2 = vpop.f32.mrb[103].mxu0  ;;  %v2181_v28 = vsel %vm2137_vm3, %v10154_v55, 0 }
 0x2e4   : > { %14024 = vst [vmem:[#allocation60_spill] sm:$0xff] %v10286_v19  ;;  %v10290_v12 = vpack.c.bf16 %v1700_v56, %v1697_v42  ;;  %v10296_v57 = vadd.f32 %v9774_v61, %v1972_v2  ;;  %v2217_v42 = vsel %vm2137_vm3, %v10062_v30, 0 }
 0x2e5   : > { %14023 = vst [vmem:[#allocation59_spill] sm:$0xff] %v10283_v52  ;;  %14026 = vst [vmem:[#allocation62_spill] sm:$0xff] %v10293_v63  ;;  %v2005_v25 = vpack.c.bf16 %v10293_v63, %v10281_v51 }
 0x2e6   : > { %14025 = vst [vmem:[#allocation61_spill] sm:$0xff] %v10290_v12  ;;  %14027 = vst [vmem:[#allocation63_spill] sm:$0xff] %v10296_v57  ;;  %v2004_v44 = vpack.c.bf16 %v10296_v57, %v10286_v19 }
 0x2e7   : > { %7532 = vmatpush3.bf16.xpose.msra.mxu0 %v2181_v28  ;;  %v9485_v28 = vld [vmem:[%s13684_s5] ss:$0 sm:$0xff]  ;;  %v10459_v1 = vpop.permute.xlu0 %3200 }
 0x2e8   : > { %v8498_v60 = vpop.f32.mrb[80].mxu1  ;;  %8606 = vmatprep.subr.msk.bf16.mxu0 %vm2137_vm3, %v10210_v27  ;;  %v8532_v56 = vpop.f32.mrb[104].mxu0  ;;  %8546 = vmatprep.mubr.msk.bf16.mxu1 %vm1051_vm2, %v2004_v44  ;;  %14053 = vst [vmem:[#allocation89_spill] sm:$0xff] %v10459_v1 }
 0x2e9   : > { %v1713_v43 = vpop.f32.mrb[81].mxu1  ;;  %v1985_v61 = vpop.f32.mrb[105].mxu0  ;;  %8547 = vmatmul.mubr.msk.bf16.gmra.mrb[108].mxu1 %vm1051_vm2, %v2005_v25  ;;  %v10313_v57 = vadd.f32 %v9485_v28, %v8532_v56  ;;  %v2184_v56 = vsel %vm2137_vm3, %v10150_v46, 0 }
 0x2ea   : > { %v8499_v2 = vpop.f32.mrb[82].mxu1  ;;  %v8533_v19 = vpop.f32.mrb[106].mxu0  ;;  %7556 = vmatpush3.bf16.xpose.msra.mxu1 %v2217_v42  ;;  %v10317_v55 = vadd.f32 %v9485_v28, %v1985_v61 }
 0x2eb   : > { %14028 = vst [vmem:[#allocation64_spill] sm:$0xff] %v10313_v57  ;;  %v10315_v63 = vpack.c.bf16 %v8499_v2, %v8498_v60  ;;  %v1716_v51 = vpop.f32.mrb[83].mxu1  ;;  %v10319_v44 = vadd.f32 %v9485_v28, %v8533_v19  ;;  %8610 = vmatprep.subr.msk.bf16.mxu1 %vm2137_vm3, %v10092_v37  ;;  %v1988_v25 = vpop.f32.mrb[107].mxu0 }
 0x2ec   : > { %14030 = vst [vmem:[#allocation66_spill] sm:$0xff] %v10317_v55  ;;  %v10323_v26 = vpack.c.bf16 %v1716_v51, %v1713_v43  ;;  %v10325_v5 = vadd.f32 %v9485_v28, %v1988_v25  ;;  %v2220_v51 = vsel %vm2137_vm3, %v10060_v6, 0 }
 0x2ed   : > { %14029 = vst [vmem:[#allocation65_spill] sm:$0xff] %v10315_v63  ;;  %14031 = vst [vmem:[#allocation67_spill] sm:$0xff] %v10319_v44  ;;  %v2007_v60 = vpack.c.bf16 %v10319_v44, %v10313_v57 }
 0x2ee   : > { %14032 = vst [vmem:[#allocation68_spill] sm:$0xff] %v10323_v26  ;;  %14033 = vst [vmem:[#allocation69_spill] sm:$0xff] %v10325_v5  ;;  %v2006_v61 = vpack.c.bf16 %v10325_v5, %v10317_v55 }
 0x2ef   : > { %7534 = vmatpush3.bf16.xpose.msra.mxu0 %v2184_v56 }
 0x2f0   : > { %v8502_v19 = vpop.f32.mrb[84].mxu1  ;;  %8550 = vmatprep.mubr.msk.bf16.mxu1 %vm1051_vm2, %v2006_v61  ;;  %v2223_v61 = vsel %vm2137_vm3, %v10070_v15, 0 }
 0x2f1   : > { %v1729_v42 = vpop.f32.mrb[85].mxu1  ;;  %8551 = vmatmul.mubr.msk.bf16.gmra.mrb[112].mxu1 %vm1051_vm2, %v2007_v60 }
 0x2f2   : > { %v8503_v43 = vpop.f32.mrb[86].mxu1  ;;  %7558 = vmatpush3.bf16.xpose.msra.mxu1 %v2220_v51 }
 0x2f3   : > { %v10337_v2 = vpack.c.bf16 %v8503_v43, %v8502_v19  ;;  %v1732_v28 = vpop.f32.mrb[87].mxu1  ;;  %8611 = vmatprep.subr.msk.bf16.mxu1 %vm2137_vm3, %v10102_v62  ;;  %v2226_v43 = vsel %vm2137_vm3, %v10068_v13, 0 }
 0x2f4   : > { %v10341_v25 = vpack.c.bf16 %v1732_v28, %v1729_v42 }
 0x2f6   : > { %14034 = vst [vmem:[#allocation70_spill] sm:$0xff] %v10341_v25  ;;  %7583 = vmatprep.subr.bf16.mxu0 %v10341_v25 }
 0x2f8   : > { %v8506_v56 = vpop.f32.mrb[88].mxu1 }
 0x2f9   : > { %v1745_v5 = vpop.f32.mrb[89].mxu1 }
 0x2fa   : > { %v8507_v55 = vpop.f32.mrb[90].mxu1  ;;  %7560 = vmatpush3.bf16.xpose.msra.mxu1 %v2223_v61 }
 0x2fb   : > { %v10346_v44 = vpack.c.bf16 %v8507_v55, %v8506_v56  ;;  %v1748_v60 = vpop.f32.mrb[91].mxu1  ;;  %8612 = vmatprep.subr.msk.bf16.mxu1 %vm2137_vm3, %v10100_v45 }
 0x2fc   : > { %v10350_v19 = vpack.c.bf16 %v1748_v60, %v1745_v5  ;;  %v2229_v5 = vsel %vm2137_vm3, %v10078_v24, 0 }
 0x2fd   : > { %14035 = vst [vmem:[#allocation71_spill] sm:$0xff] %v10346_v44 }
 0x300   : > { %v8510_v51 = vpop.f32.mrb[92].mxu1 }
 0x301   : > { %v1761_v42 = vpop.f32.mrb[93].mxu1 }
 0x302   : > { %v8511_v28 = vpop.f32.mrb[94].mxu1  ;;  %7562 = vmatpush3.bf16.xpose.msra.mxu1 %v2226_v43  ;;  %v2232_v43 = vsel %vm2137_vm3, %v10076_v40, 0 }
 0x303   : > { %v10354_v57 = vpack.c.bf16 %v8511_v28, %v8510_v51  ;;  %v1764_v62 = vpop.f32.mrb[95].mxu1  ;;  %8613 = vmatprep.subr.msk.bf16.mxu1 %vm2137_vm3, %v10110_v54 }
 0x304   : > { %v10358_v55 = vpack.c.bf16 %v1764_v62, %v1761_v42  ;;  %v10371_v62 = vpop.permute.xlu1 %3184 }
 0x305   : > { %14036 = vst [vmem:[#allocation72_spill] sm:$0xff] %v10354_v57 }
 0x306   : > { %14037 = vst [vmem:[#allocation73_spill] sm:$0xff] %v10358_v55 }
 0x308   : > { %v8514_v56 = vpop.f32.mrb[96].mxu1  ;;  %v10373_v42 = vpop.permute.xlu1 %3182 }
 0x309   : > { %v1777_v61 = vpop.f32.mrb[97].mxu1 }
 0x30a   : > { %v8515_v60 = vpop.f32.mrb[98].mxu1  ;;  %7564 = vmatpush3.bf16.xpose.msra.mxu1 %v2229_v5 }
 0x30b   : > { %v10362_v45 = vpack.c.bf16 %v8515_v60, %v8514_v56  ;;  %v1780_v13 = vpop.f32.mrb[99].mxu1  ;;  %8614 = vmatprep.subr.msk.bf16.mxu1 %vm2137_vm3, %v10108_v9 }
 0x30c   : > { %v10366_v51 = vpack.c.bf16 %v1780_v13, %v1777_v61  ;;  %v10375_v28 = vpop.permute.xlu1 %3188 }
 0x30d   : > { %14038 = vst [vmem:[#allocation74_spill] sm:$0xff] %v10362_v45 }
 0x30e   : > { %14039 = vst [vmem:[#allocation75_spill] sm:$0xff] %v10366_v51 }
 0x310   : > { %v10377_v56 = vpop.permute.xlu1 %3186 }
 0x312   : > { %7566 = vmatpush3.bf16.xpose.msra.mxu1 %v2232_v43 }
 0x313   : > { %7647 = vmatprep.subr.bf16.mxu1 %v10162_v58 }
 0x314   : > { %v10379_v5 = vpop.permute.xlu1 %3192 }
 0x315   : > { %14040 = vst [vmem:[#allocation76_spill] sm:$0xff] %v10379_v5 }
 0x318   : > { %v10383_v15 = vpop.permute.xlu1 %3190 }
 0x319   : > { %14042 = vst [vmem:[#allocation78_spill] sm:$0xff] %v10383_v15 }
 0x3ac   : > { %v8540_v60 = vpop.f32.mrb[100].mxu1 }
 0x3ad   : > { %v2066_v24 = vpop.f32.mrb[101].mxu1 }
 0x3ae   : > { %v8541_v13 = vpop.f32.mrb[102].mxu1 }
 0x3af   : > { %v10381_v61 = vpack.c.bf16 %v8541_v13, %v8540_v60  ;;  %v2069_v37 = vpop.f32.mrb[103].mxu1 }
 0x3b0   : > { %v10385_v43 = vpack.c.bf16 %v2069_v37, %v2066_v24  ;;  %v10401_v37 = vpop.permute.xlu1 %3194 }
 0x3b1   : > { %14041 = vst [vmem:[#allocation77_spill] sm:$0xff] %v10381_v61  ;;  %14044 = vst [vmem:[#allocation80_spill] sm:$0xff] %v10401_v37 }
 0x3b2   : > { %14043 = vst [vmem:[#allocation79_spill] sm:$0xff] %v10385_v43  ;;  %7535 = vmatprep.mubr.msk.bf16.mxu0 %vm2137_vm3, %v10385_v43  ;;  %7567 = vmatprep.mubr.msk.bf16.mxu1 %vm2137_vm3, %v10385_v43 }
 0x3b3   : > { %7536 = vmatmul.mubr.msk.bf16.vlgmr.msra.gmra.mrb[108].mxu0 %vm2137_vm3, %v10385_v43  ;;  %7568 = vmatmul.mubr.msk.bf16.vlgmr.msra.gmra.mrb[116].mxu1 %vm2137_vm3, %v10385_v43 }
 0x3b4   : > { %7584 = vmatpush3.bf16.msra.mxu0 %v10227_v11  ;;  %7648 = vmatpush3.bf16.msra.mxu1 %v10116_v35  ;;  %v8544_v60 = vpop.f32.mrb[104].mxu1  ;;  %v10413_v7 = vpop.permute.xlu1 %3160 }
 0x3b5   : > { %7537 = vmatprep.mubr.msk.bf16.mxu0 %vm2137_vm3, %v10381_v61  ;;  %7569 = vmatprep.mubr.msk.bf16.mxu1 %vm2137_vm3, %v10381_v61  ;;  %v2082_v24 = vpop.f32.mrb[105].mxu1  ;;  %14047 = vst [vmem:[#allocation83_spill] sm:$0xff] %v10413_v7 }
 0x3b6   : > { %7585 = vmatprep.subr.bf16.mxu0 %v10337_v2  ;;  %7649 = vmatprep.subr.bf16.mxu1 %v10158_v59  ;;  %v8545_v13 = vpop.f32.mrb[106].mxu1 }
 0x3b7   : > { %v10405_v33 = vpack.c.bf16 %v8545_v13, %v8544_v60  ;;  %v2085_v41 = vpop.f32.mrb[107].mxu1 }
 0x3b8   : > { %7586 = vmatpush3.bf16.msra.mxu0 %v10222_v10  ;;  %7650 = vmatpush3.bf16.msra.mxu1 %v10112_v16  ;;  %v10409_v6 = vpack.c.bf16 %v2085_v41, %v2082_v24  ;;  %v10429_v31 = vpop.permute.xlu1 %3158 }
 0x3b9   : > { %14045 = vst [vmem:[#allocation81_spill] sm:$0xff] %v10405_v33  ;;  %7587 = vmatprep.subr.bf16.mxu0 %v10350_v19  ;;  %7651 = vmatprep.subr.bf16.mxu1 %v10180_v50  ;;  %14049 = vst [vmem:[#allocation85_spill] sm:$0xff] %v10429_v31 }
 0x3ba   : > { %14046 = vst [vmem:[#allocation82_spill] sm:$0xff] %v10409_v6 }
 0x3bb   : > { %7538 = vmatmul.mubr.msk.bf16.gmra.mrb[112].mxu0 %vm2137_vm3, %v10381_v61  ;;  %7570 = vmatmul.mubr.msk.bf16.gmra.mrb[120].mxu1 %vm2137_vm3, %v10381_v61 }
 0x3bc   : > { %7588 = vmatpush3.bf16.msra.mxu0 %v10263_v8  ;;  %7652 = vmatpush3.bf16.msra.mxu1 %v10128_v23  ;;  %v8548_v60 = vpop.f32.mrb[108].mxu1 }
 0x3bd   : > { %7539 = vmatprep.mubr.msk.bf16.mxu0 %vm2137_vm3, %v10409_v6  ;;  %7571 = vmatprep.mubr.msk.bf16.mxu1 %vm2137_vm3, %v10409_v6  ;;  %v2098_v41 = vpop.f32.mrb[109].mxu1 }
 0x3be   : > { %7589 = vmatprep.subr.bf16.mxu0 %v10346_v44  ;;  %7653 = vmatprep.subr.bf16.mxu1 %v10176_v29  ;;  %v8549_v24 = vpop.f32.mrb[110].mxu1 }
 0x3bf   : > { %v10427_v13 = vpack.c.bf16 %v8549_v24, %v8548_v60  ;;  %v2101_v18 = vpop.f32.mrb[111].mxu1 }
 0x3c0   : > { %7590 = vmatpush3.bf16.msra.mxu0 %v10253_v14  ;;  %7654 = vmatpush3.bf16.msra.mxu1 %v10124_v3  ;;  %v10433_v30 = vpack.c.bf16 %v2101_v18, %v2098_v41  ;;  %v10447_v41 = vpop.permute.xlu1 %3162 }
 0x3c1   : > { %14048 = vst [vmem:[#allocation84_spill] sm:$0xff] %v10427_v13  ;;  %7591 = vmatprep.subr.bf16.mxu0 %v10358_v55  ;;  %7655 = vmatprep.subr.bf16.mxu1 %v10196_v20  ;;  %14051 = vst [vmem:[#allocation87_spill] sm:$0xff] %v10447_v41 }
 0x3c2   : > { %14050 = vst [vmem:[#allocation86_spill] sm:$0xff] %v10433_v30 }
 0x3c3   : > { %7540 = vmatmul.mubr.msk.bf16.gmra.mrb[116].mxu0 %vm2137_vm3, %v10409_v6  ;;  %7572 = vmatmul.mubr.msk.bf16.gmra.mrb[124].mxu1 %vm2137_vm3, %v10409_v6 }
 0x3c4   : > { %7592 = vmatpush3.bf16.msra.mxu0 %v10290_v12  ;;  %7656 = vmatpush3.bf16.msra.mxu1 %v10140_v32  ;;  %v8552_v60 = vpop.f32.mrb[112].mxu1  ;;  %v10461_v48 = vpop.permute.xlu1 %3168 }
 0x3c5   : > { %7541 = vmatprep.mubr.msk.bf16.mxu0 %vm2137_vm3, %v10405_v33  ;;  %7573 = vmatprep.mubr.msk.bf16.mxu1 %vm2137_vm3, %v10405_v33  ;;  %v2114_v18 = vpop.f32.mrb[113].mxu1  ;;  %14054 = vst [vmem:[#allocation90_spill] sm:$0xff] %v10461_v48 }
 0x3c6   : > { %7593 = vmatprep.subr.bf16.mxu0 %v10354_v57  ;;  %7657 = vmatprep.subr.bf16.mxu1 %v10192_v21  ;;  %v8553_v24 = vpop.f32.mrb[114].mxu1 }
 0x3c7   : > { %v10451_v36 = vpack.c.bf16 %v8553_v24, %v8552_v60  ;;  %v2117_v34 = vpop.f32.mrb[115].mxu1 }
 0x3c8   : > { %7594 = vmatpush3.bf16.msra.mxu0 %v10283_v52  ;;  %7658 = vmatpush3.bf16.msra.mxu1 %v10136_v22  ;;  %v10455_v39 = vpack.c.bf16 %v2117_v34, %v2114_v18  ;;  %v3199_v34 = vpop.permute.xlu0 %3198  ;;  %v3167_v60 = vpop.permute.xlu1 %3166 }
 0x3c9   : > { %7595 = vmatprep.subr.bf16.mxu0 %v10366_v51  ;;  %7659 = vmatprep.subr.bf16.mxu1 %v10212_v38 }
 0x3ca   : > { %14052 = vst [vmem:[#allocation88_spill] sm:$0xff] %v10455_v39 }
 0x3cb   : > { %7542 = vmatmul.mubr.msk.bf16.gmra.mrb[120].mxu0 %vm2137_vm3, %v10405_v33  ;;  %7574 = vmatmul.mubr.msk.bf16.gmra.mrb[128].mxu1 %vm2137_vm3, %v10405_v33 }
 0x3cc   : > { %7596 = vmatpush3.bf16.msra.mxu0 %v10323_v26  ;;  %7660 = vmatpush3.bf16.msra.mxu1 %v10152_v53 }
 0x3cd   : > { %7543 = vmatprep.mubr.msk.bf16.mxu0 %vm2137_vm3, %v10433_v30  ;;  %7575 = vmatprep.mubr.msk.bf16.mxu1 %vm2137_vm3, %v10433_v30 }
 0x3ce   : > { %7597 = vmatprep.subr.bf16.mxu0 %v10362_v45  ;;  %7661 = vmatprep.subr.bf16.mxu1 %v10208_v17 }
 0x3d0   : > { %7598 = vmatpush3.bf16.msra.mxu0 %v10315_v63  ;;  %7662 = vmatpush3.bf16.msra.mxu1 %v10148_v49 }
 0x3d1   : > { %8615 = vmatprep.subr.msk.bf16.mxu0 %vm2137_vm3, %v3167_v60  ;;  %8623 = vmatprep.subr.msk.bf16.mxu1 %vm2137_vm3, %v3199_v34 }
 0x3d3   : > { %7544 = vmatmul.mubr.msk.bf16.gmra.mrb[124].mxu0 %vm2137_vm3, %v10433_v30  ;;  %7576 = vmatmul.mubr.msk.bf16.gmra.mrb[132].mxu1 %vm2137_vm3, %v10433_v30 }
 0x3d4   : > { %7545 = vmatprep.mubr.msk.bf16.mxu0 %vm2137_vm3, %v10427_v13  ;;  %7577 = vmatprep.mubr.msk.bf16.mxu1 %vm2137_vm3, %v10427_v13 }
 0x3db   : > { %7546 = vmatmul.mubr.msk.bf16.gmra.mrb[128].mxu0 %vm2137_vm3, %v10427_v13  ;;  %7578 = vmatmul.mubr.msk.bf16.gmra.mrb[136].mxu1 %vm2137_vm3, %v10427_v13 }
 0x3dc   : > { %7547 = vmatprep.mubr.msk.bf16.mxu0 %vm2137_vm3, %v10455_v39  ;;  %7579 = vmatprep.mubr.msk.bf16.mxu1 %vm2137_vm3, %v10455_v39 }
 0x3e3   : > { %7548 = vmatmul.mubr.msk.bf16.gmra.mrb[132].mxu0 %vm2137_vm3, %v10455_v39  ;;  %7580 = vmatmul.mubr.msk.bf16.gmra.mrb[140].mxu1 %vm2137_vm3, %v10455_v39 }
 0x3e4   : > { %7549 = vmatprep.mubr.msk.bf16.mxu0 %vm2137_vm3, %v10451_v36  ;;  %7581 = vmatprep.mubr.msk.bf16.mxu1 %vm2137_vm3, %v10451_v36 }
 0x3eb   : > { %7550 = vmatmul.mubr.msk.bf16.gmra.mrb[136].mxu0 %vm2137_vm3, %v10451_v36  ;;  %7582 = vmatmul.mubr.msk.bf16.gmra.mrb[144].mxu1 %vm2137_vm3, %v10451_v36 }
 0x486   : > { %v10507_v18 = vpop.f32.mrb[108].mxu0  ;;  %v10509_v24 = vpop.f32.mrb[116].mxu1 }
 0x487   : > { %v10511_v34 = vpop.f32.mrb[109].mxu0  ;;  %v10513_v60 = vpop.f32.mrb[117].mxu1 }
 0x488   : > { %v10515_v47 = vpop.f32.mrb[110].mxu0  ;;  %v10517_v37 = vpop.f32.mrb[118].mxu1  ;;  %v2484_v49 = vmax.f32 %v10507_v18, %v10511_v34 }
 0x489   : > { %v10521_v41 = vpop.f32.mrb[111].mxu0  ;;  %v10523_v4 = vpop.f32.mrb[119].mxu1 }
 0x48a   : > { %v2485_v63 = vmax.f32 %v2484_v49, %v10509_v24  ;;  %v2489_v0 = vmax.f32 %v10515_v47, %v10521_v41 }
 0x48c   : > { %v2486_v5 = vmax.f32 %v2485_v63, %v10513_v60  ;;  %v2490_v45 = vmax.f32 %v2489_v0, %v10517_v37 }
 0x48e   : > { %v10530_v7 = vpop.f32.mrb[120].mxu1  ;;  %2487 = vmax.xlane.f32.xlu1 %v2486_v5  ;;  %v10532_v17 = vpop.f32.mrb[112].mxu0  ;;  %v2491_v26 = vmax.f32 %v2490_v45, %v10523_v4 }
 0x48f   : > { %v10535_v53 = vpop.f32.mrb[113].mxu0  ;;  %v10537_v15 = vpop.f32.mrb[121].mxu1 }
 0x490   : > { %v10539_v51 = vpop.f32.mrb[122].mxu1  ;;  %2492 = vmax.xlane.f32.xlu0 %v2491_v26  ;;  %v10541_v49 = vpop.f32.mrb[114].mxu0  ;;  %v2494_v63 = vmax.f32 %v10532_v17, %v10535_v53 }
 0x491   : > { %v10545_v0 = vpop.f32.mrb[115].mxu0  ;;  %v10547_v38 = vpop.f32.mrb[123].mxu1 }
 0x492   : > { %v2495_v5 = vmax.f32 %v2494_v63, %v10530_v7  ;;  %v2499_v45 = vmax.f32 %v10541_v49, %v10545_v0 }
 0x494   : > { %v2496_v52 = vmax.f32 %v2495_v5, %v10537_v15  ;;  %v2500_v31 = vmax.f32 %v2499_v45, %v10539_v51 }
 0x496   : > { %v10554_v22 = vpop.f32.mrb[124].mxu1  ;;  %2497 = vmax.xlane.f32.xlu1 %v2496_v52  ;;  %v10556_v26 = vpop.f32.mrb[116].mxu0  ;;  %v2501_v57 = vmax.f32 %v2500_v31, %v10547_v38 }
 0x497   : > { %v10559_v21 = vpop.f32.mrb[117].mxu0  ;;  %v10561_v12 = vpop.f32.mrb[125].mxu1 }
 0x498   : > { %v10563_v32 = vpop.f32.mrb[118].mxu0  ;;  %v10565_v63 = vpop.f32.mrb[126].mxu1  ;;  %v2504_v5 = vmax.f32 %v10556_v26, %v10559_v21 }
 0x499   : > { %14055 = vst [vmem:[#allocation91_spill] sm:$0xff] %v10563_v32  ;;  %14056 = vst [vmem:[#allocation92_spill] sm:$0xff] %v10565_v63  ;;  %v10569_v55 = vpop.f32.mrb[119].mxu0  ;;  %v10571_v45 = vpop.f32.mrb[127].mxu1 }
 0x49a   : > { %14057 = vst [vmem:[#allocation93_spill] sm:$0xff] %v10569_v55  ;;  %14058 = vst [vmem:[#allocation94_spill] sm:$0xff] %v10571_v45  ;;  %2502 = vmax.xlane.f32.xlu1 %v2501_v57  ;;  %v2505_v52 = vmax.f32 %v2504_v5, %v10554_v22  ;;  %v2509_v31 = vmax.f32 %v10563_v32, %v10569_v55 }
 0x49c   : > { %v2506_v20 = vmax.f32 %v2505_v52, %v10561_v12  ;;  %v2510_v14 = vmax.f32 %v2509_v31, %v10565_v63 }
 0x49e   : > { %v10578_v3 = vpop.f32.mrb[128].mxu1  ;;  %2507 = vmax.xlane.f32.xlu1 %v2506_v20  ;;  %v10580_v44 = vpop.f32.mrb[120].mxu0  ;;  %v2511_v1 = vmax.f32 %v2510_v14, %v10571_v45 }
 0x49f   : > { %14059 = vst [vmem:[#allocation95_spill] sm:$0xff] %v10578_v3  ;;  %14060 = vst [vmem:[#allocation96_spill] sm:$0xff] %v10580_v44  ;;  %v10583_v29 = vpop.f32.mrb[121].mxu0  ;;  %v10585_v48 = vpop.f32.mrb[129].mxu1 }
 0x4a0   : > { %14061 = vst [vmem:[#allocation97_spill] sm:$0xff] %v10583_v29  ;;  %14062 = vst [vmem:[#allocation98_spill] sm:$0xff] %v10585_v48  ;;  %v10587_v57 = vpop.f32.mrb[122].mxu0  ;;  %v10589_v5 = vpop.f32.mrb[130].mxu1  ;;  %v2514_v52 = vmax.f32 %v10580_v44, %v10583_v29 }
 0x4a1   : > { %14063 = vst [vmem:[#allocation99_spill] sm:$0xff] %v10587_v57  ;;  %14064 = vst [vmem:[#allocation100_spill] sm:$0xff] %v10589_v5  ;;  %v10593_v8 = vpop.f32.mrb[123].mxu0  ;;  %v10595_v31 = vpop.f32.mrb[131].mxu1 }
 0x4a2   : > { %14065 = vst [vmem:[#allocation101_spill] sm:$0xff] %v10593_v8  ;;  %14066 = vst [vmem:[#allocation102_spill] sm:$0xff] %v10595_v31  ;;  %2512 = vmax.xlane.f32.xlu1 %v2511_v1  ;;  %v2515_v20 = vmax.f32 %v2514_v52, %v10578_v3  ;;  %v2519_v14 = vmax.f32 %v10587_v57, %v10593_v8 }
 0x4a4   : > { %v2516_v45 = vmax.f32 %v2515_v20, %v10585_v48  ;;  %v2520_v63 = vmax.f32 %v2519_v14, %v10589_v5 }
 0x4a6   : > { %v10602_v23 = vpop.f32.mrb[132].mxu1  ;;  %2517 = vmax.xlane.f32.xlu1 %v2516_v45  ;;  %v10604_v55 = vpop.f32.mrb[124].mxu0  ;;  %v2521_v29 = vmax.f32 %v2520_v63, %v10595_v31 }
 0x4a7   : > { %14067 = vst [vmem:[#allocation103_spill] sm:$0xff] %v10602_v23  ;;  %14068 = vst [vmem:[#allocation104_spill] sm:$0xff] %v10604_v55  ;;  %v10607_v44 = vpop.f32.mrb[125].mxu0  ;;  %v10609_v32 = vpop.f32.mrb[133].mxu1 }
 0x4a8   : > { %14069 = vst [vmem:[#allocation105_spill] sm:$0xff] %v10607_v44  ;;  %14070 = vst [vmem:[#allocation106_spill] sm:$0xff] %v10609_v32  ;;  %v2524_v1 = vmax.f32 %v10604_v55, %v10607_v44  ;;  %v10613_v52 = vpop.f32.mrb[126].mxu0  ;;  %v10615_v8 = vpop.f32.mrb[134].mxu1 }
 0x4a9   : > { %14071 = vst [vmem:[#allocation107_spill] sm:$0xff] %v10613_v52  ;;  %14072 = vst [vmem:[#allocation108_spill] sm:$0xff] %v10615_v8  ;;  %v10617_v20 = vpop.f32.mrb[127].mxu0  ;;  %v10619_v14 = vpop.f32.mrb[135].mxu1 }
 0x4aa   : > { %14073 = vst [vmem:[#allocation109_spill] sm:$0xff] %v10617_v20  ;;  %14074 = vst [vmem:[#allocation110_spill] sm:$0xff] %v10619_v14  ;;  %v2529_v45 = vmax.f32 %v10613_v52, %v10617_v20  ;;  %2522 = vmax.xlane.f32.xlu1 %v2521_v29  ;;  %v2525_v63 = vmax.f32 %v2524_v1, %v10602_v23 }
 0x4ac   : > { %v2526_v31 = vmax.f32 %v2525_v63, %v10609_v32  ;;  %v2530_v5 = vmax.f32 %v2529_v45, %v10615_v8 }
 0x4ae   : > { %v10626_v57 = vpop.f32.mrb[136].mxu1  ;;  %2527 = vmax.xlane.f32.xlu1 %v2526_v31  ;;  %v10628_v44 = vpop.f32.mrb[128].mxu0  ;;  %v2531_v55 = vmax.f32 %v2530_v5, %v10619_v14 }
 0x4af   : > { %14075 = vst [vmem:[#allocation111_spill] sm:$0xff] %v10628_v44  ;;  %v10631_v48 = vpop.f32.mrb[129].mxu0  ;;  %v10633_v3 = vpop.f32.mrb[137].mxu1 }
 0x4b0   : > { %14076 = vst [vmem:[#allocation112_spill] sm:$0xff] %v10631_v48  ;;  %14077 = vst [vmem:[#allocation113_spill] sm:$0xff] %v10633_v3  ;;  %v2534_v29 = vmax.f32 %v10628_v44, %v10631_v48  ;;  %v10637_v20 = vpop.f32.mrb[130].mxu0  ;;  %v10639_v1 = vpop.f32.mrb[138].mxu1 }
 0x4b1   : > { %14078 = vst [vmem:[#allocation114_spill] sm:$0xff] %v10637_v20  ;;  %14079 = vst [vmem:[#allocation115_spill] sm:$0xff] %v10639_v1  ;;  %v10641_v63 = vpop.f32.mrb[131].mxu0  ;;  %v10643_v45 = vpop.f32.mrb[139].mxu1 }
 0x4b2   : > { %14080 = vst [vmem:[#allocation116_spill] sm:$0xff] %v10641_v63  ;;  %14081 = vst [vmem:[#allocation117_spill] sm:$0xff] %v10643_v45  ;;  %v2539_v31 = vmax.f32 %v10637_v20, %v10641_v63  ;;  %2532 = vmax.xlane.f32.xlu1 %v2531_v55  ;;  %v2535_v5 = vmax.f32 %v2534_v29, %v10626_v57 }
 0x4b4   : > { %v2536_v14 = vmax.f32 %v2535_v5, %v10633_v3  ;;  %v2540_v8 = vmax.f32 %v2539_v31, %v10639_v1 }
 0x4b6   : > { %v10650_v52 = vpop.f32.mrb[140].mxu1  ;;  %2537 = vmax.xlane.f32.xlu1 %v2536_v14  ;;  %v10652_v48 = vpop.f32.mrb[132].mxu0  ;;  %v2541_v44 = vmax.f32 %v2540_v8, %v10643_v45 }
 0x4b7   : > { %14082 = vst [vmem:[#allocation118_spill] sm:$0xff] %v10652_v48  ;;  %v10655_v32 = vpop.f32.mrb[133].mxu0  ;;  %v10657_v23 = vpop.f32.mrb[141].mxu1 }
 0x4b8   : > { %14083 = vst [vmem:[#allocation119_spill] sm:$0xff] %v10655_v32  ;;  %14084 = vst [vmem:[#allocation120_spill] sm:$0xff] %v10657_v23  ;;  %v2544_v55 = vmax.f32 %v10652_v48, %v10655_v32  ;;  %v10661_v63 = vpop.f32.mrb[142].mxu1  ;;  %2542 = vmax.xlane.f32.xlu0 %v2541_v44  ;;  %v10663_v29 = vpop.f32.mrb[134].mxu0 }
 0x4b9   : > { %14085 = vst [vmem:[#allocation121_spill] sm:$0xff] %v10661_v63  ;;  %14086 = vst [vmem:[#allocation122_spill] sm:$0xff] %v10663_v29  ;;  %v10665_v31 = vpop.f32.mrb[135].mxu0  ;;  %v10667_v5 = vpop.f32.mrb[143].mxu1 }
 0x4ba   : > { %14087 = vst [vmem:[#allocation123_spill] sm:$0xff] %v10665_v31  ;;  %14088 = vst [vmem:[#allocation124_spill] sm:$0xff] %v10667_v5  ;;  %v2549_v14 = vmax.f32 %v10663_v29, %v10665_v31  ;;  %v2545_v8 = vmax.f32 %v2544_v55, %v10650_v52 }
 0x4bc   : > { %v2546_v45 = vmax.f32 %v2545_v8, %v10657_v23  ;;  %v2550_v1 = vmax.f32 %v2549_v14, %v10661_v63 }
 0x4be   : > { %v10674_v20 = vpop.f32.mrb[144].mxu1  ;;  %2547 = vmax.xlane.f32.xlu1 %v2546_v45  ;;  %v10676_v32 = vpop.f32.mrb[136].mxu0  ;;  %v2551_v44 = vmax.f32 %v2550_v1, %v10667_v5 }
 0x4bf   : > { %14089 = vst [vmem:[#allocation125_spill] sm:$0xff] %v10676_v32  ;;  %v10679_v48 = vpop.f32.mrb[137].mxu0  ;;  %v10681_v3 = vpop.f32.mrb[145].mxu1 }
 0x4c0   : > { %14090 = vst [vmem:[#allocation126_spill] sm:$0xff] %v10679_v48  ;;  %v2554_v31 = vmax.f32 %v10676_v32, %v10679_v48  ;;  %v10685_v29 = vpop.f32.mrb[146].mxu1  ;;  %2552 = vmax.xlane.f32.xlu0 %v2551_v44  ;;  %v10687_v55 = vpop.f32.mrb[138].mxu0 }
 0x4c1   : > { %14091 = vst [vmem:[#allocation127_spill] sm:$0xff] %v10685_v29  ;;  %v10689_v14 = vpop.f32.mrb[139].mxu0  ;;  %v10691_v8 = vpop.f32.mrb[147].mxu1 }
 0x4c2   : > { %14092 = vst [vmem:[#allocation128_spill] sm:$0xff] %v10689_v14  ;;  %14093 = vst [vmem:[#allocation129_spill] sm:$0xff] %v10691_v8  ;;  %v2559_v45 = vmax.f32 %v10687_v55, %v10689_v14  ;;  %v2555_v1 = vmax.f32 %v2554_v31, %v10674_v20  ;;  %v10703_v44 = vpop.permute.xlu0 %3204 }
 0x4c4   : > { %v2556_v5 = vmax.f32 %v2555_v1, %v10681_v3  ;;  %v2560_v63 = vmax.f32 %v2559_v45, %v10685_v29 }
 0x4c6   : > { %v2561_v48 = vmax.f32 %v2560_v63, %v10691_v8  ;;  %v10705_v32 = vpop.permute.xlu0 %3202 }
 0x4ca   : > { %v10707_v23 = vpop.permute.xlu0 %3208 }
 0x4ce   : > { %v10709_v14 = vpop.permute.xlu0 %3206 }
 0x4cf   : > { %3164 = vrot.lane.b32.xlu1 %v10150_v46, %s9546_s22 }
 0x4d2   : > { %v10711_v31 = vpop.permute.xlu0 %3152 }
 0x4d6   : > { %3210 = vrot.lane.b32.xlu0 %v10110_v54, %s9546_s22  ;;  %v10713_v45 = vpop.permute.xlu0 %3150 }
 0x4da   : > { %v10715_v63 = vpop.permute.xlu0 %3156 }
 0x4de   : > { %v10721_v1 = vpop.permute.xlu0 %3154 }
 0x4f3   : > { %2557 = vmax.xlane.f32.xlu1 %v2556_v5  ;;  %v10733_v5 = vpop.permute.xlu1 %3172 }
 0x4f5   : > { %2562 = vmax.xlane.f32.xlu0 %v2561_v48  ;;  %v10727_v48 = vpop.permute.xlu0 %3176 }
 0x504   : > { %3196 = vrot.lane.b32.xlu1 %v10076_v40, %s9546_s22  ;;  %v10735_v40 = vpop.permute.xlu0 %3174 }
 0x508   : > { %3102 = vrot.lane.b32.xlu1 %v10385_v43, %s9546_s22 }
 0x50b   : > { %3180 = vrot.lane.b32.xlu0 %v10210_v27, %s9546_s22  ;;  %v10741_v27 = vpop.permute.xlu1 %3170 }
 0x50c   : > { %3106 = vrot.lane.b32.xlu1 %v10409_v6, %s9546_s22 }
 0x50f   : > { %3212 = vrot.lane.b32.xlu0 %v10108_v9, %s9546_s22  ;;  %v10747_v9 = vpop.permute.xlu0 %3178 }
 0x510   : > { %3110 = vrot.lane.b32.xlu1 %v10433_v30, %s9546_s22 }
 0x513   : > { %3104 = vrot.lane.b32.xlu0 %v10381_v61, %s9546_s22 }
 0x514   : > { %3114 = vrot.lane.b32.xlu1 %v10455_v39, %s9546_s22 }
 0x517   : > { %3108 = vrot.lane.b32.xlu0 %v10405_v33, %s9546_s22 }
 0x518   : > { %3992 = vrot.lane.b32.xlu1 %v10341_v25, %s9546_s22 }
 0x51b   : > { %v2488_v30 = vpop.xlane.xlu1 %2487  ;;  %3112 = vrot.lane.b32.xlu0 %v10427_v13, %s9546_s22 }
 0x51c   : > { %v2564_v6 = vsub.f32 %v10507_v18, %v2488_v30  ;;  %v2565_v61 = vsub.f32 %v10511_v34, %v2488_v30  ;;  %v2566_v39 = vsub.f32 %v10509_v24, %v2488_v30  ;;  %v2567_v43 = vsub.f32 %v10513_v60, %v2488_v30  ;;  %4024 = vrot.lane.b32.xlu1 %v10162_v58, %s9546_s22 }
 0x51d   : > { %v2493_v33 = vpop.xlane.xlu0 %2492 }
 0x51e   : > { %v2628_v54 = vmul.f32 1.442695, %v2564_v6  ;;  %v2630_v25 = vmul.f32 1.442695, %v2565_v61  ;;  %v2632_v46 = vmul.f32 1.442695, %v2566_v39  ;;  %v2568_v8 = vsub.f32 %v10515_v47, %v2493_v33 }
 0x51f   : > { %v2634_v29 = vmul.f32 1.442695, %v2567_v43  ;;  %v2569_v13 = vsub.f32 %v10521_v41, %v2493_v33  ;;  %v2570_v18 = vsub.f32 %v10517_v37, %v2493_v33  ;;  %v2571_v34 = vsub.f32 %v10523_v4, %v2493_v33  ;;  %3116 = vrot.lane.b32.xlu0 %v10451_v36, %s9546_s22 }
 0x520   : > { %8845 = vpow2.f32 %v2628_v54  ;;  %v2636_v30 = vmul.f32 1.442695, %v2568_v8  ;;  %4008 = vrot.lane.b32.xlu1 %v10116_v35, %s9546_s22 }
 0x521   : > { %8847 = vpow2.f32 %v2630_v25  ;;  %v2638_v6 = vmul.f32 1.442695, %v2569_v13  ;;  %v2640_v39 = vmul.f32 1.442695, %v2570_v18  ;;  %v2642_v47 = vmul.f32 1.442695, %v2571_v34 }
 0x522   : > { %8849 = vpow2.f32 %v2632_v46  ;;  %v10774_v46 = vsel %vm2137_vm3, %v10371_v62, 0  ;;  %v3239_v18 = vsel %vm2137_vm3, %v10713_v45, 0 }
 0x523   : > { %8851 = vpow2.f32 %v2634_v29  ;;  %v2498_v61 = vpop.xlane.xlu1 %2497  ;;  %3976 = vrot.lane.b32.xlu0 %v10227_v11, %s9546_s22 }
 0x524   : > { %8853 = vpow2.f32 %v2636_v30  ;;  %v2572_v4 = vsub.f32 %v10532_v17, %v2498_v61  ;;  %v2573_v33 = vsub.f32 %v10535_v53, %v2498_v61  ;;  %v2574_v54 = vsub.f32 %v10530_v7, %v2498_v61  ;;  %4026 = vrot.lane.b32.xlu1 %v10158_v59, %s9546_s22 }
 0x525   : > { %8855 = vpow2.f32 %v2638_v6  ;;  %v2575_v25 = vsub.f32 %v10537_v15, %v2498_v61  ;;  %v10779_v17 = vsel %vm2137_vm3, %v10373_v42, 0  ;;  %v10783_v7 = vsel %vm2137_vm3, %v10375_v28, 0 }
 0x526   : > { %8857 = vpow2.f32 %v2640_v39  ;;  %v2644_v43 = vmul.f32 1.442695, %v2572_v4  ;;  %v2646_v37 = vmul.f32 1.442695, %v2573_v33  ;;  %v2648_v13 = vmul.f32 1.442695, %v2574_v54 }
 0x527   : > { %8859 = vpow2.f32 %v2642_v47  ;;  %v2650_v53 = vmul.f32 1.442695, %v2575_v25  ;;  %v2503_v41 = vpop.xlane.xlu1 %2502  ;;  %3994 = vrot.lane.b32.xlu0 %v10337_v2, %s9546_s22  ;;  %v10794_v42 = vsel %vm2137_vm3, %v10377_v56, 0  ;;  %v10798_v28 = vsel %vm2137_vm3, %v10711_v31, 0 }
 0x528   : > { %8861 = vpow2.f32 %v2644_v43  ;;  %v2576_v15 = vsub.f32 %v10541_v49, %v2503_v41  ;;  %v2577_v62 = vsub.f32 %v10545_v0, %v2503_v41  ;;  %v2578_v24 = vsub.f32 %v10539_v51, %v2503_v41  ;;  %4010 = vrot.lane.b32.xlu1 %v10112_v16, %s9546_s22 }
 0x529   : > { %8863 = vpow2.f32 %v2646_v37  ;;  %v2579_v60 = vsub.f32 %v10547_v38, %v2503_v41  ;;  %v10805_v56 = vsel %vm2137_vm3, %v10715_v63, 0  ;;  %v10816_v63 = vsel %vm2137_vm3, %v10721_v1, 0  ;;  %v14095_v41 = vld [vmem:[#allocation93_spill] sm:$0xff] }
 0x52a   : > { %v8846_v29 = vpop.eup %8845  ;;  %8865 = vpow2.f32 %v2648_v13  ;;  %v2652_v49 = vmul.f32 1.442695, %v2576_v15  ;;  %v2654_v0 = vmul.f32 1.442695, %v2577_v62  ;;  %v2656_v8 = vmul.f32 1.442695, %v2578_v24 }
 0x52b   : > { %v8848_v51 = vpop.eup %8847  ;;  %8867 = vpow2.f32 %v2650_v53  ;;  %v2658_v34 = vmul.f32 1.442695, %v2579_v60  ;;  %v2508_v31 = vpop.xlane.xlu1 %2507  ;;  %3978 = vrot.lane.b32.xlu0 %v10222_v10, %s9546_s22  ;;  %v14094_v53 = vld [vmem:[#allocation91_spill] sm:$0xff]  ;;  %v14096_v62 = vld [vmem:[#allocation25_spill] sm:$0xff]  ;;  %v14097_v60 = vld [vmem:[#allocation92_spill] sm:$0xff] }
 0x52c   : > { %v8850_v38 = vpop.eup %8849  ;;  %8869 = vpow2.f32 %v2652_v49  ;;  %v2580_v30 = vsub.f32 %v10556_v26, %v2508_v31  ;;  %v2581_v6 = vsub.f32 %v10559_v21, %v2508_v31  ;;  %v2582_v39 = vsub.f32 %v10554_v22, %v2508_v31  ;;  %4028 = vrot.lane.b32.xlu1 %v10180_v50, %s9546_s22 }
 0x52d   : > { %v8852_v45 = vpop.eup %8851  ;;  %8871 = vpow2.f32 %v2654_v0  ;;  %v2583_v47 = vsub.f32 %v10561_v12, %v2508_v31  ;;  %v2756_v61 = vadd.f32 %v8848_v51, %v8846_v29  ;;  %v14098_v0 = vld [vmem:[#allocation94_spill] sm:$0xff] }
 0x52e   : > { %v8854_v4 = vpop.eup %8853  ;;  %8873 = vpow2.f32 %v2656_v8  ;;  %v2660_v33 = vmul.f32 1.442695, %v2580_v30  ;;  %v2662_v26 = vmul.f32 1.442695, %v2581_v6  ;;  %v2664_v54 = vmul.f32 1.442695, %v2582_v39 }
 0x52f   : > { %v8856_v21 = vpop.eup %8855  ;;  %8875 = vpow2.f32 %v2658_v34  ;;  %v2666_v22 = vmul.f32 1.442695, %v2583_v47  ;;  %v2513_v25 = vpop.xlane.xlu1 %2512  ;;  %3996 = vrot.lane.b32.xlu0 %v10350_v19, %s9546_s22  ;;  %v2836_v43 = vpack.c.bf16 %v8854_v4, %v8846_v29  ;;  %v2757_v37 = vadd.f32 %v8850_v38, %v2756_v61 }
 0x530   : > { %v8858_v1 = vpop.eup %8857  ;;  %8877 = vpow2.f32 %v2660_v33  ;;  %v2837_v13 = vpack.c.bf16 %v8856_v21, %v8848_v51  ;;  %v2584_v12 = vsub.f32 %v14094_v53, %v2513_v25  ;;  %v2585_v15 = vsub.f32 %v14095_v41, %v2513_v25  ;;  %4012 = vrot.lane.b32.xlu1 %v14096_v62, %s9546_s22  ;;  %v14099_v33 = vld [vmem:[#allocation56_spill] sm:$0xff] }
 0x531   : > { %v8860_v24 = vpop.eup %8859  ;;  %8879 = vpow2.f32 %v2662_v26  ;;  %v2586_v49 = vsub.f32 %v14097_v60, %v2513_v25  ;;  %v2587_v8 = vsub.f32 %v14098_v0, %v2513_v25  ;;  %v2838_v34 = vpack.c.bf16 %v8858_v1, %v8850_v38  ;;  %v14100_v38 = vld [vmem:[#allocation96_spill] sm:$0xff] }
 0x532   : > { %v10827_v31 = vpop.eup %8861  ;;  %8881 = vpow2.f32 %v2664_v54  ;;  %2900 = vmatprep.mubr.bf16.mxu0 %v2837_v13  ;;  %v2839_v29 = vpack.c.bf16 %v8860_v24, %v8852_v45  ;;  %v2668_v51 = vmul.f32 1.442695, %v2584_v12  ;;  %v2670_v30 = vmul.f32 1.442695, %v2585_v15  ;;  %v14101_v13 = vld [vmem:[#allocation97_spill] sm:$0xff]  ;;  %v14102_v12 = vld [vmem:[#allocation95_spill] sm:$0xff] }
 0x533   : > { %v10829_v6 = vpop.eup %8863  ;;  %8883 = vpow2.f32 %v2666_v22  ;;  %v2672_v39 = vmul.f32 1.442695, %v2586_v49  ;;  %v2674_v47 = vmul.f32 1.442695, %v2587_v8  ;;  %2901 = vmatmul.mubr.bf16.vlgmr.msra.gmra.mrb[140].mxu0 %v2836_v43  ;;  %v2518_v61 = vpop.xlane.xlu1 %2517  ;;  %3980 = vrot.lane.b32.xlu0 %v14099_v33, %s9546_s22  ;;  %v2761_v26 = vadd.f32 %v8856_v21, %v8854_v4  ;;  %v14103_v43 = vld [vmem:[#allocation90_spill] sm:$0xff] }
 0x534   : > { %v10833_v25 = vpop.eup %8865  ;;  %2997 = vmatprep.mubr.bf16.mxu1 %v2839_v29  ;;  %8885 = vpow2.f32 %v2668_v51  ;;  %7712 = vmatpush3.bf16.xpose.msra.mxu0 %v3239_v18  ;;  %v2588_v54 = vsub.f32 %v14100_v38, %v2518_v61  ;;  %v2589_v53 = vsub.f32 %v14101_v13, %v2518_v61  ;;  %v2590_v41 = vsub.f32 %v14102_v12, %v2518_v61  ;;  %v14104_v15 = vld [vmem:[#allocation98_spill] sm:$0xff]  ;;  %v14106_v29 = vld [vmem:[#allocation37_spill] sm:$0xff]  ;;  %v14112_v13 = vld [vmem:[#allocation100_spill] sm:$0xff] }
 0x535   : > { %v10838_v22 = vpop.eup %8867  ;;  %8887 = vpow2.f32 %v2670_v30  ;;  %2998 = vmatmul.mubr.bf16.vlgmr.msra.gmra.mrb[148].mxu1 %v2838_v34  ;;  %8616 = vmatprep.subr.msk.bf16.mxu0 %vm2137_vm3, %v14103_v43  ;;  %v2591_v4 = vsub.f32 %v14104_v15, %v2518_v61  ;;  %v2762_v21 = vadd.f32 %v8858_v1, %v2761_v26  ;;  %v10843_v60 = vadd.f32 %v8852_v45, %v2757_v37  ;;  %v14107_v34 = vld [vmem:[#allocation89_spill] sm:$0xff]  ;;  %v14108_v45 = vld [vmem:[#allocation71_spill] sm:$0xff]  ;;  %v14113_v12 = vld [vmem:[#allocation102_spill] sm:$0xff] }
 0x536   : > { %v8870_v49 = vpop.eup %8869  ;;  %8889 = vpow2.f32 %v2672_v39  ;;  %7744 = vmatpush3.bf16.xpose.msra.mxu1 %v10779_v17  ;;  %v2676_v18 = vmul.f32 1.442695, %v2588_v54  ;;  %v2678_v0 = vmul.f32 1.442695, %v2589_v53  ;;  %v2680_v8 = vmul.f32 1.442695, %v2590_v41  ;;  %4030 = vrot.lane.b32.xlu1 %v14106_v29, %s9546_s22 }
 0x537   : > { %14105 = vst [vmem:[#allocation91_spill] sm:$0xff] %v10843_v60  ;;  %v8872_v51 = vpop.eup %8871  ;;  %8891 = vpow2.f32 %v2674_v47  ;;  %8624 = vmatprep.subr.msk.bf16.mxu1 %vm2137_vm3, %v14107_v34  ;;  %v2682_v30 = vmul.f32 1.442695, %v2591_v4  ;;  %v2523_v61 = vpop.xlane.xlu1 %2522  ;;  %3998 = vrot.lane.b32.xlu0 %v14108_v45, %s9546_s22  ;;  %v2840_v37 = vpack.c.bf16 %v8870_v49, %v10827_v31  ;;  %v10853_v1 = vadd.f32 %v8860_v24, %v2762_v21  ;;  %v14110_v39 = vld [vmem:[#allocation99_spill] sm:$0xff]  ;;  %v14111_v38 = vld [vmem:[#allocation101_spill] sm:$0xff] }
 0x538   : > { %v8874_v17 = vpop.eup %8873  ;;  %8893 = vpow2.f32 %v2676_v18  ;;  %v2592_v26 = vsub.f32 %v14110_v39, %v2523_v61  ;;  %v2593_v54 = vsub.f32 %v14111_v38, %v2523_v61  ;;  %v2594_v47 = vsub.f32 %v14112_v13, %v2523_v61  ;;  %v14114_v34 = vld [vmem:[#allocation23_spill] sm:$0xff]  ;;  %v14115_v13 = vld [vmem:[#allocation53_spill] sm:$0xff] }
 0x539   : > { %14109 = vst [vmem:[#allocation93_spill] sm:$0xff] %v10853_v1  ;;  %v8876_v53 = vpop.eup %8875  ;;  %8895 = vpow2.f32 %v2678_v0  ;;  %v2595_v41 = vsub.f32 %v14113_v12, %v2523_v61  ;;  %v2841_v43 = vpack.c.bf16 %v8872_v51, %v10829_v6  ;;  %v2842_v15 = vpack.c.bf16 %v8874_v17, %v10833_v25  ;;  %v14118_v1 = vld [vmem:[#allocation103_spill] sm:$0xff] }
 0x53a   : > { %v10861_v4 = vpop.eup %8877  ;;  %8897 = vpow2.f32 %v2680_v8  ;;  %v2684_v24 = vmul.f32 1.442695, %v2592_v26  ;;  %v2686_v21 = vmul.f32 1.442695, %v2593_v54  ;;  %v2688_v18 = vmul.f32 1.442695, %v2594_v47  ;;  %4014 = vrot.lane.b32.xlu1 %v14114_v34, %s9546_s22 }
 0x53b   : > { %v10865_v39 = vpop.eup %8879  ;;  %8899 = vpow2.f32 %v2682_v30  ;;  %v2690_v38 = vmul.f32 1.442695, %v2595_v41  ;;  %2908 = vmatprep.mubr.bf16.mxu0 %v2841_v43  ;;  %v2843_v0 = vpack.c.bf16 %v8876_v53, %v10838_v22  ;;  %v2528_v61 = vpop.xlane.xlu1 %2527  ;;  %3982 = vrot.lane.b32.xlu0 %v14115_v13, %s9546_s22  ;;  %v2771_v12 = vadd.f32 %v8872_v51, %v8870_v49  ;;  %v14116_v8 = vld [vmem:[#allocation104_spill] sm:$0xff]  ;;  %v14117_v54 = vld [vmem:[#allocation105_spill] sm:$0xff]  ;;  %v14119_v43 = vld [vmem:[#allocation106_spill] sm:$0xff] }
 0x53c   : > { %v10870_v60 = vpop.eup %8881  ;;  %8901 = vpow2.f32 %v2684_v24  ;;  %7714 = vmatpush3.bf16.xpose.msra.mxu0 %v10798_v28  ;;  %v2596_v26 = vsub.f32 %v14116_v8, %v2528_v61  ;;  %v2597_v47 = vsub.f32 %v14117_v54, %v2528_v61  ;;  %v2598_v30 = vsub.f32 %v14118_v1, %v2528_v61 }
 0x53d   : > { %v10876_v41 = vpop.eup %8883  ;;  %8903 = vpow2.f32 %v2686_v21  ;;  %3005 = vmatprep.mubr.bf16.mxu1 %v2843_v0  ;;  %8617 = vmatprep.subr.msk.bf16.mxu0 %vm2137_vm3, %v10741_v27  ;;  %v2599_v49 = vsub.f32 %v14119_v43, %v2528_v61  ;;  %v2772_v51 = vadd.f32 %v8874_v17, %v2771_v12  ;;  %v2766_v24 = vadd.f32 %v10829_v6, %v10827_v31  ;;  %v14122_v6 = vld [vmem:[#allocation107_spill] sm:$0xff]  ;;  %v14124_v61 = vld [vmem:[#allocation108_spill] sm:$0xff] }
 0x53e   : > { %v8886_v28 = vpop.eup %8885  ;;  %8905 = vpow2.f32 %v2688_v18  ;;  %7746 = vmatpush3.bf16.xpose.msra.mxu1 %v10774_v46  ;;  %2909 = vmatmul.mubr.bf16.gmra.mrb[144].mxu0 %v2840_v37  ;;  %v2692_v8 = vmul.f32 1.442695, %v2596_v26  ;;  %v2694_v1 = vmul.f32 1.442695, %v2597_v47  ;;  %v2696_v54 = vmul.f32 1.442695, %v2598_v30 }
 0x53f   : > { %v8888_v13 = vpop.eup %8887  ;;  %8907 = vpow2.f32 %v2690_v38  ;;  %8625 = vmatprep.subr.msk.bf16.mxu1 %vm2137_vm3, %v10705_v32  ;;  %3006 = vmatmul.mubr.bf16.gmra.mrb[152].mxu1 %v2842_v15  ;;  %v2698_v27 = vmul.f32 1.442695, %v2599_v49  ;;  %v2533_v21 = vpop.xlane.xlu1 %2532  ;;  %v2844_v17 = vpack.c.bf16 %v8886_v28, %v10861_v4  ;;  %v10887_v0 = vadd.f32 %v8876_v53, %v2772_v51  ;;  %v14121_v46 = vld [vmem:[#allocation42_spill] sm:$0xff]  ;;  %v14123_v18 = vld [vmem:[#allocation109_spill] sm:$0xff] }
 0x540   : > { %v10889_v31 = vpop.eup %8889  ;;  %8909 = vpow2.f32 %v2692_v8  ;;  %4032 = vrot.lane.b32.xlu1 %v14121_v46, %s9546_s22  ;;  %v2600_v37 = vsub.f32 %v14122_v6, %v2533_v21  ;;  %v2601_v38 = vsub.f32 %v14123_v18, %v2533_v21  ;;  %v2602_v12 = vsub.f32 %v14124_v61, %v2533_v21  ;;  %v14125_v32 = vld [vmem:[#allocation73_spill] sm:$0xff]  ;;  %v14126_v53 = vld [vmem:[#allocation110_spill] sm:$0xff] }
 0x541   : > { %14120 = vst [vmem:[#allocation25_spill] sm:$0xff] %v10887_v0  ;;  %4000 = vrot.lane.b32.xlu0 %v14125_v32, %s9546_s22  ;;  %v10898_v15 = vpop.eup %8891  ;;  %8911 = vpow2.f32 %v2694_v1  ;;  %v2603_v26 = vsub.f32 %v14126_v53, %v2533_v21  ;;  %v2845_v47 = vpack.c.bf16 %v8888_v13, %v10865_v39  ;;  %v2846_v30 = vpack.c.bf16 %v10889_v31, %v10870_v60 }
 0x542   : > { %v10904_v43 = vpop.eup %8893  ;;  %8913 = vpow2.f32 %v2696_v54  ;;  %v2700_v49 = vmul.f32 1.442695, %v2600_v37  ;;  %v2702_v51 = vmul.f32 1.442695, %v2601_v38  ;;  %v2704_v8 = vmul.f32 1.442695, %v2602_v12 }
 0x543   : > { %v10906_v6 = vpop.eup %8895  ;;  %8915 = vpow2.f32 %v2698_v27  ;;  %v2706_v18 = vmul.f32 1.442695, %v2603_v26  ;;  %2916 = vmatprep.mubr.bf16.mxu0 %v2845_v47  ;;  %v2847_v1 = vpack.c.bf16 %v10898_v15, %v10876_v41  ;;  %v2538_v21 = vpop.xlane.xlu1 %2537  ;;  %v2767_v61 = vadd.f32 %v10833_v25, %v2766_v24  ;;  %v14127_v54 = vld [vmem:[#allocation29_spill] sm:$0xff]  ;;  %v14128_v37 = vld [vmem:[#allocation111_spill] sm:$0xff]  ;;  %v14129_v12 = vld [vmem:[#allocation112_spill] sm:$0xff] }
 0x544   : > { %v10911_v53 = vpop.eup %8897  ;;  %8917 = vpow2.f32 %v2700_v49  ;;  %7716 = vmatpush3.bf16.xpose.msra.mxu0 %v10816_v63  ;;  %4016 = vrot.lane.b32.xlu1 %v14127_v54, %s9546_s22  ;;  %v2604_v38 = vsub.f32 %v14128_v37, %v2538_v21  ;;  %v2605_v27 = vsub.f32 %v14129_v12, %v2538_v21  ;;  %v2606_v26 = vsub.f32 %v10626_v57, %v2538_v21  ;;  %v14130_v25 = vld [vmem:[#allocation113_spill] sm:$0xff] }
 0x545   : > { %v10919_v47 = vpop.eup %8899  ;;  %8919 = vpow2.f32 %v2702_v51  ;;  %3013 = vmatprep.mubr.bf16.mxu1 %v2847_v1  ;;  %8618 = vmatprep.subr.msk.bf16.mxu0 %vm2137_vm3, %v10733_v5  ;;  %v2607_v24 = vsub.f32 %v14130_v25, %v2538_v21  ;;  %v2543_v49 = vpop.xlane.xlu0 %2542  ;;  %v10925_v63 = vadd.f32 %v10838_v22, %v2767_v61  ;;  %v2781_v0 = vadd.f32 %v8888_v13, %v8886_v28  ;;  %v14132_v22 = vld [vmem:[#allocation114_spill] sm:$0xff]  ;;  %v14133_v13 = vld [vmem:[#allocation116_spill] sm:$0xff] }
 0x546   : > { %v10927_v54 = vpop.eup %8901  ;;  %8921 = vpow2.f32 %v2704_v8  ;;  %7748 = vmatpush3.bf16.xpose.msra.mxu1 %v10794_v42  ;;  %2917 = vmatmul.mubr.bf16.gmra.mrb[148].mxu0 %v2844_v17  ;;  %v2708_v57 = vmul.f32 1.442695, %v2604_v38  ;;  %v2710_v37 = vmul.f32 1.442695, %v2605_v27  ;;  %v2712_v51 = vmul.f32 1.442695, %v2606_v26 }
 0x547   : > { %14131 = vst [vmem:[#allocation92_spill] sm:$0xff] %v10925_v63  ;;  %v10930_v1 = vpop.eup %8903  ;;  %8923 = vpow2.f32 %v2706_v18  ;;  %8626 = vmatprep.subr.msk.bf16.mxu1 %vm2137_vm3, %v10703_v44  ;;  %3014 = vmatmul.mubr.bf16.gmra.mrb[156].mxu1 %v2846_v30  ;;  %v2714_v5 = vmul.f32 1.442695, %v2607_v24  ;;  %v2608_v21 = vsub.f32 %v14132_v22, %v2543_v49  ;;  %v2609_v28 = vsub.f32 %v14133_v13, %v2543_v49  ;;  %v14134_v42 = vld [vmem:[#allocation61_spill] sm:$0xff]  ;;  %v14135_v17 = vld [vmem:[#allocation40_spill] sm:$0xff]  ;;  %v14136_v8 = vld [vmem:[#allocation115_spill] sm:$0xff] }
 0x548   : > { %v10936_v61 = vpop.eup %8905  ;;  %8925 = vpow2.f32 %v2708_v57  ;;  %3984 = vrot.lane.b32.xlu0 %v14134_v42, %s9546_s22  ;;  %4034 = vrot.lane.b32.xlu1 %v14135_v17, %s9546_s22  ;;  %v2610_v18 = vsub.f32 %v14136_v8, %v2543_v49  ;;  %v14137_v38 = vld [vmem:[#allocation117_spill] sm:$0xff]  ;;  %v2849_v44 = vpack.c.bf16 %v10930_v1, %v10906_v6  ;;  %v2848_v25 = vpack.c.bf16 %v10927_v54, %v10904_v43 }
 0x549   : > { %v2611_v12 = vsub.f32 %v14137_v38, %v2543_v49  ;;  %v10946_v30 = vpop.eup %8907  ;;  %8927 = vpow2.f32 %v2710_v37  ;;  %v2716_v27 = vmul.f32 1.442695, %v2608_v21  ;;  %v2718_v26 = vmul.f32 1.442695, %v2609_v28 }
 0x54a   : > { %v10950_v24 = vpop.eup %8909  ;;  %8929 = vpow2.f32 %v2712_v51  ;;  %v2720_v57 = vmul.f32 1.442695, %v2610_v18  ;;  %2924 = vmatprep.mubr.bf16.mxu0 %v2849_v44  ;;  %v2851_v49 = vpack.c.bf16 %v10946_v30, %v10919_v47  ;;  %v2850_v37 = vpack.c.bf16 %v10936_v61, %v10911_v53  ;;  %v14138_v51 = vld [vmem:[#allocation72_spill] sm:$0xff]  ;;  %v14139_v18 = vld [vmem:[#allocation118_spill] sm:$0xff] }
 0x54b   : > { %v2722_v22 = vmul.f32 1.442695, %v2611_v12  ;;  %v10954_v13 = vpop.eup %8911  ;;  %8931 = vpow2.f32 %v2714_v5  ;;  %v2548_v21 = vpop.xlane.xlu1 %2547  ;;  %v2782_v28 = vadd.f32 %v10889_v31, %v2781_v0  ;;  %v2776_v8 = vadd.f32 %v10865_v39, %v10861_v4  ;;  %v14140_v5 = vld [vmem:[#allocation119_spill] sm:$0xff]  ;;  %v14142_v4 = vld [vmem:[#allocation120_spill] sm:$0xff] }
 0x54c   : > { %v10961_v38 = vpop.eup %8913  ;;  %8933 = vpow2.f32 %v2716_v27  ;;  %4002 = vrot.lane.b32.xlu0 %v14138_v51, %s9546_s22  ;;  %7718 = vmatpush3.bf16.xpose.msra.mxu0 %v10805_v56  ;;  %v2612_v12 = vsub.f32 %v14139_v18, %v2548_v21  ;;  %v2613_v44 = vsub.f32 %v14140_v5, %v2548_v21  ;;  %v2614_v63 = vsub.f32 %v10650_v52, %v2548_v21  ;;  %v14141_v0 = vld [vmem:[#allocation27_spill] sm:$0xff] }
 0x54d   : > { %v10969_v17 = vpop.eup %8915  ;;  %8935 = vpow2.f32 %v2718_v26  ;;  %4018 = vrot.lane.b32.xlu1 %v14141_v0, %s9546_s22  ;;  %3021 = vmatprep.mubr.bf16.mxu1 %v2851_v49  ;;  %v2615_v39 = vsub.f32 %v14142_v4, %v2548_v21  ;;  %v2553_v31 = vpop.xlane.xlu0 %2552  ;;  %v10975_v27 = vadd.f32 %v10898_v15, %v2782_v28  ;;  %v2777_v56 = vadd.f32 %v10870_v60, %v2776_v8  ;;  %v14144_v49 = vld [vmem:[#allocation122_spill] sm:$0xff]  ;;  %v14145_v60 = vld [vmem:[#allocation123_spill] sm:$0xff]  ;;  %v14146_v8 = vld [vmem:[#allocation85_spill] sm:$0xff] }
 0x54e   : > { %v8918_v18 = vpop.eup %8917  ;;  %8937 = vpow2.f32 %v2720_v57  ;;  %7750 = vmatpush3.bf16.xpose.msra.mxu1 %v10783_v7  ;;  %8619 = vmatprep.subr.msk.bf16.mxu0 %vm2137_vm3, %v10735_v40  ;;  %v2724_v52 = vmul.f32 1.442695, %v2612_v12  ;;  %v2726_v26 = vmul.f32 1.442695, %v2613_v44  ;;  %v2728_v5 = vmul.f32 1.442695, %v2614_v63 }
 0x54f   : > { %14143 = vst [vmem:[#allocation94_spill] sm:$0xff] %v10975_v27  ;;  %v8920_v0 = vpop.eup %8919  ;;  %8939 = vpow2.f32 %v2722_v22  ;;  %8627 = vmatprep.subr.msk.bf16.mxu1 %vm2137_vm3, %v10709_v14  ;;  %2925 = vmatmul.mubr.bf16.gmra.mrb[152].mxu0 %v2848_v25  ;;  %v2730_v15 = vmul.f32 1.442695, %v2615_v39  ;;  %v2616_v21 = vsub.f32 %v14144_v49, %v2553_v31  ;;  %v2617_v28 = vsub.f32 %v14145_v60, %v2553_v31  ;;  %v14147_v40 = vld [vmem:[#allocation59_spill] sm:$0xff]  ;;  %v14148_v63 = vld [vmem:[#allocation121_spill] sm:$0xff]  ;;  %v14149_v12 = vld [vmem:[#allocation124_spill] sm:$0xff] }
 0x550   : > { %v8922_v57 = vpop.eup %8921  ;;  %v3251_v7 = vsel %vm2137_vm3, %v14146_v8, 0  ;;  %3022 = vmatmul.mubr.bf16.gmra.mrb[160].mxu1 %v2850_v37  ;;  %8941 = vpow2.f32 %v2724_v52  ;;  %3986 = vrot.lane.b32.xlu0 %v14147_v40, %s9546_s22  ;;  %v2618_v22 = vsub.f32 %v14148_v63, %v2553_v31  ;;  %v2619_v44 = vsub.f32 %v14149_v12, %v2553_v31  ;;  %v14150_v25 = vld [vmem:[#allocation46_spill] sm:$0xff] }
 0x551   : > { %v8924_v14 = vpop.eup %8923  ;;  %8943 = vpow2.f32 %v2726_v26  ;;  %4036 = vrot.lane.b32.xlu1 %v14150_v25, %s9546_s22  ;;  %v2732_v4 = vmul.f32 1.442695, %v2616_v21  ;;  %v2734_v39 = vmul.f32 1.442695, %v2617_v28  ;;  %v2853_v49 = vpack.c.bf16 %v8920_v0, %v10954_v13  ;;  %v14152_v28 = vld [vmem:[#allocation75_spill] sm:$0xff] }
 0x552   : > { %v10994_v60 = vpop.eup %8925  ;;  %8945 = vpow2.f32 %v2728_v5  ;;  %v2736_v37 = vmul.f32 1.442695, %v2618_v22  ;;  %v2738_v52 = vmul.f32 1.442695, %v2619_v44  ;;  %v2855_v8 = vpack.c.bf16 %v8924_v14, %v10969_v17  ;;  %v14153_v44 = vld [vmem:[#allocation78_spill] sm:$0xff] }
 0x553   : > { %v8928_v27 = vpop.eup %8927  ;;  %8947 = vpow2.f32 %v2730_v15  ;;  %2932 = vmatprep.mubr.bf16.mxu0 %v2853_v49  ;;  %v2852_v31 = vpack.c.bf16 %v8918_v18, %v10950_v24  ;;  %v2854_v26 = vpack.c.bf16 %v8922_v57, %v10961_v38  ;;  %v11000_v63 = vadd.f32 %v10876_v41, %v2777_v56  ;;  %v14154_v56 = vld [vmem:[#allocation33_spill] sm:$0xff] }
 0x554   : > { %v11002_v21 = vpop.eup %8929  ;;  %8949 = vpow2.f32 %v2732_v4  ;;  %4004 = vrot.lane.b32.xlu0 %v14152_v28, %s9546_s22  ;;  %7720 = vmatpush3.bf16.xpose.msra.mxu0 %v3251_v7  ;;  %v2791_v5 = vadd.f32 %v10930_v1, %v10927_v54  ;;  %v2786_v15 = vadd.f32 %v10906_v6, %v10904_v43  ;;  %v2796_v22 = vadd.f32 %v10954_v13, %v10950_v24 }
 0x555   : > { %14151 = vst [vmem:[#allocation56_spill] sm:$0xff] %v11000_v63  ;;  %v8932_v12 = vpop.eup %8931  ;;  %v3299_v41 = vsel %vm2137_vm3, %v14153_v44, 0  ;;  %8951 = vpow2.f32 %v2734_v39  ;;  %4020 = vrot.lane.b32.xlu1 %v14154_v56, %s9546_s22  ;;  %3029 = vmatprep.mubr.bf16.mxu1 %v2855_v8  ;;  %v2801_v4 = vadd.f32 %v8920_v0, %v8918_v18  ;;  %v2806_v7 = vadd.f32 %v8928_v27, %v10994_v60  ;;  %v14192_v63 = vld [vmem:[#allocation128_spill] sm:$0xff] }
 0x556   : > { %v8934_v49 = vpop.eup %8933  ;;  %8953 = vpow2.f32 %v2736_v37  ;;  %7752 = vmatpush3.bf16.xpose.msra.mxu1 %v3299_v41  ;;  %8620 = vmatprep.subr.msk.bf16.mxu0 %vm2137_vm3, %v10727_v48  ;;  %v2792_v43 = vadd.f32 %v10936_v61, %v2791_v5  ;;  %v2787_v6 = vadd.f32 %v10911_v53, %v2786_v15  ;;  %v2797_v54 = vadd.f32 %v10961_v38, %v2796_v22  ;;  %v14155_v48 = vld [vmem:[#allocation68_spill] sm:$0xff]  ;;  %v14162_v5 = vld [vmem:[#allocation83_spill] sm:$0xff] }
 0x557   : > { %v8936_v1 = vpop.eup %8935  ;;  %8955 = vpow2.f32 %v2738_v52  ;;  %8628 = vmatprep.subr.msk.bf16.mxu1 %vm2137_vm3, %v10707_v23  ;;  %2933 = vmatmul.mubr.bf16.gmra.mrb[156].mxu0 %v2852_v31  ;;  %v2856_v24 = vpack.c.bf16 %v8934_v49, %v10994_v60  ;;  %v2802_v13 = vadd.f32 %v8922_v57, %v2801_v4  ;;  %v2807_v0 = vadd.f32 %v11002_v21, %v2806_v7  ;;  %v14158_v23 = vld [vmem:[#allocation44_spill] sm:$0xff]  ;;  %v3211_v7 = vpop.permute.xlu0 %3210 }
 0x558   : > { %v8938_v18 = vpop.eup %8937  ;;  %3030 = vmatmul.mubr.bf16.gmra.mrb[164].mxu1 %v2854_v26  ;;  %3988 = vrot.lane.b32.xlu0 %v14155_v48, %s9546_s22  ;;  %v2857_v61 = vpack.c.bf16 %v8936_v1, %v8928_v27  ;;  %v11029_v53 = vadd.f32 %v10946_v30, %v2792_v43  ;;  %v11032_v38 = vadd.f32 %v10919_v47, %v2787_v6  ;;  %v3254_v15 = vsel %vm2137_vm3, %v14162_v5, 0 }
 0x559   : > { %v8940_v39 = vpop.eup %8939  ;;  %4038 = vrot.lane.b32.xlu1 %v14158_v23, %s9546_s22  ;;  %v2858_v57 = vpack.c.bf16 %v8938_v18, %v11002_v21  ;;  %v11038_v60 = vadd.f32 %v10969_v17, %v2797_v54  ;;  %v11040_v37 = vadd.f32 %v8924_v14, %v2802_v13  ;;  %v2811_v52 = vadd.f32 %v8936_v1, %v8934_v49  ;;  %v14163_v21 = vld [vmem:[#allocation74_spill] sm:$0xff]  ;;  %v14164_v14 = vld [vmem:[#allocation76_spill] sm:$0xff]  ;;  %v14167_v1 = vld [vmem:[#allocation65_spill] sm:$0xff] }
 0x55a   : > { %14156 = vst [vmem:[#allocation96_spill] sm:$0xff] %v11029_v53  ;;  %14157 = vst [vmem:[#allocation97_spill] sm:$0xff] %v11032_v38  ;;  %v8942_v8 = vpop.eup %8941  ;;  %2940 = vmatprep.mubr.bf16.mxu0 %v2857_v61  ;;  %v2859_v27 = vpack.c.bf16 %v8940_v39, %v8932_v12  ;;  %v11042_v30 = vadd.f32 %v8932_v12, %v2807_v0  ;;  %v3302_v44 = vsel %vm2137_vm3, %v14164_v14, 0  ;;  %v14165_v12 = vld [vmem:[#allocation36_spill] sm:$0xff]  ;;  %v14178_v14 = vld [vmem:[#allocation39_spill] sm:$0xff] }
 0x55b   : > { %14159 = vst [vmem:[#allocation95_spill] sm:$0xff] %v11038_v60  ;;  %14160 = vst [vmem:[#allocation90_spill] sm:$0xff] %v11040_v37  ;;  %v8944_v31 = vpop.eup %8943  ;;  %v2812_v47 = vadd.f32 %v8938_v18, %v2811_v52  ;;  %v14191_v38 = vld [vmem:[#allocation15_spill] sm:$0xff] }
 0x55c   : > { %14161 = vst [vmem:[#allocation98_spill] sm:$0xff] %v11042_v30  ;;  %v8946_v26 = vpop.eup %8945  ;;  %3037 = vmatprep.mubr.bf16.mxu1 %v2859_v27  ;;  %4006 = vrot.lane.b32.xlu0 %v14163_v21, %s9546_s22  ;;  %v2816_v17 = vadd.f32 %v8944_v31, %v8942_v8 }
 0x55d   : > { %v8948_v22 = vpop.eup %8947  ;;  %7722 = vmatpush3.bf16.xpose.msra.mxu0 %v3254_v15  ;;  %4330 = vrot.lane.b32.xlu1 %v14165_v12, %s9547_s30  ;;  %v11052_v41 = vadd.f32 %v8940_v39, %v2812_v47  ;;  %v14169_v39 = vld [vmem:[#allocation6_spill] sm:$0xff]  ;;  %v14170_v47 = vld [vmem:[#allocation87_spill] sm:$0xff] }
 0x55e   : > { %v8950_v4 = vpop.eup %8949  ;;  %7754 = vmatpush3.bf16.xpose.msra.mxu1 %v3302_v44  ;;  %8621 = vmatprep.subr.msk.bf16.mxu0 %vm2137_vm3, %v10747_v9  ;;  %v2817_v49 = vadd.f32 %v8946_v26, %v2816_v17  ;;  %v14174_v15 = vld [vmem:[#allocation35_spill] sm:$0xff]  ;;  %v14176_v17 = vld [vmem:[#allocation5_spill] sm:$0xff] }
 0x55f   : > { %14166 = vst [vmem:[#allocation89_spill] sm:$0xff] %v11052_v41  ;;  %v8952_v43 = vpop.eup %8951  ;;  %8629 = vmatprep.subr.msk.bf16.mxu1 %vm2137_vm3, %v3211_v7  ;;  %2941 = vmatmul.mubr.bf16.gmra.mrb[160].mxu0 %v2856_v24  ;;  %v2860_v6 = vpack.c.bf16 %v8950_v4, %v8942_v8  ;;  %v3257_v24 = vsel %vm2137_vm3, %v14170_v47, 0  ;;  %v14179_v44 = vld [vmem:[#allocation21_spill] sm:$0xff] }
 0x560   : > { %v8954_v54 = vpop.eup %8953  ;;  %3038 = vmatmul.mubr.bf16.gmra.mrb[168].mxu1 %v2858_v57  ;;  %3990 = vrot.lane.b32.xlu0 %v14167_v1, %s9546_s22  ;;  %v2861_v13 = vpack.c.bf16 %v8952_v43, %v8944_v31  ;;  %v11059_v0 = vadd.f32 %v8948_v22, %v2817_v49  ;;  %v2821_v18 = vadd.f32 %v8952_v43, %v8950_v4  ;;  %v14171_v57 = vld [vmem:[#allocation31_spill] sm:$0xff]  ;;  %v14173_v31 = vld [vmem:[#allocation80_spill] sm:$0xff]  ;;  %v14181_v7 = vld [vmem:[#allocation13_spill] sm:$0xff] }
 0x561   : > { %v8956_v61 = vpop.eup %8955  ;;  %4346 = vrot.lane.b32.xlu1 %v14169_v39, %s9547_s30  ;;  %v2862_v9 = vpack.c.bf16 %v8954_v54, %v8946_v26  ;;  %v3305_v5 = vsel %vm2137_vm3, %v14173_v31, 0  ;;  %v14175_v26 = vld [vmem:[#allocation22_spill] sm:$0xff]  ;;  %v14180_v4 = vld [vmem:[#allocation8_spill] sm:$0xff] }
 0x562   : > { %14168 = vst [vmem:[#allocation99_spill] sm:$0xff] %v11059_v0  ;;  %2948 = vmatprep.mubr.bf16.mxu0 %v2861_v13  ;;  %v2863_v52 = vpack.c.bf16 %v8956_v61, %v8948_v22  ;;  %v2822_v27 = vadd.f32 %v8954_v54, %v2821_v18  ;;  %v14177_v22 = vld [vmem:[#allocation14_spill] sm:$0xff]  ;;  %v3165_v54 = vpop.permute.xlu1 %3164  ;;  %v14185_v13 = vld [vmem:[#allocation16_spill] sm:$0xff] }
 0x563   : > { %v14182_v49 = vld [vmem:[#allocation38_spill] sm:$0xff] }
 0x564   : > { %3045 = vmatprep.mubr.bf16.mxu1 %v2863_v52  ;;  %4022 = vrot.lane.b32.xlu0 %v14171_v57, %s9546_s22  ;;  %v11067_v8 = vadd.f32 %v8956_v61, %v2822_v27  ;;  %v14183_v43 = vld [vmem:[#allocation26_spill] sm:$0xff]  ;;  %v14187_v61 = vld [vmem:[#allocation24_spill] sm:$0xff]  ;;  %v14189_v27 = vld [vmem:[#allocation125_spill] sm:$0xff] }
 0x565   : > { %7724 = vmatpush3.bf16.xpose.msra.mxu0 %v3257_v24  ;;  %4332 = vrot.lane.b32.xlu1 %v14174_v15, %s9547_s30  ;;  %v14186_v18 = vld [vmem:[#allocation30_spill] sm:$0xff] }
 0x566   : > { %14172 = vst [vmem:[#allocation101_spill] sm:$0xff] %v11067_v8  ;;  %7756 = vmatpush3.bf16.xpose.msra.mxu1 %v3305_v5  ;;  %v14188_v52 = vld [vmem:[#allocation10_spill] sm:$0xff] }
 0x567   : > { %2949 = vmatmul.mubr.bf16.gmra.mrb[164].mxu0 %v2860_v6  ;;  %v14184_v6 = vld [vmem:[#allocation7_spill] sm:$0xff]  ;;  %v14190_v24 = vld [vmem:[#allocation126_spill] sm:$0xff] }
 0x568   : > { %3046 = vmatmul.mubr.bf16.gmra.mrb[172].mxu1 %v2862_v9  ;;  %4314 = vrot.lane.b32.xlu0 %v14175_v26, %s9547_s30 }
 0x569   : > { %4348 = vrot.lane.b32.xlu1 %v14176_v17, %s9547_s30 }
 0x56c   : > { %4362 = vrot.lane.b32.xlu0 %v14177_v22, %s9547_s30 }
 0x56d   : > { %4334 = vrot.lane.b32.xlu1 %v14178_v14, %s9547_s30 }
 0x570   : > { %4316 = vrot.lane.b32.xlu0 %v14179_v44, %s9547_s30 }
 0x571   : > { %4350 = vrot.lane.b32.xlu1 %v14180_v4, %s9547_s30 }
 0x574   : > { %4364 = vrot.lane.b32.xlu0 %v14181_v7, %s9547_s30 }
 0x575   : > { %4336 = vrot.lane.b32.xlu1 %v14182_v49, %s9547_s30 }
 0x578   : > { %4318 = vrot.lane.b32.xlu0 %v14183_v43, %s9547_s30 }
 0x579   : > { %4352 = vrot.lane.b32.xlu1 %v14184_v6, %s9547_s30 }
 0x57c   : > { %4366 = vrot.lane.b32.xlu0 %v14185_v13, %s9547_s30 }
 0x57d   : > { %4322 = vrot.lane.b32.xlu1 %v14186_v18, %s9547_s30  ;;  %v14194_v18 = vld [vmem:[#allocation129_spill] sm:$0xff] }
 0x580   : > { %4320 = vrot.lane.b32.xlu0 %v14187_v61, %s9547_s30  ;;  %v2558_v9 = vpop.xlane.xlu1 %2557  ;;  %v14193_v61 = vld [vmem:[#allocation127_spill] sm:$0xff] }
 0x581   : > { %4354 = vrot.lane.b32.xlu1 %v14188_v52, %s9547_s30  ;;  %v2620_v47 = vsub.f32 %v14189_v27, %v2558_v9  ;;  %v2621_v31 = vsub.f32 %v14190_v24, %v2558_v9  ;;  %v2622_v5 = vsub.f32 %v10674_v20, %v2558_v9  ;;  %v2623_v8 = vsub.f32 %v10681_v3, %v2558_v9  ;;  %v14195_v20 = vld [vmem:[#allocation28_spill] sm:$0xff] }
 0x582   : > { %v2563_v0 = vpop.xlane.xlu0 %2562 }
 0x583   : > { %v2740_v30 = vmul.f32 1.442695, %v2620_v47  ;;  %v2742_v37 = vmul.f32 1.442695, %v2621_v31  ;;  %v2744_v41 = vmul.f32 1.442695, %v2622_v5  ;;  %v2624_v60 = vsub.f32 %v10687_v55, %v2563_v0 }
 0x584   : > { %4368 = vrot.lane.b32.xlu0 %v14191_v38, %s9547_s30  ;;  %v2746_v53 = vmul.f32 1.442695, %v2623_v8  ;;  %v2625_v52 = vsub.f32 %v14192_v63, %v2563_v0  ;;  %v2626_v27 = vsub.f32 %v14193_v61, %v2563_v0  ;;  %v2627_v24 = vsub.f32 %v14194_v18, %v2563_v0  ;;  %v3197_v13 = vpop.permute.xlu1 %3196  ;;  %v14196_v8 = vld [vmem:[#allocation43_spill] sm:$0xff]  ;;  %v14200_v5 = vld [vmem:[#allocation41_spill] sm:$0xff] }
 0x585   : > { %4324 = vrot.lane.b32.xlu1 %v14195_v20, %s9547_s30  ;;  %8957 = vpow2.f32 %v2740_v30  ;;  %v2748_v3 = vmul.f32 1.442695, %v2624_v60  ;;  %v3260_v55 = vsel %vm2137_vm3, %v3165_v54, 0  ;;  %v14197_v30 = vld [vmem:[#allocation9_spill] sm:$0xff]  ;;  %v14199_v54 = vld [vmem:[#allocation34_spill] sm:$0xff] }
 0x586   : > { %8959 = vpow2.f32 %v2742_v37  ;;  %v2750_v9 = vmul.f32 1.442695, %v2625_v52  ;;  %v3181_v47 = vpop.permute.xlu0 %3180  ;;  %v2752_v31 = vmul.f32 1.442695, %v2626_v27  ;;  %v2754_v63 = vmul.f32 1.442695, %v2627_v24 }
 0x587   : > { %8961 = vpow2.f32 %v2744_v41  ;;  %8622 = vmatprep.subr.msk.bf16.mxu0 %vm2137_vm3, %v3181_v47  ;;  %v3308_v37 = vsel %vm2137_vm3, %v3197_v13, 0  ;;  %v14201_v24 = vld [vmem:[#allocation12_spill] sm:$0xff] }
 0x588   : > { %8963 = vpow2.f32 %v2746_v53  ;;  %4338 = vrot.lane.b32.xlu0 %v14196_v8, %s9547_s30  ;;  %v3103_v0 = vpop.permute.xlu1 %3102  ;;  %7726 = vmatpush3.bf16.xpose.msra.mxu0 %v3260_v55  ;;  %v14198_v53 = vld [vmem:[#allocation18_spill] sm:$0xff] }
 0x589   : > { %8965 = vpow2.f32 %v2748_v3  ;;  %4356 = vrot.lane.b32.xlu1 %v14197_v30, %s9547_s30 }
 0x58a   : > { %8967 = vpow2.f32 %v2750_v9  ;;  %v3213_v60 = vpop.permute.xlu0 %3212 }
 0x58b   : > { %8969 = vpow2.f32 %v2752_v31  ;;  %8630 = vmatprep.subr.msk.bf16.mxu1 %vm2137_vm3, %v3213_v60  ;;  %v14202_v60 = vld [vmem:[#allocation17_spill] sm:$0xff] }
 0x58c   : > { %8971 = vpow2.f32 %v2754_v63  ;;  %4370 = vrot.lane.b32.xlu0 %v14198_v53, %s9547_s30  ;;  %v11123_v41 = vpop.permute.xlu1 %3106  ;;  %7758 = vmatpush3.bf16.xpose.msra.mxu1 %v3308_v37 }
 0x58d   : > { %4326 = vrot.lane.b32.xlu1 %v14199_v54, %s9547_s30 }
 0x58e   : > { %v3105_v18 = vpop.permute.xlu0 %3104 }
 0x58f   : > { %v8958_v61 = vpop.eup %8957 }
 0x590   : > { %v8960_v52 = vpop.eup %8959  ;;  %4340 = vrot.lane.b32.xlu0 %v14200_v5, %s9547_s30  ;;  %v11129_v27 = vpop.permute.xlu1 %3110 }
 0x591   : > { %v8962_v13 = vpop.eup %8961  ;;  %4358 = vrot.lane.b32.xlu1 %v14201_v24, %s9547_s30  ;;  %v2826_v3 = vadd.f32 %v8960_v52, %v8958_v61 }
 0x592   : > { %v8964_v9 = vpop.eup %8963  ;;  %v11133_v47 = vpop.permute.xlu0 %3108 }
 0x593   : > { %v8966_v55 = vpop.eup %8965  ;;  %v2827_v31 = vadd.f32 %v8962_v13, %v2826_v3  ;;  %v14204_v3 = vld [vmem:[#allocation47_spill] sm:$0xff] }
 0x594   : > { %v8968_v63 = vpop.eup %8967  ;;  %4372 = vrot.lane.b32.xlu0 %v14202_v60, %s9547_s30  ;;  %v11137_v37 = vpop.permute.xlu1 %3114  ;;  %v2864_v54 = vpack.c.bf16 %v8966_v55, %v8958_v61 }
 0x595   : > { %v8970_v5 = vpop.eup %8969  ;;  %v2865_v53 = vpack.c.bf16 %v8968_v63, %v8960_v52  ;;  %v11139_v30 = vadd.f32 %v8964_v9, %v2827_v31  ;;  %v2831_v8 = vadd.f32 %v8968_v63, %v8966_v55 }
 0x596   : > { %v8972_v20 = vpop.eup %8971  ;;  %v2866_v24 = vpack.c.bf16 %v8970_v5, %v8962_v13  ;;  %v11141_v38 = vpop.permute.xlu0 %3112 }
 0x597   : > { %14203 = vst [vmem:[#allocation100_spill] sm:$0xff] %v11139_v30  ;;  %2956 = vmatprep.mubr.bf16.mxu0 %v2865_v53  ;;  %v2867_v6 = vpack.c.bf16 %v8972_v20, %v8964_v9  ;;  %v2832_v43 = vadd.f32 %v8970_v5, %v2831_v8 }
 0x598   : > { %4342 = vrot.lane.b32.xlu0 %v14204_v3, %s9547_s30  ;;  %2957 = vmatmul.mubr.bf16.gmra.mrb[168].mxu0 %v2864_v54  ;;  %v3993_v60 = vpop.permute.xlu1 %3992 }
 0x599   : > { %3053 = vmatprep.mubr.bf16.mxu1 %v2867_v6  ;;  %7727 = vmatprep.mubr.msk.bf16.mxu0 %vm2137_vm3, %v3103_v0  ;;  %v11146_v61 = vadd.f32 %v8972_v20, %v2832_v43 }
 0x59a   : > { %3054 = vmatmul.mubr.bf16.gmra.mrb[176].mxu1 %v2866_v24  ;;  %7775 = vmatprep.subr.bf16.mxu0 %v3993_v60  ;;  %v11148_v52 = vpop.permute.xlu0 %3116 }
 0x59b   : > { %14205 = vst [vmem:[#allocation102_spill] sm:$0xff] %v11146_v61  ;;  %7759 = vmatprep.mubr.msk.bf16.mxu1 %vm2137_vm3, %v3103_v0 }
 0x59c   : > { %v4025_v13 = vpop.permute.xlu1 %4024 }
 0x59d   : > { %7839 = vmatprep.subr.bf16.mxu1 %v4025_v13 }
 0x59e   : > { %v3977_v53 = vpop.permute.xlu0 %3976 }
 0x5a0   : > { %7728 = vmatmul.mubr.msk.bf16.vlgmr.msra.gmra.mrb[172].mxu0 %vm2137_vm3, %v3103_v0  ;;  %v4009_v8 = vpop.permute.xlu1 %4008 }
 0x5a1   : > { %7729 = vmatprep.mubr.msk.bf16.mxu0 %vm2137_vm3, %v3105_v18  ;;  %7776 = vmatpush3.bf16.msra.mxu0 %v3977_v53 }
 0x5a2   : > { %7760 = vmatmul.mubr.msk.bf16.vlgmr.msra.gmra.mrb[180].mxu1 %vm2137_vm3, %v3103_v0  ;;  %v3995_v6 = vpop.permute.xlu0 %3994 }
 0x5a3   : > { %7761 = vmatprep.mubr.msk.bf16.mxu1 %vm2137_vm3, %v3105_v18  ;;  %7840 = vmatpush3.bf16.msra.mxu1 %v4009_v8 }
 0x5a4   : > { %7777 = vmatprep.subr.bf16.mxu0 %v3995_v6  ;;  %v4027_v43 = vpop.permute.xlu1 %4026 }
 0x5a5   : > { %7841 = vmatprep.subr.bf16.mxu1 %v4027_v43 }
 0x5a6   : > { %v3979_v20 = vpop.permute.xlu0 %3978 }
 0x5a7   : > { %7778 = vmatpush3.bf16.msra.mxu0 %v3979_v20 }
 0x5a8   : > { %7730 = vmatmul.mubr.msk.bf16.gmra.mrb[176].mxu0 %vm2137_vm3, %v3105_v18  ;;  %v4011_v54 = vpop.permute.xlu1 %4010 }
 0x5a9   : > { %7731 = vmatprep.mubr.msk.bf16.mxu0 %vm2137_vm3, %v11123_v41  ;;  %7842 = vmatpush3.bf16.msra.mxu1 %v4011_v54 }
 0x5aa   : > { %7762 = vmatmul.mubr.msk.bf16.gmra.mrb[184].mxu1 %vm2137_vm3, %v3105_v18  ;;  %v3997_v5 = vpop.permute.xlu0 %3996 }
 0x5ab   : > { %7763 = vmatprep.mubr.msk.bf16.mxu1 %vm2137_vm3, %v11123_v41  ;;  %7779 = vmatprep.subr.bf16.mxu0 %v3997_v5 }
 0x5ac   : > { %v4029_v0 = vpop.permute.xlu1 %4028 }
 0x5ad   : > { %7843 = vmatprep.subr.bf16.mxu1 %v4029_v0 }
 0x5ae   : > { %v3981_v24 = vpop.permute.xlu0 %3980 }
 0x5af   : > { %7780 = vmatpush3.bf16.msra.mxu0 %v3981_v24 }
 0x5b0   : > { %7732 = vmatmul.mubr.msk.bf16.gmra.mrb[180].mxu0 %vm2137_vm3, %v11123_v41  ;;  %v4013_v9 = vpop.permute.xlu1 %4012 }
 0x5b1   : > { %7733 = vmatprep.mubr.msk.bf16.mxu0 %vm2137_vm3, %v11133_v47  ;;  %7844 = vmatpush3.bf16.msra.mxu1 %v4013_v9 }
 0x5b2   : > { %7764 = vmatmul.mubr.msk.bf16.gmra.mrb[188].mxu1 %vm2137_vm3, %v11123_v41  ;;  %v3999_v18 = vpop.permute.xlu0 %3998 }
 0x5b3   : > { %7765 = vmatprep.mubr.msk.bf16.mxu1 %vm2137_vm3, %v11133_v47  ;;  %7781 = vmatprep.subr.bf16.mxu0 %v3999_v18 }
 0x5b4   : > { %v4031_v55 = vpop.permute.xlu1 %4030 }
 0x5b5   : > { %7845 = vmatprep.subr.bf16.mxu1 %v4031_v55 }
 0x5b6   : > { %v3983_v31 = vpop.permute.xlu0 %3982 }
 0x5b7   : > { %7782 = vmatpush3.bf16.msra.mxu0 %v3983_v31 }
 0x5b8   : > { %7734 = vmatmul.mubr.msk.bf16.gmra.mrb[184].mxu0 %vm2137_vm3, %v11133_v47  ;;  %v4015_v63 = vpop.permute.xlu1 %4014 }
 0x5b9   : > { %7735 = vmatprep.mubr.msk.bf16.mxu0 %vm2137_vm3, %v11129_v27  ;;  %7846 = vmatpush3.bf16.msra.mxu1 %v4015_v63 }
 0x5ba   : > { %7766 = vmatmul.mubr.msk.bf16.gmra.mrb[192].mxu1 %vm2137_vm3, %v11133_v47  ;;  %v4001_v41 = vpop.permute.xlu0 %4000 }
 0x5bb   : > { %7767 = vmatprep.mubr.msk.bf16.mxu1 %vm2137_vm3, %v11129_v27  ;;  %7783 = vmatprep.subr.bf16.mxu0 %v4001_v41 }
 0x5bc   : > { %v4033_v60 = vpop.permute.xlu1 %4032 }
 0x5bd   : > { %7847 = vmatprep.subr.bf16.mxu1 %v4033_v60 }
 0x5be   : > { %v3985_v13 = vpop.permute.xlu0 %3984 }
 0x5bf   : > { %7784 = vmatpush3.bf16.msra.mxu0 %v3985_v13 }
 0x5c0   : > { %7736 = vmatmul.mubr.msk.bf16.gmra.mrb[188].mxu0 %vm2137_vm3, %v11129_v27  ;;  %v4017_v53 = vpop.permute.xlu1 %4016 }
 0x5c1   : > { %7737 = vmatprep.mubr.msk.bf16.mxu0 %vm2137_vm3, %v11141_v38  ;;  %7848 = vmatpush3.bf16.msra.mxu1 %v4017_v53 }
 0x5c2   : > { %7768 = vmatmul.mubr.msk.bf16.gmra.mrb[196].mxu1 %vm2137_vm3, %v11129_v27  ;;  %v4003_v47 = vpop.permute.xlu0 %4002 }
 0x5c3   : > { %7769 = vmatprep.mubr.msk.bf16.mxu1 %vm2137_vm3, %v11141_v38  ;;  %7785 = vmatprep.subr.bf16.mxu0 %v4003_v47 }
 0x5c4   : > { %v4035_v8 = vpop.permute.xlu1 %4034 }
 0x5c5   : > { %7849 = vmatprep.subr.bf16.mxu1 %v4035_v8 }
 0x5c6   : > { %v3987_v6 = vpop.permute.xlu0 %3986 }
 0x5c7   : > { %7786 = vmatpush3.bf16.msra.mxu0 %v3987_v6 }
 0x5c8   : > { %7738 = vmatmul.mubr.msk.bf16.gmra.mrb[192].mxu0 %vm2137_vm3, %v11141_v38  ;;  %v4019_v43 = vpop.permute.xlu1 %4018 }
 0x5c9   : > { %7739 = vmatprep.mubr.msk.bf16.mxu0 %vm2137_vm3, %v11137_v37  ;;  %7850 = vmatpush3.bf16.msra.mxu1 %v4019_v43 }
 0x5ca   : > { %7770 = vmatmul.mubr.msk.bf16.gmra.mrb[200].mxu1 %vm2137_vm3, %v11141_v38  ;;  %v4005_v27 = vpop.permute.xlu0 %4004 }
 0x5cb   : > { %7771 = vmatprep.mubr.msk.bf16.mxu1 %vm2137_vm3, %v11137_v37  ;;  %7787 = vmatprep.subr.bf16.mxu0 %v4005_v27 }
 0x5cc   : > { %v4037_v20 = vpop.permute.xlu1 %4036 }
 0x5cd   : > { %7851 = vmatprep.subr.bf16.mxu1 %v4037_v20 }
 0x5ce   : > { %v3989_v54 = vpop.permute.xlu0 %3988 }
 0x5cf   : > { %7788 = vmatpush3.bf16.msra.mxu0 %v3989_v54 }
 0x5d0   : > { %7740 = vmatmul.mubr.msk.bf16.gmra.mrb[196].mxu0 %vm2137_vm3, %v11137_v37  ;;  %v4021_v5 = vpop.permute.xlu1 %4020 }
 0x5d1   : > { %7741 = vmatprep.mubr.msk.bf16.mxu0 %vm2137_vm3, %v11148_v52  ;;  %7852 = vmatpush3.bf16.msra.mxu1 %v4021_v5 }
 0x5d2   : > { %7772 = vmatmul.mubr.msk.bf16.gmra.mrb[204].mxu1 %vm2137_vm3, %v11137_v37  ;;  %v4007_v38 = vpop.permute.xlu0 %4006 }
 0x5d3   : > { %7773 = vmatprep.mubr.msk.bf16.mxu1 %vm2137_vm3, %v11148_v52  ;;  %7789 = vmatprep.subr.bf16.mxu0 %v4007_v38 }
 0x5d4   : > { %v4039_v0 = vpop.permute.xlu1 %4038 }
 0x5d5   : > { %7853 = vmatprep.subr.bf16.mxu1 %v4039_v0 }
 0x5d6   : > { %v3991_v24 = vpop.permute.xlu0 %3990 }
 0x5d7   : > { %7790 = vmatpush3.bf16.msra.mxu0 %v3991_v24 }
 0x5d8   : > { %7742 = vmatmul.mubr.msk.bf16.gmra.mrb[200].mxu0 %vm2137_vm3, %v11148_v52  ;;  %v4331_v9 = vpop.permute.xlu1 %4330 }
 0x5d9   : > { %8631 = vmatprep.subr.msk.bf16.mxu0 %vm2137_vm3, %v4331_v9 }
 0x5da   : > { %7774 = vmatmul.mubr.msk.bf16.gmra.mrb[208].mxu1 %vm2137_vm3, %v11148_v52  ;;  %v4023_v18 = vpop.permute.xlu0 %4022 }
 0x5db   : > { %7854 = vmatpush3.bf16.msra.mxu1 %v4023_v18 }
 0x5de   : > { %v11206_v37 = vpop.permute.xlu0 %4314 }
 0x5e2   : > { %v4363_v55 = vpop.permute.xlu0 %4362 }
 0x5e3   : > { %8639 = vmatprep.subr.msk.bf16.mxu1 %vm2137_vm3, %v4363_v55 }
 0x606   : > { %v7599_v31 = vpop.f32.mrb[140].mxu0 }
 0x607   : > { %v7600_v63 = vpop.f32.mrb[141].mxu0 }
 0x608   : > { %v7663_v41 = vpop.f32.mrb[148].mxu1  ;;  %v7601_v60 = vadd.f32 %v7600_v63, %v7599_v31  ;;  %v7602_v13 = vpop.f32.mrb[142].mxu0 }
 0x609   : > { %v7664_v53 = vpop.f32.mrb[149].mxu1  ;;  %v7603_v47 = vpop.f32.mrb[143].mxu0 }
 0x60a   : > { %v7665_v8 = vadd.f32 %v7664_v53, %v7663_v41  ;;  %v7666_v6 = vpop.f32.mrb[150].mxu1  ;;  %v7604_v43 = vadd.f32 %v7603_v47, %v7602_v13 }
 0x60b   : > { %v7667_v27 = vpop.f32.mrb[151].mxu1 }
 0x60c   : > { %v11209_v20 = vadd.f32 %v7665_v8, %v7601_v60  ;;  %v7668_v52 = vadd.f32 %v7667_v27, %v7666_v6 }
 0x60e   : > { %14206 = vst [vmem:[#allocation104_spill] sm:$0xff] %v11209_v20  ;;  %v11211_v54 = vadd.f32 %v7668_v52, %v7604_v43 }
 0x610   : > { %14207 = vst [vmem:[#allocation105_spill] sm:$0xff] %v11211_v54 }
 0x611   : > { %v7605_v5 = vpop.f32.mrb[144].mxu0 }
 0x612   : > { %v7669_v38 = vpop.f32.mrb[152].mxu1  ;;  %v7606_v0 = vpop.f32.mrb[145].mxu0 }
 0x613   : > { %v7607_v24 = vadd.f32 %v7606_v0, %v7605_v5  ;;  %v7670_v9 = vpop.f32.mrb[153].mxu1  ;;  %v7608_v18 = vpop.f32.mrb[146].mxu0 }
 0x614   : > { %v7671_v55 = vadd.f32 %v7670_v9, %v7669_v38  ;;  %v7672_v31 = vpop.f32.mrb[154].mxu1  ;;  %v7609_v63 = vpop.f32.mrb[147].mxu0 }
 0x615   : > { %v7610_v61 = vadd.f32 %v7609_v63, %v7608_v18  ;;  %v7673_v30 = vpop.f32.mrb[155].mxu1 }
 0x616   : > { %v11213_v41 = vadd.f32 %v7671_v55, %v7607_v24  ;;  %v7674_v13 = vadd.f32 %v7673_v30, %v7672_v31 }
 0x618   : > { %14208 = vst [vmem:[#allocation103_spill] sm:$0xff] %v11213_v41  ;;  %v11215_v53 = vadd.f32 %v7674_v13, %v7610_v61 }
 0x619   : > { %v7611_v60 = vpop.f32.mrb[148].mxu0 }
 0x61a   : > { %14209 = vst [vmem:[#allocation106_spill] sm:$0xff] %v11215_v53  ;;  %v7675_v47 = vpop.f32.mrb[156].mxu1  ;;  %v7612_v8 = vpop.f32.mrb[149].mxu0 }
 0x61b   : > { %v7613_v6 = vadd.f32 %v7612_v8, %v7611_v60  ;;  %v7676_v43 = vpop.f32.mrb[157].mxu1  ;;  %v7614_v27 = vpop.f32.mrb[150].mxu0 }
 0x61c   : > { %v7677_v52 = vadd.f32 %v7676_v43, %v7675_v47  ;;  %v7678_v5 = vpop.f32.mrb[158].mxu1  ;;  %v7615_v0 = vpop.f32.mrb[151].mxu0 }
 0x61d   : > { %v7616_v20 = vadd.f32 %v7615_v0, %v7614_v27  ;;  %v7679_v38 = vpop.f32.mrb[159].mxu1 }
 0x61e   : > { %v11217_v9 = vadd.f32 %v7677_v52, %v7613_v6  ;;  %v7680_v18 = vadd.f32 %v7679_v38, %v7678_v5 }
 0x620   : > { %14210 = vst [vmem:[#allocation107_spill] sm:$0xff] %v11217_v9  ;;  %v11219_v63 = vadd.f32 %v7680_v18, %v7616_v20 }
 0x622   : > { %14211 = vst [vmem:[#allocation109_spill] sm:$0xff] %v11219_v63  ;;  %v7617_v24 = vpop.f32.mrb[152].mxu0 }
 0x623   : > { %v7681_v30 = vpop.f32.mrb[160].mxu1  ;;  %v7618_v61 = vpop.f32.mrb[153].mxu0 }
 0x624   : > { %v7619_v55 = vadd.f32 %v7618_v61, %v7617_v24  ;;  %v7682_v31 = vpop.f32.mrb[161].mxu1  ;;  %v7620_v13 = vpop.f32.mrb[154].mxu0 }
 0x625   : > { %v7683_v41 = vadd.f32 %v7682_v31, %v7681_v30  ;;  %v7684_v60 = vpop.f32.mrb[162].mxu1  ;;  %v7621_v8 = vpop.f32.mrb[155].mxu0 }
 0x626   : > { %v7622_v53 = vadd.f32 %v7621_v8, %v7620_v13  ;;  %v7685_v47 = vpop.f32.mrb[163].mxu1 }
 0x627   : > { %v11221_v43 = vadd.f32 %v7683_v41, %v7619_v55  ;;  %v7686_v27 = vadd.f32 %v7685_v47, %v7684_v60 }
 0x629   : > { %14212 = vst [vmem:[#allocation108_spill] sm:$0xff] %v11221_v43  ;;  %v11223_v0 = vadd.f32 %v7686_v27, %v7622_v53 }
 0x62a   : > { %v7623_v6 = vpop.f32.mrb[156].mxu0 }
 0x62b   : > { %14213 = vst [vmem:[#allocation110_spill] sm:$0xff] %v11223_v0  ;;  %v7687_v52 = vpop.f32.mrb[164].mxu1  ;;  %v7624_v20 = vpop.f32.mrb[157].mxu0 }
 0x62c   : > { %v7625_v5 = vadd.f32 %v7624_v20, %v7623_v6  ;;  %v7688_v38 = vpop.f32.mrb[165].mxu1  ;;  %v7626_v18 = vpop.f32.mrb[158].mxu0 }
 0x62d   : > { %v7689_v9 = vadd.f32 %v7688_v38, %v7687_v52  ;;  %v7690_v24 = vpop.f32.mrb[166].mxu1  ;;  %v7627_v61 = vpop.f32.mrb[159].mxu0 }
 0x62e   : > { %v7628_v63 = vadd.f32 %v7627_v61, %v7626_v18  ;;  %v7691_v30 = vpop.f32.mrb[167].mxu1 }
 0x62f   : > { %v11225_v31 = vadd.f32 %v7689_v9, %v7625_v5  ;;  %v7692_v13 = vadd.f32 %v7691_v30, %v7690_v24 }
 0x631   : > { %14214 = vst [vmem:[#allocation111_spill] sm:$0xff] %v11225_v31  ;;  %v11227_v8 = vadd.f32 %v7692_v13, %v7628_v63 }
 0x632   : > { %v7629_v41 = vpop.f32.mrb[160].mxu0 }
 0x633   : > { %14215 = vst [vmem:[#allocation112_spill] sm:$0xff] %v11227_v8  ;;  %v7693_v55 = vpop.f32.mrb[168].mxu1  ;;  %v7630_v53 = vpop.f32.mrb[161].mxu0 }
 0x634   : > { %v7631_v60 = vadd.f32 %v7630_v53, %v7629_v41  ;;  %v7694_v47 = vpop.f32.mrb[169].mxu1  ;;  %v7632_v27 = vpop.f32.mrb[162].mxu0 }
 0x635   : > { %v7695_v43 = vadd.f32 %v7694_v47, %v7693_v55  ;;  %v7696_v6 = vpop.f32.mrb[170].mxu1  ;;  %v7633_v20 = vpop.f32.mrb[163].mxu0 }
 0x636   : > { %v7634_v0 = vadd.f32 %v7633_v20, %v7632_v27  ;;  %v7697_v52 = vpop.f32.mrb[171].mxu1 }
 0x637   : > { %v11229_v38 = vadd.f32 %v7695_v43, %v7631_v60  ;;  %v7698_v18 = vadd.f32 %v7697_v52, %v7696_v6 }
 0x639   : > { %14216 = vst [vmem:[#allocation113_spill] sm:$0xff] %v11229_v38  ;;  %v11231_v61 = vadd.f32 %v7698_v18, %v7634_v0 }
 0x63a   : > { %v7635_v9 = vpop.f32.mrb[164].mxu0 }
 0x63b   : > { %14217 = vst [vmem:[#allocation114_spill] sm:$0xff] %v11231_v61  ;;  %v7699_v5 = vpop.f32.mrb[172].mxu1  ;;  %v7636_v63 = vpop.f32.mrb[165].mxu0 }
 0x63c   : > { %v7637_v24 = vadd.f32 %v7636_v63, %v7635_v9  ;;  %v7700_v30 = vpop.f32.mrb[173].mxu1  ;;  %v7638_v13 = vpop.f32.mrb[166].mxu0 }
 0x63d   : > { %v7701_v8 = vadd.f32 %v7700_v30, %v7699_v5  ;;  %v7702_v41 = vpop.f32.mrb[174].mxu1  ;;  %v7639_v53 = vpop.f32.mrb[167].mxu0 }
 0x63e   : > { %v7640_v31 = vadd.f32 %v7639_v53, %v7638_v13  ;;  %v7703_v55 = vpop.f32.mrb[175].mxu1 }
 0x63f   : > { %v11233_v47 = vadd.f32 %v7701_v8, %v7637_v24  ;;  %v7704_v27 = vadd.f32 %v7703_v55, %v7702_v41 }
 0x641   : > { %14218 = vst [vmem:[#allocation116_spill] sm:$0xff] %v11233_v47  ;;  %v11235_v20 = vadd.f32 %v7704_v27, %v7640_v31 }
 0x643   : > { %14219 = vst [vmem:[#allocation115_spill] sm:$0xff] %v11235_v20 }
 0x66b   : > { %v7641_v43 = vpop.f32.mrb[168].mxu0 }
 0x66c   : > { %v7642_v60 = vpop.f32.mrb[169].mxu0 }
 0x66d   : > { %v7705_v0 = vpop.f32.mrb[176].mxu1  ;;  %v7643_v6 = vadd.f32 %v7642_v60, %v7641_v43  ;;  %v7644_v52 = vpop.f32.mrb[170].mxu0 }
 0x66e   : > { %v7706_v18 = vpop.f32.mrb[177].mxu1  ;;  %v7645_v38 = vpop.f32.mrb[171].mxu0 }
 0x66f   : > { %v7707_v9 = vadd.f32 %v7706_v18, %v7705_v0  ;;  %v7708_v63 = vpop.f32.mrb[178].mxu1  ;;  %v7646_v61 = vadd.f32 %v7645_v38, %v7644_v52 }
 0x670   : > { %v7709_v5 = vpop.f32.mrb[179].mxu1 }
 0x671   : > { %v11237_v30 = vadd.f32 %v7707_v9, %v7643_v6  ;;  %v7710_v13 = vadd.f32 %v7709_v5, %v7708_v63 }
 0x673   : > { %14220 = vst [vmem:[#allocation117_spill] sm:$0xff] %v11237_v30  ;;  %v11239_v53 = vadd.f32 %v7710_v13, %v7646_v61  ;;  %v11241_v8 = vpop.f32.mrb[172].mxu0 }
 0x674   : > { %v11243_v31 = vpop.f32.mrb[173].mxu0 }
 0x675   : > { %14221 = vst [vmem:[#allocation118_spill] sm:$0xff] %v11239_v53  ;;  %v11245_v24 = vpop.f32.mrb[180].mxu1  ;;  %v3560_v41 = vmax.f32 %v11241_v8, %v11243_v31  ;;  %v11249_v55 = vpop.f32.mrb[174].mxu0 }
 0x676   : > { %v11251_v27 = vpop.f32.mrb[181].mxu1  ;;  %v11253_v38 = vpop.f32.mrb[175].mxu0 }
 0x677   : > { %v3561_v43 = vmax.f32 %v3560_v41, %v11245_v24  ;;  %v11256_v60 = vpop.f32.mrb[182].mxu1  ;;  %v3565_v61 = vmax.f32 %v11249_v55, %v11253_v38 }
 0x678   : > { %v11260_v0 = vpop.f32.mrb[183].mxu1 }
 0x679   : > { %v3562_v6 = vmax.f32 %v3561_v43, %v11251_v27  ;;  %v3566_v52 = vmax.f32 %v3565_v61, %v11256_v60 }
 0x67b   : > { %v3567_v18 = vmax.f32 %v3566_v52, %v11260_v0  ;;  %3563 = vmax.xlane.f32.xlu0 %v3562_v6  ;;  %v11265_v9 = vpop.f32.mrb[176].mxu0 }
 0x67c   : > { %v11267_v63 = vpop.f32.mrb[177].mxu0 }
 0x67d   : > { %v11269_v5 = vpop.f32.mrb[184].mxu1  ;;  %v3570_v13 = vmax.f32 %v11265_v9, %v11267_v63  ;;  %3568 = vmax.xlane.f32.xlu1 %v3567_v18  ;;  %v11273_v41 = vpop.f32.mrb[178].mxu0 }
 0x67e   : > { %v11275_v53 = vpop.f32.mrb[185].mxu1  ;;  %v11277_v43 = vpop.f32.mrb[179].mxu0 }
 0x67f   : > { %v3571_v61 = vmax.f32 %v3570_v13, %v11269_v5  ;;  %v11280_v52 = vpop.f32.mrb[186].mxu1  ;;  %v3575_v6 = vmax.f32 %v11273_v41, %v11277_v43 }
 0x680   : > { %v11284_v30 = vpop.f32.mrb[187].mxu1 }
 0x681   : > { %v3572_v20 = vmax.f32 %v3571_v61, %v11275_v53  ;;  %v3576_v47 = vmax.f32 %v3575_v6, %v11280_v52 }
 0x683   : > { %v3577_v18 = vmax.f32 %v3576_v47, %v11284_v30  ;;  %3573 = vmax.xlane.f32.xlu0 %v3572_v20  ;;  %v11289_v54 = vpop.f32.mrb[180].mxu0 }
 0x684   : > { %v11291_v3 = vpop.f32.mrb[181].mxu0 }
 0x685   : > { %v11293_v49 = vpop.f32.mrb[188].mxu1  ;;  %v3580_v13 = vmax.f32 %v11289_v54, %v11291_v3  ;;  %3578 = vmax.xlane.f32.xlu1 %v3577_v18  ;;  %v11297_v7 = vpop.f32.mrb[182].mxu0 }
 0x686   : > { %v11299_v4 = vpop.f32.mrb[189].mxu1  ;;  %v11301_v61 = vpop.f32.mrb[183].mxu0 }
 0x687   : > { %v3581_v6 = vmax.f32 %v3580_v13, %v11293_v49  ;;  %v11304_v47 = vpop.f32.mrb[190].mxu1  ;;  %v3585_v20 = vmax.f32 %v11297_v7, %v11301_v61 }
 0x688   : > { %v11308_v44 = vpop.f32.mrb[191].mxu1 }
 0x689   : > { %v3582_v14 = vmax.f32 %v3581_v6, %v11299_v4  ;;  %v3586_v22 = vmax.f32 %v3585_v20, %v11304_v47 }
 0x68b   : > { %v3587_v18 = vmax.f32 %v3586_v22, %v11308_v44  ;;  %3583 = vmax.xlane.f32.xlu0 %v3582_v14  ;;  %v11313_v17 = vpop.f32.mrb[184].mxu0 }
 0x68c   : > { %v11315_v26 = vpop.f32.mrb[185].mxu0 }
 0x68d   : > { %v11317_v15 = vpop.f32.mrb[192].mxu1  ;;  %v3590_v13 = vmax.f32 %v11313_v17, %v11315_v26  ;;  %3588 = vmax.xlane.f32.xlu1 %v3587_v18  ;;  %v11321_v57 = vpop.f32.mrb[186].mxu0 }
 0x68e   : > { %v11323_v39 = vpop.f32.mrb[193].mxu1  ;;  %v11325_v6 = vpop.f32.mrb[187].mxu0 }
 0x68f   : > { %14222 = vst [vmem:[#allocation119_spill] sm:$0xff] %v11325_v6  ;;  %v3591_v20 = vmax.f32 %v3590_v13, %v11317_v15  ;;  %v11328_v22 = vpop.f32.mrb[194].mxu1  ;;  %v3595_v14 = vmax.f32 %v11321_v57, %v11325_v6 }
 0x690   : > { %14223 = vst [vmem:[#allocation120_spill] sm:$0xff] %v11328_v22  ;;  %v11332_v1 = vpop.f32.mrb[195].mxu1 }
 0x691   : > { %14224 = vst [vmem:[#allocation122_spill] sm:$0xff] %v11332_v1  ;;  %v3592_v12 = vmax.f32 %v3591_v20, %v11323_v39  ;;  %v3596_v21 = vmax.f32 %v3595_v14, %v11328_v22 }
 0x693   : > { %v3597_v18 = vmax.f32 %v3596_v21, %v11332_v1  ;;  %3593 = vmax.xlane.f32.xlu0 %v3592_v12  ;;  %v11337_v23 = vpop.f32.mrb[188].mxu0  ;;  %v14266_v1 = vld [vmem:[#allocation11_spill] sm:$0xff] }
 0x694   : > { %14225 = vst [vmem:[#allocation123_spill] sm:$0xff] %v11337_v23  ;;  %v11339_v48 = vpop.f32.mrb[189].mxu0 }
 0x695   : > { %14226 = vst [vmem:[#allocation85_spill] sm:$0xff] %v11339_v48  ;;  %v11341_v56 = vpop.f32.mrb[196].mxu1  ;;  %v3600_v13 = vmax.f32 %v11337_v23, %v11339_v48  ;;  %3598 = vmax.xlane.f32.xlu1 %v3597_v18  ;;  %v11345_v28 = vpop.f32.mrb[190].mxu0 }
 0x696   : > { %14227 = vst [vmem:[#allocation121_spill] sm:$0xff] %v11341_v56  ;;  %14228 = vst [vmem:[#allocation124_spill] sm:$0xff] %v11345_v28  ;;  %v11347_v25 = vpop.f32.mrb[197].mxu1  ;;  %v11349_v20 = vpop.f32.mrb[191].mxu0 }
 0x697   : > { %14229 = vst [vmem:[#allocation78_spill] sm:$0xff] %v11347_v25  ;;  %14230 = vst [vmem:[#allocation83_spill] sm:$0xff] %v11349_v20  ;;  %v3601_v14 = vmax.f32 %v3600_v13, %v11341_v56  ;;  %v11352_v21 = vpop.f32.mrb[198].mxu1  ;;  %v3605_v12 = vmax.f32 %v11345_v28, %v11349_v20 }
 0x698   : > { %14231 = vst [vmem:[#allocation76_spill] sm:$0xff] %v11352_v21  ;;  %v11356_v40 = vpop.f32.mrb[199].mxu1 }
 0x699   : > { %14232 = vst [vmem:[#allocation87_spill] sm:$0xff] %v11356_v40  ;;  %v3602_v51 = vmax.f32 %v3601_v14, %v11347_v25  ;;  %v3606_v42 = vmax.f32 %v3605_v12, %v11352_v21 }
 0x69b   : > { %v3607_v18 = vmax.f32 %v3606_v42, %v11356_v40  ;;  %3603 = vmax.xlane.f32.xlu1 %v3602_v51  ;;  %v11361_v32 = vpop.f32.mrb[192].mxu0 }
 0x69c   : > { %14233 = vst [vmem:[#allocation80_spill] sm:$0xff] %v11361_v32  ;;  %v11363_v46 = vpop.f32.mrb[193].mxu0 }
 0x69d   : > { %14234 = vst [vmem:[#allocation125_spill] sm:$0xff] %v11363_v46  ;;  %v11365_v48 = vpop.f32.mrb[200].mxu1  ;;  %v3610_v13 = vmax.f32 %v11361_v32, %v11363_v46  ;;  %3608 = vmax.xlane.f32.xlu0 %v3607_v18  ;;  %v11369_v20 = vpop.f32.mrb[194].mxu0 }
 0x69e   : > { %14235 = vst [vmem:[#allocation126_spill] sm:$0xff] %v11365_v48  ;;  %14236 = vst [vmem:[#allocation128_spill] sm:$0xff] %v11369_v20  ;;  %v11371_v28 = vpop.f32.mrb[201].mxu1  ;;  %v11373_v14 = vpop.f32.mrb[195].mxu0 }
 0x69f   : > { %14237 = vst [vmem:[#allocation127_spill] sm:$0xff] %v11371_v28  ;;  %14238 = vst [vmem:[#allocation129_spill] sm:$0xff] %v11373_v14  ;;  %v3611_v12 = vmax.f32 %v3610_v13, %v11365_v48  ;;  %v11376_v42 = vpop.f32.mrb[202].mxu1  ;;  %v3615_v51 = vmax.f32 %v11369_v20, %v11373_v14 }
 0x6a0   : > { %14239 = vst [vmem:[#allocation130_spill] sm:$0xff] %v11376_v42  ;;  %v11380_v40 = vpop.f32.mrb[203].mxu1 }
 0x6a1   : > { %14240 = vst [vmem:[#allocation131_spill] sm:$0xff] %v11380_v40  ;;  %v3612_v21 = vmax.f32 %v3611_v12, %v11371_v28  ;;  %v3616_v46 = vmax.f32 %v3615_v51, %v11376_v42 }
 0x6a3   : > { %v3617_v18 = vmax.f32 %v3616_v46, %v11380_v40  ;;  %3613 = vmax.xlane.f32.xlu1 %v3612_v21  ;;  %v11385_v32 = vpop.f32.mrb[196].mxu0 }
 0x6a4   : > { %14241 = vst [vmem:[#allocation132_spill] sm:$0xff] %v11385_v32  ;;  %v11387_v25 = vpop.f32.mrb[197].mxu0 }
 0x6a5   : > { %14242 = vst [vmem:[#allocation133_spill] sm:$0xff] %v11387_v25  ;;  %v11389_v56 = vpop.f32.mrb[204].mxu1  ;;  %v3620_v13 = vmax.f32 %v11385_v32, %v11387_v25  ;;  %3618 = vmax.xlane.f32.xlu0 %v3617_v18  ;;  %v11393_v14 = vpop.f32.mrb[198].mxu0 }
 0x6a6   : > { %14243 = vst [vmem:[#allocation134_spill] sm:$0xff] %v11389_v56  ;;  %14244 = vst [vmem:[#allocation135_spill] sm:$0xff] %v11393_v14  ;;  %v11395_v20 = vpop.f32.mrb[205].mxu1  ;;  %v11397_v12 = vpop.f32.mrb[199].mxu0 }
 0x6a7   : > { %14245 = vst [vmem:[#allocation136_spill] sm:$0xff] %v11395_v20  ;;  %14246 = vst [vmem:[#allocation137_spill] sm:$0xff] %v11397_v12  ;;  %v3621_v51 = vmax.f32 %v3620_v13, %v11389_v56  ;;  %v11400_v46 = vpop.f32.mrb[206].mxu1  ;;  %v3625_v21 = vmax.f32 %v11393_v14, %v11397_v12  ;;  %v11441_v56 = vpop.permute.xlu0 %4316 }
 0x6a8   : > { %14247 = vst [vmem:[#allocation138_spill] sm:$0xff] %v11400_v46  ;;  %v11404_v40 = vpop.f32.mrb[207].mxu1 }
 0x6a9   : > { %14248 = vst [vmem:[#allocation139_spill] sm:$0xff] %v11404_v40  ;;  %v3622_v42 = vmax.f32 %v3621_v51, %v11395_v20  ;;  %v3626_v25 = vmax.f32 %v3625_v21, %v11400_v46  ;;  %v11435_v20 = vpop.permute.xlu1 %4346 }
 0x6ab   : > { %v3627_v18 = vmax.f32 %v3626_v25, %v11404_v40  ;;  %3623 = vmax.xlane.f32.xlu1 %v3622_v42  ;;  %v11409_v32 = vpop.f32.mrb[200].mxu0 }
 0x6ac   : > { %14249 = vst [vmem:[#allocation140_spill] sm:$0xff] %v11409_v32  ;;  %v11411_v28 = vpop.f32.mrb[201].mxu0 }
 0x6ad   : > { %14250 = vst [vmem:[#allocation141_spill] sm:$0xff] %v11411_v28  ;;  %v11413_v48 = vpop.f32.mrb[208].mxu1  ;;  %v3630_v13 = vmax.f32 %v11409_v32, %v11411_v28  ;;  %3628 = vmax.xlane.f32.xlu0 %v3627_v18  ;;  %v11417_v12 = vpop.f32.mrb[202].mxu0  ;;  %v14257_v32 = vld [vmem:[#allocation32_spill] sm:$0xff] }
 0x6ae   : > { %14251 = vst [vmem:[#allocation142_spill] sm:$0xff] %v11413_v48  ;;  %14252 = vst [vmem:[#allocation143_spill] sm:$0xff] %v11417_v12  ;;  %v11419_v14 = vpop.f32.mrb[209].mxu1  ;;  %v11421_v51 = vpop.f32.mrb[203].mxu0 }
 0x6af   : > { %14253 = vst [vmem:[#allocation144_spill] sm:$0xff] %v11419_v14  ;;  %14254 = vst [vmem:[#allocation145_spill] sm:$0xff] %v11421_v51  ;;  %v3631_v21 = vmax.f32 %v3630_v13, %v11413_v48  ;;  %v11424_v25 = vpop.f32.mrb[210].mxu1  ;;  %v3635_v42 = vmax.f32 %v11417_v12, %v11421_v51  ;;  %v14258_v13 = vld [vmem:[#allocation20_spill] sm:$0xff]  ;;  %v11439_v48 = vpop.permute.xlu1 %4332 }
 0x6b0   : > { %14255 = vst [vmem:[#allocation146_spill] sm:$0xff] %v11424_v25  ;;  %v11428_v40 = vpop.f32.mrb[211].mxu1  ;;  %v11445_v12 = vpop.permute.xlu0 %4364 }
 0x6b1   : > { %14256 = vst [vmem:[#allocation147_spill] sm:$0xff] %v11428_v40  ;;  %v3632_v46 = vmax.f32 %v3631_v21, %v11419_v14  ;;  %v3636_v28 = vmax.f32 %v3635_v42, %v11424_v25 }
 0x6b3   : > { %v3637_v18 = vmax.f32 %v3636_v28, %v11428_v40  ;;  %v11443_v51 = vpop.permute.xlu1 %4348 }
 0x6b4   : > { %v11449_v42 = vpop.permute.xlu0 %4318 }
 0x6b7   : > { %v11447_v21 = vpop.permute.xlu1 %4334 }
 0x6b8   : > { %14259 = vst [vmem:[#allocation148_spill] sm:$0xff] %v11447_v21 }
 0x6bb   : > { %v11451_v28 = vpop.permute.xlu1 %4350 }
 0x6bc   : > { %4328 = vrot.lane.b32.xlu1 %v14257_v32, %s9547_s30  ;;  %v11453_v32 = vpop.permute.xlu0 %4366 }
 0x6bd   : > { %14260 = vst [vmem:[#allocation149_spill] sm:$0xff] %v11453_v32 }
 0x6bf   : > { %v11455_v40 = vpop.permute.xlu1 %4336 }
 0x6c0   : > { %14261 = vst [vmem:[#allocation150_spill] sm:$0xff] %v11455_v40  ;;  %v11457_v25 = vpop.permute.xlu0 %4320 }
 0x6c3   : > { %4374 = vrot.lane.b32.xlu0 %v14258_v13, %s9547_s30  ;;  %v11459_v13 = vpop.permute.xlu1 %4352 }
 0x6c4   : > { %v11461_v14 = vpop.permute.xlu0 %4368 }
 0x6c5   : > { %14262 = vst [vmem:[#allocation151_spill] sm:$0xff] %v11461_v14 }
 0x6c7   : > { %v11463_v23 = vpop.permute.xlu1 %4322 }
 0x6c8   : > { %14263 = vst [vmem:[#allocation152_spill] sm:$0xff] %v11463_v23  ;;  %v11465_v34 = vpop.permute.xlu0 %4338  ;;  %v14272_v23 = vld [vmem:[#allocation82_spill] sm:$0xff] }
 0x6c9   : > { %14264 = vst [vmem:[#allocation153_spill] sm:$0xff] %v11465_v34 }
 0x6cb   : > { %v11467_v21 = vpop.permute.xlu1 %4354 }
 0x6cc   : > { %14265 = vst [vmem:[#allocation154_spill] sm:$0xff] %v11467_v21  ;;  %v11471_v32 = vpop.permute.xlu0 %4370  ;;  %v14274_v21 = vld [vmem:[#allocation19_spill] sm:$0xff] }
 0x6cd   : > { %14267 = vst [vmem:[#allocation155_spill] sm:$0xff] %v11471_v32 }
 0x6cf   : > { %v11473_v40 = vpop.permute.xlu1 %4324 }
 0x6d0   : > { %14268 = vst [vmem:[#allocation156_spill] sm:$0xff] %v11473_v40  ;;  %v11477_v22 = vpop.permute.xlu0 %4340 }
 0x6d1   : > { %14270 = vst [vmem:[#allocation157_spill] sm:$0xff] %v11477_v22 }
 0x6d3   : > { %v11483_v34 = vpop.permute.xlu1 %4356 }
 0x6d4   : > { %14273 = vst [vmem:[#allocation158_spill] sm:$0xff] %v11483_v34  ;;  %v11489_v40 = vpop.permute.xlu0 %4372 }
 0x6d5   : > { %14276 = vst [vmem:[#allocation159_spill] sm:$0xff] %v11489_v40 }
 0x6d7   : > { %v11491_v32 = vpop.permute.xlu1 %4326 }
 0x6d8   : > { %14277 = vst [vmem:[#allocation160_spill] sm:$0xff] %v11491_v32  ;;  %v11497_v22 = vpop.permute.xlu0 %4342 }
 0x6d9   : > { %14280 = vst [vmem:[#allocation161_spill] sm:$0xff] %v11497_v22 }
 0x6db   : > { %v11503_v34 = vpop.permute.xlu1 %4358 }
 0x6dc   : > { %14283 = vst [vmem:[#allocation162_spill] sm:$0xff] %v11503_v34 }
 0x6e0   : > { %3633 = vmax.xlane.f32.xlu1 %v3632_v46  ;;  %v14269_v46 = vld [vmem:[#allocation79_spill] sm:$0xff] }
 0x6e2   : > { %3638 = vmax.xlane.f32.xlu0 %v3637_v18  ;;  %v14271_v18 = vld [vmem:[#allocation45_spill] sm:$0xff] }
 0x6f1   : > { %4360 = vrot.lane.b32.xlu1 %v14266_v1, %s9547_s30  ;;  %v14275_v1 = vld [vmem:[#allocation86_spill] sm:$0xff] }
 0x6f5   : > { %4298 = vrot.lane.b32.xlu1 %v14269_v46, %s9547_s30  ;;  %v14278_v46 = vld [vmem:[#allocation77_spill] sm:$0xff] }
 0x6f8   : > { %4344 = vrot.lane.b32.xlu0 %v14271_v18, %s9547_s30  ;;  %v14279_v18 = vld [vmem:[#allocation88_spill] sm:$0xff] }
 0x6f9   : > { %4302 = vrot.lane.b32.xlu1 %v14272_v23, %s9547_s30  ;;  %v14281_v23 = vld [vmem:[#allocation81_spill] sm:$0xff] }
 0x6fc   : > { %4376 = vrot.lane.b32.xlu0 %v14274_v21, %s9547_s30  ;;  %v14282_v21 = vld [vmem:[#allocation70_spill] sm:$0xff] }
 0x6fd   : > { %4306 = vrot.lane.b32.xlu1 %v14275_v1, %s9547_s30  ;;  %v14284_v1 = vld [vmem:[#allocation84_spill] sm:$0xff] }
 0x700   : > { %4300 = vrot.lane.b32.xlu0 %v14278_v46, %s9547_s30 }
 0x701   : > { %4310 = vrot.lane.b32.xlu1 %v14279_v18, %s9547_s30 }
 0x704   : > { %4304 = vrot.lane.b32.xlu0 %v14281_v23, %s9547_s30 }
 0x705   : > { %5124 = vrot.lane.b32.xlu1 %v14282_v21, %s9547_s30 }
 0x708   : > { %4308 = vrot.lane.b32.xlu0 %v14284_v1, %s9547_s30  ;;  %v3564_v32 = vpop.xlane.xlu0 %3563 }
 0x709   : > { %v3640_v40 = vsub.f32 %v11241_v8, %v3564_v32  ;;  %v3641_v46 = vsub.f32 %v11243_v31, %v3564_v32  ;;  %v3642_v18 = vsub.f32 %v11245_v24, %v3564_v32  ;;  %v3643_v22 = vsub.f32 %v11251_v27, %v3564_v32  ;;  %5156 = vrot.lane.b32.xlu1 %v10162_v58, %s9547_s30 }
 0x70a   : > { %v3569_v23 = vpop.xlane.xlu1 %3568 }
 0x70b   : > { %v3704_v14 = vmul.f32 1.442695, %v3640_v40  ;;  %v3706_v21 = vmul.f32 1.442695, %v3641_v46  ;;  %v3708_v45 = vmul.f32 1.442695, %v3642_v18  ;;  %v3644_v34 = vsub.f32 %v11249_v55, %v3569_v23 }
 0x70c   : > { %v3710_v6 = vmul.f32 1.442695, %v3643_v22  ;;  %v3645_v1 = vsub.f32 %v11253_v38, %v3569_v23  ;;  %v3646_v8 = vsub.f32 %v11256_v60, %v3569_v23  ;;  %v3647_v31 = vsub.f32 %v11260_v0, %v3569_v23  ;;  %4312 = vrot.lane.b32.xlu0 %v10451_v36, %s9547_s30 }
 0x70d   : > { %8973 = vpow2.f32 %v3704_v14  ;;  %v3712_v32 = vmul.f32 1.442695, %v3644_v34  ;;  %5140 = vrot.lane.b32.xlu1 %v10116_v35, %s9547_s30 }
 0x70e   : > { %8975 = vpow2.f32 %v3706_v21  ;;  %v3714_v40 = vmul.f32 1.442695, %v3645_v1  ;;  %v3716_v24 = vmul.f32 1.442695, %v3646_v8  ;;  %v3718_v55 = vmul.f32 1.442695, %v3647_v31 }
 0x70f   : > { %8977 = vpow2.f32 %v3708_v45  ;;  %v11530_v45 = vsel %vm2137_vm3, %v11435_v20, 0  ;;  %v11539_v20 = vsel %vm2137_vm3, %v11206_v37, 0  ;;  %v11551_v37 = vsel %vm2137_vm3, %v11441_v56, 0 }
 0x710   : > { %8979 = vpow2.f32 %v3710_v6  ;;  %5108 = vrot.lane.b32.xlu0 %v10227_v11, %s9547_s30  ;;  %v3574_v27 = vpop.xlane.xlu0 %3573  ;;  %v11559_v8 = vsel %vm2137_vm3, %v11449_v42, 0 }
 0x711   : > { %8981 = vpow2.f32 %v3712_v32  ;;  %v3648_v23 = vsub.f32 %v11265_v9, %v3574_v27  ;;  %v3649_v38 = vsub.f32 %v11267_v63, %v3574_v27  ;;  %v3650_v34 = vsub.f32 %v11269_v5, %v3574_v27  ;;  %5158 = vrot.lane.b32.xlu1 %v10158_v59, %s9547_s30 }
 0x712   : > { %8983 = vpow2.f32 %v3714_v40  ;;  %v3651_v1 = vsub.f32 %v11275_v53, %v3574_v27  ;;  %v3579_v60 = vpop.xlane.xlu1 %3578 }
 0x713   : > { %8985 = vpow2.f32 %v3716_v24  ;;  %v3720_v0 = vmul.f32 1.442695, %v3648_v23  ;;  %v3722_v6 = vmul.f32 1.442695, %v3649_v38  ;;  %v3724_v22 = vmul.f32 1.442695, %v3650_v34 }
 0x714   : > { %8987 = vpow2.f32 %v3718_v55  ;;  %v3726_v9 = vmul.f32 1.442695, %v3651_v1  ;;  %v3652_v63 = vsub.f32 %v11273_v41, %v3579_v60  ;;  %v3653_v5 = vsub.f32 %v11277_v43, %v3579_v60  ;;  %5126 = vrot.lane.b32.xlu0 %v10337_v2, %s9547_s30 }
 0x715   : > { %8989 = vpow2.f32 %v3720_v0  ;;  %v3654_v53 = vsub.f32 %v11280_v52, %v3579_v60  ;;  %v3655_v14 = vsub.f32 %v11284_v30, %v3579_v60  ;;  %5142 = vrot.lane.b32.xlu1 %v10112_v16, %s9547_s30  ;;  %v11547_v41 = vsel %vm2137_vm3, %v11443_v51, 0 }
 0x716   : > { %8991 = vpow2.f32 %v3722_v6  ;;  %v3728_v43 = vmul.f32 1.442695, %v3652_v63  ;;  %v3730_v21 = vmul.f32 1.442695, %v3653_v5  ;;  %v11555_v52 = vsel %vm2137_vm3, %v11451_v28, 0 }
 0x717   : > { %v8974_v46 = vpop.eup %8973  ;;  %8993 = vpow2.f32 %v3724_v22  ;;  %v3732_v30 = vmul.f32 1.442695, %v3654_v53  ;;  %v11563_v51 = vsel %vm2137_vm3, %v11459_v13, 0  ;;  %v3734_v31 = vmul.f32 1.442695, %v3655_v14 }
 0x718   : > { %v8976_v18 = vpop.eup %8975  ;;  %8995 = vpow2.f32 %v3726_v9  ;;  %5110 = vrot.lane.b32.xlu0 %v10222_v10, %s9547_s30  ;;  %v3584_v56 = vpop.xlane.xlu0 %3583  ;;  %v11574_v13 = vsel %vm2137_vm3, %v11457_v25, 0 }
 0x719   : > { %v8978_v32 = vpop.eup %8977  ;;  %8997 = vpow2.f32 %v3728_v43  ;;  %v3656_v28 = vsub.f32 %v11289_v54, %v3584_v56  ;;  %v3657_v40 = vsub.f32 %v11291_v3, %v3584_v56  ;;  %v3658_v24 = vsub.f32 %v11293_v49, %v3584_v56  ;;  %5160 = vrot.lane.b32.xlu1 %v10180_v50, %s9547_s30 }
 0x71a   : > { %v8980_v42 = vpop.eup %8979  ;;  %8999 = vpow2.f32 %v3730_v21  ;;  %v3659_v55 = vsub.f32 %v11299_v4, %v3584_v56  ;;  %v3589_v27 = vpop.xlane.xlu1 %3588  ;;  %v3832_v23 = vadd.f32 %v8976_v18, %v8974_v46 }
 0x71b   : > { %v8982_v38 = vpop.eup %8981  ;;  %9001 = vpow2.f32 %v3732_v30  ;;  %v3736_v54 = vmul.f32 1.442695, %v3656_v28  ;;  %v3738_v34 = vmul.f32 1.442695, %v3657_v40  ;;  %v3740_v3 = vmul.f32 1.442695, %v3658_v24 }
 0x71c   : > { %v8984_v1 = vpop.eup %8983  ;;  %9003 = vpow2.f32 %v3734_v31  ;;  %v3742_v49 = vmul.f32 1.442695, %v3659_v55  ;;  %v3660_v60 = vsub.f32 %v11297_v7, %v3589_v27  ;;  %v3661_v0 = vsub.f32 %v11301_v61, %v3589_v27  ;;  %5128 = vrot.lane.b32.xlu0 %v10350_v19, %s9547_s30 }
 0x71d   : > { %v8986_v25 = vpop.eup %8985  ;;  %9005 = vpow2.f32 %v3736_v54  ;;  %v3662_v4 = vsub.f32 %v11304_v47, %v3589_v27  ;;  %v3663_v6 = vsub.f32 %v11308_v44, %v3589_v27  ;;  %v3913_v22 = vpack.c.bf16 %v8984_v1, %v8976_v18  ;;  %5144 = vrot.lane.b32.xlu1 %v14096_v62, %s9547_s30  ;;  %v14287_v54 = vld [vmem:[#allocation71_spill] sm:$0xff] }
 0x71e   : > { %v11585_v9 = vpop.eup %8987  ;;  %9007 = vpow2.f32 %v3738_v34  ;;  %v3744_v63 = vmul.f32 1.442695, %v3660_v60  ;;  %v3746_v7 = vmul.f32 1.442695, %v3661_v0  ;;  %v3912_v5 = vpack.c.bf16 %v8982_v38, %v8974_v46  ;;  %v14288_v34 = vld [vmem:[#allocation120_spill] sm:$0xff] }
 0x71f   : > { %v11587_v61 = vpop.eup %8989  ;;  %9009 = vpow2.f32 %v3740_v3  ;;  %v3748_v53 = vmul.f32 1.442695, %v3662_v4  ;;  %v3750_v14 = vmul.f32 1.442695, %v3663_v6  ;;  %4104 = vmatprep.mubr.bf16.mxu0 %v3913_v22  ;;  %v3915_v47 = vpack.c.bf16 %v11585_v9, %v8980_v42 }
 0x720   : > { %v11590_v43 = vpop.eup %8991  ;;  %9011 = vpow2.f32 %v3742_v49  ;;  %4105 = vmatmul.mubr.bf16.vlgmr.msra.gmra.mrb[204].mxu0 %v3912_v5  ;;  %v3914_v44 = vpack.c.bf16 %v8986_v25, %v8978_v32  ;;  %5112 = vrot.lane.b32.xlu0 %v14099_v33, %s9547_s30  ;;  %v3594_v21 = vpop.xlane.xlu0 %3593  ;;  %v3837_v30 = vadd.f32 %v8984_v1, %v8982_v38  ;;  %v3833_v18 = vadd.f32 %v8978_v32, %v3832_v23  ;;  %v14289_v1 = vld [vmem:[#allocation122_spill] sm:$0xff] }
 0x721   : > { %v11594_v46 = vpop.eup %8993  ;;  %9013 = vpow2.f32 %v3744_v63  ;;  %4201 = vmatprep.mubr.bf16.mxu1 %v3915_v47  ;;  %7904 = vmatpush3.bf16.xpose.msra.mxu0 %v11539_v20  ;;  %v3664_v31 = vsub.f32 %v11313_v17, %v3594_v21  ;;  %v3665_v56 = vsub.f32 %v11315_v26, %v3594_v21  ;;  %v3666_v28 = vsub.f32 %v11317_v15, %v3594_v21  ;;  %v14291_v47 = vld [vmem:[#allocation53_spill] sm:$0xff] }
 0x722   : > { %v11600_v40 = vpop.eup %8995  ;;  %9015 = vpow2.f32 %v3746_v7  ;;  %4202 = vmatmul.mubr.bf16.vlgmr.msra.gmra.mrb[212].mxu1 %v3914_v44  ;;  %8632 = vmatprep.subr.msk.bf16.mxu0 %vm2137_vm3, %v11439_v48  ;;  %v3667_v32 = vsub.f32 %v11323_v39, %v3594_v21  ;;  %v3599_v24 = vpop.xlane.xlu1 %3598  ;;  %v3838_v55 = vadd.f32 %v8986_v25, %v3837_v30  ;;  %v11605_v27 = vadd.f32 %v8980_v42, %v3833_v18  ;;  %v14286_v42 = vld [vmem:[#allocation119_spill] sm:$0xff] }
 0x723   : > { %v8998_v20 = vpop.eup %8997  ;;  %9017 = vpow2.f32 %v3748_v53  ;;  %7936 = vmatpush3.bf16.xpose.msra.mxu1 %v11530_v45  ;;  %v3752_v26 = vmul.f32 1.442695, %v3664_v31  ;;  %v3754_v17 = vmul.f32 1.442695, %v3665_v56  ;;  %v3756_v15 = vmul.f32 1.442695, %v3666_v28  ;;  %5162 = vrot.lane.b32.xlu1 %v14106_v29, %s9547_s30 }
 0x724   : > { %14285 = vst [vmem:[#allocation163_spill] sm:$0xff] %v11605_v27  ;;  %v9000_v23 = vpop.eup %8999  ;;  %9019 = vpow2.f32 %v3750_v14  ;;  %8640 = vmatprep.subr.msk.bf16.mxu1 %vm2137_vm3, %v11445_v12  ;;  %v3758_v48 = vmul.f32 1.442695, %v3667_v32  ;;  %v3668_v39 = vsub.f32 %v11321_v57, %v3599_v24  ;;  %v3669_v38 = vsub.f32 %v14286_v42, %v3599_v24  ;;  %5130 = vrot.lane.b32.xlu0 %v14287_v54, %s9547_s30  ;;  %v14290_v7 = vld [vmem:[#allocation23_spill] sm:$0xff]  ;;  %v14294_v56 = vld [vmem:[#allocation85_spill] sm:$0xff] }
 0x725   : > { %v9002_v45 = vpop.eup %9001  ;;  %9021 = vpow2.f32 %v3752_v26  ;;  %v3670_v3 = vsub.f32 %v14288_v34, %v3599_v24  ;;  %v3671_v49 = vsub.f32 %v14289_v1, %v3599_v24  ;;  %v3917_v60 = vpack.c.bf16 %v9000_v23, %v11590_v43  ;;  %v14293_v18 = vld [vmem:[#allocation123_spill] sm:$0xff]  ;;  %v14295_v32 = vld [vmem:[#allocation121_spill] sm:$0xff] }
 0x726   : > { %v11619_v0 = vpop.eup %9003  ;;  %9023 = vpow2.f32 %v3754_v17  ;;  %v3760_v12 = vmul.f32 1.442695, %v3668_v39  ;;  %v3762_v25 = vmul.f32 1.442695, %v3669_v38  ;;  %v3916_v57 = vpack.c.bf16 %v8998_v20, %v11587_v61  ;;  %v14296_v17 = vld [vmem:[#allocation148_spill] sm:$0xff]  ;;  %v14298_v38 = vld [vmem:[#allocation42_spill] sm:$0xff] }
 0x727   : > { %v11622_v4 = vpop.eup %9005  ;;  %9025 = vpow2.f32 %v3756_v15  ;;  %v3764_v6 = vmul.f32 1.442695, %v3670_v3  ;;  %v3766_v22 = vmul.f32 1.442695, %v3671_v49  ;;  %4112 = vmatprep.mubr.bf16.mxu0 %v3917_v60  ;;  %v3919_v63 = vpack.c.bf16 %v11619_v0, %v11600_v40  ;;  %5146 = vrot.lane.b32.xlu1 %v14290_v7, %s9547_s30  ;;  %v14299_v3 = vld [vmem:[#allocation149_spill] sm:$0xff]  ;;  %v14301_v60 = vld [vmem:[#allocation83_spill] sm:$0xff] }
 0x728   : > { %v11628_v5 = vpop.eup %9007  ;;  %9027 = vpow2.f32 %v3758_v48  ;;  %4113 = vmatmul.mubr.bf16.gmra.mrb[208].mxu0 %v3916_v57  ;;  %v3918_v53 = vpack.c.bf16 %v9002_v45, %v11594_v46  ;;  %v3604_v14 = vpop.xlane.xlu1 %3603  ;;  %5114 = vrot.lane.b32.xlu0 %v14291_v47, %s9547_s30  ;;  %v11634_v44 = vadd.f32 %v11585_v9, %v3838_v55  ;;  %v3847_v21 = vadd.f32 %v9000_v23, %v8998_v20  ;;  %v14297_v9 = vld [vmem:[#allocation78_spill] sm:$0xff]  ;;  %v14304_v57 = vld [vmem:[#allocation87_spill] sm:$0xff] }
 0x729   : > { %v11636_v30 = vpop.eup %9009  ;;  %9029 = vpow2.f32 %v3760_v12  ;;  %4209 = vmatprep.mubr.bf16.mxu1 %v3919_v63  ;;  %7906 = vmatpush3.bf16.xpose.msra.mxu0 %v11551_v37  ;;  %v3672_v31 = vsub.f32 %v14293_v18, %v3604_v14  ;;  %v3673_v28 = vsub.f32 %v14294_v56, %v3604_v14  ;;  %v3674_v24 = vsub.f32 %v14295_v32, %v3604_v14  ;;  %v14303_v12 = vld [vmem:[#allocation76_spill] sm:$0xff]  ;;  %v14305_v32 = vld [vmem:[#allocation29_spill] sm:$0xff] }
 0x72a   : > { %14292 = vst [vmem:[#allocation119_spill] sm:$0xff] %v11634_v44  ;;  %v11642_v26 = vpop.eup %9011  ;;  %9031 = vpow2.f32 %v3762_v25  ;;  %4210 = vmatmul.mubr.bf16.gmra.mrb[216].mxu1 %v3918_v53  ;;  %8633 = vmatprep.subr.msk.bf16.mxu0 %vm2137_vm3, %v14296_v17  ;;  %v3675_v55 = vsub.f32 %v14297_v9, %v3604_v14  ;;  %v3609_v20 = vpop.xlane.xlu0 %3608  ;;  %v3848_v15 = vadd.f32 %v9002_v45, %v3847_v21  ;;  %v14300_v45 = vld [vmem:[#allocation124_spill] sm:$0xff] }
 0x72b   : > { %v3842_v37 = vadd.f32 %v11590_v43, %v11587_v61  ;;  %v9014_v23 = vpop.eup %9013  ;;  %9033 = vpow2.f32 %v3764_v6  ;;  %7938 = vmatpush3.bf16.xpose.msra.mxu1 %v11547_v41  ;;  %v3768_v48 = vmul.f32 1.442695, %v3672_v31  ;;  %v3770_v39 = vmul.f32 1.442695, %v3673_v28  ;;  %5164 = vrot.lane.b32.xlu1 %v14298_v38, %s9547_s30  ;;  %v14302_v43 = vld [vmem:[#allocation73_spill] sm:$0xff] }
 0x72c   : > { %v3772_v42 = vmul.f32 1.442695, %v3674_v24  ;;  %v9016_v34 = vpop.eup %9015  ;;  %9035 = vpow2.f32 %v3766_v22  ;;  %8641 = vmatprep.subr.msk.bf16.mxu1 %vm2137_vm3, %v14299_v3  ;;  %v3774_v1 = vmul.f32 1.442695, %v3675_v55  ;;  %v3676_v49 = vsub.f32 %v14300_v45, %v3609_v20  ;;  %5132 = vrot.lane.b32.xlu0 %v14302_v43, %s9547_s30  ;;  %v14306_v55 = vld [vmem:[#allocation61_spill] sm:$0xff] }
 0x72d   : > { %v3677_v61 = vsub.f32 %v14301_v60, %v3609_v20  ;;  %v11658_v41 = vpop.eup %9017  ;;  %9037 = vpow2.f32 %v3768_v48  ;;  %v3678_v25 = vsub.f32 %v14303_v12, %v3609_v20  ;;  %v3679_v6 = vsub.f32 %v14304_v57, %v3609_v20 }
 0x72e   : > { %v3921_v22 = vpack.c.bf16 %v9016_v34, %v11628_v5  ;;  %v11663_v63 = vpop.eup %9019  ;;  %9039 = vpow2.f32 %v3770_v39  ;;  %v3776_v53 = vmul.f32 1.442695, %v3676_v49  ;;  %v3920_v21 = vpack.c.bf16 %v9014_v23, %v11622_v4  ;;  %v14310_v49 = vld [vmem:[#allocation126_spill] sm:$0xff] }
 0x72f   : > { %v3778_v14 = vmul.f32 1.442695, %v3677_v61  ;;  %v11666_v18 = vpop.eup %9021  ;;  %9041 = vpow2.f32 %v3772_v42  ;;  %v3780_v31 = vmul.f32 1.442695, %v3678_v25  ;;  %v3782_v56 = vmul.f32 1.442695, %v3679_v6  ;;  %5148 = vrot.lane.b32.xlu1 %v14305_v32, %s9547_s30 }
 0x730   : > { %4120 = vmatprep.mubr.bf16.mxu0 %v3921_v22  ;;  %v3923_v28 = vpack.c.bf16 %v11663_v63, %v11642_v26  ;;  %v11672_v24 = vpop.eup %9023  ;;  %9043 = vpow2.f32 %v3774_v1  ;;  %v3922_v17 = vpack.c.bf16 %v11658_v41, %v11636_v30  ;;  %v3614_v9 = vpop.xlane.xlu1 %3613  ;;  %5116 = vrot.lane.b32.xlu0 %v14306_v55, %s9547_s30  ;;  %v11679_v20 = vadd.f32 %v11619_v0, %v3848_v15  ;;  %v14308_v42 = vld [vmem:[#allocation80_spill] sm:$0xff]  ;;  %v14309_v1 = vld [vmem:[#allocation125_spill] sm:$0xff]  ;;  %v14311_v0 = vld [vmem:[#allocation150_spill] sm:$0xff] }
 0x731   : > { %4121 = vmatmul.mubr.bf16.gmra.mrb[212].mxu0 %v3920_v21  ;;  %v3843_v48 = vadd.f32 %v11594_v46, %v3842_v37  ;;  %v11682_v39 = vpop.eup %9025  ;;  %9045 = vpow2.f32 %v3776_v53  ;;  %v3680_v3 = vsub.f32 %v14308_v42, %v3614_v9  ;;  %v3681_v45 = vsub.f32 %v14309_v1, %v3614_v9  ;;  %v14312_v46 = vld [vmem:[#allocation127_spill] sm:$0xff]  ;;  %v14314_v53 = vld [vmem:[#allocation40_spill] sm:$0xff] }
 0x732   : > { %14307 = vst [vmem:[#allocation71_spill] sm:$0xff] %v11679_v20  ;;  %4217 = vmatprep.mubr.bf16.mxu1 %v3923_v28  ;;  %7908 = vmatpush3.bf16.xpose.msra.mxu0 %v11559_v8  ;;  %v3682_v60 = vsub.f32 %v14310_v49, %v3614_v9  ;;  %v11688_v61 = vpop.eup %9027  ;;  %9047 = vpow2.f32 %v3778_v14  ;;  %v3683_v15 = vsub.f32 %v14312_v46, %v3614_v9  ;;  %v3619_v37 = vpop.xlane.xlu0 %3618  ;;  %v14315_v21 = vld [vmem:[#allocation151_spill] sm:$0xff]  ;;  %v14316_v28 = vld [vmem:[#allocation128_spill] sm:$0xff]  ;;  %v14319_v9 = vld [vmem:[#allocation130_spill] sm:$0xff] }
 0x733   : > { %4218 = vmatmul.mubr.bf16.gmra.mrb[220].mxu1 %v3922_v17  ;;  %8634 = vmatprep.subr.msk.bf16.mxu0 %vm2137_vm3, %v14311_v0  ;;  %v11694_v12 = vadd.f32 %v11600_v40, %v3843_v48  ;;  %v3857_v8 = vadd.f32 %v9016_v34, %v9014_v23  ;;  %v11696_v25 = vpop.eup %9029  ;;  %9049 = vpow2.f32 %v3780_v31  ;;  %v3784_v57 = vmul.f32 1.442695, %v3680_v3  ;;  %v14317_v34 = vld [vmem:[#allocation129_spill] sm:$0xff]  ;;  %v14318_v31 = vld [vmem:[#allocation72_spill] sm:$0xff]  ;;  %v14320_v42 = vld [vmem:[#allocation131_spill] sm:$0xff] }
 0x734   : > { %7940 = vmatpush3.bf16.xpose.msra.mxu1 %v11555_v52  ;;  %v3786_v6 = vmul.f32 1.442695, %v3681_v45  ;;  %v3788_v22 = vmul.f32 1.442695, %v3682_v60  ;;  %5166 = vrot.lane.b32.xlu1 %v14314_v53, %s9547_s30  ;;  %v11701_v14 = vpop.eup %9031  ;;  %9051 = vpow2.f32 %v3782_v56  ;;  %v3790_v40 = vmul.f32 1.442695, %v3683_v15 }
 0x735   : > { %14313 = vst [vmem:[#allocation120_spill] sm:$0xff] %v11694_v12  ;;  %8642 = vmatprep.subr.msk.bf16.mxu1 %vm2137_vm3, %v14315_v21  ;;  %v3684_v23 = vsub.f32 %v14316_v28, %v3619_v37  ;;  %v3685_v17 = vsub.f32 %v14317_v34, %v3619_v37  ;;  %5134 = vrot.lane.b32.xlu0 %v14318_v31, %s9547_s30  ;;  %v11709_v52 = vpop.eup %9033  ;;  %9053 = vpow2.f32 %v3784_v57  ;;  %v14321_v57 = vld [vmem:[#allocation27_spill] sm:$0xff] }
 0x736   : > { %v3686_v48 = vsub.f32 %v14319_v9, %v3619_v37  ;;  %v3687_v3 = vsub.f32 %v14320_v42, %v3619_v37  ;;  %v3925_v56 = vpack.c.bf16 %v11701_v14, %v11672_v24  ;;  %v11715_v1 = vpop.eup %9035  ;;  %9055 = vpow2.f32 %v3786_v6 }
 0x737   : > { %v3792_v45 = vmul.f32 1.442695, %v3684_v23  ;;  %v3794_v49 = vmul.f32 1.442695, %v3685_v17  ;;  %v3924_v60 = vpack.c.bf16 %v11696_v25, %v11666_v18  ;;  %v11719_v0 = vpop.eup %9037  ;;  %9057 = vpow2.f32 %v3788_v22  ;;  %v14322_v23 = vld [vmem:[#allocation59_spill] sm:$0xff] }
 0x738   : > { %v3796_v46 = vmul.f32 1.442695, %v3686_v48  ;;  %v3798_v15 = vmul.f32 1.442695, %v3687_v3  ;;  %4128 = vmatprep.mubr.bf16.mxu0 %v3925_v56  ;;  %v3927_v37 = vpack.c.bf16 %v11715_v1, %v11688_v61  ;;  %5150 = vrot.lane.b32.xlu1 %v14321_v57, %s9547_s30  ;;  %v11725_v21 = vpop.eup %9039  ;;  %9059 = vpow2.f32 %v3790_v40  ;;  %v3624_v28 = vpop.xlane.xlu1 %3623  ;;  %v14323_v40 = vld [vmem:[#allocation132_spill] sm:$0xff]  ;;  %v14324_v48 = vld [vmem:[#allocation133_spill] sm:$0xff] }
 0x739   : > { %4129 = vmatmul.mubr.bf16.gmra.mrb[216].mxu0 %v3924_v60  ;;  %v3926_v6 = vpack.c.bf16 %v11709_v52, %v11682_v39  ;;  %5118 = vrot.lane.b32.xlu0 %v14322_v23, %s9547_s30  ;;  %v3858_v22 = vadd.f32 %v11658_v41, %v3857_v8  ;;  %v3852_v34 = vadd.f32 %v11628_v5, %v11622_v4  ;;  %v11734_v17 = vpop.eup %9041  ;;  %9061 = vpow2.f32 %v3792_v45  ;;  %v14325_v3 = vld [vmem:[#allocation134_spill] sm:$0xff]  ;;  %v14326_v41 = vld [vmem:[#allocation153_spill] sm:$0xff]  ;;  %v14327_v4 = vld [vmem:[#allocation136_spill] sm:$0xff] }
 0x73a   : > { %4225 = vmatprep.mubr.bf16.mxu1 %v3927_v37  ;;  %7910 = vmatpush3.bf16.xpose.msra.mxu0 %v11574_v13  ;;  %v3688_v9 = vsub.f32 %v14323_v40, %v3624_v28  ;;  %v3689_v42 = vsub.f32 %v14324_v48, %v3624_v28  ;;  %v3690_v56 = vsub.f32 %v14325_v3, %v3624_v28  ;;  %v11740_v60 = vpop.eup %9043  ;;  %9063 = vpow2.f32 %v3794_v49  ;;  %v3629_v8 = vpop.xlane.xlu0 %3628  ;;  %v14329_v49 = vld [vmem:[#allocation46_spill] sm:$0xff] }
 0x73b   : > { %4226 = vmatmul.mubr.bf16.gmra.mrb[224].mxu1 %v3926_v6  ;;  %8635 = vmatprep.subr.msk.bf16.mxu0 %vm2137_vm3, %v14326_v41  ;;  %v3691_v5 = vsub.f32 %v14327_v4, %v3624_v28  ;;  %v11746_v45 = vadd.f32 %v11663_v63, %v3858_v22  ;;  %v3853_v13 = vadd.f32 %v11636_v30, %v3852_v34  ;;  %v9046_v37 = vpop.eup %9045  ;;  %9065 = vpow2.f32 %v3796_v46  ;;  %v14330_v41 = vld [vmem:[#allocation155_spill] sm:$0xff]  ;;  %v14332_v4 = vld [vmem:[#allocation137_spill] sm:$0xff]  ;;  %v14334_v34 = vld [vmem:[#allocation152_spill] sm:$0xff] }
 0x73c   : > { %7942 = vmatpush3.bf16.xpose.msra.mxu1 %v11563_v51  ;;  %v3800_v40 = vmul.f32 1.442695, %v3688_v9  ;;  %v3802_v48 = vmul.f32 1.442695, %v3689_v42  ;;  %v3804_v3 = vmul.f32 1.442695, %v3690_v56  ;;  %5168 = vrot.lane.b32.xlu1 %v14329_v49, %s9547_s30  ;;  %v9048_v6 = vpop.eup %9047  ;;  %9067 = vpow2.f32 %v3798_v15 }
 0x73d   : > { %14328 = vst [vmem:[#allocation122_spill] sm:$0xff] %v11746_v45  ;;  %8643 = vmatprep.subr.msk.bf16.mxu1 %vm2137_vm3, %v14330_v41  ;;  %v3806_v28 = vmul.f32 1.442695, %v3691_v5  ;;  %v14331_v63 = vld [vmem:[#allocation135_spill] sm:$0xff]  ;;  %v3693_v30 = vsub.f32 %v14332_v4, %v3629_v8  ;;  %v9050_v51 = vpop.eup %9049  ;;  %v4415_v9 = vsel %vm2137_vm3, %v14334_v34, 0  ;;  %v14335_v42 = vld [vmem:[#allocation138_spill] sm:$0xff] }
 0x73e   : > { %v3692_v22 = vsub.f32 %v14331_v63, %v3629_v8  ;;  %v14333_v46 = vld [vmem:[#allocation75_spill] sm:$0xff]  ;;  %9069 = vpow2.f32 %v3800_v40  ;;  %v3694_v56 = vsub.f32 %v14335_v42, %v3629_v8  ;;  %v9052_v12 = vpop.eup %9051  ;;  %v3929_v63 = vpack.c.bf16 %v9048_v6, %v11725_v21  ;;  %v14337_v34 = vld [vmem:[#allocation33_spill] sm:$0xff] }
 0x73f   : > { %5136 = vrot.lane.b32.xlu0 %v14333_v46, %s9547_s30  ;;  %v14336_v45 = vld [vmem:[#allocation139_spill] sm:$0xff]  ;;  %9071 = vpow2.f32 %v3802_v48  ;;  %v3810_v5 = vmul.f32 1.442695, %v3693_v30  ;;  %v11763_v20 = vpop.eup %9053  ;;  %v3931_v44 = vpack.c.bf16 %v9052_v12, %v11740_v60  ;;  %v14338_v48 = vld [vmem:[#allocation68_spill] sm:$0xff]  ;;  %v3867_v30 = vadd.f32 %v11701_v14, %v11696_v25  ;;  %v14341_v25 = vld [vmem:[#allocation157_spill] sm:$0xff] }
 0x740   : > { %v3695_v15 = vsub.f32 %v14336_v45, %v3629_v8  ;;  %v3808_v41 = vmul.f32 1.442695, %v3692_v22  ;;  %9073 = vpow2.f32 %v3804_v3  ;;  %v3812_v4 = vmul.f32 1.442695, %v3694_v56  ;;  %5152 = vrot.lane.b32.xlu1 %v14337_v34, %s9547_s30  ;;  %v9056_v40 = vpop.eup %9055  ;;  %4136 = vmatprep.mubr.bf16.mxu0 %v3929_v63 }
 0x741   : > { %9075 = vpow2.f32 %v3806_v28  ;;  %v3928_v8 = vpack.c.bf16 %v9046_v37, %v11719_v0  ;;  %v3930_v45 = vpack.c.bf16 %v9050_v51, %v11734_v17  ;;  %v11773_v22 = vadd.f32 %v11642_v26, %v3853_v13  ;;  %v9058_v3 = vpop.eup %9057  ;;  %4233 = vmatprep.mubr.bf16.mxu1 %v3931_v44 }
 0x742   : > { %v3814_v27 = vmul.f32 1.442695, %v3695_v15  ;;  %9077 = vpow2.f32 %v3808_v41  ;;  %7912 = vmatpush3.bf16.xpose.msra.mxu0 %v4415_v9  ;;  %v3862_v28 = vadd.f32 %v11672_v24, %v11666_v18  ;;  %v3877_v42 = vadd.f32 %v9048_v6, %v9046_v37  ;;  %v9060_v56 = vpop.eup %9059  ;;  %v14340_v15 = vld [vmem:[#allocation154_spill] sm:$0xff]  ;;  %v14342_v6 = vld [vmem:[#allocation159_spill] sm:$0xff] }
 0x743   : > { %5120 = vrot.lane.b32.xlu0 %v14338_v48, %s9547_s30  ;;  %14339 = vst [vmem:[#allocation53_spill] sm:$0xff] %v11773_v22  ;;  %v4463_v63 = vsel %vm2137_vm3, %v14340_v15, 0  ;;  %9079 = vpow2.f32 %v3810_v5  ;;  %4137 = vmatmul.mubr.bf16.gmra.mrb[220].mxu0 %v3928_v8  ;;  %v3872_v26 = vadd.f32 %v11725_v21, %v11719_v0  ;;  %v3882_v44 = vadd.f32 %v9056_v40, %v11763_v20  ;;  %v9062_v13 = vpop.eup %9061  ;;  %v14343_v0 = vld [vmem:[#allocation44_spill] sm:$0xff] }
 0x744   : > { %4234 = vmatmul.mubr.bf16.gmra.mrb[228].mxu1 %v3930_v45  ;;  %9081 = vpow2.f32 %v3812_v4  ;;  %8636 = vmatprep.subr.msk.bf16.mxu0 %vm2137_vm3, %v14341_v25  ;;  %v3868_v18 = vadd.f32 %v11709_v52, %v3867_v30  ;;  %v3863_v24 = vadd.f32 %v11682_v39, %v3862_v28  ;;  %v3878_v14 = vadd.f32 %v9050_v51, %v3877_v42  ;;  %v9064_v37 = vpop.eup %9063  ;;  %v14344_v4 = vld [vmem:[#allocation74_spill] sm:$0xff]  ;;  %v14350_v15 = vld [vmem:[#allocation156_spill] sm:$0xff]  ;;  %v4375_v25 = vpop.permute.xlu0 %4374 }
 0x745   : > { %7944 = vmatpush3.bf16.xpose.msra.mxu1 %v4463_v63  ;;  %9083 = vpow2.f32 %v3814_v27  ;;  %5170 = vrot.lane.b32.xlu1 %v14343_v0, %s9547_s30  ;;  %v3932_v21 = vpack.c.bf16 %v9062_v13, %v11763_v20  ;;  %v3873_v9 = vadd.f32 %v11734_v17, %v3872_v26  ;;  %v3883_v41 = vadd.f32 %v9058_v3, %v3882_v44  ;;  %v9066_v5 = vpop.eup %9065  ;;  %v14352_v26 = vld [vmem:[#allocation158_spill] sm:$0xff] }
 0x746   : > { %8644 = vmatprep.subr.msk.bf16.mxu1 %vm2137_vm3, %v14342_v6  ;;  %v3933_v52 = vpack.c.bf16 %v9064_v37, %v9056_v40  ;;  %v11797_v39 = vadd.f32 %v11715_v1, %v3868_v18  ;;  %v11800_v27 = vadd.f32 %v11688_v61, %v3863_v24  ;;  %v11802_v51 = vadd.f32 %v9052_v12, %v3878_v14  ;;  %v9068_v8 = vpop.eup %9067  ;;  %v14351_v61 = vld [vmem:[#allocation36_spill] sm:$0xff]  ;;  %v14354_v18 = vld [vmem:[#allocation161_spill] sm:$0xff] }
 0x747   : > { %5138 = vrot.lane.b32.xlu0 %v14344_v4, %s9547_s30  ;;  %v3934_v45 = vpack.c.bf16 %v9066_v5, %v9058_v3  ;;  %v11805_v20 = vadd.f32 %v11740_v60, %v3873_v9  ;;  %v3887_v17 = vadd.f32 %v9064_v37, %v9062_v13  ;;  %v11807_v30 = vadd.f32 %v9060_v56, %v3883_v41  ;;  %v14355_v37 = vld [vmem:[#allocation65_spill] sm:$0xff] }
 0x748   : > { %14345 = vst [vmem:[#allocation123_spill] sm:$0xff] %v11797_v39  ;;  %14346 = vst [vmem:[#allocation85_spill] sm:$0xff] %v11800_v27  ;;  %v9070_v28 = vpop.eup %9069  ;;  %4144 = vmatprep.mubr.bf16.mxu0 %v3933_v52  ;;  %v3935_v42 = vpack.c.bf16 %v9068_v8, %v9060_v56  ;;  %v4418_v1 = vsel %vm2137_vm3, %v14350_v15, 0  ;;  %v4466_v44 = vsel %vm2137_vm3, %v14352_v26, 0  ;;  %v14358_v15 = vld [vmem:[#allocation31_spill] sm:$0xff]  ;;  %v14365_v26 = vld [vmem:[#allocation14_spill] sm:$0xff] }
 0x749   : > { %14347 = vst [vmem:[#allocation121_spill] sm:$0xff] %v11802_v51  ;;  %14348 = vst [vmem:[#allocation148_spill] sm:$0xff] %v11805_v20  ;;  %v9072_v40 = vpop.eup %9071  ;;  %5462 = vrot.lane.b32.xlu1 %v14351_v61, %s9548_s16  ;;  %v3888_v12 = vadd.f32 %v9066_v5, %v3887_v17  ;;  %v14361_v61 = vld [vmem:[#allocation160_spill] sm:$0xff] }
 0x74a   : > { %14349 = vst [vmem:[#allocation78_spill] sm:$0xff] %v11807_v30  ;;  %v9074_v63 = vpop.eup %9073  ;;  %4241 = vmatprep.mubr.bf16.mxu1 %v3935_v42  ;;  %7914 = vmatpush3.bf16.xpose.msra.mxu0 %v4418_v1  ;;  %v3892_v60 = vadd.f32 %v9072_v40, %v9070_v28  ;;  %v14359_v1 = vld [vmem:[#allocation35_spill] sm:$0xff] }
 0x74b   : > { %v9076_v3 = vpop.eup %9075  ;;  %4145 = vmatmul.mubr.bf16.gmra.mrb[224].mxu0 %v3932_v21  ;;  %v11815_v56 = vadd.f32 %v9068_v8, %v3888_v12  ;;  %8637 = vmatprep.subr.msk.bf16.mxu0 %vm2137_vm3, %v14354_v18  ;;  %v14356_v21 = vld [vmem:[#allocation6_spill] sm:$0xff]  ;;  %v14369_v18 = vld [vmem:[#allocation13_spill] sm:$0xff] }
 0x74c   : > { %4242 = vmatmul.mubr.bf16.gmra.mrb[232].mxu1 %v3934_v45  ;;  %v9078_v13 = vpop.eup %9077  ;;  %v3893_v24 = vadd.f32 %v9074_v63, %v3892_v60  ;;  %5122 = vrot.lane.b32.xlu0 %v14355_v37, %s9547_s30  ;;  %v14362_v12 = vld [vmem:[#allocation162_spill] sm:$0xff] }
 0x74d   : > { %14353 = vst [vmem:[#allocation149_spill] sm:$0xff] %v11815_v56  ;;  %7946 = vmatpush3.bf16.xpose.msra.mxu1 %v4466_v44  ;;  %v9080_v14 = vpop.eup %9079  ;;  %v3936_v6 = vpack.c.bf16 %v9078_v13, %v9070_v28  ;;  %5478 = vrot.lane.b32.xlu1 %v14356_v21, %s9548_s16  ;;  %v4469_v60 = vsel %vm2137_vm3, %v14362_v12, 0  ;;  %v14366_v44 = vld [vmem:[#allocation39_spill] sm:$0xff]  ;;  %v4329_v21 = vpop.permute.xlu1 %4328 }
 0x74e   : > { %8645 = vmatprep.subr.msk.bf16.mxu1 %vm2137_vm3, %v4375_v25  ;;  %v9082_v9 = vpop.eup %9081  ;;  %v3937_v41 = vpack.c.bf16 %v9080_v14, %v9072_v40  ;;  %v3897_v5 = vadd.f32 %v9080_v14, %v9078_v13  ;;  %v11824_v52 = vadd.f32 %v9076_v3, %v3893_v24  ;;  %v4421_v40 = vsel %vm2137_vm3, %v14361_v61, 0  ;;  %v14367_v13 = vld [vmem:[#allocation21_spill] sm:$0xff]  ;;  %v14368_v25 = vld [vmem:[#allocation8_spill] sm:$0xff]  ;;  %v14370_v24 = vld [vmem:[#allocation38_spill] sm:$0xff] }
 0x74f   : > { %v9084_v8 = vpop.eup %9083  ;;  %v3938_v45 = vpack.c.bf16 %v9082_v9, %v9074_v63  ;;  %v14363_v63 = vld [vmem:[#allocation22_spill] sm:$0xff] }
 0x750   : > { %14357 = vst [vmem:[#allocation124_spill] sm:$0xff] %v11824_v52  ;;  %4152 = vmatprep.mubr.bf16.mxu0 %v3937_v41  ;;  %v3939_v17 = vpack.c.bf16 %v9084_v8, %v9076_v3  ;;  %v3898_v42 = vadd.f32 %v9082_v9, %v3897_v5  ;;  %5154 = vrot.lane.b32.xlu0 %v14358_v15, %s9547_s30  ;;  %v14364_v3 = vld [vmem:[#allocation5_spill] sm:$0xff]  ;;  %v14371_v14 = vld [vmem:[#allocation26_spill] sm:$0xff]  ;;  %v14373_v9 = vld [vmem:[#allocation16_spill] sm:$0xff]  ;;  %s9551_s30 = smov 24  }
 0x751   : > { %5464 = vrot.lane.b32.xlu1 %v14359_v1, %s9548_s16  ;;  %v14374_v41 = vld [vmem:[#allocation30_spill] sm:$0xff]  ;;  %v14375_v5 = vld [vmem:[#allocation24_spill] sm:$0xff]  ;;  %v14378_v1 = vld [vmem:[#allocation141_spill] sm:$0xff] }
 0x752   : > { %4249 = vmatprep.mubr.bf16.mxu1 %v3939_v17  ;;  %v11830_v28 = vadd.f32 %v9084_v8, %v3898_v42  ;;  %7916 = vmatpush3.bf16.xpose.msra.mxu0 %v4421_v40  ;;  %v14376_v8 = vld [vmem:[#allocation10_spill] sm:$0xff]  ;;  %v14377_v17 = vld [vmem:[#allocation140_spill] sm:$0xff]  ;;  %v14395_v52 = vld [vmem:[#allocation47_spill] sm:$0xff] }
 0x753   : > { %4153 = vmatmul.mubr.bf16.gmra.mrb[228].mxu0 %v3936_v6  ;;  %v14372_v6 = vld [vmem:[#allocation7_spill] sm:$0xff]  ;;  %v14379_v40 = vld [vmem:[#allocation142_spill] sm:$0xff] }
 0x754   : > { %14360 = vst [vmem:[#allocation83_spill] sm:$0xff] %v11830_v28  ;;  %4250 = vmatmul.mubr.bf16.gmra.mrb[236].mxu1 %v3938_v45  ;;  %5446 = vrot.lane.b32.xlu0 %v14363_v63, %s9548_s16 }
 0x755   : > { %7948 = vmatpush3.bf16.xpose.msra.mxu1 %v4469_v60  ;;  %5480 = vrot.lane.b32.xlu1 %v14364_v3, %s9548_s16  ;;  %v14380_v60 = vld [vmem:[#allocation144_spill] sm:$0xff] }
 0x758   : > { %5494 = vrot.lane.b32.xlu0 %v14365_v26, %s9548_s16  ;;  %v14381_v26 = vld [vmem:[#allocation15_spill] sm:$0xff] }
 0x759   : > { %5466 = vrot.lane.b32.xlu1 %v14366_v44, %s9548_s16 }
 0x75c   : > { %5448 = vrot.lane.b32.xlu0 %v14367_v13, %s9548_s16 }
 0x75d   : > { %5482 = vrot.lane.b32.xlu1 %v14368_v25, %s9548_s16 }
 0x760   : > { %5496 = vrot.lane.b32.xlu0 %v14369_v18, %s9548_s16  ;;  %v14382_v18 = vld [vmem:[#allocation143_spill] sm:$0xff] }
 0x761   : > { %5468 = vrot.lane.b32.xlu1 %v14370_v24, %s9548_s16 }
 0x764   : > { %5450 = vrot.lane.b32.xlu0 %v14371_v14, %s9548_s16  ;;  %v14383_v14 = vld [vmem:[#allocation28_spill] sm:$0xff] }
 0x765   : > { %5484 = vrot.lane.b32.xlu1 %v14372_v6, %s9548_s16 }
 0x768   : > { %5498 = vrot.lane.b32.xlu0 %v14373_v9, %s9548_s16  ;;  %v14384_v9 = vld [vmem:[#allocation145_spill] sm:$0xff] }
 0x769   : > { %5454 = vrot.lane.b32.xlu1 %v14374_v41, %s9548_s16 }
 0x76c   : > { %5452 = vrot.lane.b32.xlu0 %v14375_v5, %s9548_s16  ;;  %v14385_v5 = vld [vmem:[#allocation146_spill] sm:$0xff] }
 0x76d   : > { %5486 = vrot.lane.b32.xlu1 %v14376_v8, %s9548_s16  ;;  %v3634_v45 = vpop.xlane.xlu1 %3633 }
 0x76e   : > { %v3696_v42 = vsub.f32 %v14377_v17, %v3634_v45  ;;  %v3697_v61 = vsub.f32 %v14378_v1, %v3634_v45  ;;  %v3698_v12 = vsub.f32 %v14379_v40, %v3634_v45  ;;  %v3699_v63 = vsub.f32 %v14380_v60, %v3634_v45  ;;  %v14386_v17 = vld [vmem:[#allocation147_spill] sm:$0xff] }
 0x76f   : > { %v3639_v3 = vpop.xlane.xlu0 %3638 }
 0x770   : > { %5500 = vrot.lane.b32.xlu0 %v14381_v26, %s9548_s16  ;;  %v3816_v44 = vmul.f32 1.442695, %v3696_v42  ;;  %v3818_v13 = vmul.f32 1.442695, %v3697_v61  ;;  %v3820_v25 = vmul.f32 1.442695, %v3698_v12  ;;  %v3700_v24 = vsub.f32 %v14382_v18, %v3639_v3 }
 0x771   : > { %5456 = vrot.lane.b32.xlu1 %v14383_v14, %s9548_s16  ;;  %v3822_v6 = vmul.f32 1.442695, %v3699_v63  ;;  %v3701_v41 = vsub.f32 %v14384_v9, %v3639_v3  ;;  %v3702_v8 = vsub.f32 %v14385_v5, %v3639_v3  ;;  %v3703_v1 = vsub.f32 %v14386_v17, %v3639_v3  ;;  %v4361_v45 = vpop.permute.xlu1 %4360  ;;  %v14387_v26 = vld [vmem:[#allocation43_spill] sm:$0xff]  ;;  %v14388_v18 = vld [vmem:[#allocation9_spill] sm:$0xff]  ;;  %v14392_v5 = vld [vmem:[#allocation12_spill] sm:$0xff] }
 0x772   : > { %9085 = vpow2.f32 %v3816_v44  ;;  %v3824_v40 = vmul.f32 1.442695, %v3700_v24  ;;  %v4424_v61 = vsel %vm2137_vm3, %v4329_v21, 0  ;;  %v4472_v21 = vsel %vm2137_vm3, %v4361_v45, 0  ;;  %v14391_v9 = vld [vmem:[#allocation41_spill] sm:$0xff] }
 0x773   : > { %9087 = vpow2.f32 %v3818_v13  ;;  %v3826_v60 = vmul.f32 1.442695, %v3701_v41  ;;  %v4345_v42 = vpop.permute.xlu0 %4344  ;;  %v3828_v12 = vmul.f32 1.442695, %v3702_v8  ;;  %v3830_v63 = vmul.f32 1.442695, %v3703_v1 }
 0x774   : > { %9089 = vpow2.f32 %v3820_v25  ;;  %5470 = vrot.lane.b32.xlu0 %v14387_v26, %s9548_s16  ;;  %8638 = vmatprep.subr.msk.bf16.mxu0 %vm2137_vm3, %v4345_v42  ;;  %v14389_v13 = vld [vmem:[#allocation18_spill] sm:$0xff]  ;;  %v14393_v42 = vld [vmem:[#allocation17_spill] sm:$0xff] }
 0x775   : > { %9091 = vpow2.f32 %v3822_v6  ;;  %5488 = vrot.lane.b32.xlu1 %v14388_v18, %s9548_s16  ;;  %v4299_v3 = vpop.permute.xlu1 %4298  ;;  %7918 = vmatpush3.bf16.xpose.msra.mxu0 %v4424_v61  ;;  %v14390_v25 = vld [vmem:[#allocation34_spill] sm:$0xff] }
 0x776   : > { %9093 = vpow2.f32 %v3824_v40 }
 0x777   : > { %9095 = vpow2.f32 %v3826_v60  ;;  %v4377_v44 = vpop.permute.xlu0 %4376 }
 0x778   : > { %9097 = vpow2.f32 %v3828_v12  ;;  %5502 = vrot.lane.b32.xlu0 %v14389_v13, %s9548_s16  ;;  %8646 = vmatprep.subr.msk.bf16.mxu1 %vm2137_vm3, %v4377_v44 }
 0x779   : > { %9099 = vpow2.f32 %v3830_v63  ;;  %5458 = vrot.lane.b32.xlu1 %v14390_v25, %s9548_s16  ;;  %v11888_v24 = vpop.permute.xlu1 %4302  ;;  %7950 = vmatpush3.bf16.xpose.msra.mxu1 %v4472_v21 }
 0x77b   : > { %v4301_v14 = vpop.permute.xlu0 %4300 }
 0x77c   : > { %v9086_v6 = vpop.eup %9085  ;;  %5472 = vrot.lane.b32.xlu0 %v14391_v9, %s9548_s16 }
 0x77d   : > { %v9088_v41 = vpop.eup %9087  ;;  %5490 = vrot.lane.b32.xlu1 %v14392_v5, %s9548_s16  ;;  %v11894_v8 = vpop.permute.xlu1 %4306 }
 0x77e   : > { %v9090_v17 = vpop.eup %9089  ;;  %v3902_v1 = vadd.f32 %v9088_v41, %v9086_v6 }
 0x77f   : > { %v9092_v45 = vpop.eup %9091  ;;  %v11896_v40 = vpop.permute.xlu0 %4304 }
 0x780   : > { %v9094_v60 = vpop.eup %9093  ;;  %5504 = vrot.lane.b32.xlu0 %v14393_v42, %s9548_s16  ;;  %v3903_v61 = vadd.f32 %v9090_v17, %v3902_v1 }
 0x781   : > { %v9096_v12 = vpop.eup %9095  ;;  %v11900_v26 = vpop.permute.xlu1 %4310  ;;  %v3940_v63 = vpack.c.bf16 %v9094_v60, %v9086_v6 }
 0x782   : > { %v9098_v18 = vpop.eup %9097  ;;  %v3941_v44 = vpack.c.bf16 %v9096_v12, %v9088_v41  ;;  %v3907_v21 = vadd.f32 %v9096_v12, %v9094_v60  ;;  %v11902_v13 = vadd.f32 %v9092_v45, %v3903_v61 }
 0x783   : > { %v9100_v25 = vpop.eup %9099  ;;  %v3942_v9 = vpack.c.bf16 %v9098_v18, %v9090_v17  ;;  %v11904_v5 = vpop.permute.xlu0 %4308 }
 0x784   : > { %14394 = vst [vmem:[#allocation76_spill] sm:$0xff] %v11902_v13  ;;  %5474 = vrot.lane.b32.xlu0 %v14395_v52, %s9548_s16  ;;  %4160 = vmatprep.mubr.bf16.mxu0 %v3941_v44  ;;  %v3943_v28 = vpack.c.bf16 %v9100_v25, %v9092_v45  ;;  %v3908_v42 = vadd.f32 %v9098_v18, %v3907_v21 }
 0x785   : > { %4161 = vmatmul.mubr.bf16.gmra.mrb[232].mxu0 %v3940_v63  ;;  %v5125_v1 = vpop.permute.xlu1 %5124 }
 0x786   : > { %4257 = vmatprep.mubr.bf16.mxu1 %v3943_v28  ;;  %7919 = vmatprep.mubr.msk.bf16.mxu0 %vm2137_vm3, %v4299_v3  ;;  %v11909_v6 = vadd.f32 %v9100_v25, %v3908_v42 }
 0x787   : > { %4258 = vmatmul.mubr.bf16.gmra.mrb[240].mxu1 %v3942_v9  ;;  %7967 = vmatprep.subr.bf16.mxu0 %v5125_v1  ;;  %v11911_v41 = vpop.permute.xlu0 %4312 }
 0x788   : > { %14396 = vst [vmem:[#allocation87_spill] sm:$0xff] %v11909_v6  ;;  %7951 = vmatprep.mubr.msk.bf16.mxu1 %vm2137_vm3, %v4299_v3 }
 0x789   : > { %v5157_v17 = vpop.permute.xlu1 %5156 }
 0x78a   : > { %8031 = vmatprep.subr.bf16.mxu1 %v5157_v17 }
 0x78b   : > { %v5109_v60 = vpop.permute.xlu0 %5108 }
 0x78d   : > { %7920 = vmatmul.mubr.msk.bf16.vlgmr.msra.gmra.mrb[236].mxu0 %vm2137_vm3, %v4299_v3  ;;  %v5141_v52 = vpop.permute.xlu1 %5140 }
 0x78e   : > { %7921 = vmatprep.mubr.msk.bf16.mxu0 %vm2137_vm3, %v4301_v14  ;;  %7968 = vmatpush3.bf16.msra.mxu0 %v5109_v60 }
 0x78f   : > { %7952 = vmatmul.mubr.msk.bf16.vlgmr.msra.gmra.mrb[244].mxu1 %vm2137_vm3, %v4299_v3  ;;  %v5127_v28 = vpop.permute.xlu0 %5126 }
 0x790   : > { %7953 = vmatprep.mubr.msk.bf16.mxu1 %vm2137_vm3, %v4301_v14  ;;  %8032 = vmatpush3.bf16.msra.mxu1 %v5141_v52 }
 0x791   : > { %7969 = vmatprep.subr.bf16.mxu0 %v5127_v28  ;;  %v5159_v45 = vpop.permute.xlu1 %5158 }
 0x792   : > { %8033 = vmatprep.subr.bf16.mxu1 %v5159_v45 }
 0x793   : > { %v5111_v61 = vpop.permute.xlu0 %5110 }
 0x794   : > { %7970 = vmatpush3.bf16.msra.mxu0 %v5111_v61 }
 0x795   : > { %7922 = vmatmul.mubr.msk.bf16.gmra.mrb[240].mxu0 %vm2137_vm3, %v4301_v14  ;;  %v5143_v12 = vpop.permute.xlu1 %5142 }
 0x796   : > { %7923 = vmatprep.mubr.msk.bf16.mxu0 %vm2137_vm3, %v11888_v24  ;;  %8034 = vmatpush3.bf16.msra.mxu1 %v5143_v12 }
 0x797   : > { %7954 = vmatmul.mubr.msk.bf16.gmra.mrb[248].mxu1 %vm2137_vm3, %v4301_v14  ;;  %v5129_v63 = vpop.permute.xlu0 %5128 }
 0x798   : > { %7955 = vmatprep.mubr.msk.bf16.mxu1 %vm2137_vm3, %v11888_v24  ;;  %7971 = vmatprep.subr.bf16.mxu0 %v5129_v63 }
 0x799   : > { %v5161_v3 = vpop.permute.xlu1 %5160 }
 0x79a   : > { %8035 = vmatprep.subr.bf16.mxu1 %v5161_v3 }
 0x79b   : > { %v5113_v18 = vpop.permute.xlu0 %5112 }
 0x79c   : > { %7972 = vmatpush3.bf16.msra.mxu0 %v5113_v18 }
 0x79d   : > { %7924 = vmatmul.mubr.msk.bf16.gmra.mrb[244].mxu0 %vm2137_vm3, %v11888_v24  ;;  %v5145_v44 = vpop.permute.xlu1 %5144 }
 0x79e   : > { %7925 = vmatprep.mubr.msk.bf16.mxu0 %vm2137_vm3, %v11896_v40  ;;  %8036 = vmatpush3.bf16.msra.mxu1 %v5145_v44 }
 0x79f   : > { %7956 = vmatmul.mubr.msk.bf16.gmra.mrb[252].mxu1 %vm2137_vm3, %v11888_v24  ;;  %v5131_v14 = vpop.permute.xlu0 %5130 }
 0x7a0   : > { %7957 = vmatprep.mubr.msk.bf16.mxu1 %vm2137_vm3, %v11896_v40  ;;  %7973 = vmatprep.subr.bf16.mxu0 %v5131_v14 }
 0x7a1   : > { %v5163_v21 = vpop.permute.xlu1 %5162 }
 0x7a2   : > { %8037 = vmatprep.subr.bf16.mxu1 %v5163_v21 }
 0x7a3   : > { %v5115_v25 = vpop.permute.xlu0 %5114 }
 0x7a4   : > { %7974 = vmatpush3.bf16.msra.mxu0 %v5115_v25 }
 0x7a5   : > { %7926 = vmatmul.mubr.msk.bf16.gmra.mrb[248].mxu0 %vm2137_vm3, %v11896_v40  ;;  %v5147_v9 = vpop.permute.xlu1 %5146 }
 0x7a6   : > { %7927 = vmatprep.mubr.msk.bf16.mxu0 %vm2137_vm3, %v11894_v8  ;;  %8038 = vmatpush3.bf16.msra.mxu1 %v5147_v9 }
 0x7a7   : > { %7958 = vmatmul.mubr.msk.bf16.gmra.mrb[0].mxu1 %vm2137_vm3, %v11896_v40  ;;  %v5133_v24 = vpop.permute.xlu0 %5132 }
 0x7a8   : > { %7959 = vmatprep.mubr.msk.bf16.mxu1 %vm2137_vm3, %v11894_v8  ;;  %7975 = vmatprep.subr.bf16.mxu0 %v5133_v24 }
 0x7a9   : > { %v5165_v42 = vpop.permute.xlu1 %5164 }
 0x7aa   : > { %8039 = vmatprep.subr.bf16.mxu1 %v5165_v42 }
 0x7ab   : > { %v5117_v1 = vpop.permute.xlu0 %5116 }
 0x7ac   : > { %7976 = vmatpush3.bf16.msra.mxu0 %v5117_v1 }
 0x7ad   : > { %7928 = vmatmul.mubr.msk.bf16.gmra.mrb[252].mxu0 %vm2137_vm3, %v11894_v8  ;;  %v5149_v17 = vpop.permute.xlu1 %5148 }
 0x7ae   : > { %7929 = vmatprep.mubr.msk.bf16.mxu0 %vm2137_vm3, %v11904_v5  ;;  %8040 = vmatpush3.bf16.msra.mxu1 %v5149_v17 }
 0x7af   : > { %7960 = vmatmul.mubr.msk.bf16.gmra.mrb[4].mxu1 %vm2137_vm3, %v11894_v8  ;;  %v5135_v40 = vpop.permute.xlu0 %5134 }
 0x7b0   : > { %7961 = vmatprep.mubr.msk.bf16.mxu1 %vm2137_vm3, %v11904_v5  ;;  %7977 = vmatprep.subr.bf16.mxu0 %v5135_v40 }
 0x7b1   : > { %v5167_v60 = vpop.permute.xlu1 %5166 }
 0x7b2   : > { %8041 = vmatprep.subr.bf16.mxu1 %v5167_v60 }
 0x7b3   : > { %v5119_v52 = vpop.permute.xlu0 %5118 }
 0x7b4   : > { %7978 = vmatpush3.bf16.msra.mxu0 %v5119_v52 }
 0x7b5   : > { %7930 = vmatmul.mubr.msk.bf16.gmra.mrb[0].mxu0 %vm2137_vm3, %v11904_v5  ;;  %v5151_v28 = vpop.permute.xlu1 %5150 }
 0x7b6   : > { %7931 = vmatprep.mubr.msk.bf16.mxu0 %vm2137_vm3, %v11900_v26  ;;  %8042 = vmatpush3.bf16.msra.mxu1 %v5151_v28 }
 0x7b7   : > { %7962 = vmatmul.mubr.msk.bf16.gmra.mrb[8].mxu1 %vm2137_vm3, %v11904_v5  ;;  %v5137_v8 = vpop.permute.xlu0 %5136 }
 0x7b8   : > { %7963 = vmatprep.mubr.msk.bf16.mxu1 %vm2137_vm3, %v11900_v26  ;;  %7979 = vmatprep.subr.bf16.mxu0 %v5137_v8 }
 0x7b9   : > { %v5169_v45 = vpop.permute.xlu1 %5168 }
 0x7ba   : > { %8043 = vmatprep.subr.bf16.mxu1 %v5169_v45 }
 0x7bb   : > { %v5121_v61 = vpop.permute.xlu0 %5120 }
 0x7bc   : > { %7980 = vmatpush3.bf16.msra.mxu0 %v5121_v61 }
 0x7bd   : > { %7932 = vmatmul.mubr.msk.bf16.gmra.mrb[4].mxu0 %vm2137_vm3, %v11900_v26  ;;  %v5153_v12 = vpop.permute.xlu1 %5152 }
 0x7be   : > { %7933 = vmatprep.mubr.msk.bf16.mxu0 %vm2137_vm3, %v11911_v41  ;;  %8044 = vmatpush3.bf16.msra.mxu1 %v5153_v12 }
 0x7bf   : > { %7964 = vmatmul.mubr.msk.bf16.gmra.mrb[12].mxu1 %vm2137_vm3, %v11900_v26  ;;  %v5139_v5 = vpop.permute.xlu0 %5138 }
 0x7c0   : > { %7965 = vmatprep.mubr.msk.bf16.mxu1 %vm2137_vm3, %v11911_v41  ;;  %7981 = vmatprep.subr.bf16.mxu0 %v5139_v5 }
 0x7c1   : > { %v5171_v63 = vpop.permute.xlu1 %5170 }
 0x7c2   : > { %8045 = vmatprep.subr.bf16.mxu1 %v5171_v63 }
 0x7c3   : > { %v5123_v3 = vpop.permute.xlu0 %5122 }
 0x7c4   : > { %7982 = vmatpush3.bf16.msra.mxu0 %v5123_v3 }
 0x7c5   : > { %7934 = vmatmul.mubr.msk.bf16.gmra.mrb[8].mxu0 %vm2137_vm3, %v11911_v41  ;;  %v5463_v18 = vpop.permute.xlu1 %5462 }
 0x7c6   : > { %8647 = vmatprep.subr.msk.bf16.mxu0 %vm2137_vm3, %v5463_v18 }
 0x7c7   : > { %7966 = vmatmul.mubr.msk.bf16.gmra.mrb[16].mxu1 %vm2137_vm3, %v11911_v41  ;;  %v5155_v44 = vpop.permute.xlu0 %5154 }
 0x7c8   : > { %8046 = vmatpush3.bf16.msra.mxu1 %v5155_v44 }
 0x7cb   : > { %v11969_v26 = vpop.permute.xlu0 %5446 }
 0x7cf   : > { %v5495_v14 = vpop.permute.xlu0 %5494 }
 0x7d0   : > { %8655 = vmatprep.subr.msk.bf16.mxu1 %vm2137_vm3, %v5495_v14 }
 0x7f3   : > { %v7791_v21 = vpop.f32.mrb[204].mxu0 }
 0x7f4   : > { %v7792_v25 = vpop.f32.mrb[205].mxu0 }
 0x7f5   : > { %v7855_v9 = vpop.f32.mrb[212].mxu1  ;;  %v7793_v24 = vadd.f32 %v7792_v25, %v7791_v21  ;;  %v7794_v42 = vpop.f32.mrb[206].mxu0 }
 0x7f6   : > { %v7856_v1 = vpop.f32.mrb[213].mxu1  ;;  %v7795_v17 = vpop.f32.mrb[207].mxu0 }
 0x7f7   : > { %v7857_v40 = vadd.f32 %v7856_v1, %v7855_v9  ;;  %v7858_v60 = vpop.f32.mrb[214].mxu1  ;;  %v7796_v52 = vadd.f32 %v7795_v17, %v7794_v42 }
 0x7f8   : > { %v7859_v28 = vpop.f32.mrb[215].mxu1 }
 0x7f9   : > { %v11972_v8 = vadd.f32 %v7857_v40, %v7793_v24  ;;  %v7860_v41 = vadd.f32 %v7859_v28, %v7858_v60 }
 0x7fb   : > { %14397 = vst [vmem:[#allocation80_spill] sm:$0xff] %v11972_v8  ;;  %v11974_v45 = vadd.f32 %v7860_v41, %v7796_v52  ;;  %v7797_v61 = vpop.f32.mrb[208].mxu0 }
 0x7fc   : > { %v7798_v12 = vpop.f32.mrb[209].mxu0 }
 0x7fd   : > { %14398 = vst [vmem:[#allocation125_spill] sm:$0xff] %v11974_v45  ;;  %v7861_v5 = vpop.f32.mrb[216].mxu1  ;;  %v7799_v63 = vadd.f32 %v7798_v12, %v7797_v61  ;;  %v7800_v3 = vpop.f32.mrb[210].mxu0 }
 0x7fe   : > { %v7862_v18 = vpop.f32.mrb[217].mxu1  ;;  %v7801_v44 = vpop.f32.mrb[211].mxu0 }
 0x7ff   : > { %v7863_v14 = vadd.f32 %v7862_v18, %v7861_v5  ;;  %v7864_v21 = vpop.f32.mrb[218].mxu1  ;;  %v7802_v25 = vadd.f32 %v7801_v44, %v7800_v3 }
 0x800   : > { %v7865_v13 = vpop.f32.mrb[219].mxu1 }
 0x801   : > { %v11976_v9 = vadd.f32 %v7863_v14, %v7799_v63  ;;  %v7866_v42 = vadd.f32 %v7865_v13, %v7864_v21 }
 0x803   : > { %14399 = vst [vmem:[#allocation126_spill] sm:$0xff] %v11976_v9  ;;  %v11978_v1 = vadd.f32 %v7866_v42, %v7802_v25 }
 0x804   : > { %v7803_v24 = vpop.f32.mrb[212].mxu0 }
 0x805   : > { %14400 = vst [vmem:[#allocation150_spill] sm:$0xff] %v11978_v1  ;;  %v7804_v17 = vpop.f32.mrb[213].mxu0 }
 0x806   : > { %v7867_v40 = vpop.f32.mrb[220].mxu1  ;;  %v7805_v60 = vadd.f32 %v7804_v17, %v7803_v24  ;;  %v7806_v52 = vpop.f32.mrb[214].mxu0 }
 0x807   : > { %v7868_v28 = vpop.f32.mrb[221].mxu1  ;;  %v7807_v41 = vpop.f32.mrb[215].mxu0 }
 0x808   : > { %v7869_v61 = vadd.f32 %v7868_v28, %v7867_v40  ;;  %v7870_v12 = vpop.f32.mrb[222].mxu1  ;;  %v7808_v8 = vadd.f32 %v7807_v41, %v7806_v52 }
 0x809   : > { %v7871_v45 = vpop.f32.mrb[223].mxu1 }
 0x80a   : > { %v11980_v5 = vadd.f32 %v7869_v61, %v7805_v60  ;;  %v7872_v3 = vadd.f32 %v7871_v45, %v7870_v12 }
 0x80c   : > { %14401 = vst [vmem:[#allocation127_spill] sm:$0xff] %v11980_v5  ;;  %v11982_v18 = vadd.f32 %v7872_v3, %v7808_v8  ;;  %v7809_v63 = vpop.f32.mrb[216].mxu0 }
 0x80d   : > { %v7810_v13 = vpop.f32.mrb[217].mxu0 }
 0x80e   : > { %14402 = vst [vmem:[#allocation151_spill] sm:$0xff] %v11982_v18  ;;  %v7873_v44 = vpop.f32.mrb[224].mxu1  ;;  %v7811_v14 = vadd.f32 %v7810_v13, %v7809_v63  ;;  %v7812_v21 = vpop.f32.mrb[218].mxu0 }
 0x80f   : > { %v7874_v25 = vpop.f32.mrb[225].mxu1  ;;  %v7813_v42 = vpop.f32.mrb[219].mxu0 }
 0x810   : > { %v7875_v24 = vadd.f32 %v7874_v25, %v7873_v44  ;;  %v7876_v17 = vpop.f32.mrb[226].mxu1  ;;  %v7814_v1 = vadd.f32 %v7813_v42, %v7812_v21 }
 0x811   : > { %v7877_v9 = vpop.f32.mrb[227].mxu1 }
 0x812   : > { %v11984_v40 = vadd.f32 %v7875_v24, %v7811_v14  ;;  %v7878_v52 = vadd.f32 %v7877_v9, %v7876_v17 }
 0x814   : > { %14403 = vst [vmem:[#allocation128_spill] sm:$0xff] %v11984_v40  ;;  %v11986_v28 = vadd.f32 %v7878_v52, %v7814_v1 }
 0x816   : > { %14404 = vst [vmem:[#allocation129_spill] sm:$0xff] %v11986_v28  ;;  %v7815_v60 = vpop.f32.mrb[220].mxu0 }
 0x817   : > { %v7879_v45 = vpop.f32.mrb[228].mxu1  ;;  %v7816_v8 = vpop.f32.mrb[221].mxu0 }
 0x818   : > { %v7880_v41 = vpop.f32.mrb[229].mxu1  ;;  %v7817_v61 = vadd.f32 %v7816_v8, %v7815_v60  ;;  %v7818_v3 = vpop.f32.mrb[222].mxu0 }
 0x819   : > { %v7881_v12 = vadd.f32 %v7880_v41, %v7879_v45  ;;  %v7882_v63 = vpop.f32.mrb[230].mxu1  ;;  %v7819_v13 = vpop.f32.mrb[223].mxu0 }
 0x81a   : > { %v7883_v18 = vpop.f32.mrb[231].mxu1  ;;  %v7820_v44 = vadd.f32 %v7819_v13, %v7818_v3 }
 0x81b   : > { %v11988_v5 = vadd.f32 %v7881_v12, %v7817_v61  ;;  %v7884_v21 = vadd.f32 %v7883_v18, %v7882_v63 }
 0x81d   : > { %14405 = vst [vmem:[#allocation130_spill] sm:$0xff] %v11988_v5  ;;  %v11990_v25 = vadd.f32 %v7884_v21, %v7820_v44 }
 0x81e   : > { %v7821_v14 = vpop.f32.mrb[224].mxu0 }
 0x81f   : > { %14406 = vst [vmem:[#allocation131_spill] sm:$0xff] %v11990_v25  ;;  %v7885_v9 = vpop.f32.mrb[232].mxu1  ;;  %v7822_v1 = vpop.f32.mrb[225].mxu0 }
 0x820   : > { %v7886_v42 = vpop.f32.mrb[233].mxu1  ;;  %v7823_v24 = vadd.f32 %v7822_v1, %v7821_v14  ;;  %v7824_v52 = vpop.f32.mrb[226].mxu0 }
 0x821   : > { %v7887_v17 = vadd.f32 %v7886_v42, %v7885_v9  ;;  %v7888_v28 = vpop.f32.mrb[234].mxu1  ;;  %v7825_v60 = vpop.f32.mrb[227].mxu0 }
 0x822   : > { %v7889_v45 = vpop.f32.mrb[235].mxu1  ;;  %v7826_v41 = vadd.f32 %v7825_v60, %v7824_v52 }
 0x823   : > { %v11992_v8 = vadd.f32 %v7887_v17, %v7823_v24  ;;  %v7890_v40 = vadd.f32 %v7889_v45, %v7888_v28 }
 0x825   : > { %14407 = vst [vmem:[#allocation132_spill] sm:$0xff] %v11992_v8  ;;  %v11994_v61 = vadd.f32 %v7890_v40, %v7826_v41 }
 0x826   : > { %v7827_v12 = vpop.f32.mrb[228].mxu0 }
 0x827   : > { %14408 = vst [vmem:[#allocation133_spill] sm:$0xff] %v11994_v61  ;;  %v7891_v18 = vpop.f32.mrb[236].mxu1  ;;  %v7828_v3 = vpop.f32.mrb[229].mxu0 }
 0x828   : > { %v7892_v63 = vpop.f32.mrb[237].mxu1  ;;  %v7829_v13 = vadd.f32 %v7828_v3, %v7827_v12  ;;  %v7830_v21 = vpop.f32.mrb[230].mxu0 }
 0x829   : > { %v7893_v44 = vadd.f32 %v7892_v63, %v7891_v18  ;;  %v7894_v5 = vpop.f32.mrb[238].mxu1  ;;  %v7831_v14 = vpop.f32.mrb[231].mxu0 }
 0x82a   : > { %v7895_v9 = vpop.f32.mrb[239].mxu1  ;;  %v7832_v42 = vadd.f32 %v7831_v14, %v7830_v21 }
 0x82b   : > { %v11996_v1 = vadd.f32 %v7893_v44, %v7829_v13  ;;  %v7896_v25 = vadd.f32 %v7895_v9, %v7894_v5 }
 0x82d   : > { %14409 = vst [vmem:[#allocation134_spill] sm:$0xff] %v11996_v1  ;;  %v11998_v24 = vadd.f32 %v7896_v25, %v7832_v42 }
 0x82f   : > { %14410 = vst [vmem:[#allocation153_spill] sm:$0xff] %v11998_v24 }
 0x858   : > { %v7833_v17 = vpop.f32.mrb[232].mxu0 }
 0x859   : > { %v7834_v28 = vpop.f32.mrb[233].mxu0 }
 0x85a   : > { %v7897_v40 = vpop.f32.mrb[240].mxu1  ;;  %v7835_v52 = vadd.f32 %v7834_v28, %v7833_v17  ;;  %v7836_v60 = vpop.f32.mrb[234].mxu0 }
 0x85b   : > { %v7898_v45 = vpop.f32.mrb[241].mxu1  ;;  %v7837_v41 = vpop.f32.mrb[235].mxu0 }
 0x85c   : > { %v7899_v8 = vadd.f32 %v7898_v45, %v7897_v40  ;;  %v7900_v12 = vpop.f32.mrb[242].mxu1  ;;  %v7838_v18 = vadd.f32 %v7837_v41, %v7836_v60 }
 0x85d   : > { %v7901_v3 = vpop.f32.mrb[243].mxu1 }
 0x85e   : > { %v12000_v63 = vadd.f32 %v7899_v8, %v7835_v52  ;;  %v7902_v61 = vadd.f32 %v7901_v3, %v7900_v12 }
 0x860   : > { %14411 = vst [vmem:[#allocation136_spill] sm:$0xff] %v12000_v63  ;;  %v12002_v13 = vadd.f32 %v7902_v61, %v7838_v18  ;;  %v12004_v44 = vpop.f32.mrb[236].mxu0 }
 0x861   : > { %v12006_v5 = vpop.f32.mrb[237].mxu0 }
 0x862   : > { %14412 = vst [vmem:[#allocation155_spill] sm:$0xff] %v12002_v13  ;;  %v12008_v25 = vpop.f32.mrb[244].mxu1  ;;  %v4724_v21 = vmax.f32 %v12004_v44, %v12006_v5  ;;  %v12012_v14 = vpop.f32.mrb[238].mxu0 }
 0x863   : > { %v12014_v9 = vpop.f32.mrb[245].mxu1  ;;  %v12016_v42 = vpop.f32.mrb[239].mxu0 }
 0x864   : > { %v4725_v8 = vmax.f32 %v4724_v21, %v12008_v25  ;;  %v12019_v17 = vpop.f32.mrb[246].mxu1  ;;  %v4729_v61 = vmax.f32 %v12012_v14, %v12016_v42 }
 0x865   : > { %v12023_v28 = vpop.f32.mrb[247].mxu1 }
 0x866   : > { %v4726_v40 = vmax.f32 %v4725_v8, %v12014_v9  ;;  %v4730_v52 = vmax.f32 %v4729_v61, %v12019_v17 }
 0x868   : > { %v4731_v60 = vmax.f32 %v4730_v52, %v12023_v28  ;;  %4727 = vmax.xlane.f32.xlu0 %v4726_v40  ;;  %v12028_v45 = vpop.f32.mrb[240].mxu0 }
 0x869   : > { %v12030_v41 = vpop.f32.mrb[241].mxu0 }
 0x86a   : > { %v12032_v12 = vpop.f32.mrb[248].mxu1  ;;  %v4734_v18 = vmax.f32 %v12028_v45, %v12030_v41  ;;  %4732 = vmax.xlane.f32.xlu1 %v4731_v60  ;;  %v12036_v3 = vpop.f32.mrb[242].mxu0 }
 0x86b   : > { %v12038_v21 = vpop.f32.mrb[249].mxu1  ;;  %v12040_v8 = vpop.f32.mrb[243].mxu0 }
 0x86c   : > { %v4735_v61 = vmax.f32 %v4734_v18, %v12032_v12  ;;  %v12043_v52 = vpop.f32.mrb[250].mxu1  ;;  %v4739_v40 = vmax.f32 %v12036_v3, %v12040_v8 }
 0x86d   : > { %v12047_v63 = vpop.f32.mrb[251].mxu1 }
 0x86e   : > { %v4736_v13 = vmax.f32 %v4735_v61, %v12038_v21  ;;  %v4740_v1 = vmax.f32 %v4739_v40, %v12043_v52 }
 0x870   : > { %v4741_v60 = vmax.f32 %v4740_v1, %v12047_v63  ;;  %4737 = vmax.xlane.f32.xlu0 %v4736_v13  ;;  %v12052_v24 = vpop.f32.mrb[244].mxu0 }
 0x871   : > { %v12054_v6 = vpop.f32.mrb[245].mxu0 }
 0x872   : > { %v12056_v30 = vpop.f32.mrb[252].mxu1  ;;  %v4744_v18 = vmax.f32 %v12052_v24, %v12054_v6  ;;  %4742 = vmax.xlane.f32.xlu1 %v4741_v60  ;;  %v12060_v56 = vpop.f32.mrb[246].mxu0 }
 0x873   : > { %v12062_v20 = vpop.f32.mrb[253].mxu1  ;;  %v12064_v61 = vpop.f32.mrb[247].mxu0 }
 0x874   : > { %v4745_v40 = vmax.f32 %v4744_v18, %v12056_v30  ;;  %v12067_v1 = vpop.f32.mrb[254].mxu1  ;;  %v4749_v13 = vmax.f32 %v12060_v56, %v12064_v61 }
 0x875   : > { %v12071_v51 = vpop.f32.mrb[255].mxu1 }
 0x876   : > { %v4746_v27 = vmax.f32 %v4745_v40, %v12062_v20  ;;  %v4750_v39 = vmax.f32 %v4749_v13, %v12067_v1 }
 0x878   : > { %v4751_v60 = vmax.f32 %v4750_v39, %v12071_v51  ;;  %4747 = vmax.xlane.f32.xlu0 %v4746_v27  ;;  %v12076_v22 = vpop.f32.mrb[248].mxu0 }
 0x879   : > { %v12078_v15 = vpop.f32.mrb[249].mxu0 }
 0x87a   : > { %v12080_v0 = vpop.f32.mrb[0].mxu1  ;;  %v4754_v18 = vmax.f32 %v12076_v22, %v12078_v15  ;;  %4752 = vmax.xlane.f32.xlu1 %v4751_v60  ;;  %v12084_v34 = vpop.f32.mrb[250].mxu0 }
 0x87b   : > { %v12086_v37 = vpop.f32.mrb[1].mxu1  ;;  %v12088_v40 = vpop.f32.mrb[251].mxu0 }
 0x87c   : > { %14413 = vst [vmem:[#allocation135_spill] sm:$0xff] %v12088_v40  ;;  %v4755_v13 = vmax.f32 %v4754_v18, %v12080_v0  ;;  %v12091_v39 = vpop.f32.mrb[2].mxu1  ;;  %v4759_v27 = vmax.f32 %v12084_v34, %v12088_v40 }
 0x87d   : > { %14414 = vst [vmem:[#allocation137_spill] sm:$0xff] %v12091_v39  ;;  %v12095_v46 = vpop.f32.mrb[3].mxu1 }
 0x87e   : > { %14415 = vst [vmem:[#allocation152_spill] sm:$0xff] %v12095_v46  ;;  %v4756_v4 = vmax.f32 %v4755_v13, %v12086_v37  ;;  %v4760_v57 = vmax.f32 %v4759_v27, %v12091_v39 }
 0x880   : > { %v4761_v60 = vmax.f32 %v4760_v57, %v12095_v46  ;;  %4757 = vmax.xlane.f32.xlu0 %v4756_v4  ;;  %v12100_v48 = vpop.f32.mrb[252].mxu0  ;;  %v14457_v46 = vld [vmem:[#allocation11_spill] sm:$0xff] }
 0x881   : > { %14416 = vst [vmem:[#allocation138_spill] sm:$0xff] %v12100_v48  ;;  %v12102_v53 = vpop.f32.mrb[253].mxu0 }
 0x882   : > { %14417 = vst [vmem:[#allocation139_spill] sm:$0xff] %v12102_v53  ;;  %v12104_v49 = vpop.f32.mrb[4].mxu1  ;;  %v4764_v18 = vmax.f32 %v12100_v48, %v12102_v53  ;;  %4762 = vmax.xlane.f32.xlu1 %v4761_v60  ;;  %v12108_v32 = vpop.f32.mrb[254].mxu0 }
 0x883   : > { %14418 = vst [vmem:[#allocation154_spill] sm:$0xff] %v12104_v49  ;;  %14419 = vst [vmem:[#allocation157_spill] sm:$0xff] %v12108_v32  ;;  %v12110_v23 = vpop.f32.mrb[5].mxu1  ;;  %v12112_v13 = vpop.f32.mrb[255].mxu0 }
 0x884   : > { %14420 = vst [vmem:[#allocation159_spill] sm:$0xff] %v12110_v23  ;;  %14421 = vst [vmem:[#allocation156_spill] sm:$0xff] %v12112_v13  ;;  %v4765_v27 = vmax.f32 %v4764_v18, %v12104_v49  ;;  %v12115_v57 = vpop.f32.mrb[6].mxu1  ;;  %v4769_v4 = vmax.f32 %v12108_v32, %v12112_v13 }
 0x885   : > { %14422 = vst [vmem:[#allocation36_spill] sm:$0xff] %v12115_v57  ;;  %v12119_v43 = vpop.f32.mrb[7].mxu1 }
 0x886   : > { %14423 = vst [vmem:[#allocation158_spill] sm:$0xff] %v12119_v43  ;;  %v4766_v31 = vmax.f32 %v4765_v27, %v12110_v23  ;;  %v4770_v7 = vmax.f32 %v4769_v4, %v12115_v57 }
 0x888   : > { %v4771_v60 = vmax.f32 %v4770_v7, %v12119_v43  ;;  %4767 = vmax.xlane.f32.xlu1 %v4766_v31  ;;  %v12124_v55 = vpop.f32.mrb[0].mxu0 }
 0x889   : > { %14424 = vst [vmem:[#allocation161_spill] sm:$0xff] %v12124_v55  ;;  %v12126_v53 = vpop.f32.mrb[1].mxu0 }
 0x88a   : > { %14425 = vst [vmem:[#allocation6_spill] sm:$0xff] %v12126_v53  ;;  %v12128_v48 = vpop.f32.mrb[8].mxu1  ;;  %v4774_v18 = vmax.f32 %v12124_v55, %v12126_v53  ;;  %4772 = vmax.xlane.f32.xlu0 %v4771_v60  ;;  %v12132_v13 = vpop.f32.mrb[2].mxu0 }
 0x88b   : > { %14426 = vst [vmem:[#allocation35_spill] sm:$0xff] %v12128_v48  ;;  %14427 = vst [vmem:[#allocation160_spill] sm:$0xff] %v12132_v13  ;;  %v12134_v32 = vpop.f32.mrb[9].mxu1  ;;  %v12136_v27 = vpop.f32.mrb[3].mxu0 }
 0x88c   : > { %14428 = vst [vmem:[#allocation162_spill] sm:$0xff] %v12134_v32  ;;  %14429 = vst [vmem:[#allocation22_spill] sm:$0xff] %v12136_v27  ;;  %v4775_v4 = vmax.f32 %v4774_v18, %v12128_v48  ;;  %v12139_v7 = vpop.f32.mrb[10].mxu1  ;;  %v4779_v31 = vmax.f32 %v12132_v13, %v12136_v27 }
 0x88d   : > { %14430 = vst [vmem:[#allocation5_spill] sm:$0xff] %v12139_v7  ;;  %v12143_v43 = vpop.f32.mrb[11].mxu1 }
 0x88e   : > { %14431 = vst [vmem:[#allocation14_spill] sm:$0xff] %v12143_v43  ;;  %v4776_v57 = vmax.f32 %v4775_v4, %v12134_v32  ;;  %v4780_v53 = vmax.f32 %v4779_v31, %v12139_v7 }
 0x890   : > { %v4781_v60 = vmax.f32 %v4780_v53, %v12143_v43  ;;  %4777 = vmax.xlane.f32.xlu1 %v4776_v57  ;;  %v12148_v55 = vpop.f32.mrb[4].mxu0 }
 0x891   : > { %14432 = vst [vmem:[#allocation39_spill] sm:$0xff] %v12148_v55  ;;  %v12150_v23 = vpop.f32.mrb[5].mxu0 }
 0x892   : > { %14433 = vst [vmem:[#allocation21_spill] sm:$0xff] %v12150_v23  ;;  %v12152_v49 = vpop.f32.mrb[12].mxu1  ;;  %v4784_v18 = vmax.f32 %v12148_v55, %v12150_v23  ;;  %4782 = vmax.xlane.f32.xlu0 %v4781_v60  ;;  %v12156_v27 = vpop.f32.mrb[6].mxu0 }
 0x893   : > { %14434 = vst [vmem:[#allocation8_spill] sm:$0xff] %v12152_v49  ;;  %14435 = vst [vmem:[#allocation13_spill] sm:$0xff] %v12156_v27  ;;  %v12158_v13 = vpop.f32.mrb[13].mxu1  ;;  %v12160_v4 = vpop.f32.mrb[7].mxu0 }
 0x894   : > { %14436 = vst [vmem:[#allocation38_spill] sm:$0xff] %v12158_v13  ;;  %14437 = vst [vmem:[#allocation26_spill] sm:$0xff] %v12160_v4  ;;  %v4785_v31 = vmax.f32 %v4784_v18, %v12152_v49  ;;  %v12163_v53 = vpop.f32.mrb[14].mxu1  ;;  %v4789_v57 = vmax.f32 %v12156_v27, %v12160_v4  ;;  %v12204_v49 = vpop.permute.xlu0 %5448 }
 0x895   : > { %14438 = vst [vmem:[#allocation7_spill] sm:$0xff] %v12163_v53  ;;  %v12167_v43 = vpop.f32.mrb[15].mxu1 }
 0x896   : > { %14439 = vst [vmem:[#allocation16_spill] sm:$0xff] %v12167_v43  ;;  %v4786_v7 = vmax.f32 %v4785_v31, %v12158_v13  ;;  %v4790_v23 = vmax.f32 %v4789_v57, %v12163_v53  ;;  %v12198_v13 = vpop.permute.xlu1 %5478 }
 0x898   : > { %v4791_v60 = vmax.f32 %v4790_v23, %v12167_v43  ;;  %4787 = vmax.xlane.f32.xlu1 %v4786_v7  ;;  %v12172_v55 = vpop.f32.mrb[8].mxu0 }
 0x899   : > { %14440 = vst [vmem:[#allocation30_spill] sm:$0xff] %v12172_v55  ;;  %v12174_v32 = vpop.f32.mrb[9].mxu0 }
 0x89a   : > { %14441 = vst [vmem:[#allocation24_spill] sm:$0xff] %v12174_v32  ;;  %v12176_v48 = vpop.f32.mrb[16].mxu1  ;;  %v4794_v18 = vmax.f32 %v12172_v55, %v12174_v32  ;;  %4792 = vmax.xlane.f32.xlu0 %v4791_v60  ;;  %v12180_v4 = vpop.f32.mrb[10].mxu0  ;;  %v14448_v55 = vld [vmem:[#allocation32_spill] sm:$0xff] }
 0x89b   : > { %14442 = vst [vmem:[#allocation10_spill] sm:$0xff] %v12176_v48  ;;  %14443 = vst [vmem:[#allocation140_spill] sm:$0xff] %v12180_v4  ;;  %v12182_v27 = vpop.f32.mrb[17].mxu1  ;;  %v12184_v31 = vpop.f32.mrb[11].mxu0 }
 0x89c   : > { %14444 = vst [vmem:[#allocation141_spill] sm:$0xff] %v12182_v27  ;;  %14445 = vst [vmem:[#allocation142_spill] sm:$0xff] %v12184_v31  ;;  %v4795_v57 = vmax.f32 %v4794_v18, %v12176_v48  ;;  %v12187_v23 = vpop.f32.mrb[18].mxu1  ;;  %v4799_v7 = vmax.f32 %v12180_v4, %v12184_v31  ;;  %v14449_v18 = vld [vmem:[#allocation20_spill] sm:$0xff]  ;;  %v12202_v48 = vpop.permute.xlu1 %5464 }
 0x89d   : > { %14446 = vst [vmem:[#allocation144_spill] sm:$0xff] %v12187_v23  ;;  %v12191_v43 = vpop.f32.mrb[19].mxu1  ;;  %v12208_v4 = vpop.permute.xlu0 %5496 }
 0x89e   : > { %14447 = vst [vmem:[#allocation15_spill] sm:$0xff] %v12191_v43  ;;  %v4796_v53 = vmax.f32 %v4795_v57, %v12182_v27  ;;  %v4800_v32 = vmax.f32 %v4799_v7, %v12187_v23 }
 0x8a0   : > { %v4801_v60 = vmax.f32 %v4800_v32, %v12191_v43  ;;  %v12206_v31 = vpop.permute.xlu1 %5480 }
 0x8a1   : > { %v12212_v7 = vpop.permute.xlu0 %5450 }
 0x8a4   : > { %v12210_v57 = vpop.permute.xlu1 %5466 }
 0x8a5   : > { %14450 = vst [vmem:[#allocation143_spill] sm:$0xff] %v12210_v57 }
 0x8a8   : > { %v12214_v32 = vpop.permute.xlu1 %5482 }
 0x8a9   : > { %5460 = vrot.lane.b32.xlu1 %v14448_v55, %s9548_s16  ;;  %v12216_v55 = vpop.permute.xlu0 %5498 }
 0x8aa   : > { %14451 = vst [vmem:[#allocation28_spill] sm:$0xff] %v12216_v55 }
 0x8ac   : > { %v12218_v43 = vpop.permute.xlu1 %5468 }
 0x8ad   : > { %14452 = vst [vmem:[#allocation145_spill] sm:$0xff] %v12218_v43  ;;  %v12220_v23 = vpop.permute.xlu0 %5452 }
 0x8b0   : > { %5506 = vrot.lane.b32.xlu0 %v14449_v18, %s9548_s16  ;;  %v12222_v18 = vpop.permute.xlu1 %5484 }
 0x8b1   : > { %v12224_v27 = vpop.permute.xlu0 %5500 }
 0x8b2   : > { %14453 = vst [vmem:[#allocation146_spill] sm:$0xff] %v12224_v27 }
 0x8b4   : > { %v12226_v29 = vpop.permute.xlu1 %5454 }
 0x8b5   : > { %14454 = vst [vmem:[#allocation147_spill] sm:$0xff] %v12226_v29  ;;  %v12228_v38 = vpop.permute.xlu0 %5470  ;;  %v14463_v29 = vld [vmem:[#allocation82_spill] sm:$0xff] }
 0x8b6   : > { %14455 = vst [vmem:[#allocation43_spill] sm:$0xff] %v12228_v38 }
 0x8b8   : > { %v12230_v57 = vpop.permute.xlu1 %5486 }
 0x8b9   : > { %14456 = vst [vmem:[#allocation9_spill] sm:$0xff] %v12230_v57  ;;  %v12234_v55 = vpop.permute.xlu0 %5502  ;;  %v14465_v57 = vld [vmem:[#allocation19_spill] sm:$0xff] }
 0x8ba   : > { %14458 = vst [vmem:[#allocation18_spill] sm:$0xff] %v12234_v55 }
 0x8bc   : > { %v12236_v43 = vpop.permute.xlu1 %5456 }
 0x8bd   : > { %14459 = vst [vmem:[#allocation34_spill] sm:$0xff] %v12236_v43  ;;  %v12240_v39 = vpop.permute.xlu0 %5472 }
 0x8be   : > { %14461 = vst [vmem:[#allocation41_spill] sm:$0xff] %v12240_v39 }
 0x8c0   : > { %v12246_v38 = vpop.permute.xlu1 %5488 }
 0x8c1   : > { %14464 = vst [vmem:[#allocation12_spill] sm:$0xff] %v12246_v38  ;;  %v12252_v43 = vpop.permute.xlu0 %5504 }
 0x8c2   : > { %14467 = vst [vmem:[#allocation17_spill] sm:$0xff] %v12252_v43 }
 0x8c4   : > { %v12254_v55 = vpop.permute.xlu1 %5458 }
 0x8c5   : > { %14468 = vst [vmem:[#allocation47_spill] sm:$0xff] %v12254_v55  ;;  %v12260_v39 = vpop.permute.xlu0 %5474 }
 0x8c6   : > { %14471 = vst [vmem:[#allocation32_spill] sm:$0xff] %v12260_v39 }
 0x8cd   : > { %4797 = vmax.xlane.f32.xlu1 %v4796_v53  ;;  %v14460_v53 = vld [vmem:[#allocation79_spill] sm:$0xff] }
 0x8cf   : > { %4802 = vmax.xlane.f32.xlu0 %v4801_v60  ;;  %v14462_v60 = vld [vmem:[#allocation45_spill] sm:$0xff] }
 0x8de   : > { %5492 = vrot.lane.b32.xlu1 %v14457_v46, %s9548_s16  ;;  %v14466_v46 = vld [vmem:[#allocation86_spill] sm:$0xff] }
 0x8e2   : > { %5430 = vrot.lane.b32.xlu1 %v14460_v53, %s9548_s16  ;;  %v14469_v53 = vld [vmem:[#allocation77_spill] sm:$0xff] }
 0x8e5   : > { %5476 = vrot.lane.b32.xlu0 %v14462_v60, %s9548_s16  ;;  %v14470_v60 = vld [vmem:[#allocation88_spill] sm:$0xff] }
 0x8e6   : > { %5434 = vrot.lane.b32.xlu1 %v14463_v29, %s9548_s16  ;;  %v14472_v29 = vld [vmem:[#allocation81_spill] sm:$0xff] }
 0x8e9   : > { %5508 = vrot.lane.b32.xlu0 %v14465_v57, %s9548_s16  ;;  %v12266_v57 = vpop.permute.xlu1 %5490 }
 0x8ea   : > { %5438 = vrot.lane.b32.xlu1 %v14466_v46, %s9548_s16  ;;  %14473 = vst [vmem:[#allocation20_spill] sm:$0xff] %v12266_v57  ;;  %v14474_v46 = vld [vmem:[#allocation84_spill] sm:$0xff] }
 0x8ed   : > { %5432 = vrot.lane.b32.xlu0 %v14469_v53, %s9548_s16 }
 0x8ee   : > { %5442 = vrot.lane.b32.xlu1 %v14470_v60, %s9548_s16 }
 0x8f1   : > { %5436 = vrot.lane.b32.xlu0 %v14472_v29, %s9548_s16 }
 0x8f2   : > { %6288 = vrot.lane.b32.xlu1 %v10162_v58, %s9548_s16 }
 0x8f5   : > { %5440 = vrot.lane.b32.xlu0 %v14474_v46, %s9548_s16  ;;  %v4728_v55 = vpop.xlane.xlu0 %4727 }
 0x8f6   : > { %v4804_v38 = vsub.f32 %v12004_v44, %v4728_v55  ;;  %v4805_v53 = vsub.f32 %v12006_v5, %v4728_v55  ;;  %v4806_v60 = vsub.f32 %v12008_v25, %v4728_v55  ;;  %v4807_v39 = vsub.f32 %v12014_v9, %v4728_v55  ;;  %6240 = vrot.lane.b32.xlu1 %v10227_v11, %s9548_s16  ;;  %v14475_v9 = vld [vmem:[#allocation70_spill] sm:$0xff] }
 0x8f7   : > { %v4733_v29 = vpop.xlane.xlu1 %4732 }
 0x8f8   : > { %v4868_v43 = vmul.f32 1.442695, %v4804_v38  ;;  %v4870_v58 = vmul.f32 1.442695, %v4805_v53  ;;  %v4872_v27 = vmul.f32 1.442695, %v4806_v60  ;;  %v4808_v57 = vsub.f32 %v12012_v14, %v4733_v29 }
 0x8f9   : > { %v4874_v40 = vmul.f32 1.442695, %v4807_v39  ;;  %v4809_v46 = vsub.f32 %v12016_v42, %v4733_v29  ;;  %v4810_v44 = vsub.f32 %v12019_v17, %v4733_v29  ;;  %v4811_v5 = vsub.f32 %v12023_v28, %v4733_v29  ;;  %5444 = vrot.lane.b32.xlu0 %v10451_v36, %s9548_s16 }
 0x8fa   : > { %9101 = vpow2.f32 %v4868_v43  ;;  %v4876_v25 = vmul.f32 1.442695, %v4808_v57  ;;  %6258 = vrot.lane.b32.xlu1 %v10337_v2, %s9548_s16  ;;  %v12293_v2 = vsel %vm2137_vm3, %v12198_v13, 0 }
 0x8fb   : > { %9103 = vpow2.f32 %v4870_v58  ;;  %v4878_v11 = vmul.f32 1.442695, %v4809_v46  ;;  %v4880_v38 = vmul.f32 1.442695, %v4810_v44  ;;  %v4882_v14 = vmul.f32 1.442695, %v4811_v5 }
 0x8fc   : > { %9105 = vpow2.f32 %v4872_v27  ;;  %v12339_v46 = vsel %vm2137_vm3, %v12220_v23, 0 }
 0x8fd   : > { %9107 = vpow2.f32 %v4874_v40  ;;  %6256 = vrot.lane.b32.xlu0 %v14475_v9, %s9548_s16  ;;  %v4738_v42 = vpop.xlane.xlu0 %4737 }
 0x8fe   : > { %9109 = vpow2.f32 %v4876_v25  ;;  %v4812_v17 = vsub.f32 %v12028_v45, %v4738_v42  ;;  %v4813_v36 = vsub.f32 %v12030_v41, %v4738_v42  ;;  %v4814_v43 = vsub.f32 %v12032_v12, %v4738_v42  ;;  %6242 = vrot.lane.b32.xlu1 %v10222_v10, %s9548_s16 }
 0x8ff   : > { %9111 = vpow2.f32 %v4878_v11  ;;  %v4815_v28 = vsub.f32 %v12038_v21, %v4738_v42  ;;  %v4743_v40 = vpop.xlane.xlu1 %4742  ;;  %v12302_v10 = vsel %vm2137_vm3, %v11969_v26, 0  ;;  %v12314_v26 = vsel %vm2137_vm3, %v12204_v49, 0 }
 0x900   : > { %9113 = vpow2.f32 %v4880_v38  ;;  %v4884_v39 = vmul.f32 1.442695, %v4812_v17  ;;  %v4886_v27 = vmul.f32 1.442695, %v4813_v36  ;;  %v4888_v55 = vmul.f32 1.442695, %v4814_v43 }
 0x901   : > { %9115 = vpow2.f32 %v4882_v14  ;;  %v4890_v45 = vmul.f32 1.442695, %v4815_v28  ;;  %v4816_v41 = vsub.f32 %v12036_v3, %v4743_v40  ;;  %v4817_v12 = vsub.f32 %v12040_v8, %v4743_v40  ;;  %6272 = vrot.lane.b32.xlu0 %v10116_v35, %s9548_s16 }
 0x902   : > { %9117 = vpow2.f32 %v4884_v39  ;;  %v4818_v21 = vsub.f32 %v12043_v52, %v4743_v40  ;;  %v4819_v13 = vsub.f32 %v12047_v63, %v4743_v40  ;;  %6292 = vrot.lane.b32.xlu1 %v10180_v50, %s9548_s16  ;;  %v12310_v3 = vsel %vm2137_vm3, %v12206_v31, 0 }
 0x903   : > { %9119 = vpow2.f32 %v4886_v27  ;;  %v4892_v8 = vmul.f32 1.442695, %v4816_v41  ;;  %v4894_v57 = vmul.f32 1.442695, %v4817_v12  ;;  %v12318_v52 = vsel %vm2137_vm3, %v12214_v32, 0 }
 0x904   : > { %v9102_v35 = vpop.eup %9101  ;;  %9121 = vpow2.f32 %v4888_v55  ;;  %v4896_v63 = vmul.f32 1.442695, %v4818_v21  ;;  %v12322_v50 = vsel %vm2137_vm3, %v12212_v7, 0  ;;  %v12326_v31 = vsel %vm2137_vm3, %v12222_v18, 0 }
 0x905   : > { %v9104_v53 = vpop.eup %9103  ;;  %9123 = vpow2.f32 %v4890_v45  ;;  %v4898_v60 = vmul.f32 1.442695, %v4819_v13  ;;  %6290 = vrot.lane.b32.xlu0 %v10158_v59, %s9548_s16  ;;  %v4748_v49 = vpop.xlane.xlu0 %4747 }
 0x906   : > { %v12330_v29 = vpop.eup %9105  ;;  %9125 = vpow2.f32 %v4892_v8  ;;  %v4820_v32 = vsub.f32 %v12052_v24, %v4748_v49  ;;  %v4821_v58 = vsub.f32 %v12054_v6, %v4748_v49  ;;  %v4822_v7 = vsub.f32 %v12056_v30, %v4748_v49  ;;  %6244 = vrot.lane.b32.xlu1 %v14099_v33, %s9548_s16 }
 0x907   : > { %v9108_v18 = vpop.eup %9107  ;;  %9127 = vpow2.f32 %v4894_v57  ;;  %v4823_v59 = vsub.f32 %v12062_v20, %v4748_v49  ;;  %v4753_v44 = vpop.xlane.xlu1 %4752  ;;  %v4996_v5 = vadd.f32 %v9104_v53, %v9102_v35  ;;  %v14477_v49 = vld [vmem:[#allocation137_spill] sm:$0xff] }
 0x908   : > { %v9110_v25 = vpop.eup %9109  ;;  %9129 = vpow2.f32 %v4896_v63  ;;  %v4900_v24 = vmul.f32 1.442695, %v4820_v32  ;;  %v4902_v11 = vmul.f32 1.442695, %v4821_v58  ;;  %v4904_v6 = vmul.f32 1.442695, %v4822_v7 }
 0x909   : > { %v9112_v38 = vpop.eup %9111  ;;  %v5076_v30 = vpack.c.bf16 %v9110_v25, %v9102_v35  ;;  %9131 = vpow2.f32 %v4898_v60  ;;  %v4906_v14 = vmul.f32 1.442695, %v4823_v59  ;;  %v4824_v33 = vsub.f32 %v12060_v56, %v4753_v44  ;;  %6274 = vrot.lane.b32.xlu0 %v10112_v16, %s9548_s16  ;;  %v14478_v32 = vld [vmem:[#allocation152_spill] sm:$0xff]  ;;  %v14479_v7 = vld [vmem:[#allocation42_spill] sm:$0xff] }
 0x90a   : > { %v9114_v23 = vpop.eup %9113  ;;  %9133 = vpow2.f32 %v4900_v24  ;;  %v4825_v20 = vsub.f32 %v12064_v61, %v4753_v44  ;;  %v4826_v9 = vsub.f32 %v12067_v1, %v4753_v44  ;;  %v4827_v42 = vsub.f32 %v12071_v51, %v4753_v44  ;;  %6262 = vrot.lane.b32.xlu1 %v14287_v54, %s9548_s16 }
 0x90b   : > { %v12350_v17 = vpop.eup %9115  ;;  %v5078_v36 = vpack.c.bf16 %v9114_v23, %v12330_v29  ;;  %9135 = vpow2.f32 %v4902_v11  ;;  %v4908_v56 = vmul.f32 1.442695, %v4824_v33  ;;  %v5077_v43 = vpack.c.bf16 %v9112_v38, %v9104_v53  ;;  %v14481_v33 = vld [vmem:[#allocation138_spill] sm:$0xff] }
 0x90c   : > { %v12353_v28 = vpop.eup %9117  ;;  %9137 = vpow2.f32 %v4904_v6  ;;  %v4910_v16 = vmul.f32 1.442695, %v4825_v20  ;;  %v4912_v40 = vmul.f32 1.442695, %v4826_v9  ;;  %v4914_v61 = vmul.f32 1.442695, %v4827_v42 }
 0x90d   : > { %v12355_v39 = vpop.eup %9119  ;;  %9139 = vpow2.f32 %v4906_v14  ;;  %5236 = vmatprep.mubr.bf16.mxu0 %v5077_v43  ;;  %v5079_v51 = vpack.c.bf16 %v12350_v17, %v9108_v18  ;;  %6260 = vrot.lane.b32.xlu0 %v10350_v19, %s9548_s16  ;;  %v4758_v54 = vpop.xlane.xlu0 %4757  ;;  %v5001_v1 = vadd.f32 %v9112_v38, %v9110_v25  ;;  %v4997_v27 = vadd.f32 %v12330_v29, %v4996_v5  ;;  %v14480_v6 = vld [vmem:[#allocation37_spill] sm:$0xff]  ;;  %v14482_v20 = vld [vmem:[#allocation139_spill] sm:$0xff]  ;;  %v14483_v42 = vld [vmem:[#allocation154_spill] sm:$0xff] }
 0x90e   : > { %v12361_v55 = vpop.eup %9121  ;;  %9141 = vpow2.f32 %v4908_v56  ;;  %5237 = vmatmul.mubr.bf16.vlgmr.msra.gmra.mrb[12].mxu0 %v5076_v30  ;;  %v4828_v45 = vsub.f32 %v12076_v22, %v4758_v54  ;;  %v4829_v41 = vsub.f32 %v12078_v15, %v4758_v54  ;;  %v4830_v12 = vsub.f32 %v12080_v0, %v4758_v54  ;;  %6246 = vrot.lane.b32.xlu1 %v14291_v47, %s9548_s16  ;;  %v14484_v56 = vld [vmem:[#allocation61_spill] sm:$0xff] }
 0x90f   : > { %v12368_v21 = vpop.eup %9123  ;;  %9143 = vpow2.f32 %v4910_v16  ;;  %5333 = vmatprep.mubr.bf16.mxu1 %v5079_v51  ;;  %8096 = vmatpush3.bf16.xpose.msra.mxu0 %v12302_v10  ;;  %v4831_v19 = vsub.f32 %v12086_v37, %v4758_v54  ;;  %v4763_v13 = vpop.xlane.xlu1 %4762  ;;  %v5002_v8 = vadd.f32 %v9114_v23, %v5001_v1  ;;  %v12372_v57 = vadd.f32 %v9108_v18, %v4997_v27  ;;  %v14486_v1 = vld [vmem:[#allocation143_spill] sm:$0xff] }
 0x910   : > { %v9126_v22 = vpop.eup %9125  ;;  %9145 = vpow2.f32 %v4912_v40  ;;  %5334 = vmatmul.mubr.bf16.vlgmr.msra.gmra.mrb[20].mxu1 %v5078_v36  ;;  %8648 = vmatprep.subr.msk.bf16.mxu0 %vm2137_vm3, %v12202_v48  ;;  %v4916_v0 = vmul.f32 1.442695, %v4828_v45  ;;  %v4918_v47 = vmul.f32 1.442695, %v4829_v41  ;;  %v4920_v15 = vmul.f32 1.442695, %v4830_v12 }
 0x911   : > { %v9128_v35 = vpop.eup %9127  ;;  %v5080_v63 = vpack.c.bf16 %v9126_v22, %v12353_v28  ;;  %9147 = vpow2.f32 %v4914_v61  ;;  %8128 = vmatpush3.bf16.xpose.msra.mxu1 %v12293_v2  ;;  %v4922_v37 = vmul.f32 1.442695, %v4831_v19  ;;  %v4832_v10 = vsub.f32 %v12084_v34, %v4763_v13  ;;  %6276 = vrot.lane.b32.xlu0 %v14096_v62, %s9548_s16  ;;  %v14476_v48 = vld [vmem:[#allocation135_spill] sm:$0xff] }
 0x912   : > { %v9130_v53 = vpop.eup %9129  ;;  %8656 = vmatprep.subr.msk.bf16.mxu1 %vm2137_vm3, %v12208_v4  ;;  %9149 = vpow2.f32 %v4916_v0  ;;  %v4833_v60 = vsub.f32 %v14476_v48, %v4763_v13  ;;  %v4834_v29 = vsub.f32 %v14477_v49, %v4763_v13  ;;  %v4835_v58 = vsub.f32 %v14478_v32, %v4763_v13  ;;  %6296 = vrot.lane.b32.xlu1 %v14479_v7, %s9548_s16  ;;  %v14487_v13 = vld [vmem:[#allocation157_spill] sm:$0xff]  ;;  %v14490_v0 = vld [vmem:[#allocation156_spill] sm:$0xff] }
 0x913   : > { %v12388_v2 = vpop.eup %9131  ;;  %v5082_v34 = vpack.c.bf16 %v9130_v53, %v12361_v55  ;;  %9151 = vpow2.f32 %v4918_v47  ;;  %v4924_v62 = vmul.f32 1.442695, %v4832_v10  ;;  %v5081_v18 = vpack.c.bf16 %v9128_v35, %v12355_v39 }
 0x914   : > { %v12392_v59 = vpop.eup %9133  ;;  %9153 = vpow2.f32 %v4920_v15  ;;  %v4926_v4 = vmul.f32 1.442695, %v4833_v60  ;;  %v4928_v44 = vmul.f32 1.442695, %v4834_v29  ;;  %v4930_v5 = vmul.f32 1.442695, %v4835_v58 }
 0x915   : > { %v12394_v25 = vpop.eup %9135  ;;  %9155 = vpow2.f32 %v4922_v37  ;;  %5244 = vmatprep.mubr.bf16.mxu0 %v5081_v18  ;;  %v5083_v24 = vpack.c.bf16 %v12388_v2, %v12368_v21  ;;  %v4768_v11 = vpop.xlane.xlu1 %4767  ;;  %6294 = vrot.lane.b32.xlu0 %v14480_v6, %s9548_s16  ;;  %v12401_v38 = vadd.f32 %v12350_v17, %v5002_v8  ;;  %v5011_v30 = vadd.f32 %v9128_v35, %v9126_v22  ;;  %v14485_v17 = vld [vmem:[#allocation159_spill] sm:$0xff]  ;;  %v14489_v22 = vld [vmem:[#allocation28_spill] sm:$0xff]  ;;  %v14494_v18 = vld [vmem:[#allocation73_spill] sm:$0xff] }
 0x916   : > { %v12403_v14 = vpop.eup %9137  ;;  %9157 = vpow2.f32 %v4924_v62  ;;  %5245 = vmatmul.mubr.bf16.gmra.mrb[16].mxu0 %v5080_v63  ;;  %v4836_v23 = vsub.f32 %v14481_v33, %v4768_v11  ;;  %v4837_v9 = vsub.f32 %v14482_v20, %v4768_v11  ;;  %v4838_v36 = vsub.f32 %v14483_v42, %v4768_v11  ;;  %6248 = vrot.lane.b32.xlu1 %v14484_v56, %s9548_s16  ;;  %v14491_v15 = vld [vmem:[#allocation36_spill] sm:$0xff]  ;;  %v14492_v63 = vld [vmem:[#allocation158_spill] sm:$0xff]  ;;  %v14497_v33 = vld [vmem:[#allocation35_spill] sm:$0xff] }
 0x917   : > { %v12410_v43 = vpop.eup %9139  ;;  %9159 = vpow2.f32 %v4926_v4  ;;  %5341 = vmatprep.mubr.bf16.mxu1 %v5083_v24  ;;  %8098 = vmatpush3.bf16.xpose.msra.mxu0 %v12314_v26  ;;  %v4839_v16 = vsub.f32 %v14485_v17, %v4768_v11  ;;  %v4773_v40 = vpop.xlane.xlu0 %4772  ;;  %v5012_v61 = vadd.f32 %v9130_v53, %v5011_v30  ;;  %v5006_v51 = vadd.f32 %v12355_v39, %v12353_v28  ;;  %v14488_v28 = vld [vmem:[#allocation23_spill] sm:$0xff]  ;;  %v14495_v24 = vld [vmem:[#allocation161_spill] sm:$0xff]  ;;  %v14496_v6 = vld [vmem:[#allocation6_spill] sm:$0xff] }
 0x918   : > { %v9142_v54 = vpop.eup %9141  ;;  %9161 = vpow2.f32 %v4928_v44  ;;  %5342 = vmatmul.mubr.bf16.gmra.mrb[24].mxu1 %v5082_v34  ;;  %8649 = vmatprep.subr.msk.bf16.mxu0 %vm2137_vm3, %v14486_v1  ;;  %v4932_v27 = vmul.f32 1.442695, %v4836_v23  ;;  %v4934_v45 = vmul.f32 1.442695, %v4837_v9  ;;  %v4936_v41 = vmul.f32 1.442695, %v4838_v36 }
 0x919   : > { %v9144_v12 = vpop.eup %9143  ;;  %v5084_v19 = vpack.c.bf16 %v9142_v54, %v12392_v59  ;;  %9163 = vpow2.f32 %v4930_v5  ;;  %8130 = vmatpush3.bf16.xpose.msra.mxu1 %v12310_v3  ;;  %v4938_v26 = vmul.f32 1.442695, %v4839_v16  ;;  %v4840_v8 = vsub.f32 %v14487_v13, %v4773_v40  ;;  %6278 = vrot.lane.b32.xlu0 %v14488_v28, %s9548_s16  ;;  %v14493_v3 = vld [vmem:[#allocation72_spill] sm:$0xff]  ;;  %v14498_v20 = vld [vmem:[#allocation59_spill] sm:$0xff]  ;;  %v14500_v16 = vld [vmem:[#allocation145_spill] sm:$0xff] }
 0x91a   : > { %v12423_v39 = vpop.eup %9145  ;;  %8657 = vmatprep.subr.msk.bf16.mxu1 %vm2137_vm3, %v14489_v22  ;;  %9165 = vpow2.f32 %v4932_v27  ;;  %v4841_v47 = vsub.f32 %v14490_v0, %v4773_v40  ;;  %v4842_v35 = vsub.f32 %v14491_v15, %v4773_v40  ;;  %v4843_v37 = vsub.f32 %v14492_v63, %v4773_v40  ;;  %6266 = vrot.lane.b32.xlu1 %v14493_v3, %s9548_s16  ;;  %v14505_v13 = vld [vmem:[#allocation5_spill] sm:$0xff]  ;;  %v14506_v28 = vld [vmem:[#allocation14_spill] sm:$0xff] }
 0x91b   : > { %v12432_v10 = vpop.eup %9147  ;;  %v5086_v53 = vpack.c.bf16 %v12423_v39, %v12403_v14  ;;  %9167 = vpow2.f32 %v4934_v45  ;;  %v4940_v48 = vmul.f32 1.442695, %v4840_v8  ;;  %v5085_v60 = vpack.c.bf16 %v9144_v12, %v12394_v25  ;;  %v14502_v45 = vld [vmem:[#allocation29_spill] sm:$0xff] }
 0x91c   : > { %v12437_v49 = vpop.eup %9149  ;;  %9169 = vpow2.f32 %v4936_v41  ;;  %v4942_v29 = vmul.f32 1.442695, %v4841_v47  ;;  %v4944_v32 = vmul.f32 1.442695, %v4842_v35  ;;  %v4946_v58 = vmul.f32 1.442695, %v4843_v37 }
 0x91d   : > { %v12439_v7 = vpop.eup %9151  ;;  %9171 = vpow2.f32 %v4938_v26  ;;  %5252 = vmatprep.mubr.bf16.mxu0 %v5085_v60  ;;  %v5087_v34 = vpack.c.bf16 %v12432_v10, %v12410_v43  ;;  %v4778_v62 = vpop.xlane.xlu1 %4777  ;;  %6264 = vrot.lane.b32.xlu0 %v14494_v18, %s9548_s16  ;;  %v12446_v4 = vadd.f32 %v12388_v2, %v5012_v61  ;;  %v5007_v44 = vadd.f32 %v12361_v55, %v5006_v51  ;;  %v14499_v55 = vld [vmem:[#allocation162_spill] sm:$0xff]  ;;  %v14509_v18 = vld [vmem:[#allocation39_spill] sm:$0xff] }
 0x91e   : > { %v12449_v5 = vpop.eup %9153  ;;  %9173 = vpow2.f32 %v4940_v48  ;;  %5253 = vmatmul.mubr.bf16.gmra.mrb[20].mxu0 %v5084_v19  ;;  %v4844_v11 = vsub.f32 %v14495_v24, %v4778_v62  ;;  %v4845_v30 = vsub.f32 %v14496_v6, %v4778_v62  ;;  %v4846_v23 = vsub.f32 %v14497_v33, %v4778_v62  ;;  %6250 = vrot.lane.b32.xlu1 %v14498_v20, %s9548_s16  ;;  %v14504_v19 = vld [vmem:[#allocation22_spill] sm:$0xff]  ;;  %v14510_v24 = vld [vmem:[#allocation21_spill] sm:$0xff]  ;;  %v14511_v6 = vld [vmem:[#allocation8_spill] sm:$0xff] }
 0x91f   : > { %v12456_v9 = vpop.eup %9155  ;;  %9175 = vpow2.f32 %v4942_v29  ;;  %5349 = vmatprep.mubr.bf16.mxu1 %v5087_v34  ;;  %8100 = vmatpush3.bf16.xpose.msra.mxu0 %v12322_v50  ;;  %v4847_v2 = vsub.f32 %v14499_v55, %v4778_v62  ;;  %v4783_v42 = vpop.xlane.xlu0 %4782  ;;  %v12461_v36 = vadd.f32 %v12368_v21, %v5007_v44  ;;  %v5021_v56 = vadd.f32 %v9144_v12, %v9142_v54  ;;  %v14501_v54 = vld [vmem:[#allocation160_spill] sm:$0xff]  ;;  %v14503_v12 = vld [vmem:[#allocation146_spill] sm:$0xff] }
 0x920   : > { %v12463_v17 = vpop.eup %9157  ;;  %9177 = vpow2.f32 %v4944_v32  ;;  %5350 = vmatmul.mubr.bf16.gmra.mrb[28].mxu1 %v5086_v53  ;;  %8650 = vmatprep.subr.msk.bf16.mxu0 %vm2137_vm3, %v14500_v16  ;;  %v4948_v40 = vmul.f32 1.442695, %v4844_v11  ;;  %v4950_v61 = vmul.f32 1.442695, %v4845_v30  ;;  %v4952_v51 = vmul.f32 1.442695, %v4846_v23 }
 0x921   : > { %v12467_v1 = vpop.eup %9159  ;;  %v5088_v50 = vpack.c.bf16 %v12463_v17, %v12437_v49  ;;  %9179 = vpow2.f32 %v4946_v58  ;;  %8132 = vmatpush3.bf16.xpose.msra.mxu1 %v12318_v52  ;;  %v4954_v21 = vmul.f32 1.442695, %v4847_v2  ;;  %v4848_v27 = vsub.f32 %v14501_v54, %v4783_v42  ;;  %6280 = vrot.lane.b32.xlu0 %v14502_v45, %s9548_s16  ;;  %v14507_v52 = vld [vmem:[#allocation46_spill] sm:$0xff]  ;;  %v14508_v32 = vld [vmem:[#allocation40_spill] sm:$0xff] }
 0x922   : > { %v12475_v41 = vpop.eup %9161  ;;  %8658 = vmatprep.subr.msk.bf16.mxu1 %vm2137_vm3, %v14503_v12  ;;  %9181 = vpow2.f32 %v4948_v40  ;;  %v4849_v26 = vsub.f32 %v14504_v19, %v4783_v42  ;;  %v4850_v8 = vsub.f32 %v14505_v13, %v4783_v42  ;;  %v4851_v22 = vsub.f32 %v14506_v28, %v4783_v42  ;;  %6300 = vrot.lane.b32.xlu1 %v14507_v52, %s9548_s16  ;;  %v14512_v33 = vld [vmem:[#allocation68_spill] sm:$0xff]  ;;  %v14514_v42 = vld [vmem:[#allocation43_spill] sm:$0xff]  ;;  %v14517_v54 = vld [vmem:[#allocation18_spill] sm:$0xff] }
 0x923   : > { %v12484_v0 = vpop.eup %9163  ;;  %v5090_v47 = vpack.c.bf16 %v12475_v41, %v12449_v5  ;;  %9183 = vpow2.f32 %v4950_v61  ;;  %v4956_v15 = vmul.f32 1.442695, %v4848_v27  ;;  %v5089_v35 = vpack.c.bf16 %v12467_v1, %v12439_v7  ;;  %v14518_v27 = vld [vmem:[#allocation26_spill] sm:$0xff]  ;;  %v14519_v12 = vld [vmem:[#allocation7_spill] sm:$0xff] }
 0x924   : > { %v12490_v63 = vpop.eup %9165  ;;  %9185 = vpow2.f32 %v4952_v51  ;;  %v4958_v37 = vmul.f32 1.442695, %v4849_v26  ;;  %v4960_v3 = vmul.f32 1.442695, %v4850_v8  ;;  %v4962_v53 = vmul.f32 1.442695, %v4851_v22 }
 0x925   : > { %v12492_v48 = vpop.eup %9167  ;;  %9187 = vpow2.f32 %v4954_v21  ;;  %5260 = vmatprep.mubr.bf16.mxu0 %v5089_v35  ;;  %v5091_v60 = vpack.c.bf16 %v12484_v0, %v12456_v9  ;;  %v4788_v29 = vpop.xlane.xlu1 %4787  ;;  %6298 = vrot.lane.b32.xlu0 %v14508_v32, %s9548_s16  ;;  %v5022_v58 = vadd.f32 %v12423_v39, %v5021_v56  ;;  %v5016_v34 = vadd.f32 %v12394_v25, %v12392_v59  ;;  %v14513_v59 = vld [vmem:[#allocation38_spill] sm:$0xff]  ;;  %v14520_v26 = vld [vmem:[#allocation16_spill] sm:$0xff]  ;;  %v14522_v28 = vld [vmem:[#allocation147_spill] sm:$0xff] }
 0x926   : > { %v12501_v62 = vpop.eup %9169  ;;  %9189 = vpow2.f32 %v4956_v15  ;;  %5261 = vmatmul.mubr.bf16.gmra.mrb[24].mxu0 %v5088_v50  ;;  %v4852_v44 = vsub.f32 %v14509_v18, %v4788_v29  ;;  %v4853_v11 = vsub.f32 %v14510_v24, %v4788_v29  ;;  %v4854_v30 = vsub.f32 %v14511_v6, %v4788_v29  ;;  %6252 = vrot.lane.b32.xlu1 %v14512_v33, %s9548_s16  ;;  %v14521_v8 = vld [vmem:[#allocation74_spill] sm:$0xff]  ;;  %v14523_v32 = vld [vmem:[#allocation75_spill] sm:$0xff]  ;;  %v14524_v18 = vld [vmem:[#allocation65_spill] sm:$0xff] }
 0x927   : > { %v12508_v23 = vpop.eup %9171  ;;  %9191 = vpow2.f32 %v4958_v37  ;;  %5357 = vmatprep.mubr.bf16.mxu1 %v5091_v60  ;;  %8102 = vmatpush3.bf16.xpose.msra.mxu0 %v12339_v46  ;;  %v4855_v25 = vsub.f32 %v14513_v59, %v4788_v29  ;;  %v4793_v39 = vpop.xlane.xlu0 %4792  ;;  %v12513_v20 = vadd.f32 %v12432_v10, %v5022_v58  ;;  %v5017_v55 = vadd.f32 %v12403_v14, %v5016_v34  ;;  %v14515_v10 = vld [vmem:[#allocation13_spill] sm:$0xff]  ;;  %v14516_v14 = vld [vmem:[#allocation27_spill] sm:$0xff] }
 0x928   : > { %v9174_v2 = vpop.eup %9173  ;;  %9193 = vpow2.f32 %v4960_v3  ;;  %5358 = vmatmul.mubr.bf16.gmra.mrb[32].mxu1 %v5090_v47  ;;  %8651 = vmatprep.subr.msk.bf16.mxu0 %vm2137_vm3, %v14514_v42  ;;  %v4964_v56 = vmul.f32 1.442695, %v4852_v44  ;;  %v4966_v16 = vmul.f32 1.442695, %v4853_v11  ;;  %v4968_v40 = vmul.f32 1.442695, %v4854_v30 }
 0x929   : > { %v9176_v61 = vpop.eup %9175  ;;  %v5092_v46 = vpack.c.bf16 %v9174_v2, %v12490_v63  ;;  %9195 = vpow2.f32 %v4962_v53  ;;  %8134 = vmatpush3.bf16.xpose.msra.mxu1 %v12326_v31  ;;  %v4970_v51 = vmul.f32 1.442695, %v4855_v25  ;;  %v4856_v50 = vsub.f32 %v14515_v10, %v4793_v39  ;;  %6282 = vrot.lane.b32.xlu0 %v14516_v14, %s9548_s16  ;;  %v14525_v30 = vld [vmem:[#allocation9_spill] sm:$0xff] }
 0x92a   : > { %v9178_v21 = vpop.eup %9177  ;;  %8659 = vmatprep.subr.msk.bf16.mxu1 %vm2137_vm3, %v14517_v54  ;;  %9197 = vpow2.f32 %v4964_v56  ;;  %v4857_v45 = vsub.f32 %v14518_v27, %v4793_v39  ;;  %v4858_v19 = vsub.f32 %v14519_v12, %v4793_v39  ;;  %v4859_v13 = vsub.f32 %v14520_v26, %v4793_v39  ;;  %6270 = vrot.lane.b32.xlu1 %v14521_v8, %s9548_s16  ;;  %v14527_v42 = vld [vmem:[#allocation17_spill] sm:$0xff] }
 0x92b   : > { %v9180_v31 = vpop.eup %9179  ;;  %v5547_v22 = vsel %vm2137_vm3, %v14522_v28, 0  ;;  %v5094_v52 = vpack.c.bf16 %v9178_v21, %v12501_v62  ;;  %9199 = vpow2.f32 %v4966_v16  ;;  %v4972_v47 = vmul.f32 1.442695, %v4856_v50 }
 0x92c   : > { %v12533_v15 = vpop.eup %9181  ;;  %9201 = vpow2.f32 %v4968_v40  ;;  %v4974_v35 = vmul.f32 1.442695, %v4857_v45  ;;  %v4976_v37 = vmul.f32 1.442695, %v4858_v19  ;;  %v4978_v3 = vmul.f32 1.442695, %v4859_v13 }
 0x92d   : > { %v9184_v53 = vpop.eup %9183  ;;  %9203 = vpow2.f32 %v4970_v51  ;;  %v5093_v60 = vpack.c.bf16 %v9176_v61, %v12492_v48  ;;  %v5095_v29 = vpack.c.bf16 %v9180_v31, %v12508_v23  ;;  %6268 = vrot.lane.b32.xlu0 %v14523_v32, %s9548_s16  ;;  %v12540_v58 = vadd.f32 %v12410_v43, %v5017_v55  ;;  %v14529_v45 = vld [vmem:[#allocation44_spill] sm:$0xff] }
 0x92e   : > { %v9186_v34 = vpop.eup %9185  ;;  %9205 = vpow2.f32 %v4972_v47  ;;  %6254 = vrot.lane.b32.xlu1 %v14524_v18, %s9548_s16  ;;  %v5031_v44 = vadd.f32 %v12467_v1, %v12463_v17  ;;  %v5026_v24 = vadd.f32 %v12439_v7, %v12437_v49  ;;  %v5041_v11 = vadd.f32 %v9176_v61, %v9174_v2  ;;  %v14526_v2 = vld [vmem:[#allocation41_spill] sm:$0xff]  ;;  %v14531_v13 = vld [vmem:[#allocation12_spill] sm:$0xff] }
 0x92f   : > { %v9188_v6 = vpop.eup %9187  ;;  %v5595_v33 = vsel %vm2137_vm3, %v14525_v30, 0  ;;  %9207 = vpow2.f32 %v4974_v35  ;;  %5268 = vmatprep.mubr.bf16.mxu0 %v5093_v60  ;;  %5365 = vmatprep.mubr.bf16.mxu1 %v5095_v29  ;;  %v5036_v43 = vadd.f32 %v12492_v48, %v12490_v63  ;;  %v5046_v59 = vadd.f32 %v9184_v53, %v12533_v15  ;;  %v14528_v61 = vld [vmem:[#allocation33_spill] sm:$0xff]  ;;  %v14533_v29 = vld [vmem:[#allocation31_spill] sm:$0xff]  ;;  %v5461_v30 = vpop.permute.xlu1 %5460 }
 0x930   : > { %v9190_v25 = vpop.eup %9189  ;;  %9209 = vpow2.f32 %v4976_v37  ;;  %5269 = vmatmul.mubr.bf16.gmra.mrb[28].mxu0 %v5092_v46  ;;  %5366 = vmatmul.mubr.bf16.gmra.mrb[36].mxu1 %v5094_v52  ;;  %v5032_v17 = vadd.f32 %v12475_v41, %v5031_v44  ;;  %v5027_v49 = vadd.f32 %v12449_v5, %v5026_v24  ;;  %v5042_v7 = vadd.f32 %v9178_v21, %v5041_v11  ;;  %v5507_v52 = vpop.permute.xlu0 %5506  ;;  %v14534_v44 = vld [vmem:[#allocation47_spill] sm:$0xff]  ;;  %v14535_v11 = vld [vmem:[#allocation20_spill] sm:$0xff] }
 0x931   : > { %v9192_v1 = vpop.eup %9191  ;;  %v5096_v39 = vpack.c.bf16 %v9190_v25, %v12533_v15  ;;  %9211 = vpow2.f32 %v4978_v3  ;;  %8104 = vmatpush3.bf16.xpose.msra.mxu0 %v5547_v22  ;;  %8136 = vmatpush3.bf16.xpose.msra.mxu1 %v5595_v33  ;;  %v5037_v55 = vadd.f32 %v12501_v62, %v5036_v43  ;;  %v5047_v63 = vadd.f32 %v9186_v34, %v5046_v59  ;;  %v14532_v15 = vld [vmem:[#allocation32_spill] sm:$0xff]  ;;  %v14536_v43 = vld [vmem:[#allocation30_spill] sm:$0xff] }
 0x932   : > { %v9194_v48 = vpop.eup %9193  ;;  %8652 = vmatprep.subr.msk.bf16.mxu0 %vm2137_vm3, %v14526_v2  ;;  %8660 = vmatprep.subr.msk.bf16.mxu1 %vm2137_vm3, %v14527_v42  ;;  %v5097_v41 = vpack.c.bf16 %v9192_v1, %v9184_v53  ;;  %v12562_v5 = vadd.f32 %v12484_v0, %v5032_v17  ;;  %v12565_v56 = vadd.f32 %v12456_v9, %v5027_v49  ;;  %v5598_v8 = vsel %vm2137_vm3, %v14531_v13, 0  ;;  %v14538_v49 = vld [vmem:[#allocation10_spill] sm:$0xff]  ;;  %v14540_v42 = vld [vmem:[#allocation140_spill] sm:$0xff] }
 0x933   : > { %v9196_v16 = vpop.eup %9195  ;;  %v5098_v40 = vpack.c.bf16 %v9194_v48, %v9186_v34  ;;  %6284 = vrot.lane.b32.xlu0 %v14528_v61, %s9548_s16  ;;  %v12569_v62 = vadd.f32 %v9180_v31, %v5042_v7  ;;  %v12572_v46 = vadd.f32 %v12508_v23, %v5037_v55  ;;  %v5051_v51 = vadd.f32 %v9192_v1, %v9190_v25  ;;  %v14530_v23 = vld [vmem:[#allocation34_spill] sm:$0xff]  ;;  %v14537_v25 = vld [vmem:[#allocation24_spill] sm:$0xff]  ;;  %v14539_v1 = vld [vmem:[#allocation141_spill] sm:$0xff] }
 0x934   : > { %v9198_v10 = vpop.eup %9197  ;;  %5276 = vmatprep.mubr.bf16.mxu0 %v5097_v41  ;;  %v5099_v50 = vpack.c.bf16 %v9196_v16, %v9188_v6  ;;  %v12574_v14 = vadd.f32 %v9188_v6, %v5047_v63  ;;  %v5550_v26 = vsel %vm2137_vm3, %v14530_v23, 0  ;;  %v5553_v24 = vsel %vm2137_vm3, %v14534_v44, 0 }
 0x935   : > { %v9200_v0 = vpop.eup %9199  ;;  %v5052_v21 = vadd.f32 %v9194_v48, %v5051_v51  ;;  %v5601_v6 = vsel %vm2137_vm3, %v14535_v11, 0  ;;  %v14542_v51 = vld [vmem:[#allocation144_spill] sm:$0xff] }
 0x936   : > { %v9202_v9 = vpop.eup %9201  ;;  %5373 = vmatprep.mubr.bf16.mxu1 %v5099_v50  ;;  %v5056_v54 = vadd.f32 %v9200_v0, %v9198_v10  ;;  %v14543_v50 = vld [vmem:[#allocation15_spill] sm:$0xff] }
 0x937   : > { %v9204_v27 = vpop.eup %9203  ;;  %6302 = vrot.lane.b32.xlu0 %v14529_v45, %s9548_s16  ;;  %v12578_v12 = vadd.f32 %v9196_v16, %v5052_v21  ;;  %v5556_v45 = vsel %vm2137_vm3, %v5461_v30, 0 }
 0x938   : > { %v9206_v19 = vpop.eup %9205  ;;  %5277 = vmatmul.mubr.bf16.gmra.mrb[32].mxu0 %v5096_v39  ;;  %5374 = vmatmul.mubr.bf16.gmra.mrb[40].mxu1 %v5098_v40  ;;  %v5057_v31 = vadd.f32 %v9202_v9, %v5056_v54  ;;  %v14541_v40 = vld [vmem:[#allocation142_spill] sm:$0xff] }
 0x939   : > { %v9208_v28 = vpop.eup %9207  ;;  %v5100_v22 = vpack.c.bf16 %v9206_v19, %v9198_v10  ;;  %8106 = vmatpush3.bf16.xpose.msra.mxu0 %v5550_v26  ;;  %8138 = vmatpush3.bf16.xpose.msra.mxu1 %v5598_v8 }
 0x93a   : > { %v9210_v47 = vpop.eup %9209  ;;  %8653 = vmatprep.subr.msk.bf16.mxu0 %vm2137_vm3, %v14532_v15  ;;  %8661 = vmatprep.subr.msk.bf16.mxu1 %vm2137_vm3, %v5507_v52  ;;  %v5101_v35 = vpack.c.bf16 %v9208_v28, %v9200_v0  ;;  %v5061_v37 = vadd.f32 %v9208_v28, %v9206_v19  ;;  %v12587_v3 = vadd.f32 %v9204_v27, %v5057_v31 }
 0x93b   : > { %v9212_v53 = vpop.eup %9211  ;;  %v5102_v60 = vpack.c.bf16 %v9210_v47, %v9202_v9  ;;  %6286 = vrot.lane.b32.xlu0 %v14533_v29, %s9548_s16  ;;  %s7198_s16 = sshll.u32 %s14715_s26, 1 }
 0x93c   : > { %5284 = vmatprep.mubr.bf16.mxu0 %v5101_v35  ;;  %v5103_v32 = vpack.c.bf16 %v9212_v53, %v9204_v27  ;;  %v5062_v34 = vadd.f32 %v9210_v47, %v5061_v37 }
 0x93e   : > { %5381 = vmatprep.mubr.bf16.mxu1 %v5103_v32  ;;  %v12591_v18 = vadd.f32 %v9212_v53, %v5062_v34 }
 0x940   : > { %5285 = vmatmul.mubr.bf16.gmra.mrb[36].mxu0 %v5100_v22  ;;  %5382 = vmatmul.mubr.bf16.gmra.mrb[44].mxu1 %v5102_v60 }
 0x941   : > { %8108 = vmatpush3.bf16.xpose.msra.mxu0 %v5553_v24  ;;  %8140 = vmatpush3.bf16.xpose.msra.mxu1 %v5601_v6 }
 0x95a   : > { %v4798_v33 = vpop.xlane.xlu1 %4797 }
 0x95b   : > { %v4860_v59 = vsub.f32 %v14536_v43, %v4798_v33  ;;  %v4861_v17 = vsub.f32 %v14537_v25, %v4798_v33  ;;  %v4862_v7 = vsub.f32 %v14538_v49, %v4798_v33  ;;  %v4863_v39 = vsub.f32 %v14539_v1, %v4798_v33 }
 0x95c   : > { %v4803_v55 = vpop.xlane.xlu0 %4802 }
 0x95d   : > { %v4980_v63 = vmul.f32 1.442695, %v4860_v59  ;;  %v4982_v48 = vmul.f32 1.442695, %v4861_v17  ;;  %v4984_v2 = vmul.f32 1.442695, %v4862_v7  ;;  %v4864_v41 = vsub.f32 %v14540_v42, %v4803_v55 }
 0x95e   : > { %v4986_v16 = vmul.f32 1.442695, %v4863_v39  ;;  %v4865_v61 = vsub.f32 %v14541_v40, %v4803_v55  ;;  %v4866_v10 = vsub.f32 %v14542_v51, %v4803_v55  ;;  %v4867_v0 = vsub.f32 %v14543_v50, %v4803_v55  ;;  %v5493_v21 = vpop.permute.xlu1 %5492 }
 0x95f   : > { %9213 = vpow2.f32 %v4980_v63  ;;  %v4988_v9 = vmul.f32 1.442695, %v4864_v41  ;;  %v5604_v8 = vsel %vm2137_vm3, %v5493_v21, 0 }
 0x960   : > { %9215 = vpow2.f32 %v4982_v48  ;;  %v4990_v54 = vmul.f32 1.442695, %v4865_v61  ;;  %v5477_v27 = vpop.permute.xlu0 %5476  ;;  %v4992_v19 = vmul.f32 1.442695, %v4866_v10  ;;  %v4994_v23 = vmul.f32 1.442695, %v4867_v0 }
 0x961   : > { %9217 = vpow2.f32 %v4984_v2  ;;  %8654 = vmatprep.subr.msk.bf16.mxu0 %vm2137_vm3, %v5477_v27 }
 0x962   : > { %9219 = vpow2.f32 %v4986_v16  ;;  %v5431_v26 = vpop.permute.xlu1 %5430  ;;  %8110 = vmatpush3.bf16.xpose.msra.mxu0 %v5556_v45 }
 0x963   : > { %9221 = vpow2.f32 %v4988_v9 }
 0x964   : > { %9223 = vpow2.f32 %v4990_v54  ;;  %v5509_v13 = vpop.permute.xlu0 %5508 }
 0x965   : > { %9225 = vpow2.f32 %v4992_v19  ;;  %8662 = vmatprep.subr.msk.bf16.mxu1 %vm2137_vm3, %v5509_v13 }
 0x966   : > { %9227 = vpow2.f32 %v4994_v23  ;;  %v12609_v31 = vpop.permute.xlu1 %5434  ;;  %8142 = vmatpush3.bf16.xpose.msra.mxu1 %v5604_v8 }
 0x968   : > { %v5433_v28 = vpop.permute.xlu0 %5432 }
 0x969   : > { %v9214_v22 = vpop.eup %9213 }
 0x96a   : > { %v9216_v52 = vpop.eup %9215  ;;  %v12611_v47 = vpop.permute.xlu1 %5438 }
 0x96b   : > { %v9218_v15 = vpop.eup %9217  ;;  %v5066_v35 = vadd.f32 %v9216_v52, %v9214_v22 }
 0x96c   : > { %v9220_v37 = vpop.eup %9219  ;;  %v12613_v53 = vpop.permute.xlu0 %5436 }
 0x96d   : > { %v9222_v60 = vpop.eup %9221  ;;  %v5067_v29 = vadd.f32 %v9218_v15, %v5066_v35 }
 0x96e   : > { %v9224_v32 = vpop.eup %9223  ;;  %v5104_v34 = vpack.c.bf16 %v9222_v60, %v9214_v22  ;;  %v12615_v44 = vpop.permute.xlu1 %5442 }
 0x96f   : > { %v9226_v24 = vpop.eup %9225  ;;  %v5105_v11 = vpack.c.bf16 %v9224_v32, %v9216_v52  ;;  %v5071_v6 = vadd.f32 %v9224_v32, %v9222_v60  ;;  %v12617_v30 = vadd.f32 %v9220_v37, %v5067_v29 }
 0x970   : > { %v9228_v33 = vpop.eup %9227  ;;  %v5106_v43 = vpack.c.bf16 %v9226_v24, %v9218_v15  ;;  %v12619_v59 = vpop.permute.xlu0 %5440 }
 0x971   : > { %5292 = vmatprep.mubr.bf16.mxu0 %v5105_v11  ;;  %v5107_v25 = vpack.c.bf16 %v9228_v33, %v9220_v37  ;;  %v5072_v17 = vadd.f32 %v9226_v24, %v5071_v6 }
 0x972   : > { %5293 = vmatmul.mubr.bf16.gmra.mrb[40].mxu0 %v5104_v34  ;;  %v6289_v49 = vpop.permute.xlu1 %6288 }
 0x973   : > { %5389 = vmatprep.mubr.bf16.mxu1 %v5107_v25  ;;  %8111 = vmatprep.mubr.msk.bf16.mxu0 %vm2137_vm3, %v5431_v26  ;;  %v12622_v7 = vadd.f32 %v9228_v33, %v5072_v17 }
 0x974   : > { %5390 = vmatmul.mubr.bf16.gmra.mrb[48].mxu1 %v5106_v43  ;;  %8223 = vmatprep.subr.bf16.mxu1 %v6289_v49  ;;  %v12624_v1 = vpop.permute.xlu0 %5444 }
 0x975   : > { %8143 = vmatprep.mubr.msk.bf16.mxu1 %vm2137_vm3, %v5431_v26 }
 0x976   : > { %v6241_v39 = vpop.permute.xlu1 %6240 }
 0x978   : > { %v6257_v55 = vpop.permute.xlu0 %6256 }
 0x979   : > { %8159 = vmatprep.subr.bf16.mxu0 %v6257_v55 }
 0x97a   : > { %8112 = vmatmul.mubr.msk.bf16.vlgmr.msra.gmra.mrb[44].mxu0 %vm2137_vm3, %v5431_v26  ;;  %v6259_v63 = vpop.permute.xlu1 %6258 }
 0x97b   : > { %8113 = vmatprep.mubr.msk.bf16.mxu0 %vm2137_vm3, %v5433_v28  ;;  %8160 = vmatpush3.bf16.msra.mxu0 %v6241_v39 }
 0x97c   : > { %8144 = vmatmul.mubr.msk.bf16.vlgmr.msra.gmra.mrb[52].mxu1 %vm2137_vm3, %v5431_v26  ;;  %8161 = vmatprep.subr.bf16.mxu0 %v6259_v63  ;;  %v6273_v48 = vpop.permute.xlu0 %6272 }
 0x97d   : > { %8145 = vmatprep.mubr.msk.bf16.mxu1 %vm2137_vm3, %v5433_v28  ;;  %8224 = vmatpush3.bf16.msra.mxu1 %v6273_v48 }
 0x97e   : > { %v6243_v2 = vpop.permute.xlu1 %6242 }
 0x97f   : > { %8162 = vmatpush3.bf16.msra.mxu0 %v6243_v2 }
 0x980   : > { %v6291_v42 = vpop.permute.xlu0 %6290 }
 0x981   : > { %8225 = vmatprep.subr.bf16.mxu1 %v6291_v42 }
 0x982   : > { %8114 = vmatmul.mubr.msk.bf16.gmra.mrb[48].mxu0 %vm2137_vm3, %v5433_v28  ;;  %v6293_v41 = vpop.permute.xlu1 %6292 }
 0x983   : > { %8115 = vmatprep.mubr.msk.bf16.mxu0 %vm2137_vm3, %v12609_v31 }
 0x984   : > { %8146 = vmatmul.mubr.msk.bf16.gmra.mrb[56].mxu1 %vm2137_vm3, %v5433_v28  ;;  %v6275_v16 = vpop.permute.xlu0 %6274 }
 0x985   : > { %8147 = vmatprep.mubr.msk.bf16.mxu1 %vm2137_vm3, %v12609_v31  ;;  %8226 = vmatpush3.bf16.msra.mxu1 %v6275_v16 }
 0x986   : > { %v6245_v40 = vpop.permute.xlu1 %6244  ;;  %8227 = vmatprep.subr.bf16.mxu1 %v6293_v41 }
 0x988   : > { %v6261_v61 = vpop.permute.xlu0 %6260 }
 0x989   : > { %8163 = vmatprep.subr.bf16.mxu0 %v6261_v61 }
 0x98a   : > { %8116 = vmatmul.mubr.msk.bf16.gmra.mrb[52].mxu0 %vm2137_vm3, %v12609_v31  ;;  %v6263_v51 = vpop.permute.xlu1 %6262 }
 0x98b   : > { %8117 = vmatprep.mubr.msk.bf16.mxu0 %vm2137_vm3, %v12613_v53  ;;  %8164 = vmatpush3.bf16.msra.mxu0 %v6245_v40 }
 0x98c   : > { %8148 = vmatmul.mubr.msk.bf16.gmra.mrb[60].mxu1 %vm2137_vm3, %v12609_v31  ;;  %8165 = vmatprep.subr.bf16.mxu0 %v6263_v51  ;;  %v6277_v10 = vpop.permute.xlu0 %6276 }
 0x98d   : > { %8149 = vmatprep.mubr.msk.bf16.mxu1 %vm2137_vm3, %v12613_v53  ;;  %8228 = vmatpush3.bf16.msra.mxu1 %v6277_v10 }
 0x98e   : > { %v6247_v50 = vpop.permute.xlu1 %6246 }
 0x98f   : > { %8166 = vmatpush3.bf16.msra.mxu0 %v6247_v50 }
 0x990   : > { %v6295_v0 = vpop.permute.xlu0 %6294 }
 0x991   : > { %8229 = vmatprep.subr.bf16.mxu1 %v6295_v0 }
 0x992   : > { %8118 = vmatmul.mubr.msk.bf16.gmra.mrb[56].mxu0 %vm2137_vm3, %v12613_v53  ;;  %v6297_v21 = vpop.permute.xlu1 %6296 }
 0x993   : > { %8119 = vmatprep.mubr.msk.bf16.mxu0 %vm2137_vm3, %v12611_v47 }
 0x994   : > { %8150 = vmatmul.mubr.msk.bf16.gmra.mrb[64].mxu1 %vm2137_vm3, %v12613_v53  ;;  %v6279_v9 = vpop.permute.xlu0 %6278 }
 0x995   : > { %8151 = vmatprep.mubr.msk.bf16.mxu1 %vm2137_vm3, %v12611_v47  ;;  %8230 = vmatpush3.bf16.msra.mxu1 %v6279_v9 }
 0x996   : > { %v6249_v54 = vpop.permute.xlu1 %6248  ;;  %8231 = vmatprep.subr.bf16.mxu1 %v6297_v21 }
 0x998   : > { %v6265_v27 = vpop.permute.xlu0 %6264 }
 0x999   : > { %8167 = vmatprep.subr.bf16.mxu0 %v6265_v27 }
 0x99a   : > { %8120 = vmatmul.mubr.msk.bf16.gmra.mrb[60].mxu0 %vm2137_vm3, %v12611_v47  ;;  %v6267_v45 = vpop.permute.xlu1 %6266 }
 0x99b   : > { %8121 = vmatprep.mubr.msk.bf16.mxu0 %vm2137_vm3, %v12619_v59  ;;  %8168 = vmatpush3.bf16.msra.mxu0 %v6249_v54 }
 0x99c   : > { %8152 = vmatmul.mubr.msk.bf16.gmra.mrb[68].mxu1 %vm2137_vm3, %v12611_v47  ;;  %8169 = vmatprep.subr.bf16.mxu0 %v6267_v45  ;;  %v6281_v19 = vpop.permute.xlu0 %6280 }
 0x99d   : > { %8153 = vmatprep.mubr.msk.bf16.mxu1 %vm2137_vm3, %v12619_v59  ;;  %8232 = vmatpush3.bf16.msra.mxu1 %v6281_v19 }
 0x99e   : > { %v6251_v23 = vpop.permute.xlu1 %6250 }
 0x99f   : > { %8170 = vmatpush3.bf16.msra.mxu0 %v6251_v23 }
 0x9a0   : > { %v6299_v26 = vpop.permute.xlu0 %6298 }
 0x9a1   : > { %8233 = vmatprep.subr.bf16.mxu1 %v6299_v26 }
 0x9a2   : > { %8122 = vmatmul.mubr.msk.bf16.gmra.mrb[64].mxu0 %vm2137_vm3, %v12619_v59  ;;  %v6301_v13 = vpop.permute.xlu1 %6300 }
 0x9a3   : > { %8123 = vmatprep.mubr.msk.bf16.mxu0 %vm2137_vm3, %v12615_v44 }
 0x9a4   : > { %8154 = vmatmul.mubr.msk.bf16.gmra.mrb[72].mxu1 %vm2137_vm3, %v12619_v59  ;;  %v6283_v8 = vpop.permute.xlu0 %6282 }
 0x9a5   : > { %8155 = vmatprep.mubr.msk.bf16.mxu1 %vm2137_vm3, %v12615_v44  ;;  %8234 = vmatpush3.bf16.msra.mxu1 %v6283_v8 }
 0x9a6   : > { %v6253_v31 = vpop.permute.xlu1 %6252  ;;  %8235 = vmatprep.subr.bf16.mxu1 %v6301_v13 }
 0x9a8   : > { %v6269_v28 = vpop.permute.xlu0 %6268 }
 0x9a9   : > { %8171 = vmatprep.subr.bf16.mxu0 %v6269_v28 }
 0x9aa   : > { %8124 = vmatmul.mubr.msk.bf16.gmra.mrb[68].mxu0 %vm2137_vm3, %v12615_v44  ;;  %v6271_v22 = vpop.permute.xlu1 %6270 }
 0x9ab   : > { %8125 = vmatprep.mubr.msk.bf16.mxu0 %vm2137_vm3, %v12624_v1  ;;  %8172 = vmatpush3.bf16.msra.mxu0 %v6253_v31 }
 0x9ac   : > { %8156 = vmatmul.mubr.msk.bf16.gmra.mrb[76].mxu1 %vm2137_vm3, %v12615_v44  ;;  %8173 = vmatprep.subr.bf16.mxu0 %v6271_v22  ;;  %v6285_v52 = vpop.permute.xlu0 %6284 }
 0x9ad   : > { %8157 = vmatprep.mubr.msk.bf16.mxu1 %vm2137_vm3, %v12624_v1  ;;  %8236 = vmatpush3.bf16.msra.mxu1 %v6285_v52 }
 0x9ae   : > { %v6255_v47 = vpop.permute.xlu1 %6254 }
 0x9af   : > { %8174 = vmatpush3.bf16.msra.mxu0 %v6255_v47 }
 0x9b0   : > { %v6303_v15 = vpop.permute.xlu0 %6302 }
 0x9b1   : > { %8237 = vmatprep.subr.bf16.mxu1 %v6303_v15 }
 0x9b2   : > { %8126 = vmatmul.mubr.msk.bf16.gmra.mrb[72].mxu0 %vm2137_vm3, %v12624_v1 }
 0x9b4   : > { %8158 = vmatmul.mubr.msk.bf16.gmra.mrb[80].mxu1 %vm2137_vm3, %v12624_v1  ;;  %v6287_v35 = vpop.permute.xlu0 %6286 }
 0x9b5   : > { %8238 = vmatpush3.bf16.msra.mxu1 %v6287_v35 }
 0x9e1   : > { %v7983_v37 = vpop.f32.mrb[12].mxu0 }
 0x9e2   : > { %v7984_v53 = vpop.f32.mrb[13].mxu0 }
 0x9e3   : > { %v8047_v60 = vpop.f32.mrb[20].mxu1  ;;  %v7985_v29 = vadd.f32 %v7984_v53, %v7983_v37  ;;  %v7986_v32 = vpop.f32.mrb[14].mxu0 }
 0x9e4   : > { %v8048_v34 = vpop.f32.mrb[21].mxu1  ;;  %v7987_v44 = vpop.f32.mrb[15].mxu0 }
 0x9e5   : > { %v8049_v24 = vadd.f32 %v8048_v34, %v8047_v60  ;;  %v8050_v11 = vpop.f32.mrb[22].mxu1  ;;  %v7988_v6 = vadd.f32 %v7987_v44, %v7986_v32 }
 0x9e6   : > { %v8051_v33 = vpop.f32.mrb[23].mxu1 }
 0x9e7   : > { %v12681_v43 = vadd.f32 %v8049_v24, %v7985_v29  ;;  %v8052_v59 = vadd.f32 %v8051_v33, %v8050_v11 }
 0x9e9   : > { %14544 = vst [vmem:[#allocation11_spill] sm:$0xff] %v12681_v43  ;;  %v12683_v25 = vadd.f32 %v8052_v59, %v7988_v6  ;;  %v7989_v17 = vpop.f32.mrb[16].mxu0  ;;  %v14574_v43 = vld [vmem:[#allocation122_spill] sm:$0xff] }
 0x9ea   : > { %v7990_v49 = vpop.f32.mrb[17].mxu0 }
 0x9eb   : > { %14545 = vst [vmem:[#allocation79_spill] sm:$0xff] %v12683_v25  ;;  %v8053_v1 = vpop.f32.mrb[24].mxu1  ;;  %v7991_v39 = vadd.f32 %v7990_v49, %v7989_v17  ;;  %v7992_v55 = vpop.f32.mrb[18].mxu0 }
 0x9ec   : > { %v8054_v63 = vpop.f32.mrb[25].mxu1  ;;  %v7993_v48 = vpop.f32.mrb[19].mxu0 }
 0x9ed   : > { %v8055_v2 = vadd.f32 %v8054_v63, %v8053_v1  ;;  %v8056_v42 = vpop.f32.mrb[26].mxu1  ;;  %v7994_v41 = vadd.f32 %v7993_v48, %v7992_v55 }
 0x9ee   : > { %v8057_v16 = vpop.f32.mrb[27].mxu1 }
 0x9ef   : > { %v12685_v40 = vadd.f32 %v8055_v2, %v7991_v39  ;;  %v8058_v61 = vadd.f32 %v8057_v16, %v8056_v42 }
 0x9f1   : > { %14546 = vst [vmem:[#allocation45_spill] sm:$0xff] %v12685_v40  ;;  %v12687_v51 = vadd.f32 %v8058_v61, %v7994_v41  ;;  %v7995_v10 = vpop.f32.mrb[20].mxu0 }
 0x9f2   : > { %v7996_v50 = vpop.f32.mrb[21].mxu0 }
 0x9f3   : > { %14547 = vst [vmem:[#allocation82_spill] sm:$0xff] %v12687_v51  ;;  %v8059_v0 = vpop.f32.mrb[28].mxu1  ;;  %v7997_v21 = vadd.f32 %v7996_v50, %v7995_v10  ;;  %v7998_v9 = vpop.f32.mrb[22].mxu0 }
 0x9f4   : > { %v8060_v54 = vpop.f32.mrb[29].mxu1  ;;  %v7999_v27 = vpop.f32.mrb[23].mxu0 }
 0x9f5   : > { %v8061_v45 = vadd.f32 %v8060_v54, %v8059_v0  ;;  %v8062_v19 = vpop.f32.mrb[30].mxu1  ;;  %v8000_v23 = vadd.f32 %v7999_v27, %v7998_v9 }
 0x9f6   : > { %v8063_v26 = vpop.f32.mrb[31].mxu1 }
 0x9f7   : > { %v12689_v13 = vadd.f32 %v8061_v45, %v7997_v21  ;;  %v8064_v8 = vadd.f32 %v8063_v26, %v8062_v19 }
 0x9f9   : > { %14548 = vst [vmem:[#allocation19_spill] sm:$0xff] %v12689_v13  ;;  %v12691_v31 = vadd.f32 %v8064_v8, %v8000_v23  ;;  %v8001_v28 = vpop.f32.mrb[24].mxu0 }
 0x9fa   : > { %v8002_v22 = vpop.f32.mrb[25].mxu0 }
 0x9fb   : > { %14549 = vst [vmem:[#allocation86_spill] sm:$0xff] %v12691_v31  ;;  %v8065_v52 = vpop.f32.mrb[32].mxu1  ;;  %v8003_v47 = vadd.f32 %v8002_v22, %v8001_v28  ;;  %v8004_v15 = vpop.f32.mrb[26].mxu0 }
 0x9fc   : > { %v8066_v35 = vpop.f32.mrb[33].mxu1  ;;  %v8005_v37 = vpop.f32.mrb[27].mxu0 }
 0x9fd   : > { %v8067_v53 = vadd.f32 %v8066_v35, %v8065_v52  ;;  %v8068_v60 = vpop.f32.mrb[34].mxu1  ;;  %v8006_v29 = vadd.f32 %v8005_v37, %v8004_v15 }
 0x9fe   : > { %v8069_v32 = vpop.f32.mrb[35].mxu1 }
 0x9ff   : > { %v12693_v34 = vadd.f32 %v8067_v53, %v8003_v47  ;;  %v8070_v44 = vadd.f32 %v8069_v32, %v8068_v60 }
 0xa01   : > { %14550 = vst [vmem:[#allocation77_spill] sm:$0xff] %v12693_v34  ;;  %v12695_v24 = vadd.f32 %v8070_v44, %v8006_v29 }
 0xa03   : > { %14551 = vst [vmem:[#allocation88_spill] sm:$0xff] %v12695_v24  ;;  %v8007_v11 = vpop.f32.mrb[28].mxu0  ;;  %v8071_v6 = vpop.f32.mrb[36].mxu1 }
 0xa04   : > { %v8008_v33 = vpop.f32.mrb[29].mxu0  ;;  %v8072_v59 = vpop.f32.mrb[37].mxu1 }
 0xa05   : > { %v8009_v17 = vadd.f32 %v8008_v33, %v8007_v11  ;;  %v8073_v49 = vadd.f32 %v8072_v59, %v8071_v6  ;;  %v8010_v1 = vpop.f32.mrb[30].mxu0  ;;  %v8074_v39 = vpop.f32.mrb[38].mxu1 }
 0xa06   : > { %v8011_v55 = vpop.f32.mrb[31].mxu0  ;;  %v8075_v63 = vpop.f32.mrb[39].mxu1 }
 0xa07   : > { %v12697_v48 = vadd.f32 %v8073_v49, %v8009_v17  ;;  %v8012_v2 = vadd.f32 %v8011_v55, %v8010_v1  ;;  %v8076_v42 = vadd.f32 %v8075_v63, %v8074_v39 }
 0xa09   : > { %14552 = vst [vmem:[#allocation81_spill] sm:$0xff] %v12697_v48  ;;  %v12699_v41 = vadd.f32 %v8076_v42, %v8012_v2 }
 0xa0b   : > { %14553 = vst [vmem:[#allocation84_spill] sm:$0xff] %v12699_v41  ;;  %v8013_v16 = vpop.f32.mrb[32].mxu0  ;;  %v8077_v61 = vpop.f32.mrb[40].mxu1 }
 0xa0c   : > { %v8014_v10 = vpop.f32.mrb[33].mxu0  ;;  %v8078_v50 = vpop.f32.mrb[41].mxu1 }
 0xa0d   : > { %v8015_v0 = vadd.f32 %v8014_v10, %v8013_v16  ;;  %v8079_v21 = vadd.f32 %v8078_v50, %v8077_v61  ;;  %v8016_v9 = vpop.f32.mrb[34].mxu0  ;;  %v8080_v54 = vpop.f32.mrb[42].mxu1 }
 0xa0e   : > { %v8017_v27 = vpop.f32.mrb[35].mxu0  ;;  %v8081_v45 = vpop.f32.mrb[43].mxu1 }
 0xa0f   : > { %v12701_v19 = vadd.f32 %v8079_v21, %v8015_v0  ;;  %v8018_v23 = vadd.f32 %v8017_v27, %v8016_v9  ;;  %v8082_v26 = vadd.f32 %v8081_v45, %v8080_v54 }
 0xa11   : > { %14554 = vst [vmem:[#allocation70_spill] sm:$0xff] %v12701_v19  ;;  %v12703_v8 = vadd.f32 %v8082_v26, %v8018_v23 }
 0xa13   : > { %14555 = vst [vmem:[#allocation135_spill] sm:$0xff] %v12703_v8  ;;  %v8019_v28 = vpop.f32.mrb[36].mxu0  ;;  %v8083_v22 = vpop.f32.mrb[44].mxu1 }
 0xa14   : > { %v8020_v52 = vpop.f32.mrb[37].mxu0  ;;  %v8084_v47 = vpop.f32.mrb[45].mxu1 }
 0xa15   : > { %v8021_v15 = vadd.f32 %v8020_v52, %v8019_v28  ;;  %v8085_v35 = vadd.f32 %v8084_v47, %v8083_v22  ;;  %v8022_v37 = vpop.f32.mrb[38].mxu0  ;;  %v8086_v53 = vpop.f32.mrb[46].mxu1 }
 0xa16   : > { %v8023_v60 = vpop.f32.mrb[39].mxu0  ;;  %v8087_v29 = vpop.f32.mrb[47].mxu1 }
 0xa17   : > { %v12705_v32 = vadd.f32 %v8085_v35, %v8021_v15  ;;  %v8024_v44 = vadd.f32 %v8023_v60, %v8022_v37  ;;  %v8088_v11 = vadd.f32 %v8087_v29, %v8086_v53 }
 0xa19   : > { %14556 = vst [vmem:[#allocation137_spill] sm:$0xff] %v12705_v32  ;;  %v12707_v6 = vadd.f32 %v8088_v11, %v8024_v44 }
 0xa1b   : > { %14557 = vst [vmem:[#allocation152_spill] sm:$0xff] %v12707_v6 }
 0xa45   : > { %v8025_v33 = vpop.f32.mrb[40].mxu0 }
 0xa46   : > { %v8026_v59 = vpop.f32.mrb[41].mxu0 }
 0xa47   : > { %v8089_v17 = vpop.f32.mrb[48].mxu1  ;;  %v8027_v49 = vadd.f32 %v8026_v59, %v8025_v33  ;;  %v8028_v1 = vpop.f32.mrb[42].mxu0 }
 0xa48   : > { %v8090_v39 = vpop.f32.mrb[49].mxu1  ;;  %v8029_v55 = vpop.f32.mrb[43].mxu0 }
 0xa49   : > { %v8091_v63 = vadd.f32 %v8090_v39, %v8089_v17  ;;  %v8092_v2 = vpop.f32.mrb[50].mxu1  ;;  %v8030_v42 = vadd.f32 %v8029_v55, %v8028_v1  ;;  %v14560_v1 = vld [vmem:[#allocation119_spill] sm:$0xff] }
 0xa4a   : > { %v8093_v16 = vpop.f32.mrb[51].mxu1 }
 0xa4b   : > { %v12709_v61 = vadd.f32 %v8091_v63, %v8027_v49  ;;  %v8094_v10 = vadd.f32 %v8093_v16, %v8092_v2  ;;  %v14561_v2 = vld [vmem:[#allocation163_spill] sm:$0xff] }
 0xa4d   : > { %14558 = vst [vmem:[#allocation42_spill] sm:$0xff] %v12709_v61  ;;  %v12711_v50 = vadd.f32 %v8094_v10, %v8030_v42  ;;  %v12713_v0 = vpop.f32.mrb[44].mxu0 }
 0xa4e   : > { %v12715_v21 = vpop.f32.mrb[45].mxu0 }
 0xa4f   : > { %14559 = vst [vmem:[#allocation37_spill] sm:$0xff] %v12711_v50  ;;  %v12717_v9 = vpop.f32.mrb[52].mxu1  ;;  %v5856_v54 = vmax.f32 %v12713_v0, %v12715_v21  ;;  %v12721_v27 = vpop.f32.mrb[46].mxu0 }
 0xa50   : > { %v12723_v45 = vpop.f32.mrb[53].mxu1  ;;  %v12725_v23 = vpop.f32.mrb[47].mxu0 }
 0xa51   : > { %v5857_v26 = vmax.f32 %v5856_v54, %v12717_v9  ;;  %v12728_v28 = vpop.f32.mrb[54].mxu1  ;;  %v5861_v22 = vmax.f32 %v12721_v27, %v12725_v23 }
 0xa52   : > { %v12732_v52 = vpop.f32.mrb[55].mxu1 }
 0xa53   : > { %v5858_v47 = vmax.f32 %v5857_v26, %v12723_v45  ;;  %v5862_v15 = vmax.f32 %v5861_v22, %v12728_v28 }
 0xa55   : > { %v5863_v35 = vmax.f32 %v5862_v15, %v12732_v52  ;;  %5859 = vmax.xlane.f32.xlu1 %v5858_v47  ;;  %v12737_v37 = vpop.f32.mrb[48].mxu0 }
 0xa56   : > { %v12739_v53 = vpop.f32.mrb[49].mxu0 }
 0xa57   : > { %v12741_v60 = vpop.f32.mrb[56].mxu1  ;;  %v5866_v29 = vmax.f32 %v12737_v37, %v12739_v53  ;;  %5864 = vmax.xlane.f32.xlu0 %v5863_v35  ;;  %v12745_v44 = vpop.f32.mrb[50].mxu0 }
 0xa58   : > { %v12747_v11 = vpop.f32.mrb[57].mxu1  ;;  %v12749_v33 = vpop.f32.mrb[51].mxu0 }
 0xa59   : > { %v5867_v59 = vmax.f32 %v5866_v29, %v12741_v60  ;;  %v12752_v17 = vpop.f32.mrb[58].mxu1  ;;  %v5871_v49 = vmax.f32 %v12745_v44, %v12749_v33  ;;  %3840 = vadd.xlane.f32.xlu1 %v14560_v1 }
 0xa5a   : > { %v12757_v39 = vpop.f32.mrb[59].mxu1 }
 0xa5b   : > { %v5868_v55 = vmax.f32 %v5867_v59, %v12747_v11  ;;  %v5872_v63 = vmax.f32 %v5871_v49, %v12752_v17  ;;  %3835 = vadd.xlane.f32.xlu0 %v14561_v2  ;;  %v14562_v49 = vld [vmem:[#allocation71_spill] sm:$0xff]  ;;  %v14563_v2 = vld [vmem:[#allocation120_spill] sm:$0xff] }
 0xa5d   : > { %v5873_v42 = vmax.f32 %v5872_v63, %v12757_v39  ;;  %5869 = vmax.xlane.f32.xlu1 %v5868_v55  ;;  %v12763_v16 = vpop.f32.mrb[52].mxu0 }
 0xa5e   : > { %v12765_v10 = vpop.f32.mrb[53].mxu0 }
 0xa5f   : > { %v12767_v54 = vpop.f32.mrb[60].mxu1  ;;  %v5876_v26 = vmax.f32 %v12763_v16, %v12765_v10  ;;  %5874 = vmax.xlane.f32.xlu0 %v5873_v42  ;;  %v12771_v22 = vpop.f32.mrb[54].mxu0 }
 0xa60   : > { %v12773_v47 = vpop.f32.mrb[61].mxu1  ;;  %v12775_v15 = vpop.f32.mrb[55].mxu0 }
 0xa61   : > { %v5877_v35 = vmax.f32 %v5876_v26, %v12767_v54  ;;  %v12778_v29 = vpop.f32.mrb[62].mxu1  ;;  %v5881_v59 = vmax.f32 %v12771_v22, %v12775_v15  ;;  %3850 = vadd.xlane.f32.xlu1 %v14562_v49 }
 0xa62   : > { %v12783_v1 = vpop.f32.mrb[63].mxu1 }
 0xa63   : > { %v5878_v55 = vmax.f32 %v5877_v35, %v12773_v47  ;;  %v5882_v63 = vmax.f32 %v5881_v59, %v12778_v29  ;;  %3845 = vadd.xlane.f32.xlu0 %v14563_v2 }
 0xa65   : > { %v5883_v42 = vmax.f32 %v5882_v63, %v12783_v1  ;;  %5879 = vmax.xlane.f32.xlu1 %v5878_v55  ;;  %v12789_v61 = vpop.f32.mrb[56].mxu0 }
 0xa66   : > { %v12791_v26 = vpop.f32.mrb[57].mxu0 }
 0xa67   : > { %v12793_v50 = vpop.f32.mrb[64].mxu1  ;;  %v5886_v49 = vmax.f32 %v12789_v61, %v12791_v26  ;;  %5884 = vmax.xlane.f32.xlu0 %v5883_v42  ;;  %v12797_v32 = vpop.f32.mrb[58].mxu0 }
 0xa68   : > { %v12799_v35 = vpop.f32.mrb[65].mxu1  ;;  %v12801_v59 = vpop.f32.mrb[59].mxu0 }
 0xa69   : > { %v5887_v2 = vmax.f32 %v5886_v49, %v12793_v50  ;;  %v12804_v63 = vpop.f32.mrb[66].mxu1  ;;  %v5891_v55 = vmax.f32 %v12797_v32, %v12801_v59  ;;  %5004 = vadd.xlane.f32.xlu1 %v12401_v38 }
 0xa6a   : > { %v12809_v6 = vpop.f32.mrb[67].mxu1 }
 0xa6b   : > { %v5888_v19 = vmax.f32 %v5887_v2, %v12799_v35  ;;  %v5892_v42 = vmax.f32 %v5891_v55, %v12804_v63  ;;  %4999 = vadd.xlane.f32.xlu0 %v12372_v57 }
 0xa6d   : > { %v5893_v8 = vmax.f32 %v5892_v42, %v12809_v6  ;;  %5889 = vmax.xlane.f32.xlu1 %v5888_v19  ;;  %v12815_v48 = vpop.f32.mrb[60].mxu0 }
 0xa6e   : > { %v12817_v49 = vpop.f32.mrb[61].mxu0 }
 0xa6f   : > { %v12819_v41 = vpop.f32.mrb[68].mxu1  ;;  %v5896_v38 = vmax.f32 %v12815_v48, %v12817_v49  ;;  %5894 = vmax.xlane.f32.xlu0 %v5893_v8  ;;  %v12823_v24 = vpop.f32.mrb[62].mxu0 }
 0xa70   : > { %14564 = vst [vmem:[#allocation138_spill] sm:$0xff] %v12823_v24  ;;  %v12825_v2 = vpop.f32.mrb[69].mxu1  ;;  %v12827_v55 = vpop.f32.mrb[63].mxu0 }
 0xa71   : > { %14565 = vst [vmem:[#allocation139_spill] sm:$0xff] %v12827_v55  ;;  %v5897_v57 = vmax.f32 %v5896_v38, %v12819_v41  ;;  %v12830_v42 = vpop.f32.mrb[70].mxu1  ;;  %v5901_v19 = vmax.f32 %v12823_v24, %v12827_v55  ;;  %5014 = vadd.xlane.f32.xlu1 %v12446_v4  ;;  %v14577_v55 = vld [vmem:[#allocation123_spill] sm:$0xff] }
 0xa72   : > { %14566 = vst [vmem:[#allocation154_spill] sm:$0xff] %v12830_v42  ;;  %v12835_v34 = vpop.f32.mrb[71].mxu1 }
 0xa73   : > { %14567 = vst [vmem:[#allocation61_spill] sm:$0xff] %v12835_v34  ;;  %v5898_v31 = vmax.f32 %v5897_v57, %v12825_v2  ;;  %v5902_v8 = vmax.f32 %v5901_v19, %v12830_v42  ;;  %5009 = vadd.xlane.f32.xlu0 %v12461_v36 }
 0xa75   : > { %v5903_v13 = vmax.f32 %v5902_v8, %v12835_v34  ;;  %5899 = vmax.xlane.f32.xlu1 %v5898_v31  ;;  %v12841_v51 = vpop.f32.mrb[64].mxu0 }
 0xa76   : > { %14568 = vst [vmem:[#allocation159_spill] sm:$0xff] %v12841_v51  ;;  %v12843_v38 = vpop.f32.mrb[65].mxu0 }
 0xa77   : > { %14569 = vst [vmem:[#allocation143_spill] sm:$0xff] %v12843_v38  ;;  %v12845_v40 = vpop.f32.mrb[72].mxu1  ;;  %v5906_v4 = vmax.f32 %v12841_v51, %v12843_v38  ;;  %5904 = vmax.xlane.f32.xlu0 %v5903_v13  ;;  %v12849_v25 = vpop.f32.mrb[66].mxu0  ;;  %v14576_v51 = vld [vmem:[#allocation53_spill] sm:$0xff] }
 0xa78   : > { %14570 = vst [vmem:[#allocation157_spill] sm:$0xff] %v12845_v40  ;;  %14571 = vst [vmem:[#allocation23_spill] sm:$0xff] %v12849_v25  ;;  %v12851_v57 = vpop.f32.mrb[73].mxu1  ;;  %v12853_v19 = vpop.f32.mrb[67].mxu0 }
 0xa79   : > { %14572 = vst [vmem:[#allocation28_spill] sm:$0xff] %v12853_v19  ;;  %v5907_v36 = vmax.f32 %v5906_v4, %v12845_v40  ;;  %v12856_v8 = vpop.f32.mrb[74].mxu1  ;;  %v5911_v31 = vmax.f32 %v12849_v25, %v12853_v19  ;;  %3860 = vadd.xlane.f32.xlu1 %v14574_v43 }
 0xa7a   : > { %14573 = vst [vmem:[#allocation156_spill] sm:$0xff] %v12856_v8  ;;  %v12861_v34 = vpop.f32.mrb[75].mxu1 }
 0xa7b   : > { %14575 = vst [vmem:[#allocation36_spill] sm:$0xff] %v12861_v34  ;;  %v5908_v38 = vmax.f32 %v5907_v36, %v12851_v57  ;;  %v5912_v13 = vmax.f32 %v5911_v31, %v12856_v8  ;;  %3855 = vadd.xlane.f32.xlu0 %v14576_v51 }
 0xa7d   : > { %v5913_v42 = vmax.f32 %v5912_v13, %v12861_v34  ;;  %3870 = vadd.xlane.f32.xlu1 %v14577_v55  ;;  %v12868_v4 = vpop.f32.mrb[68].mxu0 }
 0xa7e   : > { %14578 = vst [vmem:[#allocation158_spill] sm:$0xff] %v12868_v4  ;;  %v12870_v40 = vpop.f32.mrb[69].mxu0 }
 0xa7f   : > { %14579 = vst [vmem:[#allocation72_spill] sm:$0xff] %v12870_v40  ;;  %v12872_v24 = vpop.f32.mrb[76].mxu1  ;;  %v5916_v43 = vmax.f32 %v12868_v4, %v12870_v40  ;;  %5909 = vmax.xlane.f32.xlu0 %v5908_v38  ;;  %v12876_v19 = vpop.f32.mrb[70].mxu0  ;;  %v14584_v40 = vld [vmem:[#allocation85_spill] sm:$0xff] }
 0xa80   : > { %14580 = vst [vmem:[#allocation73_spill] sm:$0xff] %v12872_v24  ;;  %v12878_v36 = vpop.f32.mrb[77].mxu1  ;;  %v12880_v31 = vpop.f32.mrb[71].mxu0 }
 0xa81   : > { %14581 = vst [vmem:[#allocation161_spill] sm:$0xff] %v12880_v31  ;;  %v5917_v51 = vmax.f32 %v5916_v43, %v12872_v24  ;;  %v12883_v13 = vpop.f32.mrb[78].mxu1  ;;  %v5921_v55 = vmax.f32 %v12876_v19, %v12880_v31  ;;  %5914 = vmax.xlane.f32.xlu1 %v5913_v42 }
 0xa82   : > { %14582 = vst [vmem:[#allocation6_spill] sm:$0xff] %v12883_v13  ;;  %v12887_v34 = vpop.f32.mrb[79].mxu1 }
 0xa83   : > { %14583 = vst [vmem:[#allocation35_spill] sm:$0xff] %v12887_v34  ;;  %v5918_v8 = vmax.f32 %v5917_v51, %v12878_v36  ;;  %v5922_v38 = vmax.f32 %v5921_v55, %v12883_v13  ;;  %3865 = vadd.xlane.f32.xlu0 %v14584_v40 }
 0xa85   : > { %v5923_v4 = vmax.f32 %v5922_v38, %v12887_v34  ;;  %5024 = vadd.xlane.f32.xlu1 %v12513_v20  ;;  %v12894_v25 = vpop.f32.mrb[72].mxu0 }
 0xa86   : > { %v12896_v43 = vpop.f32.mrb[73].mxu0 }
 0xa87   : > { %14585 = vst [vmem:[#allocation59_spill] sm:$0xff] %v12896_v43  ;;  %v12898_v24 = vpop.f32.mrb[80].mxu1  ;;  %v5926_v42 = vmax.f32 %v12894_v25, %v12896_v43  ;;  %5919 = vmax.xlane.f32.xlu0 %v5918_v8  ;;  %v12902_v31 = vpop.f32.mrb[74].mxu0 }
 0xa88   : > { %14586 = vst [vmem:[#allocation162_spill] sm:$0xff] %v12902_v31  ;;  %v12904_v51 = vpop.f32.mrb[81].mxu1  ;;  %v12906_v55 = vpop.f32.mrb[75].mxu0 }
 0xa89   : > { %14587 = vst [vmem:[#allocation145_spill] sm:$0xff] %v12906_v55  ;;  %v5927_v40 = vmax.f32 %v5926_v42, %v12898_v24  ;;  %v12909_v38 = vpop.f32.mrb[82].mxu1  ;;  %v5931_v20 = vmax.f32 %v12902_v31, %v12906_v55  ;;  %5924 = vmax.xlane.f32.xlu1 %v5923_v4  ;;  %v14588_v42 = vld [vmem:[#allocation121_spill] sm:$0xff]  ;;  %v14589_v55 = vld [vmem:[#allocation148_spill] sm:$0xff]  ;;  %v14591_v31 = vld [vmem:[#allocation78_spill] sm:$0xff] }
 0xa8a   : > { %v12913_v34 = vpop.f32.mrb[83].mxu1  ;;  %v14590_v4 = vld [vmem:[#allocation149_spill] sm:$0xff] }
 0xa8b   : > { %v5928_v13 = vmax.f32 %v5927_v40, %v12904_v51  ;;  %v5932_v8 = vmax.f32 %v5931_v20, %v12909_v38  ;;  %5019 = vadd.xlane.f32.xlu0 %v12540_v58  ;;  %v14592_v58 = vld [vmem:[#allocation83_spill] sm:$0xff] }
 0xa8d   : > { %v5933_v43 = vmax.f32 %v5932_v8, %v12913_v34  ;;  %5034 = vadd.xlane.f32.xlu1 %v12562_v5  ;;  %v14593_v5 = vld [vmem:[#allocation124_spill] sm:$0xff] }
 0xa8f   : > { %5929 = vmax.xlane.f32.xlu0 %v5928_v13  ;;  %v14595_v13 = vld [vmem:[#allocation76_spill] sm:$0xff] }
 0xa91   : > { %3880 = vadd.xlane.f32.xlu1 %v14588_v42 }
 0xa93   : > { %5029 = vadd.xlane.f32.xlu0 %v12565_v56  ;;  %v14594_v56 = vld [vmem:[#allocation87_spill] sm:$0xff] }
 0xa95   : > { %5934 = vmax.xlane.f32.xlu1 %v5933_v43  ;;  %v14601_v43 = vld [vmem:[#allocation56_spill] sm:$0xff] }
 0xa97   : > { %3875 = vadd.xlane.f32.xlu0 %v14589_v55  ;;  %v14602_v55 = vld [vmem:[#allocation96_spill] sm:$0xff] }
 0xa99   : > { %3890 = vadd.xlane.f32.xlu1 %v14590_v4 }
 0xa9b   : > { %3885 = vadd.xlane.f32.xlu0 %v14591_v31  ;;  %v14600_v31 = vld [vmem:[#allocation94_spill] sm:$0xff] }
 0xa9d   : > { %5044 = vadd.xlane.f32.xlu1 %v12569_v62  ;;  %v14596_v62 = vld [vmem:[#allocation93_spill] sm:$0xff] }
 0xa9f   : > { %5039 = vadd.xlane.f32.xlu0 %v12572_v46  ;;  %v14597_v46 = vld [vmem:[#allocation91_spill] sm:$0xff] }
 0xaa1   : > { %5054 = vadd.xlane.f32.xlu1 %v12578_v12  ;;  %v14599_v12 = vld [vmem:[#allocation92_spill] sm:$0xff] }
 0xaa3   : > { %5049 = vadd.xlane.f32.xlu0 %v12574_v14  ;;  %v14598_v14 = vld [vmem:[#allocation25_spill] sm:$0xff] }
 0xaa5   : > { %3900 = vadd.xlane.f32.xlu1 %v14592_v58 }
 0xaa7   : > { %3895 = vadd.xlane.f32.xlu0 %v14593_v5 }
 0xaa9   : > { %3910 = vadd.xlane.f32.xlu1 %v14594_v56 }
 0xaab   : > { %3905 = vadd.xlane.f32.xlu0 %v14595_v13 }
 0xaad   : > { %5064 = vadd.xlane.f32.xlu1 %v12591_v18  ;;  %v14603_v18 = vld [vmem:[#allocation97_spill] sm:$0xff] }
 0xaaf   : > { %5059 = vadd.xlane.f32.xlu0 %v12587_v3 }
 0xab1   : > { %5074 = vadd.xlane.f32.xlu1 %v12622_v7 }
 0xab3   : > { %5069 = vadd.xlane.f32.xlu0 %v12617_v30 }
 0xab5   : > { %2764 = vadd.xlane.f32.xlu1 %v14596_v62 }
 0xab7   : > { %2759 = vadd.xlane.f32.xlu0 %v14597_v46 }
 0xab9   : > { %2774 = vadd.xlane.f32.xlu1 %v14598_v14 }
 0xabb   : > { %2769 = vadd.xlane.f32.xlu0 %v14599_v12 }
 0xabd   : > { %2784 = vadd.xlane.f32.xlu1 %v14600_v31 }
 0xabf   : > { %2779 = vadd.xlane.f32.xlu0 %v14601_v43 }
 0xac1   : > { %2794 = vadd.xlane.f32.xlu1 %v14602_v55 }
 0xac3   : > { %2789 = vadd.xlane.f32.xlu0 %v14603_v18 }
 0xae2   : > { %v5860_v3 = vpop.xlane.xlu1 %5859 }
 0xae3   : > { %v5936_v7 = vsub.f32 %v12713_v0, %v5860_v3  ;;  %v5937_v30 = vsub.f32 %v12715_v21, %v5860_v3  ;;  %v5938_v40 = vsub.f32 %v12717_v9, %v5860_v3  ;;  %v5939_v20 = vsub.f32 %v12723_v45, %v5860_v3 }
 0xae4   : > { %v5865_v8 = vpop.xlane.xlu0 %5864 }
 0xae5   : > { %v6000_v42 = vmul.f32 1.442695, %v5936_v7  ;;  %v6002_v4 = vmul.f32 1.442695, %v5937_v30  ;;  %v6004_v58 = vmul.f32 1.442695, %v5938_v40  ;;  %v5940_v5 = vsub.f32 %v12721_v27, %v5865_v8 }
 0xae6   : > { %v6006_v56 = vmul.f32 1.442695, %v5939_v20  ;;  %v5941_v13 = vsub.f32 %v12725_v23, %v5865_v8  ;;  %v5942_v62 = vsub.f32 %v12728_v28, %v5865_v8  ;;  %v5943_v46 = vsub.f32 %v12732_v52, %v5865_v8  ;;  %v3841_v0 = vpop.xlane.xlu1 %3840 }
 0xae7   : > { %9229 = vpow2.f32 %v6000_v42  ;;  %v6008_v21 = vmul.f32 1.442695, %v5940_v5 }
 0xae8   : > { %9231 = vpow2.f32 %v6002_v4  ;;  %v6010_v9 = vmul.f32 1.442695, %v5941_v13  ;;  %v3836_v14 = vpop.xlane.xlu0 %3835  ;;  %v6012_v45 = vmul.f32 1.442695, %v5942_v62  ;;  %v6014_v12 = vmul.f32 1.442695, %v5943_v46 }
 0xae9   : > { %9233 = vpow2.f32 %v6004_v58 }
 0xaea   : > { %9235 = vpow2.f32 %v6006_v56  ;;  %v5870_v31 = vpop.xlane.xlu1 %5869 }
 0xaeb   : > { %9237 = vpow2.f32 %v6008_v21  ;;  %v5944_v27 = vsub.f32 %v12737_v37, %v5870_v31  ;;  %v5945_v23 = vsub.f32 %v12739_v53, %v5870_v31  ;;  %v5946_v28 = vsub.f32 %v12741_v60, %v5870_v31 }
 0xaec   : > { %9239 = vpow2.f32 %v6010_v9  ;;  %v5947_v52 = vsub.f32 %v12747_v11, %v5870_v31  ;;  %v5875_v43 = vpop.xlane.xlu0 %5874 }
 0xaed   : > { %9241 = vpow2.f32 %v6012_v45  ;;  %v6016_v55 = vmul.f32 1.442695, %v5944_v27  ;;  %v6018_v18 = vmul.f32 1.442695, %v5945_v23  ;;  %v5948_v3 = vsub.f32 %v12745_v44, %v5875_v43 }
 0xaee   : > { %9243 = vpow2.f32 %v6014_v12  ;;  %v5949_v7 = vsub.f32 %v12749_v33, %v5875_v43  ;;  %v3851_v30 = vpop.xlane.xlu1 %3850  ;;  %v6020_v40 = vmul.f32 1.442695, %v5946_v28  ;;  %v5950_v37 = vsub.f32 %v12752_v17, %v5875_v43 }
 0xaef   : > { %9245 = vrcp.f32 %v3841_v0  ;;  %v6022_v53 = vmul.f32 1.442695, %v5947_v52  ;;  %v5951_v60 = vsub.f32 %v12757_v39, %v5875_v43  ;;  %v6024_v8 = vmul.f32 1.442695, %v5948_v3 }
 0xaf0   : > { %9247 = vrcp.f32 %v3836_v14  ;;  %v3846_v20 = vpop.xlane.xlu0 %3845  ;;  %v6026_v4 = vmul.f32 1.442695, %v5949_v7  ;;  %v6028_v58 = vmul.f32 1.442695, %v5950_v37  ;;  %v14604_v37 = vld [vmem:[#allocation125_spill] sm:$0xff] }
 0xaf1   : > { %v9230_v11 = vpop.eup %9229  ;;  %9249 = vpow2.f32 %v6016_v55  ;;  %v6030_v39 = vmul.f32 1.442695, %v5951_v60 }
 0xaf2   : > { %v9232_v42 = vpop.eup %9231  ;;  %9251 = vpow2.f32 %v6018_v18  ;;  %v5880_v44 = vpop.xlane.xlu1 %5879 }
 0xaf3   : > { %v12961_v5 = vpop.eup %9233  ;;  %9253 = vpow2.f32 %v6020_v40  ;;  %v5952_v33 = vsub.f32 %v12763_v16, %v5880_v44  ;;  %v5953_v17 = vsub.f32 %v12765_v10, %v5880_v44  ;;  %v5954_v56 = vsub.f32 %v12767_v54, %v5880_v44 }
 0xaf4   : > { %v12966_v13 = vpop.eup %9235  ;;  %9255 = vpow2.f32 %v6022_v53  ;;  %v5955_v62 = vsub.f32 %v12773_v47, %v5880_v44  ;;  %v5885_v46 = vpop.xlane.xlu0 %5884  ;;  %v12969_v0 = vadd.f32 %v9232_v42, %v9230_v11 }
 0xaf5   : > { %v9238_v21 = vpop.eup %9237  ;;  %9257 = vpow2.f32 %v6024_v8  ;;  %v6032_v45 = vmul.f32 1.442695, %v5952_v33  ;;  %v5956_v16 = vsub.f32 %v12771_v22, %v5885_v46  ;;  %v6034_v12 = vmul.f32 1.442695, %v5953_v17  ;;  %v14605_v8 = vld [vmem:[#allocation80_spill] sm:$0xff] }
 0xaf6   : > { %v9240_v9 = vpop.eup %9239  ;;  %v6208_v14 = vpack.c.bf16 %v9238_v21, %v9230_v11  ;;  %9259 = vpow2.f32 %v6026_v4  ;;  %v12972_v10 = vpop.xlane.xlu1 %5004  ;;  %v6036_v31 = vmul.f32 1.442695, %v5954_v56  ;;  %v6038_v27 = vmul.f32 1.442695, %v5955_v62 }
 0xaf7   : > { %v9242_v54 = vpop.eup %9241  ;;  %9261 = vpow2.f32 %v6028_v58  ;;  %v5957_v28 = vsub.f32 %v12775_v15, %v5885_v46  ;;  %v6209_v52 = vpack.c.bf16 %v9240_v9, %v9232_v42  ;;  %v5958_v22 = vsub.f32 %v12778_v29, %v5885_v46 }
 0xaf8   : > { %v9244_v23 = vpop.eup %9243  ;;  %v6210_v47 = vpack.c.bf16 %v9242_v54, %v12961_v5  ;;  %9263 = vpow2.f32 %v6030_v39  ;;  %v12976_v43 = vpop.xlane.xlu0 %4999  ;;  %v5959_v18 = vsub.f32 %v12783_v1, %v5885_v46  ;;  %v6040_v3 = vmul.f32 1.442695, %v5956_v16 }
 0xaf9   : > { %v9246_v55 = vpop.eup %9245  ;;  %9265 = vrcp.f32 %v3851_v30  ;;  %6368 = vmatprep.mubr.bf16.mxu0 %v6209_v52  ;;  %v6211_v40 = vpack.c.bf16 %v9244_v23, %v12966_v13  ;;  %v6133_v11 = vadd.f32 %v9240_v9, %v9238_v21  ;;  %v6044_v33 = vmul.f32 1.442695, %v5958_v22 }
 0xafa   : > { %v9248_v7 = vpop.eup %9247  ;;  %9267 = vrcp.f32 %v3846_v20  ;;  %v4283_v53 = vmul.f32 %v9246_v55, %v14604_v37  ;;  %v5890_v60 = vpop.xlane.xlu1 %5889  ;;  %6369 = vmatmul.mubr.bf16.vlgmr.msra.gmra.mrb[76].mxu0 %v6208_v14  ;;  %v6042_v20 = vmul.f32 1.442695, %v5957_v28  ;;  %v6046_v39 = vmul.f32 1.442695, %v5959_v18  ;;  %v14607_v37 = vld [vmem:[#allocation150_spill] sm:$0xff] }
 0xafb   : > { %v12982_v15 = vpop.eup %9249  ;;  %9269 = vpow2.f32 %v6032_v45  ;;  %v4282_v30 = vmul.f32 %v9248_v7, %v14605_v8  ;;  %v5960_v29 = vsub.f32 %v12789_v61, %v5890_v60  ;;  %v5961_v1 = vsub.f32 %v12791_v26, %v5890_v60  ;;  %6465 = vmatprep.mubr.bf16.mxu1 %v6211_v40 }
 0xafc   : > { %v12987_v42 = vpop.eup %9251  ;;  %9271 = vpow2.f32 %v6034_v12  ;;  %v5895_v4 = vpop.xlane.xlu0 %5894  ;;  %v6134_v58 = vadd.f32 %v9242_v54, %v6133_v11  ;;  %6466 = vmatmul.mubr.bf16.vlgmr.msra.gmra.mrb[84].mxu1 %v6210_v47  ;;  %v5962_v61 = vsub.f32 %v12793_v50, %v5890_v60  ;;  %v5963_v46 = vsub.f32 %v12799_v35, %v5890_v60 }
 0xafd   : > { %v12989_v44 = vpop.eup %9253  ;;  %9273 = vpow2.f32 %v6036_v31  ;;  %v8723_v17 = vpack.i.bf16 %v4283_v53, %v4282_v30  ;;  %v6048_v21 = vmul.f32 1.442695, %v5960_v29  ;;  %v6050_v9 = vmul.f32 1.442695, %v5961_v1 }
 0xafe   : > { %v12991_v56 = vpop.eup %9255  ;;  %9275 = vpow2.f32 %v6038_v27  ;;  %v12994_v26 = vpop.xlane.xlu1 %5014  ;;  %v5964_v16 = vsub.f32 %v12797_v32, %v5895_v4  ;;  %v13005_v54 = vadd.f32 %v9244_v23, %v6134_v58  ;;  %v5965_v31 = vsub.f32 %v12801_v59, %v5895_v4 }
 0xaff   : > { %v12996_v62 = vpop.eup %9257  ;;  %9277 = vpow2.f32 %v6040_v3  ;;  %8724 = vrot.lane.b32.xlu0 %v8723_v17, %s9549_s0  ;;  %v5966_v27 = vsub.f32 %v12804_v63, %v5895_v4  ;;  %v5967_v35 = vsub.f32 %v12809_v6, %v5895_v4  ;;  %v6129_v23 = vadd.f32 %v12961_v5, %v12969_v0 }
 0xb00   : > { %v9260_v14 = vpop.eup %9259  ;;  %v6212_v45 = vpack.c.bf16 %v12996_v62, %v12982_v15  ;;  %9279 = vpow2.f32 %v6042_v20  ;;  %v13003_v50 = vpop.xlane.xlu0 %5009  ;;  %v6052_v59 = vmul.f32 1.442695, %v5962_v61  ;;  %v6054_v22 = vmul.f32 1.442695, %v5963_v46  ;;  %v14608_v61 = vld [vmem:[#allocation138_spill] sm:$0xff]  ;;  %v14609_v46 = vld [vmem:[#allocation139_spill] sm:$0xff] }
 0xb01   : > { %v9262_v12 = vpop.eup %9261  ;;  %9281 = vpow2.f32 %v6044_v33  ;;  %v6213_v52 = vpack.c.bf16 %v9260_v14, %v12987_v42  ;;  %v6056_v0 = vmul.f32 1.442695, %v5964_v16  ;;  %v6058_v60 = vmul.f32 1.442695, %v5965_v31  ;;  %v14610_v16 = vld [vmem:[#allocation154_spill] sm:$0xff] }
 0xb02   : > { %v13010_v47 = vpop.eup %9263  ;;  %v6214_v28 = vpack.c.bf16 %v9262_v12, %v12989_v44  ;;  %9283 = vpow2.f32 %v6046_v39  ;;  %v13014_v32 = vpop.xlane.xlu1 %5899  ;;  %v6060_v11 = vmul.f32 1.442695, %v5966_v27  ;;  %v6062_v8 = vmul.f32 1.442695, %v5967_v35 }
 0xb03   : > { %v9266_v55 = vpop.eup %9265  ;;  %9285 = vrcp.f32 %v12972_v10  ;;  %v6215_v63 = vpack.c.bf16 %v13010_v47, %v12991_v56  ;;  %6376 = vmatprep.mubr.bf16.mxu0 %v6213_v52  ;;  %v5968_v18 = vsub.f32 %v12815_v48, %v13014_v32  ;;  %v5969_v3 = vsub.f32 %v12817_v49, %v13014_v32  ;;  %v14606_v10 = vld [vmem:[#allocation126_spill] sm:$0xff] }
 0xb04   : > { %v9268_v6 = vpop.eup %9267  ;;  %9287 = vrcp.f32 %v12976_v43  ;;  %v13026_v7 = vpop.xlane.xlu0 %5904  ;;  %6377 = vmatmul.mubr.bf16.gmra.mrb[80].mxu0 %v6212_v45  ;;  %v4285_v53 = vmul.f32 %v9266_v55, %v14607_v37  ;;  %v5970_v29 = vsub.f32 %v12819_v41, %v13014_v32  ;;  %v5971_v1 = vsub.f32 %v12825_v2, %v13014_v32  ;;  %v14614_v37 = vld [vmem:[#allocation159_spill] sm:$0xff] }
 0xb05   : > { %v9270_v5 = vpop.eup %9269  ;;  %9289 = vpow2.f32 %v6048_v21  ;;  %6473 = vmatprep.mubr.bf16.mxu1 %v6215_v63  ;;  %v4284_v40 = vmul.f32 %v9268_v6, %v14606_v10  ;;  %v6064_v4 = vmul.f32 1.442695, %v5968_v18  ;;  %v6066_v58 = vmul.f32 1.442695, %v5969_v3  ;;  %v14613_v10 = vld [vmem:[#allocation79_spill] sm:$0xff] }
 0xb06   : > { %v9272_v43 = vpop.eup %9271  ;;  %9291 = vpow2.f32 %v6050_v9  ;;  %6474 = vmatmul.mubr.bf16.gmra.mrb[88].mxu1 %v6214_v28  ;;  %v13030_v48 = vpop.xlane.xlu1 %3860  ;;  %v13043_v17 = vadd.f32 %v12966_v13, %v6129_v23  ;;  %v5972_v41 = vsub.f32 %v14608_v61, %v13026_v7  ;;  %v5973_v2 = vsub.f32 %v14609_v46, %v13026_v7 }
 0xb07   : > { %v13032_v49 = vpop.eup %9273  ;;  %9293 = vpow2.f32 %v6052_v59  ;;  %v8728_v30 = vpack.i.bf16 %v4285_v53, %v4284_v40  ;;  %v6143_v21 = vadd.f32 %v9260_v14, %v12996_v62  ;;  %v5974_v31 = vsub.f32 %v14610_v16, %v13026_v7 }
 0xb08   : > { %v13038_v20 = vpop.eup %9275  ;;  %9295 = vpow2.f32 %v6054_v22  ;;  %v13040_v33 = vpop.xlane.xlu0 %3855  ;;  %v6138_v27 = vadd.f32 %v12987_v42, %v12982_v15  ;;  %v13061_v59 = vadd.f32 %v9272_v43, %v9270_v5  ;;  %v6068_v6 = vmul.f32 1.442695, %v5970_v29  ;;  %v14611_v22 = vld [vmem:[#allocation61_spill] sm:$0xff] }
 0xb09   : > { %v9278_v39 = vpop.eup %9277  ;;  %9297 = vpow2.f32 %v6056_v0  ;;  %8729 = vrot.lane.b32.xlu1 %v8728_v30, %s9549_s0  ;;  %v6144_v52 = vadd.f32 %v9262_v12, %v6143_v21  ;;  %v6070_v12 = vmul.f32 1.442695, %v5971_v1  ;;  %v5975_v18 = vsub.f32 %v14611_v22, %v13026_v7  ;;  %v14615_v7 = vld [vmem:[#allocation143_spill] sm:$0xff]  ;;  %v14616_v1 = vld [vmem:[#allocation157_spill] sm:$0xff]  ;;  %v14620_v22 = vld [vmem:[#allocation36_spill] sm:$0xff] }
 0xb0a   : > { %v9280_v9 = vpop.eup %9279  ;;  %v6216_v45 = vpack.c.bf16 %v9278_v39, %v9270_v5  ;;  %9299 = vpow2.f32 %v6058_v60  ;;  %v13053_v13 = vpop.xlane.xlu1 %3870  ;;  %v6139_v55 = vadd.f32 %v12989_v44, %v6138_v27  ;;  %v6072_v3 = vmul.f32 1.442695, %v5972_v41 }
 0xb0b   : > { %v9282_v35 = vpop.eup %9281  ;;  %9301 = vpow2.f32 %v6060_v11  ;;  %v6217_v28 = vpack.c.bf16 %v9280_v9, %v9272_v43  ;;  %v6153_v32 = vadd.f32 %v9280_v9, %v9278_v39  ;;  %v6076_v60 = vmul.f32 1.442695, %v5974_v31 }
 0xb0c   : > { %v13057_v23 = vpop.eup %9283  ;;  %v6218_v62 = vpack.c.bf16 %v9282_v35, %v13032_v49  ;;  %9303 = vpow2.f32 %v6062_v8  ;;  %v5910_v14 = vpop.xlane.xlu0 %5909  ;;  %v6078_v41 = vmul.f32 1.442695, %v5975_v18  ;;  %v13090_v46 = vadd.f32 %v13010_v47, %v6144_v52 }
 0xb0d   : > { %v9286_v63 = vpop.eup %9285  ;;  %9305 = vrcp.f32 %v12994_v26  ;;  %6384 = vmatprep.mubr.bf16.mxu0 %v6217_v28  ;;  %v6219_v15 = vpack.c.bf16 %v13057_v23, %v13038_v20  ;;  %v14612_v26 = vld [vmem:[#allocation11_spill] sm:$0xff]  ;;  %v5976_v53 = vsub.f32 %v14614_v37, %v5910_v14  ;;  %v5977_v11 = vsub.f32 %v14615_v7, %v5910_v14 }
 0xb0e   : > { %v9288_v42 = vpop.eup %9287  ;;  %9307 = vrcp.f32 %v13003_v50  ;;  %6385 = vmatmul.mubr.bf16.gmra.mrb[84].mxu0 %v6216_v45  ;;  %v13069_v44 = vpop.xlane.xlu1 %5914  ;;  %v5415_v40 = vmul.f32 %v9286_v63, %v14613_v10  ;;  %v6074_v50 = vmul.f32 1.442695, %v5973_v2  ;;  %v5979_v39 = vsub.f32 %v12851_v57, %v5910_v14 }
 0xb0f   : > { %v13071_v5 = vpop.eup %9289  ;;  %9309 = vpow2.f32 %v6064_v4  ;;  %6481 = vmatprep.mubr.bf16.mxu1 %v6219_v15  ;;  %v5414_v0 = vmul.f32 %v9288_v42, %v14612_v26  ;;  %v5978_v4 = vsub.f32 %v14616_v1, %v5910_v14  ;;  %v6080_v21 = vmul.f32 1.442695, %v5976_v53  ;;  %v14619_v42 = vld [vmem:[#allocation156_spill] sm:$0xff]  ;;  %v14623_v53 = vld [vmem:[#allocation73_spill] sm:$0xff] }
 0xb10   : > { %v13076_v43 = vpop.eup %9291  ;;  %9311 = vpow2.f32 %v6066_v58  ;;  %6482 = vmatmul.mubr.bf16.gmra.mrb[92].mxu1 %v6218_v62  ;;  %v13079_v8 = vpop.xlane.xlu0 %3865  ;;  %v13096_v9 = vadd.f32 %v12991_v56, %v6139_v55  ;;  %v6082_v16 = vmul.f32 1.442695, %v5977_v11  ;;  %v6154_v47 = vadd.f32 %v9282_v35, %v6153_v32  ;;  %v14617_v55 = vld [vmem:[#allocation23_spill] sm:$0xff]  ;;  %v14625_v11 = vld [vmem:[#allocation82_spill] sm:$0xff] }
 0xb11   : > { %v13081_v30 = vpop.eup %9293  ;;  %9313 = vpow2.f32 %v6068_v6  ;;  %v8733_v29 = vpack.i.bf16 %v5415_v40, %v5414_v0  ;;  %v6084_v28 = vmul.f32 1.442695, %v5978_v4  ;;  %v6086_v52 = vmul.f32 1.442695, %v5979_v39  ;;  %v14618_v6 = vld [vmem:[#allocation28_spill] sm:$0xff]  ;;  %v14621_v0 = vld [vmem:[#allocation158_spill] sm:$0xff] }
 0xb12   : > { %v13085_v61 = vpop.eup %9295  ;;  %9315 = vpow2.f32 %v6070_v12  ;;  %v13087_v58 = vpop.xlane.xlu1 %5024  ;;  %v5980_v63 = vsub.f32 %v14617_v55, %v13069_v44  ;;  %v5981_v35 = vsub.f32 %v14618_v6, %v13069_v44  ;;  %v5982_v12 = vsub.f32 %v14619_v42, %v13069_v44  ;;  %v14622_v40 = vld [vmem:[#allocation72_spill] sm:$0xff] }
 0xb13   : > { %v13092_v2 = vpop.eup %9297  ;;  %9317 = vpow2.f32 %v6072_v3  ;;  %8734 = vrot.lane.b32.xlu1 %v8733_v29, %s9550_s19  ;;  %v5983_v18 = vsub.f32 %v14620_v22, %v13069_v44  ;;  %v14624_v44 = vld [vmem:[#allocation45_spill] sm:$0xff] }
 0xb14   : > { %v13098_v57 = vpop.eup %9299  ;;  %v6220_v45 = vpack.c.bf16 %v13092_v2, %v13071_v5  ;;  %9319 = vpow2.f32 %v6074_v50  ;;  %v5920_v31 = vpop.xlane.xlu0 %5919  ;;  %v6088_v4 = vmul.f32 1.442695, %v5980_v63  ;;  %v6090_v39 = vmul.f32 1.442695, %v5981_v35 }
 0xb15   : > { %v13102_v27 = vpop.eup %9301  ;;  %9321 = vpow2.f32 %v6076_v60  ;;  %v6221_v62 = vpack.c.bf16 %v13098_v57, %v13076_v43  ;;  %v5984_v10 = vsub.f32 %v14621_v0, %v5920_v31  ;;  %v5985_v37 = vsub.f32 %v14622_v40, %v5920_v31 }
 0xb16   : > { %v13106_v14 = vpop.eup %9303  ;;  %v6222_v56 = vpack.c.bf16 %v13102_v27, %v13081_v30  ;;  %9323 = vpow2.f32 %v6078_v41  ;;  %v13114_v32 = vpop.xlane.xlu1 %5924  ;;  %v6094_v55 = vmul.f32 1.442695, %v5983_v18 }
 0xb17   : > { %v9306_v15 = vpop.eup %9305  ;;  %9325 = vrcp.f32 %v13030_v48  ;;  %6392 = vmatprep.mubr.bf16.mxu0 %v6221_v62  ;;  %v6223_v3 = vpack.c.bf16 %v13106_v14, %v13085_v61  ;;  %v5986_v48 = vsub.f32 %v14623_v53, %v5920_v31 }
 0xb18   : > { %v9308_v26 = vpop.eup %9307  ;;  %9327 = vrcp.f32 %v13040_v33  ;;  %6393 = vmatmul.mubr.bf16.gmra.mrb[88].mxu0 %v6220_v45  ;;  %v13127_v50 = vpop.xlane.xlu0 %5019  ;;  %v5417_v29 = vmul.f32 %v9306_v15, %v14625_v11  ;;  %v5987_v33 = vsub.f32 %v12878_v36, %v5920_v31  ;;  %v13140_v45 = vadd.f32 %v13057_v23, %v6154_v47 }
 0xb19   : > { %v13129_v60 = vpop.eup %9309  ;;  %9329 = vrcp.f32 %v13053_v13  ;;  %6489 = vmatprep.mubr.bf16.mxu1 %v6223_v3  ;;  %v5416_v7 = vmul.f32 %v9308_v26, %v14624_v44  ;;  %v6092_v13 = vmul.f32 1.442695, %v5982_v12  ;;  %v6096_v36 = vmul.f32 1.442695, %v5984_v10  ;;  %v14628_v3 = vld [vmem:[#allocation35_spill] sm:$0xff] }
 0xb1a   : > { %v13135_v1 = vpop.eup %9311  ;;  %9331 = vpow2.f32 %v6080_v21  ;;  %6490 = vmatmul.mubr.bf16.gmra.mrb[96].mxu1 %v6222_v56  ;;  %v13137_v41 = vpop.xlane.xlu1 %5034  ;;  %v6098_v31 = vmul.f32 1.442695, %v5985_v37  ;;  %v6149_v56 = vadd.f32 %v13032_v49, %v13061_v59  ;;  %v6100_v23 = vmul.f32 1.442695, %v5986_v48  ;;  %v14629_v37 = vld [vmem:[#allocation59_spill] sm:$0xff] }
 0xb1b   : > { %v13142_v62 = vpop.eup %9313  ;;  %9333 = vpow2.f32 %v6082_v16  ;;  %v8738_v6 = vpack.i.bf16 %v5417_v29, %v5416_v7  ;;  %v6102_v47 = vmul.f32 1.442695, %v5987_v33  ;;  %v5988_v16 = vsub.f32 %v12876_v19, %v13114_v32 }
 0xb1c   : > { %v13144_v15 = vpop.eup %9315  ;;  %9335 = vpow2.f32 %v6084_v28  ;;  %v5930_v21 = vpop.xlane.xlu0 %5929  ;;  %v14626_v28 = vld [vmem:[#allocation161_spill] sm:$0xff]  ;;  %v13157_v49 = vadd.f32 %v13038_v20, %v6149_v56  ;;  %v5991_v19 = vsub.f32 %v14628_v3, %v13114_v32  ;;  %v6158_v33 = vadd.f32 %v13076_v43, %v13071_v5 }
 0xb1d   : > { %v9318_v63 = vpop.eup %9317  ;;  %9337 = vpow2.f32 %v6086_v52  ;;  %8739 = vrot.lane.b32.xlu0 %v8738_v6, %s9550_s19  ;;  %v5989_v12 = vsub.f32 %v14626_v28, %v13114_v32  ;;  %v14627_v52 = vld [vmem:[#allocation6_spill] sm:$0xff]  ;;  %v5992_v40 = vsub.f32 %v12894_v25, %v5930_v21  ;;  %v5993_v53 = vsub.f32 %v14629_v37, %v5930_v21 }
 0xb1e   : > { %v9320_v35 = vpop.eup %9319  ;;  %v6224_v42 = vpack.c.bf16 %v9318_v63, %v13129_v60  ;;  %9339 = vpow2.f32 %v6088_v4  ;;  %v13154_v22 = vpop.xlane.xlu1 %3880  ;;  %v5990_v18 = vsub.f32 %v14627_v52, %v13114_v32  ;;  %v5994_v7 = vsub.f32 %v12898_v24, %v5930_v21 }
 0xb1f   : > { %v9322_v59 = vpop.eup %9321  ;;  %9341 = vpow2.f32 %v6090_v39  ;;  %v6225_v26 = vpack.c.bf16 %v9320_v35, %v13135_v1  ;;  %v6163_v32 = vadd.f32 %v13098_v57, %v13092_v2  ;;  %v5995_v25 = vsub.f32 %v12904_v51, %v5930_v21  ;;  %v14630_v51 = vld [vmem:[#allocation127_spill] sm:$0xff] }
 0xb20   : > { %v9324_v0 = vpop.eup %9323  ;;  %v6226_v10 = vpack.c.bf16 %v9322_v59, %v13142_v62  ;;  %9343 = vpow2.f32 %v6092_v13  ;;  %v13167_v20 = vpop.xlane.xlu0 %5029  ;;  %v6173_v4 = vadd.f32 %v9320_v35, %v9318_v63  ;;  %v6104_v13 = vmul.f32 1.442695, %v5988_v16  ;;  %v14631_v21 = vld [vmem:[#allocation151_spill] sm:$0xff] }
 0xb21   : > { %v9326_v48 = vpop.eup %9325  ;;  %9345 = vpow2.f32 %v6094_v55  ;;  %6400 = vmatprep.mubr.bf16.mxu0 %v6225_v26  ;;  %v6227_v44 = vpack.c.bf16 %v9324_v0, %v13144_v15  ;;  %v6106_v24 = vmul.f32 1.442695, %v5989_v12  ;;  %v6108_v55 = vmul.f32 1.442695, %v5990_v18 }
 0xb22   : > { %v9328_v11 = vpop.eup %9327  ;;  %9347 = vrcp.f32 %v13079_v8  ;;  %6401 = vmatmul.mubr.bf16.gmra.mrb[92].mxu0 %v6224_v42  ;;  %v13175_v29 = vpop.xlane.xlu1 %5934  ;;  %v6110_v57 = vmul.f32 1.442695, %v5991_v19  ;;  %v13186_v56 = vmul.f32 %v9326_v48, %v14631_v21  ;;  %v6112_v43 = vmul.f32 1.442695, %v5992_v40 }
 0xb23   : > { %v9330_v39 = vpop.eup %9329  ;;  %9349 = vrcp.f32 %v13087_v58  ;;  %6497 = vmatprep.mubr.bf16.mxu1 %v6227_v44  ;;  %v13183_v6 = vmul.f32 %v9328_v11, %v14630_v51  ;;  %v6114_v58 = vmul.f32 1.442695, %v5993_v53  ;;  %v6116_v63 = vmul.f32 1.442695, %v5994_v7  ;;  %v14633_v7 = vld [vmem:[#allocation145_spill] sm:$0xff] }
 0xb24   : > { %v9332_v2 = vpop.eup %9331  ;;  %9351 = vpow2.f32 %v6096_v36  ;;  %6498 = vmatmul.mubr.bf16.gmra.mrb[100].mxu1 %v6226_v10  ;;  %v13180_v8 = vpop.xlane.xlu0 %3875  ;;  %v6118_v35 = vmul.f32 1.442695, %v5995_v25  ;;  %v6164_v28 = vadd.f32 %v13102_v27, %v6163_v32  ;;  %v6159_v52 = vadd.f32 %v13081_v30, %v6158_v33 }
 0xb25   : > { %v9334_v5 = vpop.eup %9333  ;;  %9353 = vpow2.f32 %v6098_v31  ;;  %v8743_v36 = vpack.i.bf16 %v13186_v56, %v13183_v6  ;;  %v6174_v18 = vadd.f32 %v9322_v59, %v6173_v4  ;;  %v6168_v31 = vadd.f32 %v13135_v1, %v13129_v60 }
 0xb26   : > { %v9336_v16 = vpop.eup %9335  ;;  %9355 = vpow2.f32 %v6100_v23  ;;  %v13188_v42 = vpop.xlane.xlu1 %3890  ;;  %v14632_v23 = vld [vmem:[#allocation162_spill] sm:$0xff]  ;;  %v13201_v10 = vadd.f32 %v13106_v14, %v6164_v28  ;;  %v6178_v40 = vadd.f32 %v9334_v5, %v9332_v2  ;;  %v13204_v30 = vadd.f32 %v13085_v61, %v6159_v52 }
 0xb27   : > { %v9338_v12 = vpop.eup %9337  ;;  %9357 = vpow2.f32 %v6102_v47  ;;  %v5996_v19 = vsub.f32 %v14632_v23, %v13175_v29  ;;  %v13206_v47 = vadd.f32 %v9324_v0, %v6174_v18  ;;  %v6169_v53 = vadd.f32 %v13142_v62, %v6168_v31 }
 0xb28   : > { %v9340_v3 = vpop.eup %9339  ;;  %9359 = vpow2.f32 %v6104_v13  ;;  %v13198_v26 = vpop.xlane.xlu0 %3885  ;;  %v5997_v32 = vsub.f32 %v14633_v7, %v13175_v29  ;;  %v6179_v11 = vadd.f32 %v9336_v16, %v6178_v40  ;;  %v14634_v13 = vld [vmem:[#allocation128_spill] sm:$0xff] }
 0xb29   : > { %v9342_v27 = vpop.eup %9341  ;;  %v6228_v37 = vpack.c.bf16 %v9340_v3, %v9332_v2  ;;  %9361 = vpow2.f32 %v6106_v24  ;;  %v13217_v33 = vadd.f32 %v13144_v15, %v6169_v53  ;;  %v5998_v15 = vsub.f32 %v12909_v38, %v13175_v29 }
 0xb2a   : > { %v9344_v60 = vpop.eup %9343  ;;  %9363 = vpow2.f32 %v6108_v55  ;;  %v6229_v1 = vpack.c.bf16 %v9342_v27, %v9334_v5  ;;  %v13208_v59 = vpop.xlane.xlu1 %5044  ;;  %v6183_v48 = vadd.f32 %v9342_v27, %v9340_v3  ;;  %v14635_v55 = vld [vmem:[#allocation129_spill] sm:$0xff]  ;;  %v5999_v5 = vsub.f32 %v12913_v34, %v13175_v29 }
 0xb2b   : > { %v9346_v44 = vpop.eup %9345  ;;  %v6230_v14 = vpack.c.bf16 %v9344_v60, %v9336_v16  ;;  %9365 = vpow2.f32 %v6110_v57  ;;  %v13224_v2 = vmul.f32 %v9330_v39, %v14635_v55  ;;  %v13226_v57 = vadd.f32 %v9338_v12, %v6179_v11 }
 0xb2c   : > { %v9348_v25 = vpop.eup %9347  ;;  %9367 = vrcp.f32 %v13127_v50  ;;  %6408 = vmatprep.mubr.bf16.mxu0 %v6229_v1  ;;  %v6231_v61 = vpack.c.bf16 %v9346_v44, %v9338_v12  ;;  %v13214_v0 = vpop.xlane.xlu0 %5039  ;;  %v6184_v4 = vadd.f32 %v9344_v60, %v6183_v48  ;;  %v6122_v38 = vmul.f32 1.442695, %v5997_v32  ;;  %v14638_v32 = vld [vmem:[#allocation86_spill] sm:$0xff] }
 0xb2d   : > { %v9350_v62 = vpop.eup %9349  ;;  %9369 = vrcp.f32 %v13137_v41  ;;  %6409 = vmatmul.mubr.bf16.gmra.mrb[96].mxu0 %v6228_v37  ;;  %v13221_v24 = vmul.f32 %v9348_v25, %v14634_v13  ;;  %v6124_v31 = vmul.f32 1.442695, %v5998_v15  ;;  %v6126_v34 = vmul.f32 1.442695, %v5999_v5 }
 0xb2e   : > { %v9352_v50 = vpop.eup %9351  ;;  %9371 = vpow2.f32 %v6112_v43  ;;  %6505 = vmatprep.mubr.bf16.mxu1 %v6231_v61  ;;  %v13230_v51 = vpop.xlane.xlu1 %5054  ;;  %v13232_v21 = vadd.f32 %v9346_v44, %v6184_v4  ;;  %v6120_v43 = vmul.f32 1.442695, %v5996_v19  ;;  %v13247_v11 = vmul.f32 %v9350_v62, %v14638_v32 }
 0xb2f   : > { %v9354_v41 = vpop.eup %9353  ;;  %9373 = vpow2.f32 %v6114_v58  ;;  %6506 = vmatmul.mubr.bf16.gmra.mrb[104].mxu1 %v6230_v14  ;;  %v8748_v39 = vpack.i.bf16 %v13224_v2, %v13221_v24  ;;  %v14637_v14 = vld [vmem:[#allocation19_spill] sm:$0xff]  ;;  %v14657_v24 = vld [vmem:[#allocation137_spill] sm:$0xff] }
 0xb30   : > { %v9356_v16 = vpop.eup %9355  ;;  %9375 = vpow2.f32 %v6116_v63  ;;  %v5050_v28 = vpop.xlane.xlu0 %5049  ;;  %v6188_v12 = vadd.f32 %v9354_v41, %v9352_v50 }
 0xb31   : > { %v9358_v52 = vpop.eup %9357  ;;  %9377 = vpow2.f32 %v6118_v35 }
 0xb32   : > { %v9360_v18 = vpop.eup %9359  ;;  %9379 = vrcp.f32 %v13154_v22  ;;  %v3901_v58 = vpop.xlane.xlu1 %3900  ;;  %v6189_v3 = vadd.f32 %v9356_v16, %v6188_v12 }
 0xb33   : > { %v9362_v23 = vpop.eup %9361  ;;  %v6232_v40 = vpack.c.bf16 %v9360_v18, %v9352_v50  ;;  %9381 = vrcp.f32 %v13167_v20  ;;  %v14636_v20 = vld [vmem:[#allocation95_spill] sm:$0xff] }
 0xb34   : > { %v9364_v29 = vpop.eup %9363  ;;  %9383 = vpow2.f32 %v6120_v43  ;;  %v6233_v63 = vpack.c.bf16 %v9362_v23, %v9354_v41  ;;  %v3896_v19 = vpop.xlane.xlu0 %3895  ;;  %v6193_v27 = vadd.f32 %v9362_v23, %v9360_v18  ;;  %v13240_v37 = vadd.f32 %v9358_v52, %v6189_v3  ;;  %v14643_v3 = vld [vmem:[#allocation88_spill] sm:$0xff] }
 0xb35   : > { %v9366_v35 = vpop.eup %9365  ;;  %v6234_v60 = vpack.c.bf16 %v9364_v29, %v9356_v16  ;;  %9385 = vpow2.f32 %v6122_v38  ;;  %v14640_v16 = vld [vmem:[#allocation90_spill] sm:$0xff] }
 0xb36   : > { %v9368_v1 = vpop.eup %9367  ;;  %9387 = vpow2.f32 %v6124_v31  ;;  %6416 = vmatprep.mubr.bf16.mxu0 %v6233_v63  ;;  %v6235_v22 = vpack.c.bf16 %v9366_v35, %v9358_v52  ;;  %v3911_v53 = vpop.xlane.xlu1 %3910  ;;  %v6194_v48 = vadd.f32 %v9364_v29, %v6193_v27  ;;  %v14641_v52 = vld [vmem:[#allocation131_spill] sm:$0xff]  ;;  %v14642_v31 = vld [vmem:[#allocation77_spill] sm:$0xff]  ;;  %v14644_v63 = vld [vmem:[#allocation98_spill] sm:$0xff] }
 0xb37   : > { %v9370_v44 = vpop.eup %9369  ;;  %9389 = vpow2.f32 %v6126_v34  ;;  %6417 = vmatmul.mubr.bf16.gmra.mrb[100].mxu0 %v6232_v40  ;;  %2799 = vadd.xlane.f32.xlu1 %v14636_v20  ;;  %v13244_v7 = vmul.f32 %v9368_v1, %v14637_v14  ;;  %v14645_v14 = vld [vmem:[#allocation130_spill] sm:$0xff] }
 0xb38   : > { %v9372_v25 = vpop.eup %9371  ;;  %9391 = vrcp.f32 %v13180_v8  ;;  %6513 = vmatprep.mubr.bf16.mxu1 %v6235_v22  ;;  %v3906_v61 = vpop.xlane.xlu0 %3905  ;;  %v13250_v4 = vadd.f32 %v9366_v35, %v6194_v48  ;;  %v14639_v8 = vld [vmem:[#allocation89_spill] sm:$0xff]  ;;  %v13268_v23 = vmul.f32 %v9370_v44, %v14643_v3  ;;  %v14650_v3 = vld [vmem:[#allocation135_spill] sm:$0xff] }
 0xb39   : > { %v9374_v13 = vpop.eup %9373  ;;  %9393 = vrcp.f32 %v13188_v42  ;;  %6514 = vmatmul.mubr.bf16.gmra.mrb[108].mxu1 %v6234_v60  ;;  %v8753_v55 = vpack.i.bf16 %v13247_v11, %v13244_v7 }
 0xb3a   : > { %v9376_v50 = vpop.eup %9375  ;;  %9395 = vrcp.f32 %v13198_v26  ;;  %v5065_v15 = vpop.xlane.xlu1 %5064  ;;  %v6198_v62 = vadd.f32 %v9374_v13, %v9372_v25 }
 0xb3b   : > { %v9378_v41 = vpop.eup %9377  ;;  %9397 = vrcp.f32 %v13208_v59  ;;  %2814 = vadd.xlane.f32.xlu1 %v14639_v8 }
 0xb3c   : > { %v9380_v5 = vpop.eup %9379  ;;  %9399 = vrcp.f32 %v13214_v0  ;;  %2804 = vadd.xlane.f32.xlu0 %v14640_v16  ;;  %v5060_v42 = vpop.xlane.xlu0 %5059  ;;  %v6199_v43 = vadd.f32 %v9376_v50, %v6198_v62  ;;  %v14648_v16 = vld [vmem:[#allocation84_spill] sm:$0xff] }
 0xb3d   : > { %v9382_v12 = vpop.eup %9381  ;;  %9401 = vrcp.f32 %v13230_v51  ;;  %v13262_v38 = vmul.f32 %v9380_v5, %v14641_v52  ;;  %v14649_v52 = vld [vmem:[#allocation81_spill] sm:$0xff] }
 0xb3e   : > { %v9384_v26 = vpop.eup %9383  ;;  %9403 = vrcp.f32 %v5050_v28  ;;  %v5075_v18 = vpop.xlane.xlu1 %5074  ;;  %v13265_v59 = vmul.f32 %v9382_v12, %v14642_v31  ;;  %v13270_v0 = vadd.f32 %v9378_v41, %v6199_v43 }
 0xb3f   : > { %v9386_v40 = vpop.eup %9385  ;;  %v6236_v34 = vpack.c.bf16 %v9384_v26, %v9372_v25  ;;  %9405 = vrcp.f32 %v3901_v58 }
 0xb40   : > { %v9388_v29 = vpop.eup %9387  ;;  %2809 = vadd.xlane.f32.xlu0 %v14644_v63  ;;  %v6237_v51 = vpack.c.bf16 %v9386_v40, %v9374_v13  ;;  %9407 = vrcp.f32 %v3896_v19  ;;  %v5070_v27 = vpop.xlane.xlu0 %5069  ;;  %v8758_v28 = vpack.i.bf16 %v13268_v23, %v13265_v59  ;;  %v6203_v35 = vadd.f32 %v9386_v40, %v9384_v26  ;;  %v14651_v63 = vld [vmem:[#allocation70_spill] sm:$0xff] }
 0xb41   : > { %v9390_v60 = vpop.eup %9389  ;;  %v6238_v1 = vpack.c.bf16 %v9388_v29, %v9376_v50  ;;  %9409 = vrcp.f32 %v3911_v53  ;;  %v14646_v50 = vld [vmem:[#allocation133_spill] sm:$0xff] }
 0xb42   : > { %v9392_v22 = vpop.eup %9391  ;;  %6424 = vmatprep.mubr.bf16.mxu0 %v6237_v51  ;;  %v6239_v48 = vpack.c.bf16 %v9390_v60, %v9378_v41  ;;  %9411 = vrcp.f32 %v3906_v61  ;;  %v2765_v44 = vpop.xlane.xlu1 %2764  ;;  %v6204_v20 = vadd.f32 %v9388_v29, %v6203_v35  ;;  %v14647_v61 = vld [vmem:[#allocation132_spill] sm:$0xff] }
 0xb43   : > { %v9394_v58 = vpop.eup %9393  ;;  %6425 = vmatmul.mubr.bf16.gmra.mrb[104].mxu0 %v6236_v34  ;;  %9413 = vrcp.f32 %v5065_v15  ;;  %v13276_v32 = vmul.f32 %v9392_v22, %v14645_v14 }
 0xb44   : > { %v9396_v19 = vpop.eup %9395  ;;  %6521 = vmatprep.mubr.bf16.mxu1 %v6239_v48  ;;  %9415 = vrcp.f32 %v5060_v42  ;;  %v2760_v25 = vpop.xlane.xlu0 %2759  ;;  %v13278_v13 = vadd.f32 %v9390_v60, %v6204_v20  ;;  %v13281_v53 = vmul.f32 %v9394_v58, %v14646_v50  ;;  %v14652_v60 = vld [vmem:[#allocation153_spill] sm:$0xff] }
 0xb45   : > { %v9398_v62 = vpop.eup %9397  ;;  %6522 = vmatmul.mubr.bf16.gmra.mrb[112].mxu1 %v6238_v1  ;;  %9417 = vrcp.f32 %v5075_v18  ;;  %v13284_v41 = vmul.f32 %v9396_v19, %v14647_v61  ;;  %v14654_v19 = vld [vmem:[#allocation155_spill] sm:$0xff]  ;;  %v14655_v61 = vld [vmem:[#allocation136_spill] sm:$0xff] }
 0xb46   : > { %v9400_v8 = vpop.eup %9399  ;;  %9419 = vrcp.f32 %v5070_v27  ;;  %v2775_v5 = vpop.xlane.xlu1 %2774  ;;  %v13289_v42 = vmul.f32 %v9398_v62, %v14648_v16 }
 0xb47   : > { %v9402_v43 = vpop.eup %9401  ;;  %9421 = vrcp.f32 %v2765_v44  ;;  %v13294_v26 = vmul.f32 %v9400_v8, %v14649_v52  ;;  %v14653_v44 = vld [vmem:[#allocation134_spill] sm:$0xff] }
 0xb48   : > { %v9404_v18 = vpop.eup %9403  ;;  %9423 = vrcp.f32 %v2760_v25  ;;  %v2770_v31 = vpop.xlane.xlu0 %2769  ;;  %v13297_v40 = vmul.f32 %v9402_v43, %v14650_v3  ;;  %v14656_v43 = vld [vmem:[#allocation152_spill] sm:$0xff] }
 0xb49   : > { %v9406_v34 = vpop.eup %9405  ;;  %9425 = vrcp.f32 %v2775_v5  ;;  %v13302_v51 = vmul.f32 %v9404_v18, %v14651_v63 }
 0xb4a   : > { %v9408_v27 = vpop.eup %9407  ;;  %9427 = vrcp.f32 %v2770_v31  ;;  %v2785_v35 = vpop.xlane.xlu1 %2784  ;;  %v13305_v1 = vmul.f32 %v9406_v34, %v14652_v60  ;;  %v14658_v34 = vld [vmem:[#allocation37_spill] sm:$0xff]  ;;  %v14659_v60 = vld [vmem:[#allocation42_spill] sm:$0xff] }
 0xb4b   : > { %v9410_v22 = vpop.eup %9409  ;;  %9429 = vrcp.f32 %v2785_v35  ;;  %v13310_v20 = vmul.f32 %v9408_v27, %v14653_v44 }
 0xb4c   : > { %v9412_v58 = vpop.eup %9411  ;;  %8749 = vrot.lane.b32.xlu1 %v8748_v39, %s9549_s0  ;;  %v2780_v14 = vpop.xlane.xlu0 %2779  ;;  %v13317_v25 = vmul.f32 %v9410_v22, %v14654_v19 }
 0xb4d   : > { %v9414_v50 = vpop.eup %9413  ;;  %9431 = vrcp.f32 %v2780_v14  ;;  %v13322_v8 = vmul.f32 %v9412_v58, %v14655_v61  ;;  %v14660_v58 = vld [vmem:[#allocation105_spill] sm:$0xff] }
 0xb4e   : > { %v9416_v5 = vpop.eup %9415  ;;  %v2795_v16 = vpop.xlane.xlu1 %2794  ;;  %v13325_v52 = vmul.f32 %v9414_v50, %v14656_v43  ;;  %v14661_v50 = vld [vmem:[#allocation104_spill] sm:$0xff]  ;;  %v14663_v43 = vld [vmem:[#allocation103_spill] sm:$0xff] }
 0xb4f   : > { %v9418_v18 = vpop.eup %9417  ;;  %9433 = vrcp.f32 %v2795_v16  ;;  %v13328_v2 = vmul.f32 %v9416_v5, %v14657_v24  ;;  %v14664_v24 = vld [vmem:[#allocation109_spill] sm:$0xff] }
 0xb50   : > { %v9420_v31 = vpop.eup %9419  ;;  %8754 = vrot.lane.b32.xlu1 %v8753_v55, %s9550_s19  ;;  %v2790_v3 = vpop.xlane.xlu0 %2789  ;;  %v13337_v63 = vmul.f32 %v9418_v18, %v14658_v34  ;;  %v14662_v55 = vld [vmem:[#allocation106_spill] sm:$0xff]  ;;  %v14665_v34 = vld [vmem:[#allocation107_spill] sm:$0xff] }
 0xb51   : > { %v9422_v27 = vpop.eup %9421  ;;  %9435 = vrcp.f32 %v2790_v3  ;;  %v13342_v22 = vmul.f32 %v9420_v31, %v14659_v60 }
 0xb52   : > { %v9424_v44 = vpop.eup %9423  ;;  %v3079_v14 = vmul.f32 %v9422_v27, %v14660_v58 }
 0xb53   : > { %v9426_v19 = vpop.eup %9425  ;;  %v3078_v61 = vmul.f32 %v9424_v44, %v14661_v50  ;;  %v14666_v44 = vld [vmem:[#allocation110_spill] sm:$0xff]  ;;  %v14667_v50 = vld [vmem:[#allocation108_spill] sm:$0xff] }
 0xb54   : > { %v9428_v11 = vpop.eup %9427  ;;  %v3081_v5 = vmul.f32 %v9426_v19, %v14662_v55  ;;  %v14668_v55 = vld [vmem:[#allocation99_spill] sm:$0xff] }
 0xb55   : > { %v9430_v16 = vpop.eup %9429  ;;  %v3080_v18 = vmul.f32 %v9428_v11, %v14663_v43 }
 0xb56   : > { %8744 = vrot.lane.b32.xlu0 %v8743_v36, %s9549_s0  ;;  %v13355_v31 = vmul.f32 %v9430_v16, %v14664_v24  ;;  %v14669_v24 = vld [vmem:[#allocation101_spill] sm:$0xff] }
 0xb57   : > { %v9432_v3 = vpop.eup %9431 }
 0xb58   : > { %v13358_v27 = vmul.f32 %v9432_v3, %v14665_v34 }
 0xb59   : > { %v9434_v60 = vpop.eup %9433 }
 0xb5a   : > { %8759 = vrot.lane.b32.xlu0 %v8758_v28, %s9550_s19  ;;  %v3085_v58 = vmul.f32 %v9434_v60, %v14666_v44 }
 0xb5b   : > { %v9436_v19 = vpop.eup %9435 }
 0xb5c   : > { %v3084_v11 = vmul.f32 %v9436_v19, %v14667_v50 }
 0xb71   : > { %v8725_v6 = vpop.permute.xlu0 %8724 }
 0xb72   : > { %v8727_v56 = vunpack.i.h.bf16 %v8725_v6  ;;  %v8726_v36 = vunpack.i.l.bf16 %v8725_v6 }
 0xb74   : > { %2819 = vadd.xlane.f32.xlu1 %v14668_v55  ;;  %v6755_v16 = vsel %vm2137_vm3, %v3079_v14, %v8727_v56  ;;  %v6754_v43 = vsel %vm2137_vm3, %v3078_v61, %v8726_v36  ;;  %v14670_v56 = vld [vmem:[#allocation111_spill] sm:$0xff] }
 0xb78   : > { %6136 = vadd.xlane.f32.xlu1 %v13005_v54 }
 0xb79   : > { %2824 = vadd.xlane.f32.xlu0 %v14669_v24 }
 0xb7b   : > { %v8730_v59 = vpop.permute.xlu1 %8729 }
 0xb7c   : > { %6146 = vadd.xlane.f32.xlu1 %v13090_v46  ;;  %v8732_v23 = vunpack.i.h.bf16 %v8730_v59  ;;  %v8731_v28 = vunpack.i.l.bf16 %v8730_v59 }
 0xb7d   : > { %6131 = vadd.xlane.f32.xlu0 %v13043_v17 }
 0xb7e   : > { %v6757_v3 = vsel %vm2137_vm3, %v3081_v5, %v8732_v23  ;;  %v6756_v34 = vsel %vm2137_vm3, %v3080_v18, %v8731_v28 }
 0xb80   : > { %6156 = vadd.xlane.f32.xlu1 %v13140_v45 }
 0xb81   : > { %6141 = vadd.xlane.f32.xlu0 %v13096_v9 }
 0xb84   : > { %6166 = vadd.xlane.f32.xlu1 %v13201_v10 }
 0xb85   : > { %6151 = vadd.xlane.f32.xlu0 %v13157_v49  ;;  %v8735_v54 = vpop.permute.xlu1 %8734 }
 0xb86   : > { %v8737_v14 = vunpack.i.h.bf16 %v8735_v54  ;;  %v8736_v46 = vunpack.i.l.bf16 %v8735_v54 }
 0xb88   : > { %v13380_v61 = vsel %vm6770_vm4, %v6754_v43, %v8736_v46  ;;  %v13383_v17 = vsel %vm6770_vm4, %v6755_v16, %v8737_v14  ;;  %6176 = vadd.xlane.f32.xlu1 %v13206_v47 }
 0xb89   : > { %6161 = vadd.xlane.f32.xlu0 %v13204_v30 }
 0xb8c   : > { %6186 = vadd.xlane.f32.xlu1 %v13232_v21 }
 0xb8d   : > { %6171 = vadd.xlane.f32.xlu0 %v13217_v33 }
 0xb8f   : > { %v8740_v9 = vpop.permute.xlu0 %8739 }
 0xb90   : > { %v8742_v45 = vunpack.i.h.bf16 %v8740_v9  ;;  %v8741_v49 = vunpack.i.l.bf16 %v8740_v9  ;;  %6196 = vadd.xlane.f32.xlu1 %v13250_v4 }
 0xb91   : > { %6181 = vadd.xlane.f32.xlu0 %v13226_v57 }
 0xb92   : > { %v13392_v10 = vsel %vm6770_vm4, %v6757_v3, %v8742_v45  ;;  %v13395_v5 = vsel %vm6770_vm4, %v6756_v34, %v8741_v49 }
 0xb94   : > { %6206 = vadd.xlane.f32.xlu1 %v13278_v13 }
 0xb95   : > { %6191 = vadd.xlane.f32.xlu0 %v13240_v37 }
 0xb99   : > { %6201 = vadd.xlane.f32.xlu0 %v13270_v0 }
 0xbc4   : > { %v2800_v30 = vpop.xlane.xlu1 %2799 }
 0xbc5   : > { %9437 = vrcp.f32 %v2800_v30 }
 0xbc8   : > { %v2815_v47 = vpop.xlane.xlu1 %2814 }
 0xbc9   : > { %v2805_v33 = vpop.xlane.xlu0 %2804  ;;  %9439 = vrcp.f32 %v2815_v47 }
 0xbca   : > { %9441 = vrcp.f32 %v2805_v33 }
 0xbcc   : > { %v8750_v21 = vpop.permute.xlu1 %8749 }
 0xbcd   : > { %v2810_v57 = vpop.xlane.xlu0 %2809  ;;  %v8752_v4 = vunpack.i.h.bf16 %v8750_v21  ;;  %v8751_v18 = vunpack.i.l.bf16 %v8750_v21  ;;  %v8175_v60 = vpop.f32.mrb[76].mxu0 }
 0xbce   : > { %9443 = vrcp.f32 %v2810_v57  ;;  %v8176_v37 = vpop.f32.mrb[77].mxu0  ;;  %v14671_v57 = vld [vmem:[#allocation112_spill] sm:$0xff] }
 0xbcf   : > { %v9438_v44 = vpop.eup %9437  ;;  %v6761_v19 = vsel %vm2137_vm3, %v3085_v58, %v8752_v4  ;;  %v6760_v13 = vsel %vm2137_vm3, %v3084_v11, %v8751_v18  ;;  %v8239_v0 = vpop.f32.mrb[84].mxu1  ;;  %v8177_v6 = vadd.f32 %v8176_v37, %v8175_v60 }
 0xbd0   : > { %v8755_v50 = vpop.permute.xlu1 %8754  ;;  %v13403_v36 = vmul.f32 %v9438_v44, %v14670_v56  ;;  %v8240_v24 = vpop.f32.mrb[85].mxu1 }
 0xbd1   : > { %v8745_v55 = vpop.permute.xlu0 %8744  ;;  %v8757_v16 = vunpack.i.h.bf16 %v8755_v50  ;;  %v8756_v43 = vunpack.i.l.bf16 %v8755_v50  ;;  %v8241_v28 = vadd.f32 %v8240_v24, %v8239_v0  ;;  %v8178_v3 = vpop.f32.mrb[78].mxu0 }
 0xbd2   : > { %v8747_v59 = vunpack.i.h.bf16 %v8745_v55  ;;  %v8746_v23 = vunpack.i.l.bf16 %v8745_v55  ;;  %v8242_v34 = vpop.f32.mrb[86].mxu1  ;;  %v8179_v58 = vpop.f32.mrb[79].mxu0 }
 0xbd3   : > { %v9440_v54 = vpop.eup %9439  ;;  %v8243_v14 = vpop.f32.mrb[87].mxu1  ;;  %v13409_v45 = vadd.f32 %v8241_v28, %v8177_v6  ;;  %v8180_v49 = vadd.f32 %v8179_v58, %v8178_v3 }
 0xbd4   : > { %v9442_v11 = vpop.eup %9441  ;;  %v6759_v46 = vsel %vm2137_vm3, %v13355_v31, %v8747_v59  ;;  %v6758_v9 = vsel %vm2137_vm3, %v13358_v27, %v8746_v23  ;;  %v8244_v21 = vadd.f32 %v8243_v14, %v8242_v34  ;;  %v14672_v31 = vld [vmem:[#allocation114_spill] sm:$0xff] }
 0xbd5   : > { %v13412_v30 = vsel %vm6770_vm4, %v6758_v9, %v8756_v43  ;;  %v13415_v47 = vsel %vm6770_vm4, %v6759_v46, %v8757_v16  ;;  %v8760_v33 = vpop.permute.xlu0 %8759  ;;  %v13418_v4 = vmul.f32 %v9442_v11, %v14671_v57  ;;  %v13421_v44 = vmul.f32 %v9440_v54, %v14672_v31  ;;  %v14673_v16 = vld [vmem:[#allocation113_spill] sm:$0xff] }
 0xbd6   : > { %v8762_v18 = vunpack.i.h.bf16 %v8760_v33  ;;  %v8761_v60 = vunpack.i.l.bf16 %v8760_v33  ;;  %v13423_v27 = vadd.f32 %v8244_v21, %v8180_v49 }
 0xbd7   : > { %v8181_v6 = vpop.f32.mrb[80].mxu0 }
 0xbd8   : > { %v9444_v37 = vpop.eup %9443  ;;  %v13426_v50 = vsel %vm6770_vm4, %v6761_v19, %v8762_v18  ;;  %v13429_v0 = vsel %vm6770_vm4, %v6760_v13, %v8761_v60  ;;  %v8182_v55 = vpop.f32.mrb[81].mxu0 }
 0xbd9   : > { %v8245_v56 = vpop.f32.mrb[88].mxu1  ;;  %v13432_v43 = vmul.f32 %v9444_v37, %v14673_v16  ;;  %v8183_v24 = vadd.f32 %v8182_v55, %v8181_v6  ;;  %v8184_v23 = vpop.f32.mrb[82].mxu0 }
 0xbda   : > { %v8246_v59 = vpop.f32.mrb[89].mxu1  ;;  %v8185_v34 = vpop.f32.mrb[83].mxu0 }
 0xbdb   : > { %v8247_v28 = vadd.f32 %v8246_v59, %v8245_v56  ;;  %v8248_v3 = vpop.f32.mrb[90].mxu1  ;;  %v8186_v54 = vadd.f32 %v8185_v34, %v8184_v23 }
 0xbdc   : > { %v8249_v58 = vpop.f32.mrb[91].mxu1 }
 0xbdd   : > { %v13434_v14 = vadd.f32 %v8247_v28, %v8183_v24  ;;  %v8250_v19 = vadd.f32 %v8249_v58, %v8248_v3 }
 0xbdf   : > { %v13436_v11 = vadd.f32 %v8250_v19, %v8186_v54 }
 0xbe1   : > { %v8187_v13 = vpop.f32.mrb[84].mxu0 }
 0xbe2   : > { %v8188_v46 = vpop.f32.mrb[85].mxu0 }
 0xbe3   : > { %v8251_v9 = vpop.f32.mrb[92].mxu1  ;;  %v8189_v49 = vadd.f32 %v8188_v46, %v8187_v13  ;;  %v8190_v33 = vpop.f32.mrb[86].mxu0  ;;  %v6812_v13 = vld [vmem:[%s13688_s9] sm:$0xff]  ;;  %v6813_v46 = vld [vmem:[%s13688_s9 + $0x8] sm:$0xff] }
 0xbe4   : > { %v8252_v21 = vpop.f32.mrb[93].mxu1  ;;  %v8191_v57 = vpop.f32.mrb[87].mxu0 }
 0xbe5   : > { %v8253_v18 = vadd.f32 %v8252_v21, %v8251_v9  ;;  %v8254_v60 = vpop.f32.mrb[94].mxu1  ;;  %v8192_v31 = vadd.f32 %v8191_v57, %v8190_v33 }
 0xbe6   : > { %v8255_v37 = vpop.f32.mrb[95].mxu1 }
 0xbe7   : > { %v13438_v6 = vadd.f32 %v8253_v18, %v8189_v49  ;;  %v8256_v56 = vadd.f32 %v8255_v37, %v8254_v60  ;;  %v6816_v49 = vpack.c.bf16 %v6813_v46, %v6812_v13 }
 0xbe9   : > { %v13440_v55 = vadd.f32 %v8256_v56, %v8192_v31  ;;  %8554 = vmatprep.subr.bf16.mxu0 %v6816_v49 }
 0xbea   : > { %8555 = vmatpush3.bf16.msra.mxu0 %v6816_v49 }
 0xbeb   : > { %v8193_v16 = vpop.f32.mrb[88].mxu0 }
 0xbec   : > { %v8194_v24 = vpop.f32.mrb[89].mxu0 }
 0xbed   : > { %v8257_v59 = vpop.f32.mrb[96].mxu1  ;;  %v8195_v23 = vadd.f32 %v8194_v24, %v8193_v16  ;;  %v8196_v28 = vpop.f32.mrb[90].mxu0 }
 0xbee   : > { %v8258_v3 = vpop.f32.mrb[97].mxu1  ;;  %v8197_v34 = vpop.f32.mrb[91].mxu0 }
 0xbef   : > { %v8259_v54 = vadd.f32 %v8258_v3, %v8257_v59  ;;  %v8260_v58 = vpop.f32.mrb[98].mxu1  ;;  %v8198_v19 = vadd.f32 %v8197_v34, %v8196_v28 }
 0xbf0   : > { %v8261_v9 = vpop.f32.mrb[99].mxu1 }
 0xbf1   : > { %v13448_v33 = vadd.f32 %v8259_v54, %v8195_v23  ;;  %v8262_v21 = vadd.f32 %v8261_v9, %v8260_v58 }
 0xbf3   : > { %v13450_v57 = vadd.f32 %v8262_v21, %v8198_v19 }
 0xbf5   : > { %v8199_v18 = vpop.f32.mrb[92].mxu0 }
 0xbf6   : > { %v8200_v60 = vpop.f32.mrb[93].mxu0 }
 0xbf7   : > { %v8263_v31 = vpop.f32.mrb[100].mxu1  ;;  %v8201_v37 = vadd.f32 %v8200_v60, %v8199_v18  ;;  %v8202_v56 = vpop.f32.mrb[94].mxu0 }
 0xbf8   : > { %v8264_v16 = vpop.f32.mrb[101].mxu1  ;;  %v8203_v24 = vpop.f32.mrb[95].mxu0 }
 0xbf9   : > { %v8265_v59 = vadd.f32 %v8264_v16, %v8263_v31  ;;  %v8266_v28 = vpop.f32.mrb[102].mxu1  ;;  %v8204_v3 = vadd.f32 %v8203_v24, %v8202_v56 }
 0xbfa   : > { %v8267_v34 = vpop.f32.mrb[103].mxu1 }
 0xbfb   : > { %v13452_v7 = vadd.f32 %v8265_v59, %v8201_v37  ;;  %v8268_v23 = vadd.f32 %v8267_v34, %v8266_v28 }
 0xbfd   : > { %v13454_v54 = vadd.f32 %v8268_v23, %v8204_v3 }
 0xc00   : > { %v8205_v58 = vpop.f32.mrb[96].mxu0 }
 0xc01   : > { %v8206_v19 = vpop.f32.mrb[97].mxu0  ;;  %v2820_v13 = vpop.xlane.xlu1 %2819 }
 0xc02   : > { %v8269_v46 = vpop.f32.mrb[104].mxu1  ;;  %v8207_v9 = vadd.f32 %v8206_v19, %v8205_v58  ;;  %v8208_v49 = vpop.f32.mrb[98].mxu0  ;;  %9445 = vrcp.f32 %v2820_v13 }
 0xc03   : > { %v8270_v21 = vpop.f32.mrb[105].mxu1  ;;  %v8209_v18 = vpop.f32.mrb[99].mxu0 }
 0xc04   : > { %v8271_v60 = vadd.f32 %v8270_v21, %v8269_v46  ;;  %v8272_v39 = vpop.f32.mrb[106].mxu1  ;;  %v8210_v31 = vadd.f32 %v8209_v18, %v8208_v49 }
 0xc05   : > { %v8273_v16 = vpop.f32.mrb[107].mxu1  ;;  %v6137_v56 = vpop.xlane.xlu1 %6136 }
 0xc06   : > { %v13456_v24 = vadd.f32 %v8271_v60, %v8207_v9  ;;  %v8274_v37 = vadd.f32 %v8273_v16, %v8272_v39  ;;  %v2825_v59 = vpop.xlane.xlu0 %2824  ;;  %v14674_v9 = vld [vmem:[#allocation116_spill] sm:$0xff] }
 0xc07   : > { %9447 = vrcp.f32 %v2825_v59 }
 0xc08   : > { %v13458_v28 = vadd.f32 %v8274_v37, %v8210_v31  ;;  %9449 = vrcp.f32 %v6137_v56 }
 0xc09   : > { %v6147_v3 = vpop.xlane.xlu1 %6146 }
 0xc0a   : > { %v8211_v34 = vpop.f32.mrb[100].mxu0  ;;  %v6132_v23 = vpop.xlane.xlu0 %6131 }
 0xc0b   : > { %v8212_v58 = vpop.f32.mrb[101].mxu0  ;;  %9451 = vrcp.f32 %v6132_v23 }
 0xc0c   : > { %v9446_v19 = vpop.eup %9445  ;;  %v8275_v13 = vpop.f32.mrb[108].mxu1  ;;  %v8213_v46 = vadd.f32 %v8212_v58, %v8211_v34  ;;  %9453 = vrcp.f32 %v6147_v3  ;;  %v14675_v3 = vld [vmem:[#allocation115_spill] sm:$0xff] }
 0xc0d   : > { %v8214_v21 = vpop.f32.mrb[102].mxu0  ;;  %v8276_v49 = vpop.f32.mrb[109].mxu1  ;;  %v13461_v60 = vmul.f32 %v9446_v19, %v14674_v9 }
 0xc0e   : > { %v8215_v18 = vpop.f32.mrb[103].mxu0  ;;  %v8277_v39 = vadd.f32 %v8276_v49, %v8275_v13  ;;  %v8278_v16 = vpop.f32.mrb[110].mxu1 }
 0xc0f   : > { %v8216_v31 = vadd.f32 %v8215_v18, %v8214_v21  ;;  %v6142_v37 = vpop.xlane.xlu0 %6141  ;;  %v8279_v56 = vpop.f32.mrb[111].mxu1  ;;  %v6814_v21 = vld [vmem:[%s13688_s9 + $0x10] sm:$0xff] }
 0xc10   : > { %9455 = vrcp.f32 %v6142_v37  ;;  %v6157_v59 = vpop.xlane.xlu1 %6156  ;;  %v13463_v35 = vadd.f32 %v8277_v39, %v8213_v46  ;;  %v8280_v23 = vadd.f32 %v8279_v56, %v8278_v16  ;;  %v6815_v46 = vld [vmem:[%s13688_s9 + $0x18] sm:$0xff] }
 0xc11   : > { %v9448_v62 = vpop.eup %9447  ;;  %9457 = vrcp.f32 %v6157_v59  ;;  %v6817_v18 = vpack.c.bf16 %v6815_v46, %v6814_v21 }
 0xc12   : > { %v13465_v34 = vadd.f32 %v8280_v23, %v8216_v31  ;;  %v13468_v48 = vmul.f32 %v9448_v62, %v14675_v3  ;;  %v9450_v19 = vpop.eup %9449 }
 0xc13   : > { %v6152_v58 = vpop.xlane.xlu0 %6151  ;;  %v6547_v62 = vmul.f32 %v9450_v19, %v13423_v27  ;;  %8556 = vmatprep.subr.bf16.mxu0 %v6817_v18 }
 0xc14   : > { %9459 = vrcp.f32 %v6152_v58  ;;  %v6167_v13 = vpop.xlane.xlu1 %6166  ;;  %8557 = vmatpush3.bf16.msra.mxu0 %v6817_v18 }
 0xc15   : > { %v9452_v49 = vpop.eup %9451  ;;  %9461 = vrcp.f32 %v6167_v13 }
 0xc16   : > { %v8217_v9 = vpop.f32.mrb[104].mxu0  ;;  %v6546_v16 = vmul.f32 %v9452_v49, %v13409_v45  ;;  %v9454_v31 = vpop.eup %9453 }
 0xc17   : > { %v6162_v39 = vpop.xlane.xlu0 %6161  ;;  %v8218_v37 = vpop.f32.mrb[105].mxu0  ;;  %v6549_v19 = vmul.f32 %v9454_v31, %v13436_v11 }
 0xc18   : > { %9463 = vrcp.f32 %v6162_v39  ;;  %v6177_v56 = vpop.xlane.xlu1 %6176  ;;  %v8281_v59 = vpop.f32.mrb[112].mxu1  ;;  %v8219_v23 = vadd.f32 %v8218_v37, %v8217_v9  ;;  %v8763_v3 = vpack.i.bf16 %v6547_v62, %v6546_v16 }
 0xc19   : > { %v8220_v58 = vpop.f32.mrb[106].mxu0  ;;  %v8282_v29 = vpop.f32.mrb[113].mxu1  ;;  %9465 = vrcp.f32 %v6177_v56 }
 0xc1a   : > { %v9456_v15 = vpop.eup %9455  ;;  %v8221_v13 = vpop.f32.mrb[107].mxu0  ;;  %v8283_v21 = vadd.f32 %v8282_v29, %v8281_v59  ;;  %8764 = vrot.lane.b32.xlu1 %v8763_v3, %s9551_s30 }
 0xc1b   : > { %v8284_v46 = vpop.f32.mrb[114].mxu1  ;;  %v8222_v12 = vadd.f32 %v8221_v13, %v8220_v58  ;;  %v6172_v45 = vpop.xlane.xlu0 %6171  ;;  %v6548_v27 = vmul.f32 %v9456_v15, %v13434_v14 }
 0xc1c   : > { %v9458_v49 = vpop.eup %9457  ;;  %v8285_v9 = vpop.f32.mrb[115].mxu1  ;;  %9467 = vrcp.f32 %v6172_v45  ;;  %v6524_v18 = vadd.f32 %v8283_v21, %v8219_v23 }
 0xc1d   : > { %v6187_v39 = vpop.xlane.xlu1 %6186  ;;  %v8286_v16 = vadd.f32 %v8285_v9, %v8284_v46  ;;  %v8768_v62 = vpack.i.bf16 %v6549_v19, %v6548_v27  ;;  %v6551_v58 = vmul.f32 %v9458_v49, %v13440_v55 }
 0xc1e   : > { %v9460_v37 = vpop.eup %9459  ;;  %9469 = vrcp.f32 %v6187_v39 }
 0xc1f   : > { %v6527_v29 = vadd.f32 %v8286_v16, %v8222_v12  ;;  %8769 = vrot.lane.b32.xlu0 %v8768_v62, %s9551_s30  ;;  %v6182_v56 = vpop.xlane.xlu0 %6181  ;;  %v6550_v59 = vmul.f32 %v9460_v37, %v13438_v6  ;;  %v9462_v15 = vpop.eup %9461 }
 0xc20   : > { %9471 = vrcp.f32 %v6182_v56  ;;  %v6553_v12 = vmul.f32 %v9462_v15, %v13450_v57 }
 0xc21   : > { %v6197_v14 = vpop.xlane.xlu1 %6196  ;;  %v8773_v11 = vpack.i.bf16 %v6551_v58, %v6550_v59 }
 0xc22   : > { %v9464_v31 = vpop.eup %9463  ;;  %9473 = vrcp.f32 %v6197_v14 }
 0xc23   : > { %8774 = vrot.lane.b32.xlu1 %v8773_v11, %s9551_s30  ;;  %v6192_v23 = vpop.xlane.xlu0 %6191  ;;  %v6552_v3 = vmul.f32 %v9464_v31, %v13448_v33  ;;  %v9466_v13 = vpop.eup %9465  ;;  %v14676_v11 = vld [vmem:[#allocation100_spill] sm:$0xff]  ;;  %v14677_v31 = vld [vmem:[#allocation102_spill] sm:$0xff] }
 0xc24   : > { %9475 = vrcp.f32 %v6192_v23  ;;  %v6555_v27 = vmul.f32 %v9466_v13, %v13454_v54 }
 0xc25   : > { %v6207_v21 = vpop.xlane.xlu1 %6206  ;;  %v8778_v46 = vpack.i.bf16 %v6553_v12, %v6552_v3 }
 0xc26   : > { %v9468_v6 = vpop.eup %9467  ;;  %9477 = vrcp.f32 %v6207_v21 }
 0xc27   : > { %8779 = vrot.lane.b32.xlu0 %v8778_v46, %s9551_s30  ;;  %v6202_v55 = vpop.xlane.xlu0 %6201  ;;  %v6554_v45 = vmul.f32 %v9468_v6, %v13452_v7 }
 0xc28   : > { %v9470_v19 = vpop.eup %9469  ;;  %9479 = vrcp.f32 %v6202_v55 }
 0xc29   : > { %v8803_v49 = vpack.i.bf16 %v6555_v27, %v6554_v45  ;;  %v6557_v57 = vmul.f32 %v9470_v19, %v13458_v28  ;;  %v14680_v28 = vpack.i.bf16 %v13262_v38, %v13276_v32  ;;  %v14684_v38 = vpack.i.bf16 %v13317_v25, %v13322_v8 }
 0xc2a   : > { %v9472_v9 = vpop.eup %9471  ;;  %v14685_v32 = vpack.i.bf16 %v13337_v63, %v13342_v22 }
 0xc2b   : > { %v6556_v33 = vmul.f32 %v9472_v9, %v13456_v24  ;;  %v14678_v24 = vpack.i.bf16 %v13281_v53, %v13284_v41  ;;  %v14682_v53 = vpack.i.bf16 %v13305_v1, %v13310_v20  ;;  %v14683_v41 = vpack.i.bf16 %v13325_v52, %v13328_v2 }
 0xc2c   : > { %v9474_v39 = vpop.eup %9473 }
 0xc2d   : > { %v8808_v16 = vpack.i.bf16 %v6557_v57, %v6556_v33  ;;  %v6559_v56 = vmul.f32 %v9474_v39, %v13465_v34  ;;  %v14681_v34 = vpack.i.bf16 %v13297_v40, %v13302_v51 }
 0xc2e   : > { %v9476_v62 = vpop.eup %9475 }
 0xc2f   : > { %v6558_v37 = vmul.f32 %v9476_v62, %v13463_v35  ;;  %v14679_v35 = vpack.i.bf16 %v13289_v42, %v13294_v26 }
 0xc30   : > { %v9478_v59 = vpop.eup %9477 }
 0xc31   : > { %v8833_v58 = vpack.i.bf16 %v6559_v56, %v6558_v37  ;;  %v6561_v54 = vmul.f32 %v9478_v59, %v6527_v29 }
 0xc32   : > { %v9480_v7 = vpop.eup %9479 }
 0xc33   : > { %v6560_v15 = vmul.f32 %v9480_v7, %v6524_v18 }
 0xc35   : > { %v8838_v14 = vpack.i.bf16 %v6561_v54, %v6560_v15 }
 0xc46   : > { %2829 = vadd.xlane.f32.xlu0 %v14676_v11 }
 0xc47   : > { %2834 = vadd.xlane.f32.xlu1 %v14677_v31 }
 0xc58   : > { %8789 = vrot.lane.b32.xlu1 %v14678_v24, %s9549_s0 }
 0xc5c   : > { %8794 = vrot.lane.b32.xlu1 %v14679_v35, %s9550_s19  ;;  %8784 = vrot.lane.b32.xlu0 %v14680_v28, %s9549_s0 }
 0xc60   : > { %8799 = vrot.lane.b32.xlu0 %v14681_v34, %s9550_s19  ;;  %8804 = vrot.lane.b32.xlu1 %v8803_v49, %s9551_s30 }
 0xc64   : > { %8814 = vrot.lane.b32.xlu1 %v14682_v53, %s9549_s0  ;;  %8809 = vrot.lane.b32.xlu0 %v8808_v16, %s9551_s30 }
 0xc68   : > { %8824 = vrot.lane.b32.xlu1 %v14683_v41, %s9550_s19  ;;  %8819 = vrot.lane.b32.xlu0 %v14684_v38, %s9549_s0  ;;  %s512_s0 = sadd.s32 %s7198_s16, %s14717_s25 }
 0xc6c   : > { %8829 = vrot.lane.b32.xlu0 %v14685_v32, %s9550_s19  ;;  %8834 = vrot.lane.b32.xlu1 %v8833_v58, %s9551_s30  ;;  %s7199_s19 = sshll.u32 %s512_s0, 2 }
 0xc6d   : > { %s514_s17 = scalar_lea.vmem %s13692_s13, %s7199_s19 }
 0xc70   : > { %8839 = vrot.lane.b32.xlu0 %v8838_v14, %s9551_s30 }
 0xc8c   : > { %v8765_v42 = vpop.permute.xlu1 %8764 }
 0xc8d   : > { %v8767_v26 = vunpack.i.h.bf16 %v8765_v42  ;;  %v8766_v40 = vunpack.i.l.bf16 %v8765_v42 }
 0xc8f   : > { %v6788_v51 = vsel %vm6787_vm5, %v13380_v61, %v8766_v40  ;;  %v6789_v1 = vsel %vm6787_vm5, %v13383_v17, %v8767_v26 }
 0xc90   : > { %v6804_v20 = vpack.c.bf16 %v6789_v1, %v6788_v51 }
 0xc91   : > { %v8770_v25 = vpop.permute.xlu0 %8769 }
 0xc92   : > { %v8772_v8 = vunpack.i.h.bf16 %v8770_v25  ;;  %v8771_v52 = vunpack.i.l.bf16 %v8770_v25  ;;  %8558 = vmatprep.mubr.msk.bf16.mxu0 %vm1051_vm2, %v6804_v20  ;;  %v14686_v25 = vld [vmem:[#allocation117_spill] sm:$0xff] }
 0xc94   : > { %v6790_v2 = vsel %vm6787_vm5, %v13395_v5, %v8771_v52  ;;  %v6791_v63 = vsel %vm6787_vm5, %v13392_v10, %v8772_v8  ;;  %v14687_v52 = vld [vmem:[#allocation118_spill] sm:$0xff] }
 0xc95   : > { %v6805_v22 = vpack.c.bf16 %v6791_v63, %v6790_v2  ;;  %v8775_v18 = vpop.permute.xlu1 %8774 }
 0xc96   : > { %v8777_v29 = vunpack.i.h.bf16 %v8775_v18  ;;  %v8776_v23 = vunpack.i.l.bf16 %v8775_v18 }
 0xc97   : > { %8559 = vmatmul.mubr.msk.bf16.vlgmr.msra.gmra.mrb[108].mxu0 %vm1051_vm2, %v6805_v22 }
 0xc98   : > { %v6792_v61 = vsel %vm6787_vm5, %v13412_v30, %v8776_v23  ;;  %v6793_v17 = vsel %vm6787_vm5, %v13415_v47, %v8777_v29 }
 0xc99   : > { %v6806_v3 = vpack.c.bf16 %v6793_v17, %v6792_v61  ;;  %v8780_v12 = vpop.permute.xlu0 %8779 }
 0xc9a   : > { %v8782_v13 = vunpack.i.h.bf16 %v8780_v12  ;;  %v8781_v21 = vunpack.i.l.bf16 %v8780_v12 }
 0xc9b   : > { %8562 = vmatprep.mubr.msk.bf16.mxu0 %vm1051_vm2, %v6806_v3 }
 0xc9c   : > { %v6794_v10 = vsel %vm6787_vm5, %v13429_v0, %v8781_v21  ;;  %v6795_v5 = vsel %vm6787_vm5, %v13426_v50, %v8782_v13 }
 0xc9d   : > { %v6807_v46 = vpack.c.bf16 %v6795_v5, %v6794_v10 }
 0xc9f   : > { %8563 = vmatmul.mubr.msk.bf16.gmra.mrb[112].mxu0 %vm1051_vm2, %v6807_v46 }
 0xcd3   : > { %v2830_v6 = vpop.xlane.xlu0 %2829 }
 0xcd4   : > { %v2835_v30 = vpop.xlane.xlu1 %2834  ;;  %9481 = vrcp.f32 %v2830_v6 }
 0xcd5   : > { %9483 = vrcp.f32 %v2835_v30 }
 0xcd7   : > { %v8785_v55 = vpop.permute.xlu0 %8784 }
 0xcd8   : > { %v8790_v45 = vpop.permute.xlu1 %8789  ;;  %v8787_v47 = vunpack.i.h.bf16 %v8785_v55  ;;  %v8786_v27 = vunpack.i.l.bf16 %v8785_v55 }
 0xcd9   : > { %v8792_v49 = vunpack.i.h.bf16 %v8790_v45  ;;  %v8791_v9 = vunpack.i.l.bf16 %v8790_v45 }
 0xcda   : > { %v6763_v50 = vsel %vm2137_vm3, %v13418_v4, %v8787_v47  ;;  %v6762_v62 = vsel %vm2137_vm3, %v13403_v36, %v8786_v27 }
 0xcdb   : > { %v8800_v19 = vpop.permute.xlu0 %8799  ;;  %v6765_v56 = vsel %vm2137_vm3, %v13421_v44, %v8792_v49  ;;  %v6764_v59 = vsel %vm2137_vm3, %v13432_v43, %v8791_v9  ;;  %v9552_v9 = vmov 0.0  }
 0xcdc   : > { %v8795_v33 = vpop.permute.xlu1 %8794  ;;  %v8802_v57 = vunpack.i.h.bf16 %v8800_v19  ;;  %v8801_v0 = vunpack.i.l.bf16 %v8800_v19  ;;  %8574 = vmatprep.subr.bf16.mxu1 %v9552_v9  ;;  %8590 = vmatprep.mubr.msk.bf16.mxu1 %vm9553_vm6, %v9552_v9 }
 0xcdd   : > { %v8797_v39 = vunpack.i.h.bf16 %v8795_v33  ;;  %v8796_v16 = vunpack.i.l.bf16 %v8795_v33  ;;  %v6962_v33 = vld [vmem:[%s13690_s11] sm:$0xff] }
 0xcde   : > { %v6782_v54 = vsel %vm6770_vm4, %v6765_v56, %v8802_v57  ;;  %v6781_v14 = vsel %vm6770_vm4, %v6764_v59, %v8801_v0  ;;  %v9482_v38 = vpop.eup %9481  ;;  %v6963_v57 = vld [vmem:[%s13690_s11 + $0x8] sm:$0xff]  ;;  %v13608_v56 = vld [vmem:[%s13689_s10] ss:$0 sm:$0xff] }
 0xcdf   : > { %v8810_v37 = vpop.permute.xlu0 %8809  ;;  %v6779_v4 = vsel %vm6770_vm4, %v6762_v62, %v8796_v16  ;;  %v6780_v36 = vsel %vm6770_vm4, %v6763_v50, %v8797_v39  ;;  %v9484_v32 = vpop.eup %9483  ;;  %v3092_v8 = vmul.f32 %v9482_v38, %v14686_v25  ;;  %v6966_v0 = vpack.c.bf16 %v6963_v57, %v6962_v33  ;;  %v6964_v39 = vld [vmem:[%s13690_s11 + $0x10] sm:$0xff]  ;;  %v6965_v16 = vld [vmem:[%s13690_s11 + $0x18] sm:$0xff]  ;;  %v6976_v62 = vld [vmem:[%s13691_s12] sm:$0xf] }
 0xce0   : > { %v8812_v58 = vunpack.i.h.bf16 %v8810_v37  ;;  %v8811_v7 = vunpack.i.l.bf16 %v8810_v37  ;;  %v8805_v15 = vpop.permute.xlu1 %8804  ;;  %v3093_v2 = vmul.f32 %v9484_v32, %v14687_v52  ;;  %v6967_v50 = vpack.c.bf16 %v6965_v16, %v6964_v39  ;;  %v14699_v33 = vld [vmem:[#allocation63_spill] sm:$0xff] }
 0xce1   : > { %v8807_v11 = vunpack.i.h.bf16 %v8805_v15  ;;  %v8806_v31 = vunpack.i.l.bf16 %v8805_v15  ;;  %6982 = vxpose.xlu1.c.b16.start [1/2] (short) (narrow) %v6966_v0, 16  ;;  %v9554_v37 = vmov 0  }
 0xce2   : > { %v6798_v24 = vsel %vm6787_vm5, %v6781_v14, %v8811_v7  ;;  %v6799_v44 = vsel %vm6787_vm5, %v6782_v54, %v8812_v58  ;;  %8843 = vset.pattern.permute.xlu0 %v9554_v37 }
 0xce3   : > { %v6809_v35 = vpack.c.bf16 %v6799_v44, %v6798_v24  ;;  %v6796_v43 = vsel %vm6787_vm5, %v6779_v4, %v8806_v31  ;;  %v6797_v28 = vsel %vm6787_vm5, %v6780_v36, %v8807_v11  ;;  %v8820_v34 = vpop.permute.xlu0 %8819  ;;  %6979 = vperm.xlu0 %8843, %v6976_v62   ;;  %v14688_v4 = vld [vmem:[#allocation51_spill] sm:$0xff]  ;;  %v14689_v24 = vld [vmem:[#allocation48_spill] sm:$0xff] }
 0xce4   : > { %v6808_v53 = vpack.c.bf16 %v6797_v28, %v6796_v43  ;;  %v8815_v41 = vpop.permute.xlu1 %8814  ;;  %v8822_v42 = vunpack.i.h.bf16 %v8820_v34  ;;  %v8821_v26 = vunpack.i.l.bf16 %v8820_v34  ;;  %v14691_v28 = vld [vmem:[#allocation50_spill] sm:$0xff] }
 0xce5   : > { %v8817_v51 = vunpack.i.h.bf16 %v8815_v41  ;;  %v8816_v1 = vunpack.i.l.bf16 %v8815_v41  ;;  %6983 = vxpose.xlu1.c.b16.end [2/2] (short) (narrow) %v6967_v50, 16 }
 0xce6   : > { %8566 = vmatprep.mubr.msk.bf16.mxu0 %vm1051_vm2, %v6808_v53  ;;  %v6769_v23 = vsel %vm2137_vm3, %v3093_v2, %v8822_v42  ;;  %v6768_v61 = vsel %vm2137_vm3, %v3092_v8, %v8821_v26  ;;  %v14692_v8 = vld [vmem:[#allocation52_spill] sm:$0xff]  ;;  %v14693_v2 = vld [vmem:[#allocation55_spill] sm:$0xff] }
 0xce7   : > { %v8830_v40 = vpop.permute.xlu0 %8829  ;;  %8567 = vmatmul.mubr.msk.bf16.gmra.mrb[116].mxu0 %vm1051_vm2, %v6809_v35  ;;  %v6767_v3 = vsel %vm2137_vm3, %v13468_v48, %v8817_v51  ;;  %v6766_v12 = vsel %vm2137_vm3, %v13461_v60, %v8816_v1  ;;  %v14690_v35 = vld [vmem:[#allocation49_spill] sm:$0xff] }
 0xce8   : > { %v8825_v20 = vpop.permute.xlu1 %8824  ;;  %v8832_v63 = vunpack.i.h.bf16 %v8830_v40  ;;  %v8831_v22 = vunpack.i.l.bf16 %v8830_v40 }
 0xce9   : > { %v8827_v18 = vunpack.i.h.bf16 %v8825_v20  ;;  %v8826_v29 = vunpack.i.l.bf16 %v8825_v20 }
 0xcea   : > { %v6785_v5 = vsel %vm6770_vm4, %v6768_v61, %v8831_v22  ;;  %v6786_v46 = vsel %vm6770_vm4, %v6769_v23, %v8832_v63  ;;  %v14694_v22 = vld [vmem:[#allocation54_spill] sm:$0xff] }
 0xceb   : > { %v8840_v17 = vpop.permute.xlu0 %8839  ;;  %v6783_v55 = vsel %vm6770_vm4, %v6766_v12, %v8826_v29  ;;  %v6784_v45 = vsel %vm6770_vm4, %v6767_v3, %v8827_v18  ;;  %v14695_v29 = vld [vmem:[#allocation57_spill] sm:$0xff] }
 0xcec   : > { %v8842_v13 = vunpack.i.h.bf16 %v8840_v17  ;;  %v8841_v21 = vunpack.i.l.bf16 %v8840_v17  ;;  %v8835_v10 = vpop.permute.xlu1 %8834 }
 0xced   : > { %v8837_v6 = vunpack.i.h.bf16 %v8835_v10  ;;  %v8836_v30 = vunpack.i.l.bf16 %v8835_v10 }
 0xcee   : > { %v6802_v47 = vsel %vm6787_vm5, %v6785_v5, %v8841_v21  ;;  %v6803_v48 = vsel %vm6787_vm5, %v6786_v46, %v8842_v13 }
 0xcef   : > { %v6811_v27 = vpack.c.bf16 %v6803_v48, %v6802_v47  ;;  %v6801_v60 = vsel %vm6787_vm5, %v6784_v45, %v8837_v6  ;;  %v6800_v19 = vsel %vm6787_vm5, %v6783_v55, %v8836_v30  ;;  %v14696_v47 = vld [vmem:[#allocation58_spill] sm:$0xff] }
 0xcf0   : > { %v6810_v49 = vpack.c.bf16 %v6801_v60, %v6800_v19  ;;  %v14698_v19 = vld [vmem:[#allocation60_spill] sm:$0xff] }
 0xcf2   : > { %8570 = vmatprep.mubr.msk.bf16.mxu0 %vm1051_vm2, %v6810_v49 }
 0xcf3   : > { %8571 = vmatmul.mubr.msk.bf16.gmra.mrb[120].mxu0 %vm1051_vm2, %v6811_v27  ;;  %v14697_v27 = vld [vmem:[#allocation62_spill] sm:$0xff] }
 0xd6a   : > { %v8560_v59 = vpop.f32.mrb[108].mxu0 }
 0xd6b   : > { %v6892_v58 = vadd.f32 %v8560_v59, %v13608_v56  ;;  %v6883_v7 = vpop.f32.mrb[109].mxu0 }
 0xd6c   : > { %v6884_v15 = vadd.f32 %v13608_v56, %v6883_v7  ;;  %v8561_v54 = vpop.f32.mrb[110].mxu0 }
 0xd6d   : > { %v6895_v14 = vadd.f32 %v8561_v54, %v13608_v56  ;;  %v6886_v11 = vpop.f32.mrb[111].mxu0  ;;  %v6948_v36 = vadd.f32 %v6892_v58, %v14688_v4 }
 0xd6e   : > { %v6887_v31 = vadd.f32 %v13608_v56, %v6886_v11  ;;  %v6946_v43 = vadd.f32 %v6884_v15, %v14690_v35 }
 0xd6f   : > { %v6949_v44 = vadd.f32 %v6895_v14, %v14689_v24  ;;  %v14700_v14 = vld [vmem:[#allocation64_spill] sm:$0xff] }
 0xd70   : > { %v6947_v34 = vadd.f32 %v6887_v31, %v14691_v28  ;;  %v14701_v31 = vld [vmem:[#allocation67_spill] sm:$0xff] }
 0xd71   : > { %v6969_v53 = vpack.c.bf16 %v6949_v44, %v6948_v36  ;;  %v14702_v36 = vld [vmem:[#allocation66_spill] sm:$0xff]  ;;  %v14703_v44 = vld [vmem:[#allocation69_spill] sm:$0xff] }
 0xd72   : > { %v6968_v41 = vpack.c.bf16 %v6947_v34, %v6946_v43  ;;  %v8564_v38 = vpop.f32.mrb[112].mxu0 }
 0xd73   : > { %v6908_v32 = vadd.f32 %v8564_v38, %v13608_v56  ;;  %v6899_v42 = vpop.f32.mrb[113].mxu0  ;;  %v7005_v3 = vsel %vm1051_vm2, %v6969_v53, 0  ;;  %v6980_v38 = vpop.permute.xlu0 %6979 }
 0xd74   : > { %v6900_v26 = vadd.f32 %v13608_v56, %v6899_v42  ;;  %v8565_v40 = vpop.f32.mrb[114].mxu0  ;;  %v7002_v51 = vsel %vm1051_vm2, %v6968_v41, 0  ;;  %v6990_v41 = vpop.trf.xlu1 }
 0xd75   : > { %v6911_v1 = vadd.f32 %v8565_v40, %v13608_v56  ;;  %v6902_v20 = vpop.f32.mrb[115].mxu0  ;;  %8575 = vmatpush3.bf16.xpose.msra.mxu1 %v7002_v51  ;;  %v6952_v52 = vadd.f32 %v6908_v32, %v14692_v8 }
 0xd76   : > { %v6903_v25 = vadd.f32 %v13608_v56, %v6902_v20  ;;  %8576 = vmatprep.subr.bf16.mxu1 %v9552_v9  ;;  %v6950_v18 = vadd.f32 %v6900_v26, %v14694_v22 }
 0xd77   : > { %v6953_v63 = vadd.f32 %v6911_v1, %v14693_v2 }
 0xd78   : > { %v6951_v23 = vadd.f32 %v6903_v25, %v14695_v29 }
 0xd79   : > { %v6971_v61 = vpack.c.bf16 %v6953_v63, %v6952_v52 }
 0xd7a   : > { %v6970_v17 = vpack.c.bf16 %v6951_v23, %v6950_v18 }
 0xd7b   : > { %v7011_v13 = vsel %vm1051_vm2, %v6971_v61, 0 }
 0xd7c   : > { %v7008_v12 = vsel %vm1051_vm2, %v6970_v17, 0 }
 0xd7d   : > { %8577 = vmatpush3.bf16.xpose.msra.mxu1 %v7005_v3 }
 0xd7e   : > { %8578 = vmatprep.subr.bf16.mxu1 %v9552_v9 }
 0xd85   : > { %8579 = vmatpush3.bf16.xpose.msra.mxu1 %v7008_v12 }
 0xd86   : > { %8580 = vmatprep.subr.bf16.mxu1 %v9552_v9 }
 0xd8d   : > { %8581 = vmatpush3.bf16.xpose.msra.mxu1 %v7011_v13 }
 0xd8e   : > { %8582 = vmatprep.subr.bf16.mxu1 %v9552_v9 }
 0xdba   : > { %v8568_v21 = vpop.f32.mrb[116].mxu0 }
 0xdbb   : > { %v6924_v10 = vadd.f32 %v8568_v21, %v13608_v56  ;;  %v6915_v5 = vpop.f32.mrb[117].mxu0 }
 0xdbc   : > { %v6916_v46 = vadd.f32 %v13608_v56, %v6915_v5  ;;  %v8569_v6 = vpop.f32.mrb[118].mxu0 }
 0xdbd   : > { %v6927_v30 = vadd.f32 %v8569_v6, %v13608_v56  ;;  %v6918_v55 = vpop.f32.mrb[119].mxu0  ;;  %v6956_v48 = vadd.f32 %v6924_v10, %v14696_v47 }
 0xdbe   : > { %v6919_v45 = vadd.f32 %v13608_v56, %v6918_v55  ;;  %v6954_v49 = vadd.f32 %v6916_v46, %v14698_v19 }
 0xdbf   : > { %v6957_v60 = vadd.f32 %v6927_v30, %v14697_v27 }
 0xdc0   : > { %v6955_v57 = vadd.f32 %v6919_v45, %v14699_v33 }
 0xdc1   : > { %v6973_v0 = vpack.c.bf16 %v6957_v60, %v6956_v48 }
 0xdc2   : > { %v6972_v39 = vpack.c.bf16 %v6955_v57, %v6954_v49 }
 0xdc3   : > { %v7017_v43 = vsel %vm1051_vm2, %v6973_v0, 0 }
 0xdc4   : > { %v7014_v16 = vsel %vm1051_vm2, %v6972_v39, 0 }
 0xdc5   : > { %8583 = vmatpush3.bf16.xpose.msra.mxu1 %v7014_v16 }
 0xdc6   : > { %v8572_v50 = vpop.f32.mrb[120].mxu0  ;;  %8584 = vmatprep.subr.bf16.mxu1 %v9552_v9 }
 0xdc7   : > { %v6940_v62 = vadd.f32 %v8572_v50, %v13608_v56  ;;  %v6931_v37 = vpop.f32.mrb[121].mxu0 }
 0xdc8   : > { %v6932_v59 = vadd.f32 %v13608_v56, %v6931_v37  ;;  %v8573_v58 = vpop.f32.mrb[122].mxu0 }
 0xdc9   : > { %v6943_v7 = vadd.f32 %v8573_v58, %v13608_v56  ;;  %v6934_v15 = vpop.f32.mrb[123].mxu0  ;;  %v6960_v11 = vadd.f32 %v6940_v62, %v14700_v14 }
 0xdca   : > { %v6935_v54 = vadd.f32 %v13608_v56, %v6934_v15  ;;  %v6958_v24 = vadd.f32 %v6932_v59, %v14702_v36 }
 0xdcb   : > { %v6961_v4 = vadd.f32 %v6943_v7, %v14701_v31 }
 0xdcc   : > { %v6959_v35 = vadd.f32 %v6935_v54, %v14703_v44 }
 0xdcd   : > { %v6975_v28 = vpack.c.bf16 %v6961_v4, %v6960_v11  ;;  %8585 = vmatpush3.bf16.xpose.msra.mxu1 %v7017_v43 }
 0xdce   : > { %v6974_v34 = vpack.c.bf16 %v6959_v35, %v6958_v24  ;;  %8586 = vmatprep.subr.bf16.mxu1 %v9552_v9 }
 0xdcf   : > { %v7023_v53 = vsel %vm1051_vm2, %v6975_v28, 0 }
 0xdd0   : > { %v7020_v56 = vsel %vm1051_vm2, %v6974_v34, 0 }
 0xdd5   : > { %8587 = vmatpush3.bf16.xpose.msra.mxu1 %v7020_v56 }
 0xdd6   : > { %8588 = vmatprep.subr.bf16.mxu1 %v9552_v9 }
 0xddd   : > { %8589 = vmatpush3.bf16.xpose.msra.mxu1 %v7023_v53 }
 0xde4   : > { %8591 = vmatmul.mubr.msk.bf16.vlgmr.msra.gmra.mrb[116].mxu1 %vm1051_vm2, %v6990_v41 }
 0xeb7   : > { %v7059_v32 = vpop.f32.mrb[116].mxu1 }
 0xeb8   : > { %v7060_v42 = vadd.f32 %v7059_v32, %v6980_v38  ;;  %v8592_v26 = vpop.f32.mrb[117].mxu1 }
 0xeb9   : > { %v7062_v9 = vpop.f32.mrb[118].mxu1 }
 0xeba   : > { %7065 = vst [vmem:[%s514_s17] sm:$0xf] %v7060_v42  ;;  %v8593_v40 = vpop.f32.mrb[119].mxu1 }
 0xebb PF: > { %s24_s29 = sadd.s32 1, %s9543_s29   ;;  %s14704_s25 = smov %s9535_s27 }
 0xebc   : > { %p21_p4 = scmp.ge.s32.totalorder %s24_s29, 6   ;;  %s14705_s26 = smov %s9539_s28 }
 0xebd   : > { %s14706_s27 = smov %s14709_s14  ;;  %s14707_s28 = smov %s14713_s15 }
 0xebe   :  { %23 = sbr.rel (!%p21_p4) target bundleno = 6 (0x6), region = 114 }
 0xec5   :  { %7093 = vsyncpa [#allocation3], 1 }
 0xec6   :  { %7095 = vsyncpa [#allocation3 + $0x1], 1 }

</bundles_post_ra>
